<compile_context>
chip_gen: v5e
topology: v5e:2x2
jax: 0.10.0
libtpu: 0.0.40
codegen_flags: <defaults>
</compile_context>

<pallas_src>
import functools

import jax
import jax.numpy as jnp
from jax.experimental import pallas as pl
from jax.experimental.pallas import tpu as pltpu


# ----------------------- in-kernel soft-skeleton math ------------------------
def _make_shifter(h, w):
    """Build shift(x, delta, axis) -> x[clamp(i + delta, 0, n-1)] for (h, w).

    Edge clamping is equivalent to max_pool2d's implicit -inf padding (and to
    +inf padding for the min used by soft_erode), because the clamped duplicate
    of the centre element never changes a min/max over the window.
    """
    if (h % 8 == 0) and (w % 128 == 0):
        # Tile-aligned: XLU roll + boundary masks hoisted once and reused by
        # every shift of both skeletons.
        row = jax.lax.broadcasted_iota(jnp.int32, (h, w), 0)
        col = jax.lax.broadcasted_iota(jnp.int32, (h, w), 1)
        edge_mask = {
            (0, 1): row == h - 1, (0, -1): row == 0,
            (1, 1): col == w - 1, (1, -1): col == 0,
        }

        def shift(x, delta, axis):
            n = x.shape[axis]
            rolled = pltpu.roll(x, shift=(-delta) % n, axis=axis)
            return jnp.where(edge_mask[(axis, delta)], x, rolled)

        return shift

    # Sub-tile spatial dims (e.g. 16x16 test): static slice + edge row/column.
    def shift(x, delta, axis):
        n = x.shape[axis]
        if delta > 0:
            body = jax.lax.slice_in_dim(x, 1, n, axis=axis)
            edge = jax.lax.slice_in_dim(x, n - 1, n, axis=axis)
            return jnp.concatenate([body, edge], axis=axis)
        body = jax.lax.slice_in_dim(x, 0, n - 1, axis=axis)
        edge = jax.lax.slice_in_dim(x, 0, 1, axis=axis)
        return jnp.concatenate([edge, body], axis=axis)

    return shift


def _soft_erode(x, shift):
    # min(-maxpool(-x,(3,1),pad(1,0)), -maxpool(-x,(1,3),pad(0,1)))
    # == min over the plus-shaped 5-neighbourhood.
    vmin = jnp.minimum(shift(x, 1, 0), shift(x, -1, 0))
    hmin = jnp.minimum(shift(x, 1, 1), shift(x, -1, 1))
    return jnp.minimum(x, jnp.minimum(vmin, hmin))


def _soft_dilate(x, shift):
    # maxpool(x,(3,3),stride 1,pad(1,1)), separated into H-max then W-max.
    y = jnp.maximum(x, jnp.maximum(shift(x, 1, 0), shift(x, -1, 0)))
    return jnp.maximum(y, jnp.maximum(shift(y, 1, 1), shift(y, -1, 1)))


def _soft_skel(x, iters, shift):
    # Erode-chain reuse: the erode computed inside soft_open(img) at step j is
    # exactly the `img = soft_erode(img)` needed at step j+1.  Bit-identical to
    # the reference loop, but iters+1 erodes instead of 2*iters+1.
    e = _soft_erode(x, shift)
    skel = jax.nn.relu(x - _soft_dilate(e, shift))
    for _ in range(iters):
        img = e
        e = _soft_erode(img, shift)
        delta = jax.nn.relu(img - _soft_dilate(e, shift))
        skel = skel + jax.nn.relu(delta - skel * delta)
    return skel


# ---------------------------------- kernel -----------------------------------
def _make_cldice_kernel(iters, tb, h, w):
    def kernel(yp_ref, out_ref):
        shift = _make_shifter(h, w)
        acc = [jnp.zeros((w,), jnp.float32) for _ in range(4)]
        for t in range(tb):                       # unrolled over block's images
            yp = yp_ref[t].astype(jnp.float32)    # cast in-kernel, not wrapper
            yt = jax.nn.sigmoid(yp)               # forward: y_true := sigmoid(y_pred)
            skel_pred = _soft_skel(yp, iters, shift)
            skel_true = _soft_skel(yt, iters, shift)
            acc[0] = acc[0] + jnp.sum(skel_pred * yt, axis=0)   # tprec num
            acc[1] = acc[1] + jnp.sum(skel_pred, axis=0)        # tprec den
            acc[2] = acc[2] + jnp.sum(skel_true * yp, axis=0)   # tsens num
            acc[3] = acc[3] + jnp.sum(skel_true, axis=0)        # tsens den
        out_ref[0, 0, :] = acc[0]
        out_ref[0, 1, :] = acc[1]
        out_ref[0, 2, :] = acc[2]
        out_ref[0, 3, :] = acc[3]

    return kernel


def soft_cldice(y_pred, y_true=None, iter_=3, smooth=1.0, images_per_block=4):
    """clDice loss forward.  `y_true` is ignored (the PyTorch forward overwrites
    it with sigmoid(y_pred))."""
    del y_true
    n, c, h, w = y_pred.shape
    b = n * c
    x = y_pred.reshape(b, h, w)        # keep native dtype in HBM

    tb = next(t for t in (images_per_block, 4, 2, 1) if b % t == 0)
    nb = b // tb
    # TODO(synk): for large H*W (>= ~1024^2), tile H into row strips with a
    # 2*(iter_+1)-row halo and set vmem_limit_bytes so the per-step working set
    # stays inside v7x's 64 MiB VMEM; whole-image blocks are fine at small H*W.

    partial = pl.pallas_call(
        _make_cldice_kernel(iter_, tb, h, w),
        out_shape=jax.ShapeDtypeStruct((nb, 4, w), jnp.float32),
        grid_spec=pltpu.PrefetchScalarGridSpec(
            num_scalar_prefetch=0,
            grid=(nb,),
            in_specs=[pl.BlockSpec((tb, h, w), lambda i: (i, 0, 0))],
            out_specs=pl.BlockSpec((1, 4, w), lambda i: (i, 0, 0)),
        ),
        compiler_params=pltpu.CompilerParams(
            dimension_semantics=("parallel",)),
    )(x)

    s = jnp.sum(partial, axis=(0, 2))          # (4,) global sums
    smooth = jnp.float32(smooth)
    tprec = (s[0] + smooth) / (s[1] + smooth)
    tsens = (s[2] + smooth) / (s[3] + smooth)
    return 1.0 - 2.0 * (tprec * tsens) / (tprec + tsens)


# ------------------------------- pure-JAX ref ---------------------------------
# Independent reference: original (non-restructured) soft_skel with +/-inf
# padded shifts, mirroring the clDice repo / PyTorch maxpool semantics.
def _ref_shift(x, s, axis, fill):
    n = x.shape[axis]
    pad_shape = list(x.shape)
    pad_shape[axis] = abs(s)
    pad = jnp.full(pad_shape, fill, dtype=x.dtype)
    if s > 0:
        body = jax.lax.slice_in_dim(x, s, n, axis=axis)
        return jnp.concatenate([body, pad], axis=axis)
    body = jax.lax.slice_in_dim(x, 0, n + s, axis=axis)
    return jnp.concatenate([pad, body], axis=axis)


def _ref_min3(x, axis):
    inf = jnp.array(jnp.inf, x.dtype)
    return jnp.minimum(jnp.minimum(_ref_shift(x, -1, axis, inf), x),
                       _ref_shift(x, 1, axis, inf))


def _ref_max3(x, axis):
    ninf = jnp.array(-jnp.inf, x.dtype)
    return jnp.maximum(jnp.maximum(_ref_shift(x, -1, axis, ninf), x),
                       _ref_shift(x, 1, axis, ninf))


def _ref_soft_erode(x):
    return jnp.minimum(_ref_min3(x, 0), _ref_min3(x, 1))


def _ref_soft_dilate(x):
    return _ref_max3(_ref_max3(x, 0), 1)


def _ref_soft_open(x):
    return _ref_soft_dilate(_ref_soft_erode(x))


def _ref_soft_skel(x, iters):
    img = x
    skel = jax.nn.relu(img - _ref_soft_open(img))
    for _ in range(iters):
        img = _ref_soft_erode(img)
        delta = jax.nn.relu(img - _ref_soft_open(img))
        skel = skel + jax.nn.relu(delta - skel * delta)
    return skel


def _ref_soft_cldice(y_pred, iter_=3, smooth=1.0):
    yp = y_pred.astype(jnp.float32)
    yt = jax.nn.sigmoid(yp)
    xp = yp.reshape(-1, *yp.shape[-2:])
    xt = yt.reshape(-1, *yt.shape[-2:])
    sp = jax.vmap(functools.partial(_ref_soft_skel, iters=iter_))(xp)
    st = jax.vmap(functools.partial(_ref_soft_skel, iters=iter_))(xt)
    tprec = (jnp.sum(sp * xt) + smooth) / (jnp.sum(sp) + smooth)
    tsens = (jnp.sum(st * xp) + smooth) / (jnp.sum(st) + smooth)
    return 1.0 - 2.0 * (tprec * tsens) / (tprec + tsens)


if __name__ == "__main__":
    key = jax.random.PRNGKey(0)
    k1, k2 = jax.random.split(key)
    y_pred = jax.random.normal(k1, (2, 4, 16, 16), dtype=jnp.float32)
    # y_true is accepted for API parity but unused by the forward pass.
    y_true = (jax.random.uniform(k2, (2, 4, 16, 16)) > 0.5).astype(jnp.float32)

    loss = soft_cldice(y_pred, y_true, iter_=3, smooth=1.0)
    loss = jax.block_until_ready(loss)

    ref = _ref_soft_cldice(y_pred, iter_=3, smooth=1.0)
    assert jnp.allclose(loss, ref, rtol=1e-5, atol=1e-5), (loss, ref)
    print("KERNEL_OK")
</pallas_src>

<mosaic_0001>
module attributes {stable_mosaic.version = 11 : i64} {
  func.func @kernel(%arg0: i32, %arg1: memref<4x16x16xf32, #tpu.memory_space<vmem>>, %arg2: memref<1x4x16xf32, #tpu.memory_space<vmem>>) attributes {dimension_semantics = [#tpu.dimension_semantics<parallel>], iteration_bounds = array<i64: 2>, scalar_prefetch = 0 : i64, scratch_operands = 0 : i64, tpu.core_type = #tpu.core_type<tc>, window_params = [{transform_indices = @transform_0, window_bounds = array<i64: 4, 16, 16>}, {transform_indices = @transform_1, window_bounds = array<i64: 1, 4, 16>}]} {
    %cst = arith.constant 0.000000e+00 : f32
    %0 = vector.broadcast %cst : f32 to vector<16xf32>
    %cst_0 = arith.constant 0.000000e+00 : f32
    %1 = vector.broadcast %cst_0 : f32 to vector<16xf32>
    %cst_1 = arith.constant 0.000000e+00 : f32
    %2 = vector.broadcast %cst_1 : f32 to vector<16xf32>
    %cst_2 = arith.constant 0.000000e+00 : f32
    %3 = vector.broadcast %cst_2 : f32 to vector<16xf32>
    %c0 = arith.constant 0 : index
    %c0_3 = arith.constant 0 : index
    %c0_4 = arith.constant 0 : index
    %4 = vector.load %arg1[%c0, %c0_3, %c0_4] : memref<4x16x16xf32, #tpu.memory_space<vmem>>, vector<1x16x16xf32>
    %5 = vector.shape_cast %4 : vector<1x16x16xf32> to vector<16x16xf32>
    %6 = arith.negf %5 : vector<16x16xf32>
    %7 = math.exp %6 : vector<16x16xf32>
    %cst_5 = arith.constant 1.000000e+00 : f32
    %8 = vector.broadcast %cst_5 : f32 to vector<16x16xf32>
    %9 = arith.addf %8, %7 : vector<16x16xf32>
    %10 = arith.divf %8, %9 : vector<16x16xf32>
    %11 = vector.extract_strided_slice %5 {offsets = [1, 0], sizes = [15, 16], strides = [1, 1]} : vector<16x16xf32> to vector<15x16xf32>
    %12 = vector.extract_strided_slice %5 {offsets = [15, 0], sizes = [1, 16], strides = [1, 1]} : vector<16x16xf32> to vector<1x16xf32>
    %13 = tpu.concatenate %11, %12 in 0 : vector<15x16xf32>, vector<1x16xf32> -> vector<16x16xf32>
    %14 = vector.extract_strided_slice %5 {offsets = [0, 0], sizes = [15, 16], strides = [1, 1]} : vector<16x16xf32> to vector<15x16xf32>
    %15 = vector.extract_strided_slice %5 {offsets = [0, 0], sizes = [1, 16], strides = [1, 1]} : vector<16x16xf32> to vector<1x16xf32>
    %16 = tpu.concatenate %15, %14 in 0 : vector<1x16xf32>, vector<15x16xf32> -> vector<16x16xf32>
    %17 = arith.minimumf %13, %16 : vector<16x16xf32>
    %18 = vector.extract_strided_slice %5 {offsets = [0, 1], sizes = [16, 15], strides = [1, 1]} : vector<16x16xf32> to vector<16x15xf32>
    %19 = vector.extract_strided_slice %5 {offsets = [0, 15], sizes = [16, 1], strides = [1, 1]} : vector<16x16xf32> to vector<16x1xf32>
    %20 = tpu.concatenate %18, %19 in 1 : vector<16x15xf32>, vector<16x1xf32> -> vector<16x16xf32>
    %21 = vector.extract_strided_slice %5 {offsets = [0, 0], sizes = [16, 15], strides = [1, 1]} : vector<16x16xf32> to vector<16x15xf32>
    %22 = vector.extract_strided_slice %5 {offsets = [0, 0], sizes = [16, 1], strides = [1, 1]} : vector<16x16xf32> to vector<16x1xf32>
    %23 = tpu.concatenate %22, %21 in 1 : vector<16x1xf32>, vector<16x15xf32> -> vector<16x16xf32>
    %24 = arith.minimumf %20, %23 : vector<16x16xf32>
    %25 = arith.minimumf %17, %24 : vector<16x16xf32>
    %26 = arith.minimumf %5, %25 : vector<16x16xf32>
    %27 = vector.extract_strided_slice %26 {offsets = [1, 0], sizes = [15, 16], strides = [1, 1]} : vector<16x16xf32> to vector<15x16xf32>
    %28 = vector.extract_strided_slice %26 {offsets = [15, 0], sizes = [1, 16], strides = [1, 1]} : vector<16x16xf32> to vector<1x16xf32>
    %29 = tpu.concatenate %27, %28 in 0 : vector<15x16xf32>, vector<1x16xf32> -> vector<16x16xf32>
    %30 = vector.extract_strided_slice %26 {offsets = [0, 0], sizes = [15, 16], strides = [1, 1]} : vector<16x16xf32> to vector<15x16xf32>
    %31 = vector.extract_strided_slice %26 {offsets = [0, 0], sizes = [1, 16], strides = [1, 1]} : vector<16x16xf32> to vector<1x16xf32>
    %32 = tpu.concatenate %31, %30 in 0 : vector<1x16xf32>, vector<15x16xf32> -> vector<16x16xf32>
    %33 = arith.maximumf %29, %32 : vector<16x16xf32>
    %34 = arith.maximumf %26, %33 : vector<16x16xf32>
    %35 = vector.extract_strided_slice %34 {offsets = [0, 1], sizes = [16, 15], strides = [1, 1]} : vector<16x16xf32> to vector<16x15xf32>
    %36 = vector.extract_strided_slice %34 {offsets = [0, 15], sizes = [16, 1], strides = [1, 1]} : vector<16x16xf32> to vector<16x1xf32>
    %37 = tpu.concatenate %35, %36 in 1 : vector<16x15xf32>, vector<16x1xf32> -> vector<16x16xf32>
    %38 = vector.extract_strided_slice %34 {offsets = [0, 0], sizes = [16, 15], strides = [1, 1]} : vector<16x16xf32> to vector<16x15xf32>
    %39 = vector.extract_strided_slice %34 {offsets = [0, 0], sizes = [16, 1], strides = [1, 1]} : vector<16x16xf32> to vector<16x1xf32>
    %40 = tpu.concatenate %39, %38 in 1 : vector<16x1xf32>, vector<16x15xf32> -> vector<16x16xf32>
    %41 = arith.maximumf %37, %40 : vector<16x16xf32>
    %42 = arith.maximumf %34, %41 : vector<16x16xf32>
    %43 = arith.subf %5, %42 : vector<16x16xf32>
    %cst_6 = arith.constant 0.000000e+00 : f32
    %44 = vector.broadcast %cst_6 : f32 to vector<16x16xf32>
    %45 = arith.maximumf %43, %44 : vector<16x16xf32>
    %46 = vector.extract_strided_slice %26 {offsets = [1, 0], sizes = [15, 16], strides = [1, 1]} : vector<16x16xf32> to vector<15x16xf32>
    %47 = vector.extract_strided_slice %26 {offsets = [15, 0], sizes = [1, 16], strides = [1, 1]} : vector<16x16xf32> to vector<1x16xf32>
    %48 = tpu.concatenate %46, %47 in 0 : vector<15x16xf32>, vector<1x16xf32> -> vector<16x16xf32>
    %49 = vector.extract_strided_slice %26 {offsets = [0, 0], sizes = [15, 16], strides = [1, 1]} : vector<16x16xf32> to vector<15x16xf32>
    %50 = vector.extract_strided_slice %26 {offsets = [0, 0], sizes = [1, 16], strides = [1, 1]} : vector<16x16xf32> to vector<1x16xf32>
    %51 = tpu.concatenate %50, %49 in 0 : vector<1x16xf32>, vector<15x16xf32> -> vector<16x16xf32>
    %52 = arith.minimumf %48, %51 : vector<16x16xf32>
    %53 = vector.extract_strided_slice %26 {offsets = [0, 1], sizes = [16, 15], strides = [1, 1]} : vector<16x16xf32> to vector<16x15xf32>
    %54 = vector.extract_strided_slice %26 {offsets = [0, 15], sizes = [16, 1], strides = [1, 1]} : vector<16x16xf32> to vector<16x1xf32>
    %55 = tpu.concatenate %53, %54 in 1 : vector<16x15xf32>, vector<16x1xf32> -> vector<16x16xf32>
    %56 = vector.extract_strided_slice %26 {offsets = [0, 0], sizes = [16, 15], strides = [1, 1]} : vector<16x16xf32> to vector<16x15xf32>
    %57 = vector.extract_strided_slice %26 {offsets = [0, 0], sizes = [16, 1], strides = [1, 1]} : vector<16x16xf32> to vector<16x1xf32>
    %58 = tpu.concatenate %57, %56 in 1 : vector<16x1xf32>, vector<16x15xf32> -> vector<16x16xf32>
    %59 = arith.minimumf %55, %58 : vector<16x16xf32>
    %60 = arith.minimumf %52, %59 : vector<16x16xf32>
    %61 = arith.minimumf %26, %60 : vector<16x16xf32>
    %62 = vector.extract_strided_slice %61 {offsets = [1, 0], sizes = [15, 16], strides = [1, 1]} : vector<16x16xf32> to vector<15x16xf32>
    %63 = vector.extract_strided_slice %61 {offsets = [15, 0], sizes = [1, 16], strides = [1, 1]} : vector<16x16xf32> to vector<1x16xf32>
    %64 = tpu.concatenate %62, %63 in 0 : vector<15x16xf32>, vector<1x16xf32> -> vector<16x16xf32>
    %65 = vector.extract_strided_slice %61 {offsets = [0, 0], sizes = [15, 16], strides = [1, 1]} : vector<16x16xf32> to vector<15x16xf32>
    %66 = vector.extract_strided_slice %61 {offsets = [0, 0], sizes = [1, 16], strides = [1, 1]} : vector<16x16xf32> to vector<1x16xf32>
    %67 = tpu.concatenate %66, %65 in 0 : vector<1x16xf32>, vector<15x16xf32> -> vector<16x16xf32>
    %68 = arith.maximumf %64, %67 : vector<16x16xf32>
    %69 = arith.maximumf %61, %68 : vector<16x16xf32>
    %70 = vector.extract_strided_slice %69 {offsets = [0, 1], sizes = [16, 15], strides = [1, 1]} : vector<16x16xf32> to vector<16x15xf32>
    %71 = vector.extract_strided_slice %69 {offsets = [0, 15], sizes = [16, 1], strides = [1, 1]} : vector<16x16xf32> to vector<16x1xf32>
    %72 = tpu.concatenate %70, %71 in 1 : vector<16x15xf32>, vector<16x1xf32> -> vector<16x16xf32>
    %73 = vector.extract_strided_slice %69 {offsets = [0, 0], sizes = [16, 15], strides = [1, 1]} : vector<16x16xf32> to vector<16x15xf32>
    %74 = vector.extract_strided_slice %69 {offsets = [0, 0], sizes = [16, 1], strides = [1, 1]} : vector<16x16xf32> to vector<16x1xf32>
    %75 = tpu.concatenate %74, %73 in 1 : vector<16x1xf32>, vector<16x15xf32> -> vector<16x16xf32>
    %76 = arith.maximumf %72, %75 : vector<16x16xf32>
    %77 = arith.maximumf %69, %76 : vector<16x16xf32>
    %78 = arith.subf %26, %77 : vector<16x16xf32>
    %cst_7 = arith.constant 0.000000e+00 : f32
    %79 = vector.broadcast %cst_7 : f32 to vector<16x16xf32>
    %80 = arith.maximumf %78, %79 : vector<16x16xf32>
    %81 = arith.mulf %45, %80 : vector<16x16xf32>
    %82 = arith.subf %80, %81 : vector<16x16xf32>
    %cst_8 = arith.constant 0.000000e+00 : f32
    %83 = vector.broadcast %cst_8 : f32 to vector<16x16xf32>
    %84 = arith.maximumf %82, %83 : vector<16x16xf32>
    %85 = arith.addf %45, %84 : vector<16x16xf32>
    %86 = vector.extract_strided_slice %61 {offsets = [1, 0], sizes = [15, 16], strides = [1, 1]} : vector<16x16xf32> to vector<15x16xf32>
    %87 = vector.extract_strided_slice %61 {offsets = [15, 0], sizes = [1, 16], strides = [1, 1]} : vector<16x16xf32> to vector<1x16xf32>
    %88 = tpu.concatenate %86, %87 in 0 : vector<15x16xf32>, vector<1x16xf32> -> vector<16x16xf32>
    %89 = vector.extract_strided_slice %61 {offsets = [0, 0], sizes = [15, 16], strides = [1, 1]} : vector<16x16xf32> to vector<15x16xf32>
    %90 = vector.extract_strided_slice %61 {offsets = [0, 0], sizes = [1, 16], strides = [1, 1]} : vector<16x16xf32> to vector<1x16xf32>
    %91 = tpu.concatenate %90, %89 in 0 : vector<1x16xf32>, vector<15x16xf32> -> vector<16x16xf32>
    %92 = arith.minimumf %88, %91 : vector<16x16xf32>
    %93 = vector.extract_strided_slice %61 {offsets = [0, 1], sizes = [16, 15], strides = [1, 1]} : vector<16x16xf32> to vector<16x15xf32>
    %94 = vector.extract_strided_slice %61 {offsets = [0, 15], sizes = [16, 1], strides = [1, 1]} : vector<16x16xf32> to vector<16x1xf32>
    %95 = tpu.concatenate %93, %94 in 1 : vector<16x15xf32>, vector<16x1xf32> -> vector<16x16xf32>
    %96 = vector.extract_strided_slice %61 {offsets = [0, 0], sizes = [16, 15], strides = [1, 1]} : vector<16x16xf32> to vector<16x15xf32>
    %97 = vector.extract_strided_slice %61 {offsets = [0, 0], sizes = [16, 1], strides = [1, 1]} : vector<16x16xf32> to vector<16x1xf32>
    %98 = tpu.concatenate %97, %96 in 1 : vector<16x1xf32>, vector<16x15xf32> -> vector<16x16xf32>
    %99 = arith.minimumf %95, %98 : vector<16x16xf32>
    %100 = arith.minimumf %92, %99 : vector<16x16xf32>
    %101 = arith.minimumf %61, %100 : vector<16x16xf32>
    %102 = vector.extract_strided_slice %101 {offsets = [1, 0], sizes = [15, 16], strides = [1, 1]} : vector<16x16xf32> to vector<15x16xf32>
    %103 = vector.extract_strided_slice %101 {offsets = [15, 0], sizes = [1, 16], strides = [1, 1]} : vector<16x16xf32> to vector<1x16xf32>
    %104 = tpu.concatenate %102, %103 in 0 : vector<15x16xf32>, vector<1x16xf32> -> vector<16x16xf32>
    %105 = vector.extract_strided_slice %101 {offsets = [0, 0], sizes = [15, 16], strides = [1, 1]} : vector<16x16xf32> to vector<15x16xf32>
    %106 = vector.extract_strided_slice %101 {offsets = [0, 0], sizes = [1, 16], strides = [1, 1]} : vector<16x16xf32> to vector<1x16xf32>
    %107 = tpu.concatenate %106, %105 in 0 : vector<1x16xf32>, vector<15x16xf32> -> vector<16x16xf32>
    %108 = arith.maximumf %104, %107 : vector<16x16xf32>
    %109 = arith.maximumf %101, %108 : vector<16x16xf32>
    %110 = vector.extract_strided_slice %109 {offsets = [0, 1], sizes = [16, 15], strides = [1, 1]} : vector<16x16xf32> to vector<16x15xf32>
    %111 = vector.extract_strided_slice %109 {offsets = [0, 15], sizes = [16, 1], strides = [1, 1]} : vector<16x16xf32> to vector<16x1xf32>
    %112 = tpu.concatenate %110, %111 in 1 : vector<16x15xf32>, vector<16x1xf32> -> vector<16x16xf32>
    %113 = vector.extract_strided_slice %109 {offsets = [0, 0], sizes = [16, 15], strides = [1, 1]} : vector<16x16xf32> to vector<16x15xf32>
    %114 = vector.extract_strided_slice %109 {offsets = [0, 0], sizes = [16, 1], strides = [1, 1]} : vector<16x16xf32> to vector<16x1xf32>
    %115 = tpu.concatenate %114, %113 in 1 : vector<16x1xf32>, vector<16x15xf32> -> vector<16x16xf32>
    %116 = arith.maximumf %112, %115 : vector<16x16xf32>
    %117 = arith.maximumf %109, %116 : vector<16x16xf32>
    %118 = arith.subf %61, %117 : vector<16x16xf32>
    %cst_9 = arith.constant 0.000000e+00 : f32
    %119 = vector.broadcast %cst_9 : f32 to vector<16x16xf32>
    %120 = arith.maximumf %118, %119 : vector<16x16xf32>
    %121 = arith.mulf %85, %120 : vector<16x16xf32>
    %122 = arith.subf %120, %121 : vector<16x16xf32>
    %cst_10 = arith.constant 0.000000e+00 : f32
    %123 = vector.broadcast %cst_10 : f32 to vector<16x16xf32>
    %124 = arith.maximumf %122, %123 : vector<16x16xf32>
    %125 = arith.addf %85, %124 : vector<16x16xf32>
    %126 = vector.extract_strided_slice %101 {offsets = [1, 0], sizes = [15, 16], strides = [1, 1]} : vector<16x16xf32> to vector<15x16xf32>
    %127 = vector.extract_strided_slice %101 {offsets = [15, 0], sizes = [1, 16], strides = [1, 1]} : vector<16x16xf32> to vector<1x16xf32>
    %128 = tpu.concatenate %126, %127 in 0 : vector<15x16xf32>, vector<1x16xf32> -> vector<16x16xf32>
    %129 = vector.extract_strided_slice %101 {offsets = [0, 0], sizes = [15, 16], strides = [1, 1]} : vector<16x16xf32> to vector<15x16xf32>
    %130 = vector.extract_strided_slice %101 {offsets = [0, 0], sizes = [1, 16], strides = [1, 1]} : vector<16x16xf32> to vector<1x16xf32>
    %131 = tpu.concatenate %130, %129 in 0 : vector<1x16xf32>, vector<15x16xf32> -> vector<16x16xf32>
    %132 = arith.minimumf %128, %131 : vector<16x16xf32>
    %133 = vector.extract_strided_slice %101 {offsets = [0, 1], sizes = [16, 15], strides = [1, 1]} : vector<16x16xf32> to vector<16x15xf32>
    %134 = vector.extract_strided_slice %101 {offsets = [0, 15], sizes = [16, 1], strides = [1, 1]} : vector<16x16xf32> to vector<16x1xf32>
    %135 = tpu.concatenate %133, %134 in 1 : vector<16x15xf32>, vector<16x1xf32> -> vector<16x16xf32>
    %136 = vector.extract_strided_slice %101 {offsets = [0, 0], sizes = [16, 15], strides = [1, 1]} : vector<16x16xf32> to vector<16x15xf32>
    %137 = vector.extract_strided_slice %101 {offsets = [0, 0], sizes = [16, 1], strides = [1, 1]} : vector<16x16xf32> to vector<16x1xf32>
    %138 = tpu.concatenate %137, %136 in 1 : vector<16x1xf32>, vector<16x15xf32> -> vector<16x16xf32>
    %139 = arith.minimumf %135, %138 : vector<16x16xf32>
    %140 = arith.minimumf %132, %139 : vector<16x16xf32>
    %141 = arith.minimumf %101, %140 : vector<16x16xf32>
    %142 = vector.extract_strided_slice %141 {offsets = [1, 0], sizes = [15, 16], strides = [1, 1]} : vector<16x16xf32> to vector<15x16xf32>
    %143 = vector.extract_strided_slice %141 {offsets = [15, 0], sizes = [1, 16], strides = [1, 1]} : vector<16x16xf32> to vector<1x16xf32>
    %144 = tpu.concatenate %142, %143 in 0 : vector<15x16xf32>, vector<1x16xf32> -> vector<16x16xf32>
    %145 = vector.extract_strided_slice %141 {offsets = [0, 0], sizes = [15, 16], strides = [1, 1]} : vector<16x16xf32> to vector<15x16xf32>
    %146 = vector.extract_strided_slice %141 {offsets = [0, 0], sizes = [1, 16], strides = [1, 1]} : vector<16x16xf32> to vector<1x16xf32>
    %147 = tpu.concatenate %146, %145 in 0 : vector<1x16xf32>, vector<15x16xf32> -> vector<16x16xf32>
    %148 = arith.maximumf %144, %147 : vector<16x16xf32>
    %149 = arith.maximumf %141, %148 : vector<16x16xf32>
    %150 = vector.extract_strided_slice %149 {offsets = [0, 1], sizes = [16, 15], strides = [1, 1]} : vector<16x16xf32> to vector<16x15xf32>
    %151 = vector.extract_strided_slice %149 {offsets = [0, 15], sizes = [16, 1], strides = [1, 1]} : vector<16x16xf32> to vector<16x1xf32>
    %152 = tpu.concatenate %150, %151 in 1 : vector<16x15xf32>, vector<16x1xf32> -> vector<16x16xf32>
    %153 = vector.extract_strided_slice %149 {offsets = [0, 0], sizes = [16, 15], strides = [1, 1]} : vector<16x16xf32> to vector<16x15xf32>
    %154 = vector.extract_strided_slice %149 {offsets = [0, 0], sizes = [16, 1], strides = [1, 1]} : vector<16x16xf32> to vector<16x1xf32>
    %155 = tpu.concatenate %154, %153 in 1 : vector<16x1xf32>, vector<16x15xf32> -> vector<16x16xf32>
    %156 = arith.maximumf %152, %155 : vector<16x16xf32>
    %157 = arith.maximumf %149, %156 : vector<16x16xf32>
    %158 = arith.subf %101, %157 : vector<16x16xf32>
    %cst_11 = arith.constant 0.000000e+00 : f32
    %159 = vector.broadcast %cst_11 : f32 to vector<16x16xf32>
    %160 = arith.maximumf %158, %159 : vector<16x16xf32>
    %161 = arith.mulf %125, %160 : vector<16x16xf32>
    %162 = arith.subf %160, %161 : vector<16x16xf32>
    %cst_12 = arith.constant 0.000000e+00 : f32
    %163 = vector.broadcast %cst_12 : f32 to vector<16x16xf32>
    %164 = arith.maximumf %162, %163 : vector<16x16xf32>
    %165 = arith.addf %125, %164 : vector<16x16xf32>
    %166 = vector.extract_strided_slice %10 {offsets = [1, 0], sizes = [15, 16], strides = [1, 1]} : vector<16x16xf32> to vector<15x16xf32>
    %167 = vector.extract_strided_slice %10 {offsets = [15, 0], sizes = [1, 16], strides = [1, 1]} : vector<16x16xf32> to vector<1x16xf32>
    %168 = tpu.concatenate %166, %167 in 0 : vector<15x16xf32>, vector<1x16xf32> -> vector<16x16xf32>
    %169 = vector.extract_strided_slice %10 {offsets = [0, 0], sizes = [15, 16], strides = [1, 1]} : vector<16x16xf32> to vector<15x16xf32>
    %170 = vector.extract_strided_slice %10 {offsets = [0, 0], sizes = [1, 16], strides = [1, 1]} : vector<16x16xf32> to vector<1x16xf32>
    %171 = tpu.concatenate %170, %169 in 0 : vector<1x16xf32>, vector<15x16xf32> -> vector<16x16xf32>
    %172 = arith.minimumf %168, %171 : vector<16x16xf32>
    %173 = vector.extract_strided_slice %10 {offsets = [0, 1], sizes = [16, 15], strides = [1, 1]} : vector<16x16xf32> to vector<16x15xf32>
    %174 = vector.extract_strided_slice %10 {offsets = [0, 15], sizes = [16, 1], strides = [1, 1]} : vector<16x16xf32> to vector<16x1xf32>
    %175 = tpu.concatenate %173, %174 in 1 : vector<16x15xf32>, vector<16x1xf32> -> vector<16x16xf32>
    %176 = vector.extract_strided_slice %10 {offsets = [0, 0], sizes = [16, 15], strides = [1, 1]} : vector<16x16xf32> to vector<16x15xf32>
    %177 = vector.extract_strided_slice %10 {offsets = [0, 0], sizes = [16, 1], strides = [1, 1]} : vector<16x16xf32> to vector<16x1xf32>
    %178 = tpu.concatenate %177, %176 in 1 : vector<16x1xf32>, vector<16x15xf32> -> vector<16x16xf32>
    %179 = arith.minimumf %175, %178 : vector<16x16xf32>
    %180 = arith.minimumf %172, %179 : vector<16x16xf32>
    %181 = arith.minimumf %10, %180 : vector<16x16xf32>
    %182 = vector.extract_strided_slice %181 {offsets = [1, 0], sizes = [15, 16], strides = [1, 1]} : vector<16x16xf32> to vector<15x16xf32>
    %183 = vector.extract_strided_slice %181 {offsets = [15, 0], sizes = [1, 16], strides = [1, 1]} : vector<16x16xf32> to vector<1x16xf32>
    %184 = tpu.concatenate %182, %183 in 0 : vector<15x16xf32>, vector<1x16xf32> -> vector<16x16xf32>
    %185 = vector.extract_strided_slice %181 {offsets = [0, 0], sizes = [15, 16], strides = [1, 1]} : vector<16x16xf32> to vector<15x16xf32>
    %186 = vector.extract_strided_slice %181 {offsets = [0, 0], sizes = [1, 16], strides = [1, 1]} : vector<16x16xf32> to vector<1x16xf32>
    %187 = tpu.concatenate %186, %185 in 0 : vector<1x16xf32>, vector<15x16xf32> -> vector<16x16xf32>
    %188 = arith.maximumf %184, %187 : vector<16x16xf32>
    %189 = arith.maximumf %181, %188 : vector<16x16xf32>
    %190 = vector.extract_strided_slice %189 {offsets = [0, 1], sizes = [16, 15], strides = [1, 1]} : vector<16x16xf32> to vector<16x15xf32>
    %191 = vector.extract_strided_slice %189 {offsets = [0, 15], sizes = [16, 1], strides = [1, 1]} : vector<16x16xf32> to vector<16x1xf32>
    %192 = tpu.concatenate %190, %191 in 1 : vector<16x15xf32>, vector<16x1xf32> -> vector<16x16xf32>
    %193 = vector.extract_strided_slice %189 {offsets = [0, 0], sizes = [16, 15], strides = [1, 1]} : vector<16x16xf32> to vector<16x15xf32>
    %194 = vector.extract_strided_slice %189 {offsets = [0, 0], sizes = [16, 1], strides = [1, 1]} : vector<16x16xf32> to vector<16x1xf32>
    %195 = tpu.concatenate %194, %193 in 1 : vector<16x1xf32>, vector<16x15xf32> -> vector<16x16xf32>
    %196 = arith.maximumf %192, %195 : vector<16x16xf32>
    %197 = arith.maximumf %189, %196 : vector<16x16xf32>
    %198 = arith.subf %10, %197 : vector<16x16xf32>
    %cst_13 = arith.constant 0.000000e+00 : f32
    %199 = vector.broadcast %cst_13 : f32 to vector<16x16xf32>
    %200 = arith.maximumf %198, %199 : vector<16x16xf32>
    %201 = vector.extract_strided_slice %181 {offsets = [1, 0], sizes = [15, 16], strides = [1, 1]} : vector<16x16xf32> to vector<15x16xf32>
    %202 = vector.extract_strided_slice %181 {offsets = [15, 0], sizes = [1, 16], strides = [1, 1]} : vector<16x16xf32> to vector<1x16xf32>
    %203 = tpu.concatenate %201, %202 in 0 : vector<15x16xf32>, vector<1x16xf32> -> vector<16x16xf32>
    %204 = vector.extract_strided_slice %181 {offsets = [0, 0], sizes = [15, 16], strides = [1, 1]} : vector<16x16xf32> to vector<15x16xf32>
    %205 = vector.extract_strided_slice %181 {offsets = [0, 0], sizes = [1, 16], strides = [1, 1]} : vector<16x16xf32> to vector<1x16xf32>
    %206 = tpu.concatenate %205, %204 in 0 : vector<1x16xf32>, vector<15x16xf32> -> vector<16x16xf32>
    %207 = arith.minimumf %203, %206 : vector<16x16xf32>
    %208 = vector.extract_strided_slice %181 {offsets = [0, 1], sizes = [16, 15], strides = [1, 1]} : vector<16x16xf32> to vector<16x15xf32>
    %209 = vector.extract_strided_slice %181 {offsets = [0, 15], sizes = [16, 1], strides = [1, 1]} : vector<16x16xf32> to vector<16x1xf32>
    %210 = tpu.concatenate %208, %209 in 1 : vector<16x15xf32>, vector<16x1xf32> -> vector<16x16xf32>
    %211 = vector.extract_strided_slice %181 {offsets = [0, 0], sizes = [16, 15], strides = [1, 1]} : vector<16x16xf32> to vector<16x15xf32>
    %212 = vector.extract_strided_slice %181 {offsets = [0, 0], sizes = [16, 1], strides = [1, 1]} : vector<16x16xf32> to vector<16x1xf32>
    %213 = tpu.concatenate %212, %211 in 1 : vector<16x1xf32>, vector<16x15xf32> -> vector<16x16xf32>
    %214 = arith.minimumf %210, %213 : vector<16x16xf32>
    %215 = arith.minimumf %207, %214 : vector<16x16xf32>
    %216 = arith.minimumf %181, %215 : vector<16x16xf32>
    %217 = vector.extract_strided_slice %216 {offsets = [1, 0], sizes = [15, 16], strides = [1, 1]} : vector<16x16xf32> to vector<15x16xf32>
    %218 = vector.extract_strided_slice %216 {offsets = [15, 0], sizes = [1, 16], strides = [1, 1]} : vector<16x16xf32> to vector<1x16xf32>
    %219 = tpu.concatenate %217, %218 in 0 : vector<15x16xf32>, vector<1x16xf32> -> vector<16x16xf32>
    %220 = vector.extract_strided_slice %216 {offsets = [0, 0], sizes = [15, 16], strides = [1, 1]} : vector<16x16xf32> to vector<15x16xf32>
    %221 = vector.extract_strided_slice %216 {offsets = [0, 0], sizes = [1, 16], strides = [1, 1]} : vector<16x16xf32> to vector<1x16xf32>
    %222 = tpu.concatenate %221, %220 in 0 : vector<1x16xf32>, vector<15x16xf32> -> vector<16x16xf32>
    %223 = arith.maximumf %219, %222 : vector<16x16xf32>
    %224 = arith.maximumf %216, %223 : vector<16x16xf32>
    %225 = vector.extract_strided_slice %224 {offsets = [0, 1], sizes = [16, 15], strides = [1, 1]} : vector<16x16xf32> to vector<16x15xf32>
    %226 = vector.extract_strided_slice %224 {offsets = [0, 15], sizes = [16, 1], strides = [1, 1]} : vector<16x16xf32> to vector<16x1xf32>
    %227 = tpu.concatenate %225, %226 in 1 : vector<16x15xf32>, vector<16x1xf32> -> vector<16x16xf32>
    %228 = vector.extract_strided_slice %224 {offsets = [0, 0], sizes = [16, 15], strides = [1, 1]} : vector<16x16xf32> to vector<16x15xf32>
    %229 = vector.extract_strided_slice %224 {offsets = [0, 0], sizes = [16, 1], strides = [1, 1]} : vector<16x16xf32> to vector<16x1xf32>
    %230 = tpu.concatenate %229, %228 in 1 : vector<16x1xf32>, vector<16x15xf32> -> vector<16x16xf32>
    %231 = arith.maximumf %227, %230 : vector<16x16xf32>
    %232 = arith.maximumf %224, %231 : vector<16x16xf32>
    %233 = arith.subf %181, %232 : vector<16x16xf32>
    %cst_14 = arith.constant 0.000000e+00 : f32
    %234 = vector.broadcast %cst_14 : f32 to vector<16x16xf32>
    %235 = arith.maximumf %233, %234 : vector<16x16xf32>
    %236 = arith.mulf %200, %235 : vector<16x16xf32>
    %237 = arith.subf %235, %236 : vector<16x16xf32>
    %cst_15 = arith.constant 0.000000e+00 : f32
    %238 = vector.broadcast %cst_15 : f32 to vector<16x16xf32>
    %239 = arith.maximumf %237, %238 : vector<16x16xf32>
    %240 = arith.addf %200, %239 : vector<16x16xf32>
    %241 = vector.extract_strided_slice %216 {offsets = [1, 0], sizes = [15, 16], strides = [1, 1]} : vector<16x16xf32> to vector<15x16xf32>
    %242 = vector.extract_strided_slice %216 {offsets = [15, 0], sizes = [1, 16], strides = [1, 1]} : vector<16x16xf32> to vector<1x16xf32>
    %243 = tpu.concatenate %241, %242 in 0 : vector<15x16xf32>, vector<1x16xf32> -> vector<16x16xf32>
    %244 = vector.extract_strided_slice %216 {offsets = [0, 0], sizes = [15, 16], strides = [1, 1]} : vector<16x16xf32> to vector<15x16xf32>
    %245 = vector.extract_strided_slice %216 {offsets = [0, 0], sizes = [1, 16], strides = [1, 1]} : vector<16x16xf32> to vector<1x16xf32>
    %246 = tpu.concatenate %245, %244 in 0 : vector<1x16xf32>, vector<15x16xf32> -> vector<16x16xf32>
    %247 = arith.minimumf %243, %246 : vector<16x16xf32>
    %248 = vector.extract_strided_slice %216 {offsets = [0, 1], sizes = [16, 15], strides = [1, 1]} : vector<16x16xf32> to vector<16x15xf32>
    %249 = vector.extract_strided_slice %216 {offsets = [0, 15], sizes = [16, 1], strides = [1, 1]} : vector<16x16xf32> to vector<16x1xf32>
    %250 = tpu.concatenate %248, %249 in 1 : vector<16x15xf32>, vector<16x1xf32> -> vector<16x16xf32>
    %251 = vector.extract_strided_slice %216 {offsets = [0, 0], sizes = [16, 15], strides = [1, 1]} : vector<16x16xf32> to vector<16x15xf32>
    %252 = vector.extract_strided_slice %216 {offsets = [0, 0], sizes = [16, 1], strides = [1, 1]} : vector<16x16xf32> to vector<16x1xf32>
    %253 = tpu.concatenate %252, %251 in 1 : vector<16x1xf32>, vector<16x15xf32> -> vector<16x16xf32>
    %254 = arith.minimumf %250, %253 : vector<16x16xf32>
    %255 = arith.minimumf %247, %254 : vector<16x16xf32>
    %256 = arith.minimumf %216, %255 : vector<16x16xf32>
    %257 = vector.extract_strided_slice %256 {offsets = [1, 0], sizes = [15, 16], strides = [1, 1]} : vector<16x16xf32> to vector<15x16xf32>
    %258 = vector.extract_strided_slice %256 {offsets = [15, 0], sizes = [1, 16], strides = [1, 1]} : vector<16x16xf32> to vector<1x16xf32>
    %259 = tpu.concatenate %257, %258 in 0 : vector<15x16xf32>, vector<1x16xf32> -> vector<16x16xf32>
    %260 = vector.extract_strided_slice %256 {offsets = [0, 0], sizes = [15, 16], strides = [1, 1]} : vector<16x16xf32> to vector<15x16xf32>
    %261 = vector.extract_strided_slice %256 {offsets = [0, 0], sizes = [1, 16], strides = [1, 1]} : vector<16x16xf32> to vector<1x16xf32>
    %262 = tpu.concatenate %261, %260 in 0 : vector<1x16xf32>, vector<15x16xf32> -> vector<16x16xf32>
    %263 = arith.maximumf %259, %262 : vector<16x16xf32>
    %264 = arith.maximumf %256, %263 : vector<16x16xf32>
    %265 = vector.extract_strided_slice %264 {offsets = [0, 1], sizes = [16, 15], strides = [1, 1]} : vector<16x16xf32> to vector<16x15xf32>
    %266 = vector.extract_strided_slice %264 {offsets = [0, 15], sizes = [16, 1], strides = [1, 1]} : vector<16x16xf32> to vector<16x1xf32>
    %267 = tpu.concatenate %265, %266 in 1 : vector<16x15xf32>, vector<16x1xf32> -> vector<16x16xf32>
    %268 = vector.extract_strided_slice %264 {offsets = [0, 0], sizes = [16, 15], strides = [1, 1]} : vector<16x16xf32> to vector<16x15xf32>
    %269 = vector.extract_strided_slice %264 {offsets = [0, 0], sizes = [16, 1], strides = [1, 1]} : vector<16x16xf32> to vector<16x1xf32>
    %270 = tpu.concatenate %269, %268 in 1 : vector<16x1xf32>, vector<16x15xf32> -> vector<16x16xf32>
    %271 = arith.maximumf %267, %270 : vector<16x16xf32>
    %272 = arith.maximumf %264, %271 : vector<16x16xf32>
    %273 = arith.subf %216, %272 : vector<16x16xf32>
    %cst_16 = arith.constant 0.000000e+00 : f32
    %274 = vector.broadcast %cst_16 : f32 to vector<16x16xf32>
    %275 = arith.maximumf %273, %274 : vector<16x16xf32>
    %276 = arith.mulf %240, %275 : vector<16x16xf32>
    %277 = arith.subf %275, %276 : vector<16x16xf32>
    %cst_17 = arith.constant 0.000000e+00 : f32
    %278 = vector.broadcast %cst_17 : f32 to vector<16x16xf32>
    %279 = arith.maximumf %277, %278 : vector<16x16xf32>
    %280 = arith.addf %240, %279 : vector<16x16xf32>
    %281 = vector.extract_strided_slice %256 {offsets = [1, 0], sizes = [15, 16], strides = [1, 1]} : vector<16x16xf32> to vector<15x16xf32>
    %282 = vector.extract_strided_slice %256 {offsets = [15, 0], sizes = [1, 16], strides = [1, 1]} : vector<16x16xf32> to vector<1x16xf32>
    %283 = tpu.concatenate %281, %282 in 0 : vector<15x16xf32>, vector<1x16xf32> -> vector<16x16xf32>
    %284 = vector.extract_strided_slice %256 {offsets = [0, 0], sizes = [15, 16], strides = [1, 1]} : vector<16x16xf32> to vector<15x16xf32>
    %285 = vector.extract_strided_slice %256 {offsets = [0, 0], sizes = [1, 16], strides = [1, 1]} : vector<16x16xf32> to vector<1x16xf32>
    %286 = tpu.concatenate %285, %284 in 0 : vector<1x16xf32>, vector<15x16xf32> -> vector<16x16xf32>
    %287 = arith.minimumf %283, %286 : vector<16x16xf32>
    %288 = vector.extract_strided_slice %256 {offsets = [0, 1], sizes = [16, 15], strides = [1, 1]} : vector<16x16xf32> to vector<16x15xf32>
    %289 = vector.extract_strided_slice %256 {offsets = [0, 15], sizes = [16, 1], strides = [1, 1]} : vector<16x16xf32> to vector<16x1xf32>
    %290 = tpu.concatenate %288, %289 in 1 : vector<16x15xf32>, vector<16x1xf32> -> vector<16x16xf32>
    %291 = vector.extract_strided_slice %256 {offsets = [0, 0], sizes = [16, 15], strides = [1, 1]} : vector<16x16xf32> to vector<16x15xf32>
    %292 = vector.extract_strided_slice %256 {offsets = [0, 0], sizes = [16, 1], strides = [1, 1]} : vector<16x16xf32> to vector<16x1xf32>
    %293 = tpu.concatenate %292, %291 in 1 : vector<16x1xf32>, vector<16x15xf32> -> vector<16x16xf32>
    %294 = arith.minimumf %290, %293 : vector<16x16xf32>
    %295 = arith.minimumf %287, %294 : vector<16x16xf32>
    %296 = arith.minimumf %256, %295 : vector<16x16xf32>
    %297 = vector.extract_strided_slice %296 {offsets = [1, 0], sizes = [15, 16], strides = [1, 1]} : vector<16x16xf32> to vector<15x16xf32>
    %298 = vector.extract_strided_slice %296 {offsets = [15, 0], sizes = [1, 16], strides = [1, 1]} : vector<16x16xf32> to vector<1x16xf32>
    %299 = tpu.concatenate %297, %298 in 0 : vector<15x16xf32>, vector<1x16xf32> -> vector<16x16xf32>
    %300 = vector.extract_strided_slice %296 {offsets = [0, 0], sizes = [15, 16], strides = [1, 1]} : vector<16x16xf32> to vector<15x16xf32>
    %301 = vector.extract_strided_slice %296 {offsets = [0, 0], sizes = [1, 16], strides = [1, 1]} : vector<16x16xf32> to vector<1x16xf32>
    %302 = tpu.concatenate %301, %300 in 0 : vector<1x16xf32>, vector<15x16xf32> -> vector<16x16xf32>
    %303 = arith.maximumf %299, %302 : vector<16x16xf32>
    %304 = arith.maximumf %296, %303 : vector<16x16xf32>
    %305 = vector.extract_strided_slice %304 {offsets = [0, 1], sizes = [16, 15], strides = [1, 1]} : vector<16x16xf32> to vector<16x15xf32>
    %306 = vector.extract_strided_slice %304 {offsets = [0, 15], sizes = [16, 1], strides = [1, 1]} : vector<16x16xf32> to vector<16x1xf32>
    %307 = tpu.concatenate %305, %306 in 1 : vector<16x15xf32>, vector<16x1xf32> -> vector<16x16xf32>
    %308 = vector.extract_strided_slice %304 {offsets = [0, 0], sizes = [16, 15], strides = [1, 1]} : vector<16x16xf32> to vector<16x15xf32>
    %309 = vector.extract_strided_slice %304 {offsets = [0, 0], sizes = [16, 1], strides = [1, 1]} : vector<16x16xf32> to vector<16x1xf32>
    %310 = tpu.concatenate %309, %308 in 1 : vector<16x1xf32>, vector<16x15xf32> -> vector<16x16xf32>
    %311 = arith.maximumf %307, %310 : vector<16x16xf32>
    %312 = arith.maximumf %304, %311 : vector<16x16xf32>
    %313 = arith.subf %256, %312 : vector<16x16xf32>
    %cst_18 = arith.constant 0.000000e+00 : f32
    %314 = vector.broadcast %cst_18 : f32 to vector<16x16xf32>
    %315 = arith.maximumf %313, %314 : vector<16x16xf32>
    %316 = arith.mulf %280, %315 : vector<16x16xf32>
    %317 = arith.subf %315, %316 : vector<16x16xf32>
    %cst_19 = arith.constant 0.000000e+00 : f32
    %318 = vector.broadcast %cst_19 : f32 to vector<16x16xf32>
    %319 = arith.maximumf %317, %318 : vector<16x16xf32>
    %320 = arith.addf %280, %319 : vector<16x16xf32>
    %321 = arith.mulf %165, %10 : vector<16x16xf32>
    %cst_20 = arith.constant dense<0.000000e+00> : vector<16xf32>
    %322 = vector.multi_reduction <add>, %321, %cst_20 [0] : vector<16x16xf32> to vector<16xf32>
    %323 = arith.addf %0, %322 : vector<16xf32>
    %cst_21 = arith.constant dense<0.000000e+00> : vector<16xf32>
    %324 = vector.multi_reduction <add>, %165, %cst_21 [0] : vector<16x16xf32> to vector<16xf32>
    %325 = arith.addf %1, %324 : vector<16xf32>
    %326 = arith.mulf %320, %5 : vector<16x16xf32>
    %cst_22 = arith.constant dense<0.000000e+00> : vector<16xf32>
    %327 = vector.multi_reduction <add>, %326, %cst_22 [0] : vector<16x16xf32> to vector<16xf32>
    %328 = arith.addf %2, %327 : vector<16xf32>
    %cst_23 = arith.constant dense<0.000000e+00> : vector<16xf32>
    %329 = vector.multi_reduction <add>, %320, %cst_23 [0] : vector<16x16xf32> to vector<16xf32>
    %330 = arith.addf %3, %329 : vector<16xf32>
    %c1 = arith.constant 1 : index
    %c0_24 = arith.constant 0 : index
    %c0_25 = arith.constant 0 : index
    %331 = vector.load %arg1[%c1, %c0_24, %c0_25] : memref<4x16x16xf32, #tpu.memory_space<vmem>>, vector<1x16x16xf32>
    %332 = vector.shape_cast %331 : vector<1x16x16xf32> to vector<16x16xf32>
    %333 = arith.negf %332 : vector<16x16xf32>
    %334 = math.exp %333 : vector<16x16xf32>
    %cst_26 = arith.constant 1.000000e+00 : f32
    %335 = vector.broadcast %cst_26 : f32 to vector<16x16xf32>
    %336 = arith.addf %335, %334 : vector<16x16xf32>
    %337 = arith.divf %335, %336 : vector<16x16xf32>
    %338 = vector.extract_strided_slice %332 {offsets = [1, 0], sizes = [15, 16], strides = [1, 1]} : vector<16x16xf32> to vector<15x16xf32>
    %339 = vector.extract_strided_slice %332 {offsets = [15, 0], sizes = [1, 16], strides = [1, 1]} : vector<16x16xf32> to vector<1x16xf32>
    %340 = tpu.concatenate %338, %339 in 0 : vector<15x16xf32>, vector<1x16xf32> -> vector<16x16xf32>
    %341 = vector.extract_strided_slice %332 {offsets = [0, 0], sizes = [15, 16], strides = [1, 1]} : vector<16x16xf32> to vector<15x16xf32>
    %342 = vector.extract_strided_slice %332 {offsets = [0, 0], sizes = [1, 16], strides = [1, 1]} : vector<16x16xf32> to vector<1x16xf32>
    %343 = tpu.concatenate %342, %341 in 0 : vector<1x16xf32>, vector<15x16xf32> -> vector<16x16xf32>
    %344 = arith.minimumf %340, %343 : vector<16x16xf32>
    %345 = vector.extract_strided_slice %332 {offsets = [0, 1], sizes = [16, 15], strides = [1, 1]} : vector<16x16xf32> to vector<16x15xf32>
    %346 = vector.extract_strided_slice %332 {offsets = [0, 15], sizes = [16, 1], strides = [1, 1]} : vector<16x16xf32> to vector<16x1xf32>
    %347 = tpu.concatenate %345, %346 in 1 : vector<16x15xf32>, vector<16x1xf32> -> vector<16x16xf32>
    %348 = vector.extract_strided_slice %332 {offsets = [0, 0], sizes = [16, 15], strides = [1, 1]} : vector<16x16xf32> to vector<16x15xf32>
    %349 = vector.extract_strided_slice %332 {offsets = [0, 0], sizes = [16, 1], strides = [1, 1]} : vector<16x16xf32> to vector<16x1xf32>
    %350 = tpu.concatenate %349, %348 in 1 : vector<16x1xf32>, vector<16x15xf32> -> vector<16x16xf32>
    %351 = arith.minimumf %347, %350 : vector<16x16xf32>
    %352 = arith.minimumf %344, %351 : vector<16x16xf32>
    %353 = arith.minimumf %332, %352 : vector<16x16xf32>
    %354 = vector.extract_strided_slice %353 {offsets = [1, 0], sizes = [15, 16], strides = [1, 1]} : vector<16x16xf32> to vector<15x16xf32>
    %355 = vector.extract_strided_slice %353 {offsets = [15, 0], sizes = [1, 16], strides = [1, 1]} : vector<16x16xf32> to vector<1x16xf32>
    %356 = tpu.concatenate %354, %355 in 0 : vector<15x16xf32>, vector<1x16xf32> -> vector<16x16xf32>
    %357 = vector.extract_strided_slice %353 {offsets = [0, 0], sizes = [15, 16], strides = [1, 1]} : vector<16x16xf32> to vector<15x16xf32>
    %358 = vector.extract_strided_slice %353 {offsets = [0, 0], sizes = [1, 16], strides = [1, 1]} : vector<16x16xf32> to vector<1x16xf32>
    %359 = tpu.concatenate %358, %357 in 0 : vector<1x16xf32>, vector<15x16xf32> -> vector<16x16xf32>
    %360 = arith.maximumf %356, %359 : vector<16x16xf32>
    %361 = arith.maximumf %353, %360 : vector<16x16xf32>
    %362 = vector.extract_strided_slice %361 {offsets = [0, 1], sizes = [16, 15], strides = [1, 1]} : vector<16x16xf32> to vector<16x15xf32>
    %363 = vector.extract_strided_slice %361 {offsets = [0, 15], sizes = [16, 1], strides = [1, 1]} : vector<16x16xf32> to vector<16x1xf32>
    %364 = tpu.concatenate %362, %363 in 1 : vector<16x15xf32>, vector<16x1xf32> -> vector<16x16xf32>
    %365 = vector.extract_strided_slice %361 {offsets = [0, 0], sizes = [16, 15], strides = [1, 1]} : vector<16x16xf32> to vector<16x15xf32>
    %366 = vector.extract_strided_slice %361 {offsets = [0, 0], sizes = [16, 1], strides = [1, 1]} : vector<16x16xf32> to vector<16x1xf32>
    %367 = tpu.concatenate %366, %365 in 1 : vector<16x1xf32>, vector<16x15xf32> -> vector<16x16xf32>
    %368 = arith.maximumf %364, %367 : vector<16x16xf32>
    %369 = arith.maximumf %361, %368 : vector<16x16xf32>
    %370 = arith.subf %332, %369 : vector<16x16xf32>
    %cst_27 = arith.constant 0.000000e+00 : f32
    %371 = vector.broadcast %cst_27 : f32 to vector<16x16xf32>
    %372 = arith.maximumf %370, %371 : vector<16x16xf32>
    %373 = vector.extract_strided_slice %353 {offsets = [1, 0], sizes = [15, 16], strides = [1, 1]} : vector<16x16xf32> to vector<15x16xf32>
    %374 = vector.extract_strided_slice %353 {offsets = [15, 0], sizes = [1, 16], strides = [1, 1]} : vector<16x16xf32> to vector<1x16xf32>
    %375 = tpu.concatenate %373, %374 in 0 : vector<15x16xf32>, vector<1x16xf32> -> vector<16x16xf32>
    %376 = vector.extract_strided_slice %353 {offsets = [0, 0], sizes = [15, 16], strides = [1, 1]} : vector<16x16xf32> to vector<15x16xf32>
    %377 = vector.extract_strided_slice %353 {offsets = [0, 0], sizes = [1, 16], strides = [1, 1]} : vector<16x16xf32> to vector<1x16xf32>
    %378 = tpu.concatenate %377, %376 in 0 : vector<1x16xf32>, vector<15x16xf32> -> vector<16x16xf32>
    %379 = arith.minimumf %375, %378 : vector<16x16xf32>
    %380 = vector.extract_strided_slice %353 {offsets = [0, 1], sizes = [16, 15], strides = [1, 1]} : vector<16x16xf32> to vector<16x15xf32>
    %381 = vector.extract_strided_slice %353 {offsets = [0, 15], sizes = [16, 1], strides = [1, 1]} : vector<16x16xf32> to vector<16x1xf32>
    %382 = tpu.concatenate %380, %381 in 1 : vector<16x15xf32>, vector<16x1xf32> -> vector<16x16xf32>
    %383 = vector.extract_strided_slice %353 {offsets = [0, 0], sizes = [16, 15], strides = [1, 1]} : vector<16x16xf32> to vector<16x15xf32>
    %384 = vector.extract_strided_slice %353 {offsets = [0, 0], sizes = [16, 1], strides = [1, 1]} : vector<16x16xf32> to vector<16x1xf32>
    %385 = tpu.concatenate %384, %383 in 1 : vector<16x1xf32>, vector<16x15xf32> -> vector<16x16xf32>
    %386 = arith.minimumf %382, %385 : vector<16x16xf32>
    %387 = arith.minimumf %379, %386 : vector<16x16xf32>
    %388 = arith.minimumf %353, %387 : vector<16x16xf32>
    %389 = vector.extract_strided_slice %388 {offsets = [1, 0], sizes = [15, 16], strides = [1, 1]} : vector<16x16xf32> to vector<15x16xf32>
    %390 = vector.extract_strided_slice %388 {offsets = [15, 0], sizes = [1, 16], strides = [1, 1]} : vector<16x16xf32> to vector<1x16xf32>
    %391 = tpu.concatenate %389, %390 in 0 : vector<15x16xf32>, vector<1x16xf32> -> vector<16x16xf32>
    %392 = vector.extract_strided_slice %388 {offsets = [0, 0], sizes = [15, 16], strides = [1, 1]} : vector<16x16xf32> to vector<15x16xf32>
    %393 = vector.extract_strided_slice %388 {offsets = [0, 0], sizes = [1, 16], strides = [1, 1]} : vector<16x16xf32> to vector<1x16xf32>
    %394 = tpu.concatenate %393, %392 in 0 : vector<1x16xf32>, vector<15x16xf32> -> vector<16x16xf32>
    %395 = arith.maximumf %391, %394 : vector<16x16xf32>
    %396 = arith.maximumf %388, %395 : vector<16x16xf32>
    %397 = vector.extract_strided_slice %396 {offsets = [0, 1], sizes = [16, 15], strides = [1, 1]} : vector<16x16xf32> to vector<16x15xf32>
    %398 = vector.extract_strided_slice %396 {offsets = [0, 15], sizes = [16, 1], strides = [1, 1]} : vector<16x16xf32> to vector<16x1xf32>
    %399 = tpu.concatenate %397, %398 in 1 : vector<16x15xf32>, vector<16x1xf32> -> vector<16x16xf32>
    %400 = vector.extract_strided_slice %396 {offsets = [0, 0], sizes = [16, 15], strides = [1, 1]} : vector<16x16xf32> to vector<16x15xf32>
    %401 = vector.extract_strided_slice %396 {offsets = [0, 0], sizes = [16, 1], strides = [1, 1]} : vector<16x16xf32> to vector<16x1xf32>
    %402 = tpu.concatenate %401, %400 in 1 : vector<16x1xf32>, vector<16x15xf32> -> vector<16x16xf32>
    %403 = arith.maximumf %399, %402 : vector<16x16xf32>
    %404 = arith.maximumf %396, %403 : vector<16x16xf32>
    %405 = arith.subf %353, %404 : vector<16x16xf32>
    %cst_28 = arith.constant 0.000000e+00 : f32
    %406 = vector.broadcast %cst_28 : f32 to vector<16x16xf32>
    %407 = arith.maximumf %405, %406 : vector<16x16xf32>
    %408 = arith.mulf %372, %407 : vector<16x16xf32>
    %409 = arith.subf %407, %408 : vector<16x16xf32>
    %cst_29 = arith.constant 0.000000e+00 : f32
    %410 = vector.broadcast %cst_29 : f32 to vector<16x16xf32>
    %411 = arith.maximumf %409, %410 : vector<16x16xf32>
    %412 = arith.addf %372, %411 : vector<16x16xf32>
    %413 = vector.extract_strided_slice %388 {offsets = [1, 0], sizes = [15, 16], strides = [1, 1]} : vector<16x16xf32> to vector<15x16xf32>
    %414 = vector.extract_strided_slice %388 {offsets = [15, 0], sizes = [1, 16], strides = [1, 1]} : vector<16x16xf32> to vector<1x16xf32>
    %415 = tpu.concatenate %413, %414 in 0 : vector<15x16xf32>, vector<1x16xf32> -> vector<16x16xf32>
    %416 = vector.extract_strided_slice %388 {offsets = [0, 0], sizes = [15, 16], strides = [1, 1]} : vector<16x16xf32> to vector<15x16xf32>
    %417 = vector.extract_strided_slice %388 {offsets = [0, 0], sizes = [1, 16], strides = [1, 1]} : vector<16x16xf32> to vector<1x16xf32>
    %418 = tpu.concatenate %417, %416 in 0 : vector<1x16xf32>, vector<15x16xf32> -> vector<16x16xf32>
    %419 = arith.minimumf %415, %418 : vector<16x16xf32>
    %420 = vector.extract_strided_slice %388 {offsets = [0, 1], sizes = [16, 15], strides = [1, 1]} : vector<16x16xf32> to vector<16x15xf32>
    %421 = vector.extract_strided_slice %388 {offsets = [0, 15], sizes = [16, 1], strides = [1, 1]} : vector<16x16xf32> to vector<16x1xf32>
    %422 = tpu.concatenate %420, %421 in 1 : vector<16x15xf32>, vector<16x1xf32> -> vector<16x16xf32>
    %423 = vector.extract_strided_slice %388 {offsets = [0, 0], sizes = [16, 15], strides = [1, 1]} : vector<16x16xf32> to vector<16x15xf32>
    %424 = vector.extract_strided_slice %388 {offsets = [0, 0], sizes = [16, 1], strides = [1, 1]} : vector<16x16xf32> to vector<16x1xf32>
    %425 = tpu.concatenate %424, %423 in 1 : vector<16x1xf32>, vector<16x15xf32> -> vector<16x16xf32>
    %426 = arith.minimumf %422, %425 : vector<16x16xf32>
    %427 = arith.minimumf %419, %426 : vector<16x16xf32>
    %428 = arith.minimumf %388, %427 : vector<16x16xf32>
    %429 = vector.extract_strided_slice %428 {offsets = [1, 0], sizes = [15, 16], strides = [1, 1]} : vector<16x16xf32> to vector<15x16xf32>
    %430 = vector.extract_strided_slice %428 {offsets = [15, 0], sizes = [1, 16], strides = [1, 1]} : vector<16x16xf32> to vector<1x16xf32>
    %431 = tpu.concatenate %429, %430 in 0 : vector<15x16xf32>, vector<1x16xf32> -> vector<16x16xf32>
    %432 = vector.extract_strided_slice %428 {offsets = [0, 0], sizes = [15, 16], strides = [1, 1]} : vector<16x16xf32> to vector<15x16xf32>
    %433 = vector.extract_strided_slice %428 {offsets = [0, 0], sizes = [1, 16], strides = [1, 1]} : vector<16x16xf32> to vector<1x16xf32>
    %434 = tpu.concatenate %433, %432 in 0 : vector<1x16xf32>, vector<15x16xf32> -> vector<16x16xf32>
    %435 = arith.maximumf %431, %434 : vector<16x16xf32>
    %436 = arith.maximumf %428, %435 : vector<16x16xf32>
    %437 = vector.extract_strided_slice %436 {offsets = [0, 1], sizes = [16, 15], strides = [1, 1]} : vector<16x16xf32> to vector<16x15xf32>
    %438 = vector.extract_strided_slice %436 {offsets = [0, 15], sizes = [16, 1], strides = [1, 1]} : vector<16x16xf32> to vector<16x1xf32>
    %439 = tpu.concatenate %437, %438 in 1 : vector<16x15xf32>, vector<16x1xf32> -> vector<16x16xf32>
    %440 = vector.extract_strided_slice %436 {offsets = [0, 0], sizes = [16, 15], strides = [1, 1]} : vector<16x16xf32> to vector<16x15xf32>
    %441 = vector.extract_strided_slice %436 {offsets = [0, 0], sizes = [16, 1], strides = [1, 1]} : vector<16x16xf32> to vector<16x1xf32>
    %442 = tpu.concatenate %441, %440 in 1 : vector<16x1xf32>, vector<16x15xf32> -> vector<16x16xf32>
    %443 = arith.maximumf %439, %442 : vector<16x16xf32>
    %444 = arith.maximumf %436, %443 : vector<16x16xf32>
    %445 = arith.subf %388, %444 : vector<16x16xf32>
    %cst_30 = arith.constant 0.000000e+00 : f32
    %446 = vector.broadcast %cst_30 : f32 to vector<16x16xf32>
    %447 = arith.maximumf %445, %446 : vector<16x16xf32>
    %448 = arith.mulf %412, %447 : vector<16x16xf32>
    %449 = arith.subf %447, %448 : vector<16x16xf32>
    %cst_31 = arith.constant 0.000000e+00 : f32
    %450 = vector.broadcast %cst_31 : f32 to vector<16x16xf32>
    %451 = arith.maximumf %449, %450 : vector<16x16xf32>
    %452 = arith.addf %412, %451 : vector<16x16xf32>
    %453 = vector.extract_strided_slice %428 {offsets = [1, 0], sizes = [15, 16], strides = [1, 1]} : vector<16x16xf32> to vector<15x16xf32>
    %454 = vector.extract_strided_slice %428 {offsets = [15, 0], sizes = [1, 16], strides = [1, 1]} : vector<16x16xf32> to vector<1x16xf32>
    %455 = tpu.concatenate %453, %454 in 0 : vector<15x16xf32>, vector<1x16xf32> -> vector<16x16xf32>
    %456 = vector.extract_strided_slice %428 {offsets = [0, 0], sizes = [15, 16], strides = [1, 1]} : vector<16x16xf32> to vector<15x16xf32>
    %457 = vector.extract_strided_slice %428 {offsets = [0, 0], sizes = [1, 16], strides = [1, 1]} : vector<16x16xf32> to vector<1x16xf32>
    %458 = tpu.concatenate %457, %456 in 0 : vector<1x16xf32>, vector<15x16xf32> -> vector<16x16xf32>
    %459 = arith.minimumf %455, %458 : vector<16x16xf32>
    %460 = vector.extract_strided_slice %428 {offsets = [0, 1], sizes = [16, 15], strides = [1, 1]} : vector<16x16xf32> to vector<16x15xf32>
    %461 = vector.extract_strided_slice %428 {offsets = [0, 15], sizes = [16, 1], strides = [1, 1]} : vector<16x16xf32> to vector<16x1xf32>
    %462 = tpu.concatenate %460, %461 in 1 : vector<16x15xf32>, vector<16x1xf32> -> vector<16x16xf32>
    %463 = vector.extract_strided_slice %428 {offsets = [0, 0], sizes = [16, 15], strides = [1, 1]} : vector<16x16xf32> to vector<16x15xf32>
    %464 = vector.extract_strided_slice %428 {offsets = [0, 0], sizes = [16, 1], strides = [1, 1]} : vector<16x16xf32> to vector<16x1xf32>
    %465 = tpu.concatenate %464, %463 in 1 : vector<16x1xf32>, vector<16x15xf32> -> vector<16x16xf32>
    %466 = arith.minimumf %462, %465 : vector<16x16xf32>
    %467 = arith.minimumf %459, %466 : vector<16x16xf32>
    %468 = arith.minimumf %428, %467 : vector<16x16xf32>
    %469 = vector.extract_strided_slice %468 {offsets = [1, 0], sizes = [15, 16], strides = [1, 1]} : vector<16x16xf32> to vector<15x16xf32>
    %470 = vector.extract_strided_slice %468 {offsets = [15, 0], sizes = [1, 16], strides = [1, 1]} : vector<16x16xf32> to vector<1x16xf32>
    %471 = tpu.concatenate %469, %470 in 0 : vector<15x16xf32>, vector<1x16xf32> -> vector<16x16xf32>
    %472 = vector.extract_strided_slice %468 {offsets = [0, 0], sizes = [15, 16], strides = [1, 1]} : vector<16x16xf32> to vector<15x16xf32>
    %473 = vector.extract_strided_slice %468 {offsets = [0, 0], sizes = [1, 16], strides = [1, 1]} : vector<16x16xf32> to vector<1x16xf32>
    %474 = tpu.concatenate %473, %472 in 0 : vector<1x16xf32>, vector<15x16xf32> -> vector<16x16xf32>
    %475 = arith.maximumf %471, %474 : vector<16x16xf32>
    %476 = arith.maximumf %468, %475 : vector<16x16xf32>
    %477 = vector.extract_strided_slice %476 {offsets = [0, 1], sizes = [16, 15], strides = [1, 1]} : vector<16x16xf32> to vector<16x15xf32>
    %478 = vector.extract_strided_slice %476 {offsets = [0, 15], sizes = [16, 1], strides = [1, 1]} : vector<16x16xf32> to vector<16x1xf32>
    %479 = tpu.concatenate %477, %478 in 1 : vector<16x15xf32>, vector<16x1xf32> -> vector<16x16xf32>
    %480 = vector.extract_strided_slice %476 {offsets = [0, 0], sizes = [16, 15], strides = [1, 1]} : vector<16x16xf32> to vector<16x15xf32>
    %481 = vector.extract_strided_slice %476 {offsets = [0, 0], sizes = [16, 1], strides = [1, 1]} : vector<16x16xf32> to vector<16x1xf32>
    %482 = tpu.concatenate %481, %480 in 1 : vector<16x1xf32>, vector<16x15xf32> -> vector<16x16xf32>
    %483 = arith.maximumf %479, %482 : vector<16x16xf32>
    %484 = arith.maximumf %476, %483 : vector<16x16xf32>
    %485 = arith.subf %428, %484 : vector<16x16xf32>
    %cst_32 = arith.constant 0.000000e+00 : f32
    %486 = vector.broadcast %cst_32 : f32 to vector<16x16xf32>
    %487 = arith.maximumf %485, %486 : vector<16x16xf32>
    %488 = arith.mulf %452, %487 : vector<16x16xf32>
    %489 = arith.subf %487, %488 : vector<16x16xf32>
    %cst_33 = arith.constant 0.000000e+00 : f32
    %490 = vector.broadcast %cst_33 : f32 to vector<16x16xf32>
    %491 = arith.maximumf %489, %490 : vector<16x16xf32>
    %492 = arith.addf %452, %491 : vector<16x16xf32>
    %493 = vector.extract_strided_slice %337 {offsets = [1, 0], sizes = [15, 16], strides = [1, 1]} : vector<16x16xf32> to vector<15x16xf32>
    %494 = vector.extract_strided_slice %337 {offsets = [15, 0], sizes = [1, 16], strides = [1, 1]} : vector<16x16xf32> to vector<1x16xf32>
    %495 = tpu.concatenate %493, %494 in 0 : vector<15x16xf32>, vector<1x16xf32> -> vector<16x16xf32>
    %496 = vector.extract_strided_slice %337 {offsets = [0, 0], sizes = [15, 16], strides = [1, 1]} : vector<16x16xf32> to vector<15x16xf32>
    %497 = vector.extract_strided_slice %337 {offsets = [0, 0], sizes = [1, 16], strides = [1, 1]} : vector<16x16xf32> to vector<1x16xf32>
    %498 = tpu.concatenate %497, %496 in 0 : vector<1x16xf32>, vector<15x16xf32> -> vector<16x16xf32>
    %499 = arith.minimumf %495, %498 : vector<16x16xf32>
    %500 = vector.extract_strided_slice %337 {offsets = [0, 1], sizes = [16, 15], strides = [1, 1]} : vector<16x16xf32> to vector<16x15xf32>
    %501 = vector.extract_strided_slice %337 {offsets = [0, 15], sizes = [16, 1], strides = [1, 1]} : vector<16x16xf32> to vector<16x1xf32>
    %502 = tpu.concatenate %500, %501 in 1 : vector<16x15xf32>, vector<16x1xf32> -> vector<16x16xf32>
    %503 = vector.extract_strided_slice %337 {offsets = [0, 0], sizes = [16, 15], strides = [1, 1]} : vector<16x16xf32> to vector<16x15xf32>
    %504 = vector.extract_strided_slice %337 {offsets = [0, 0], sizes = [16, 1], strides = [1, 1]} : vector<16x16xf32> to vector<16x1xf32>
    %505 = tpu.concatenate %504, %503 in 1 : vector<16x1xf32>, vector<16x15xf32> -> vector<16x16xf32>
    %506 = arith.minimumf %502, %505 : vector<16x16xf32>
    %507 = arith.minimumf %499, %506 : vector<16x16xf32>
    %508 = arith.minimumf %337, %507 : vector<16x16xf32>
    %509 = vector.extract_strided_slice %508 {offsets = [1, 0], sizes = [15, 16], strides = [1, 1]} : vector<16x16xf32> to vector<15x16xf32>
    %510 = vector.extract_strided_slice %508 {offsets = [15, 0], sizes = [1, 16], strides = [1, 1]} : vector<16x16xf32> to vector<1x16xf32>
    %511 = tpu.concatenate %509, %510 in 0 : vector<15x16xf32>, vector<1x16xf32> -> vector<16x16xf32>
    %512 = vector.extract_strided_slice %508 {offsets = [0, 0], sizes = [15, 16], strides = [1, 1]} : vector<16x16xf32> to vector<15x16xf32>
    %513 = vector.extract_strided_slice %508 {offsets = [0, 0], sizes = [1, 16], strides = [1, 1]} : vector<16x16xf32> to vector<1x16xf32>
    %514 = tpu.concatenate %513, %512 in 0 : vector<1x16xf32>, vector<15x16xf32> -> vector<16x16xf32>
    %515 = arith.maximumf %511, %514 : vector<16x16xf32>
    %516 = arith.maximumf %508, %515 : vector<16x16xf32>
    %517 = vector.extract_strided_slice %516 {offsets = [0, 1], sizes = [16, 15], strides = [1, 1]} : vector<16x16xf32> to vector<16x15xf32>
    %518 = vector.extract_strided_slice %516 {offsets = [0, 15], sizes = [16, 1], strides = [1, 1]} : vector<16x16xf32> to vector<16x1xf32>
    %519 = tpu.concatenate %517, %518 in 1 : vector<16x15xf32>, vector<16x1xf32> -> vector<16x16xf32>
    %520 = vector.extract_strided_slice %516 {offsets = [0, 0], sizes = [16, 15], strides = [1, 1]} : vector<16x16xf32> to vector<16x15xf32>
    %521 = vector.extract_strided_slice %516 {offsets = [0, 0], sizes = [16, 1], strides = [1, 1]} : vector<16x16xf32> to vector<16x1xf32>
    %522 = tpu.concatenate %521, %520 in 1 : vector<16x1xf32>, vector<16x15xf32> -> vector<16x16xf32>
    %523 = arith.maximumf %519, %522 : vector<16x16xf32>
    %524 = arith.maximumf %516, %523 : vector<16x16xf32>
    %525 = arith.subf %337, %524 : vector<16x16xf32>
    %cst_34 = arith.constant 0.000000e+00 : f32
    %526 = vector.broadcast %cst_34 : f32 to vector<16x16xf32>
    %527 = arith.maximumf %525, %526 : vector<16x16xf32>
    %528 = vector.extract_strided_slice %508 {offsets = [1, 0], sizes = [15, 16], strides = [1, 1]} : vector<16x16xf32> to vector<15x16xf32>
    %529 = vector.extract_strided_slice %508 {offsets = [15, 0], sizes = [1, 16], strides = [1, 1]} : vector<16x16xf32> to vector<1x16xf32>
    %530 = tpu.concatenate %528, %529 in 0 : vector<15x16xf32>, vector<1x16xf32> -> vector<16x16xf32>
    %531 = vector.extract_strided_slice %508 {offsets = [0, 0], sizes = [15, 16], strides = [1, 1]} : vector<16x16xf32> to vector<15x16xf32>
    %532 = vector.extract_strided_slice %508 {offsets = [0, 0], sizes = [1, 16], strides = [1, 1]} : vector<16x16xf32> to vector<1x16xf32>
    %533 = tpu.concatenate %532, %531 in 0 : vector<1x16xf32>, vector<15x16xf32> -> vector<16x16xf32>
    %534 = arith.minimumf %530, %533 : vector<16x16xf32>
    %535 = vector.extract_strided_slice %508 {offsets = [0, 1], sizes = [16, 15], strides = [1, 1]} : vector<16x16xf32> to vector<16x15xf32>
    %536 = vector.extract_strided_slice %508 {offsets = [0, 15], sizes = [16, 1], strides = [1, 1]} : vector<16x16xf32> to vector<16x1xf32>
    %537 = tpu.concatenate %535, %536 in 1 : vector<16x15xf32>, vector<16x1xf32> -> vector<16x16xf32>
    %538 = vector.extract_strided_slice %508 {offsets = [0, 0], sizes = [16, 15], strides = [1, 1]} : vector<16x16xf32> to vector<16x15xf32>
    %539 = vector.extract_strided_slice %508 {offsets = [0, 0], sizes = [16, 1], strides = [1, 1]} : vector<16x16xf32> to vector<16x1xf32>
    %540 = tpu.concatenate %539, %538 in 1 : vector<16x1xf32>, vector<16x15xf32> -> vector<16x16xf32>
    %541 = arith.minimumf %537, %540 : vector<16x16xf32>
    %542 = arith.minimumf %534, %541 : vector<16x16xf32>
    %543 = arith.minimumf %508, %542 : vector<16x16xf32>
    %544 = vector.extract_strided_slice %543 {offsets = [1, 0], sizes = [15, 16], strides = [1, 1]} : vector<16x16xf32> to vector<15x16xf32>
    %545 = vector.extract_strided_slice %543 {offsets = [15, 0], sizes = [1, 16], strides = [1, 1]} : vector<16x16xf32> to vector<1x16xf32>
    %546 = tpu.concatenate %544, %545 in 0 : vector<15x16xf32>, vector<1x16xf32> -> vector<16x16xf32>
    %547 = vector.extract_strided_slice %543 {offsets = [0, 0], sizes = [15, 16], strides = [1, 1]} : vector<16x16xf32> to vector<15x16xf32>
    %548 = vector.extract_strided_slice %543 {offsets = [0, 0], sizes = [1, 16], strides = [1, 1]} : vector<16x16xf32> to vector<1x16xf32>
    %549 = tpu.concatenate %548, %547 in 0 : vector<1x16xf32>, vector<15x16xf32> -> vector<16x16xf32>
    %550 = arith.maximumf %546, %549 : vector<16x16xf32>
    %551 = arith.maximumf %543, %550 : vector<16x16xf32>
    %552 = vector.extract_strided_slice %551 {offsets = [0, 1], sizes = [16, 15], strides = [1, 1]} : vector<16x16xf32> to vector<16x15xf32>
    %553 = vector.extract_strided_slice %551 {offsets = [0, 15], sizes = [16, 1], strides = [1, 1]} : vector<16x16xf32> to vector<16x1xf32>
    %554 = tpu.concatenate %552, %553 in 1 : vector<16x15xf32>, vector<16x1xf32> -> vector<16x16xf32>
    %555 = vector.extract_strided_slice %551 {offsets = [0, 0], sizes = [16, 15], strides = [1, 1]} : vector<16x16xf32> to vector<16x15xf32>
    %556 = vector.extract_strided_slice %551 {offsets = [0, 0], sizes = [16, 1], strides = [1, 1]} : vector<16x16xf32> to vector<16x1xf32>
    %557 = tpu.concatenate %556, %555 in 1 : vector<16x1xf32>, vector<16x15xf32> -> vector<16x16xf32>
    %558 = arith.maximumf %554, %557 : vector<16x16xf32>
    %559 = arith.maximumf %551, %558 : vector<16x16xf32>
    %560 = arith.subf %508, %559 : vector<16x16xf32>
    %cst_35 = arith.constant 0.000000e+00 : f32
    %561 = vector.broadcast %cst_35 : f32 to vector<16x16xf32>
    %562 = arith.maximumf %560, %561 : vector<16x16xf32>
    %563 = arith.mulf %527, %562 : vector<16x16xf32>
    %564 = arith.subf %562, %563 : vector<16x16xf32>
    %cst_36 = arith.constant 0.000000e+00 : f32
    %565 = vector.broadcast %cst_36 : f32 to vector<16x16xf32>
    %566 = arith.maximumf %564, %565 : vector<16x16xf32>
    %567 = arith.addf %527, %566 : vector<16x16xf32>
    %568 = vector.extract_strided_slice %543 {offsets = [1, 0], sizes = [15, 16], strides = [1, 1]} : vector<16x16xf32> to vector<15x16xf32>
    %569 = vector.extract_strided_slice %543 {offsets = [15, 0], sizes = [1, 16], strides = [1, 1]} : vector<16x16xf32> to vector<1x16xf32>
    %570 = tpu.concatenate %568, %569 in 0 : vector<15x16xf32>, vector<1x16xf32> -> vector<16x16xf32>
    %571 = vector.extract_strided_slice %543 {offsets = [0, 0], sizes = [15, 16], strides = [1, 1]} : vector<16x16xf32> to vector<15x16xf32>
    %572 = vector.extract_strided_slice %543 {offsets = [0, 0], sizes = [1, 16], strides = [1, 1]} : vector<16x16xf32> to vector<1x16xf32>
    %573 = tpu.concatenate %572, %571 in 0 : vector<1x16xf32>, vector<15x16xf32> -> vector<16x16xf32>
    %574 = arith.minimumf %570, %573 : vector<16x16xf32>
    %575 = vector.extract_strided_slice %543 {offsets = [0, 1], sizes = [16, 15], strides = [1, 1]} : vector<16x16xf32> to vector<16x15xf32>
    %576 = vector.extract_strided_slice %543 {offsets = [0, 15], sizes = [16, 1], strides = [1, 1]} : vector<16x16xf32> to vector<16x1xf32>
    %577 = tpu.concatenate %575, %576 in 1 : vector<16x15xf32>, vector<16x1xf32> -> vector<16x16xf32>
    %578 = vector.extract_strided_slice %543 {offsets = [0, 0], sizes = [16, 15], strides = [1, 1]} : vector<16x16xf32> to vector<16x15xf32>
    %579 = vector.extract_strided_slice %543 {offsets = [0, 0], sizes = [16, 1], strides = [1, 1]} : vector<16x16xf32> to vector<16x1xf32>
    %580 = tpu.concatenate %579, %578 in 1 : vector<16x1xf32>, vector<16x15xf32> -> vector<16x16xf32>
    %581 = arith.minimumf %577, %580 : vector<16x16xf32>
    %582 = arith.minimumf %574, %581 : vector<16x16xf32>
    %583 = arith.minimumf %543, %582 : vector<16x16xf32>
    %584 = vector.extract_strided_slice %583 {offsets = [1, 0], sizes = [15, 16], strides = [1, 1]} : vector<16x16xf32> to vector<15x16xf32>
    %585 = vector.extract_strided_slice %583 {offsets = [15, 0], sizes = [1, 16], strides = [1, 1]} : vector<16x16xf32> to vector<1x16xf32>
    %586 = tpu.concatenate %584, %585 in 0 : vector<15x16xf32>, vector<1x16xf32> -> vector<16x16xf32>
    %587 = vector.extract_strided_slice %583 {offsets = [0, 0], sizes = [15, 16], strides = [1, 1]} : vector<16x16xf32> to vector<15x16xf32>
    %588 = vector.extract_strided_slice %583 {offsets = [0, 0], sizes = [1, 16], strides = [1, 1]} : vector<16x16xf32> to vector<1x16xf32>
    %589 = tpu.concatenate %588, %587 in 0 : vector<1x16xf32>, vector<15x16xf32> -> vector<16x16xf32>
    %590 = arith.maximumf %586, %589 : vector<16x16xf32>
    %591 = arith.maximumf %583, %590 : vector<16x16xf32>
    %592 = vector.extract_strided_slice %591 {offsets = [0, 1], sizes = [16, 15], strides = [1, 1]} : vector<16x16xf32> to vector<16x15xf32>
    %593 = vector.extract_strided_slice %591 {offsets = [0, 15], sizes = [16, 1], strides = [1, 1]} : vector<16x16xf32> to vector<16x1xf32>
    %594 = tpu.concatenate %592, %593 in 1 : vector<16x15xf32>, vector<16x1xf32> -> vector<16x16xf32>
    %595 = vector.extract_strided_slice %591 {offsets = [0, 0], sizes = [16, 15], strides = [1, 1]} : vector<16x16xf32> to vector<16x15xf32>
    %596 = vector.extract_strided_slice %591 {offsets = [0, 0], sizes = [16, 1], strides = [1, 1]} : vector<16x16xf32> to vector<16x1xf32>
    %597 = tpu.concatenate %596, %595 in 1 : vector<16x1xf32>, vector<16x15xf32> -> vector<16x16xf32>
    %598 = arith.maximumf %594, %597 : vector<16x16xf32>
    %599 = arith.maximumf %591, %598 : vector<16x16xf32>
    %600 = arith.subf %543, %599 : vector<16x16xf32>
    %cst_37 = arith.constant 0.000000e+00 : f32
    %601 = vector.broadcast %cst_37 : f32 to vector<16x16xf32>
    %602 = arith.maximumf %600, %601 : vector<16x16xf32>
    %603 = arith.mulf %567, %602 : vector<16x16xf32>
    %604 = arith.subf %602, %603 : vector<16x16xf32>
    %cst_38 = arith.constant 0.000000e+00 : f32
    %605 = vector.broadcast %cst_38 : f32 to vector<16x16xf32>
    %606 = arith.maximumf %604, %605 : vector<16x16xf32>
    %607 = arith.addf %567, %606 : vector<16x16xf32>
    %608 = vector.extract_strided_slice %583 {offsets = [1, 0], sizes = [15, 16], strides = [1, 1]} : vector<16x16xf32> to vector<15x16xf32>
    %609 = vector.extract_strided_slice %583 {offsets = [15, 0], sizes = [1, 16], strides = [1, 1]} : vector<16x16xf32> to vector<1x16xf32>
    %610 = tpu.concatenate %608, %609 in 0 : vector<15x16xf32>, vector<1x16xf32> -> vector<16x16xf32>
    %611 = vector.extract_strided_slice %583 {offsets = [0, 0], sizes = [15, 16], strides = [1, 1]} : vector<16x16xf32> to vector<15x16xf32>
    %612 = vector.extract_strided_slice %583 {offsets = [0, 0], sizes = [1, 16], strides = [1, 1]} : vector<16x16xf32> to vector<1x16xf32>
    %613 = tpu.concatenate %612, %611 in 0 : vector<1x16xf32>, vector<15x16xf32> -> vector<16x16xf32>
    %614 = arith.minimumf %610, %613 : vector<16x16xf32>
    %615 = vector.extract_strided_slice %583 {offsets = [0, 1], sizes = [16, 15], strides = [1, 1]} : vector<16x16xf32> to vector<16x15xf32>
    %616 = vector.extract_strided_slice %583 {offsets = [0, 15], sizes = [16, 1], strides = [1, 1]} : vector<16x16xf32> to vector<16x1xf32>
    %617 = tpu.concatenate %615, %616 in 1 : vector<16x15xf32>, vector<16x1xf32> -> vector<16x16xf32>
    %618 = vector.extract_strided_slice %583 {offsets = [0, 0], sizes = [16, 15], strides = [1, 1]} : vector<16x16xf32> to vector<16x15xf32>
    %619 = vector.extract_strided_slice %583 {offsets = [0, 0], sizes = [16, 1], strides = [1, 1]} : vector<16x16xf32> to vector<16x1xf32>
    %620 = tpu.concatenate %619, %618 in 1 : vector<16x1xf32>, vector<16x15xf32> -> vector<16x16xf32>
    %621 = arith.minimumf %617, %620 : vector<16x16xf32>
    %622 = arith.minimumf %614, %621 : vector<16x16xf32>
    %623 = arith.minimumf %583, %622 : vector<16x16xf32>
    %624 = vector.extract_strided_slice %623 {offsets = [1, 0], sizes = [15, 16], strides = [1, 1]} : vector<16x16xf32> to vector<15x16xf32>
    %625 = vector.extract_strided_slice %623 {offsets = [15, 0], sizes = [1, 16], strides = [1, 1]} : vector<16x16xf32> to vector<1x16xf32>
    %626 = tpu.concatenate %624, %625 in 0 : vector<15x16xf32>, vector<1x16xf32> -> vector<16x16xf32>
    %627 = vector.extract_strided_slice %623 {offsets = [0, 0], sizes = [15, 16], strides = [1, 1]} : vector<16x16xf32> to vector<15x16xf32>
    %628 = vector.extract_strided_slice %623 {offsets = [0, 0], sizes = [1, 16], strides = [1, 1]} : vector<16x16xf32> to vector<1x16xf32>
    %629 = tpu.concatenate %628, %627 in 0 : vector<1x16xf32>, vector<15x16xf32> -> vector<16x16xf32>
    %630 = arith.maximumf %626, %629 : vector<16x16xf32>
    %631 = arith.maximumf %623, %630 : vector<16x16xf32>
    %632 = vector.extract_strided_slice %631 {offsets = [0, 1], sizes = [16, 15], strides = [1, 1]} : vector<16x16xf32> to vector<16x15xf32>
    %633 = vector.extract_strided_slice %631 {offsets = [0, 15], sizes = [16, 1], strides = [1, 1]} : vector<16x16xf32> to vector<16x1xf32>
    %634 = tpu.concatenate %632, %633 in 1 : vector<16x15xf32>, vector<16x1xf32> -> vector<16x16xf32>
    %635 = vector.extract_strided_slice %631 {offsets = [0, 0], sizes = [16, 15], strides = [1, 1]} : vector<16x16xf32> to vector<16x15xf32>
    %636 = vector.extract_strided_slice %631 {offsets = [0, 0], sizes = [16, 1], strides = [1, 1]} : vector<16x16xf32> to vector<16x1xf32>
    %637 = tpu.concatenate %636, %635 in 1 : vector<16x1xf32>, vector<16x15xf32> -> vector<16x16xf32>
    %638 = arith.maximumf %634, %637 : vector<16x16xf32>
    %639 = arith.maximumf %631, %638 : vector<16x16xf32>
    %640 = arith.subf %583, %639 : vector<16x16xf32>
    %cst_39 = arith.constant 0.000000e+00 : f32
    %641 = vector.broadcast %cst_39 : f32 to vector<16x16xf32>
    %642 = arith.maximumf %640, %641 : vector<16x16xf32>
    %643 = arith.mulf %607, %642 : vector<16x16xf32>
    %644 = arith.subf %642, %643 : vector<16x16xf32>
    %cst_40 = arith.constant 0.000000e+00 : f32
    %645 = vector.broadcast %cst_40 : f32 to vector<16x16xf32>
    %646 = arith.maximumf %644, %645 : vector<16x16xf32>
    %647 = arith.addf %607, %646 : vector<16x16xf32>
    %648 = arith.mulf %492, %337 : vector<16x16xf32>
    %cst_41 = arith.constant dense<0.000000e+00> : vector<16xf32>
    %649 = vector.multi_reduction <add>, %648, %cst_41 [0] : vector<16x16xf32> to vector<16xf32>
    %650 = arith.addf %323, %649 : vector<16xf32>
    %cst_42 = arith.constant dense<0.000000e+00> : vector<16xf32>
    %651 = vector.multi_reduction <add>, %492, %cst_42 [0] : vector<16x16xf32> to vector<16xf32>
    %652 = arith.addf %325, %651 : vector<16xf32>
    %653 = arith.mulf %647, %332 : vector<16x16xf32>
    %cst_43 = arith.constant dense<0.000000e+00> : vector<16xf32>
    %654 = vector.multi_reduction <add>, %653, %cst_43 [0] : vector<16x16xf32> to vector<16xf32>
    %655 = arith.addf %328, %654 : vector<16xf32>
    %cst_44 = arith.constant dense<0.000000e+00> : vector<16xf32>
    %656 = vector.multi_reduction <add>, %647, %cst_44 [0] : vector<16x16xf32> to vector<16xf32>
    %657 = arith.addf %330, %656 : vector<16xf32>
    %c2 = arith.constant 2 : index
    %c0_45 = arith.constant 0 : index
    %c0_46 = arith.constant 0 : index
    %658 = vector.load %arg1[%c2, %c0_45, %c0_46] : memref<4x16x16xf32, #tpu.memory_space<vmem>>, vector<1x16x16xf32>
    %659 = vector.shape_cast %658 : vector<1x16x16xf32> to vector<16x16xf32>
    %660 = arith.negf %659 : vector<16x16xf32>
    %661 = math.exp %660 : vector<16x16xf32>
    %cst_47 = arith.constant 1.000000e+00 : f32
    %662 = vector.broadcast %cst_47 : f32 to vector<16x16xf32>
    %663 = arith.addf %662, %661 : vector<16x16xf32>
    %664 = arith.divf %662, %663 : vector<16x16xf32>
    %665 = vector.extract_strided_slice %659 {offsets = [1, 0], sizes = [15, 16], strides = [1, 1]} : vector<16x16xf32> to vector<15x16xf32>
    %666 = vector.extract_strided_slice %659 {offsets = [15, 0], sizes = [1, 16], strides = [1, 1]} : vector<16x16xf32> to vector<1x16xf32>
    %667 = tpu.concatenate %665, %666 in 0 : vector<15x16xf32>, vector<1x16xf32> -> vector<16x16xf32>
    %668 = vector.extract_strided_slice %659 {offsets = [0, 0], sizes = [15, 16], strides = [1, 1]} : vector<16x16xf32> to vector<15x16xf32>
    %669 = vector.extract_strided_slice %659 {offsets = [0, 0], sizes = [1, 16], strides = [1, 1]} : vector<16x16xf32> to vector<1x16xf32>
    %670 = tpu.concatenate %669, %668 in 0 : vector<1x16xf32>, vector<15x16xf32> -> vector<16x16xf32>
    %671 = arith.minimumf %667, %670 : vector<16x16xf32>
    %672 = vector.extract_strided_slice %659 {offsets = [0, 1], sizes = [16, 15], strides = [1, 1]} : vector<16x16xf32> to vector<16x15xf32>
    %673 = vector.extract_strided_slice %659 {offsets = [0, 15], sizes = [16, 1], strides = [1, 1]} : vector<16x16xf32> to vector<16x1xf32>
    %674 = tpu.concatenate %672, %673 in 1 : vector<16x15xf32>, vector<16x1xf32> -> vector<16x16xf32>
    %675 = vector.extract_strided_slice %659 {offsets = [0, 0], sizes = [16, 15], strides = [1, 1]} : vector<16x16xf32> to vector<16x15xf32>
    %676 = vector.extract_strided_slice %659 {offsets = [0, 0], sizes = [16, 1], strides = [1, 1]} : vector<16x16xf32> to vector<16x1xf32>
    %677 = tpu.concatenate %676, %675 in 1 : vector<16x1xf32>, vector<16x15xf32> -> vector<16x16xf32>
    %678 = arith.minimumf %674, %677 : vector<16x16xf32>
    %679 = arith.minimumf %671, %678 : vector<16x16xf32>
    %680 = arith.minimumf %659, %679 : vector<16x16xf32>
    %681 = vector.extract_strided_slice %680 {offsets = [1, 0], sizes = [15, 16], strides = [1, 1]} : vector<16x16xf32> to vector<15x16xf32>
    %682 = vector.extract_strided_slice %680 {offsets = [15, 0], sizes = [1, 16], strides = [1, 1]} : vector<16x16xf32> to vector<1x16xf32>
    %683 = tpu.concatenate %681, %682 in 0 : vector<15x16xf32>, vector<1x16xf32> -> vector<16x16xf32>
    %684 = vector.extract_strided_slice %680 {offsets = [0, 0], sizes = [15, 16], strides = [1, 1]} : vector<16x16xf32> to vector<15x16xf32>
    %685 = vector.extract_strided_slice %680 {offsets = [0, 0], sizes = [1, 16], strides = [1, 1]} : vector<16x16xf32> to vector<1x16xf32>
    %686 = tpu.concatenate %685, %684 in 0 : vector<1x16xf32>, vector<15x16xf32> -> vector<16x16xf32>
    %687 = arith.maximumf %683, %686 : vector<16x16xf32>
    %688 = arith.maximumf %680, %687 : vector<16x16xf32>
    %689 = vector.extract_strided_slice %688 {offsets = [0, 1], sizes = [16, 15], strides = [1, 1]} : vector<16x16xf32> to vector<16x15xf32>
    %690 = vector.extract_strided_slice %688 {offsets = [0, 15], sizes = [16, 1], strides = [1, 1]} : vector<16x16xf32> to vector<16x1xf32>
    %691 = tpu.concatenate %689, %690 in 1 : vector<16x15xf32>, vector<16x1xf32> -> vector<16x16xf32>
    %692 = vector.extract_strided_slice %688 {offsets = [0, 0], sizes = [16, 15], strides = [1, 1]} : vector<16x16xf32> to vector<16x15xf32>
    %693 = vector.extract_strided_slice %688 {offsets = [0, 0], sizes = [16, 1], strides = [1, 1]} : vector<16x16xf32> to vector<16x1xf32>
    %694 = tpu.concatenate %693, %692 in 1 : vector<16x1xf32>, vector<16x15xf32> -> vector<16x16xf32>
    %695 = arith.maximumf %691, %694 : vector<16x16xf32>
    %696 = arith.maximumf %688, %695 : vector<16x16xf32>
    %697 = arith.subf %659, %696 : vector<16x16xf32>
    %cst_48 = arith.constant 0.000000e+00 : f32
    %698 = vector.broadcast %cst_48 : f32 to vector<16x16xf32>
    %699 = arith.maximumf %697, %698 : vector<16x16xf32>
    %700 = vector.extract_strided_slice %680 {offsets = [1, 0], sizes = [15, 16], strides = [1, 1]} : vector<16x16xf32> to vector<15x16xf32>
    %701 = vector.extract_strided_slice %680 {offsets = [15, 0], sizes = [1, 16], strides = [1, 1]} : vector<16x16xf32> to vector<1x16xf32>
    %702 = tpu.concatenate %700, %701 in 0 : vector<15x16xf32>, vector<1x16xf32> -> vector<16x16xf32>
    %703 = vector.extract_strided_slice %680 {offsets = [0, 0], sizes = [15, 16], strides = [1, 1]} : vector<16x16xf32> to vector<15x16xf32>
    %704 = vector.extract_strided_slice %680 {offsets = [0, 0], sizes = [1, 16], strides = [1, 1]} : vector<16x16xf32> to vector<1x16xf32>
    %705 = tpu.concatenate %704, %703 in 0 : vector<1x16xf32>, vector<15x16xf32> -> vector<16x16xf32>
    %706 = arith.minimumf %702, %705 : vector<16x16xf32>
    %707 = vector.extract_strided_slice %680 {offsets = [0, 1], sizes = [16, 15], strides = [1, 1]} : vector<16x16xf32> to vector<16x15xf32>
    %708 = vector.extract_strided_slice %680 {offsets = [0, 15], sizes = [16, 1], strides = [1, 1]} : vector<16x16xf32> to vector<16x1xf32>
    %709 = tpu.concatenate %707, %708 in 1 : vector<16x15xf32>, vector<16x1xf32> -> vector<16x16xf32>
    %710 = vector.extract_strided_slice %680 {offsets = [0, 0], sizes = [16, 15], strides = [1, 1]} : vector<16x16xf32> to vector<16x15xf32>
    %711 = vector.extract_strided_slice %680 {offsets = [0, 0], sizes = [16, 1], strides = [1, 1]} : vector<16x16xf32> to vector<16x1xf32>
    %712 = tpu.concatenate %711, %710 in 1 : vector<16x1xf32>, vector<16x15xf32> -> vector<16x16xf32>
    %713 = arith.minimumf %709, %712 : vector<16x16xf32>
    %714 = arith.minimumf %706, %713 : vector<16x16xf32>
    %715 = arith.minimumf %680, %714 : vector<16x16xf32>
    %716 = vector.extract_strided_slice %715 {offsets = [1, 0], sizes = [15, 16], strides = [1, 1]} : vector<16x16xf32> to vector<15x16xf32>
    %717 = vector.extract_strided_slice %715 {offsets = [15, 0], sizes = [1, 16], strides = [1, 1]} : vector<16x16xf32> to vector<1x16xf32>
    %718 = tpu.concatenate %716, %717 in 0 : vector<15x16xf32>, vector<1x16xf32> -> vector<16x16xf32>
    %719 = vector.extract_strided_slice %715 {offsets = [0, 0], sizes = [15, 16], strides = [1, 1]} : vector<16x16xf32> to vector<15x16xf32>
    %720 = vector.extract_strided_slice %715 {offsets = [0, 0], sizes = [1, 16], strides = [1, 1]} : vector<16x16xf32> to vector<1x16xf32>
    %721 = tpu.concatenate %720, %719 in 0 : vector<1x16xf32>, vector<15x16xf32> -> vector<16x16xf32>
    %722 = arith.maximumf %718, %721 : vector<16x16xf32>
    %723 = arith.maximumf %715, %722 : vector<16x16xf32>
    %724 = vector.extract_strided_slice %723 {offsets = [0, 1], sizes = [16, 15], strides = [1, 1]} : vector<16x16xf32> to vector<16x15xf32>
    %725 = vector.extract_strided_slice %723 {offsets = [0, 15], sizes = [16, 1], strides = [1, 1]} : vector<16x16xf32> to vector<16x1xf32>
    %726 = tpu.concatenate %724, %725 in 1 : vector<16x15xf32>, vector<16x1xf32> -> vector<16x16xf32>
    %727 = vector.extract_strided_slice %723 {offsets = [0, 0], sizes = [16, 15], strides = [1, 1]} : vector<16x16xf32> to vector<16x15xf32>
    %728 = vector.extract_strided_slice %723 {offsets = [0, 0], sizes = [16, 1], strides = [1, 1]} : vector<16x16xf32> to vector<16x1xf32>
    %729 = tpu.concatenate %728, %727 in 1 : vector<16x1xf32>, vector<16x15xf32> -> vector<16x16xf32>
    %730 = arith.maximumf %726, %729 : vector<16x16xf32>
    %731 = arith.maximumf %723, %730 : vector<16x16xf32>
    %732 = arith.subf %680, %731 : vector<16x16xf32>
    %cst_49 = arith.constant 0.000000e+00 : f32
    %733 = vector.broadcast %cst_49 : f32 to vector<16x16xf32>
    %734 = arith.maximumf %732, %733 : vector<16x16xf32>
    %735 = arith.mulf %699, %734 : vector<16x16xf32>
    %736 = arith.subf %734, %735 : vector<16x16xf32>
    %cst_50 = arith.constant 0.000000e+00 : f32
    %737 = vector.broadcast %cst_50 : f32 to vector<16x16xf32>
    %738 = arith.maximumf %736, %737 : vector<16x16xf32>
    %739 = arith.addf %699, %738 : vector<16x16xf32>
    %740 = vector.extract_strided_slice %715 {offsets = [1, 0], sizes = [15, 16], strides = [1, 1]} : vector<16x16xf32> to vector<15x16xf32>
    %741 = vector.extract_strided_slice %715 {offsets = [15, 0], sizes = [1, 16], strides = [1, 1]} : vector<16x16xf32> to vector<1x16xf32>
    %742 = tpu.concatenate %740, %741 in 0 : vector<15x16xf32>, vector<1x16xf32> -> vector<16x16xf32>
    %743 = vector.extract_strided_slice %715 {offsets = [0, 0], sizes = [15, 16], strides = [1, 1]} : vector<16x16xf32> to vector<15x16xf32>
    %744 = vector.extract_strided_slice %715 {offsets = [0, 0], sizes = [1, 16], strides = [1, 1]} : vector<16x16xf32> to vector<1x16xf32>
    %745 = tpu.concatenate %744, %743 in 0 : vector<1x16xf32>, vector<15x16xf32> -> vector<16x16xf32>
    %746 = arith.minimumf %742, %745 : vector<16x16xf32>
    %747 = vector.extract_strided_slice %715 {offsets = [0, 1], sizes = [16, 15], strides = [1, 1]} : vector<16x16xf32> to vector<16x15xf32>
    %748 = vector.extract_strided_slice %715 {offsets = [0, 15], sizes = [16, 1], strides = [1, 1]} : vector<16x16xf32> to vector<16x1xf32>
    %749 = tpu.concatenate %747, %748 in 1 : vector<16x15xf32>, vector<16x1xf32> -> vector<16x16xf32>
    %750 = vector.extract_strided_slice %715 {offsets = [0, 0], sizes = [16, 15], strides = [1, 1]} : vector<16x16xf32> to vector<16x15xf32>
    %751 = vector.extract_strided_slice %715 {offsets = [0, 0], sizes = [16, 1], strides = [1, 1]} : vector<16x16xf32> to vector<16x1xf32>
    %752 = tpu.concatenate %751, %750 in 1 : vector<16x1xf32>, vector<16x15xf32> -> vector<16x16xf32>
    %753 = arith.minimumf %749, %752 : vector<16x16xf32>
    %754 = arith.minimumf %746, %753 : vector<16x16xf32>
    %755 = arith.minimumf %715, %754 : vector<16x16xf32>
    %756 = vector.extract_strided_slice %755 {offsets = [1, 0], sizes = [15, 16], strides = [1, 1]} : vector<16x16xf32> to vector<15x16xf32>
    %757 = vector.extract_strided_slice %755 {offsets = [15, 0], sizes = [1, 16], strides = [1, 1]} : vector<16x16xf32> to vector<1x16xf32>
    %758 = tpu.concatenate %756, %757 in 0 : vector<15x16xf32>, vector<1x16xf32> -> vector<16x16xf32>
    %759 = vector.extract_strided_slice %755 {offsets = [0, 0], sizes = [15, 16], strides = [1, 1]} : vector<16x16xf32> to vector<15x16xf32>
    %760 = vector.extract_strided_slice %755 {offsets = [0, 0], sizes = [1, 16], strides = [1, 1]} : vector<16x16xf32> to vector<1x16xf32>
    %761 = tpu.concatenate %760, %759 in 0 : vector<1x16xf32>, vector<15x16xf32> -> vector<16x16xf32>
    %762 = arith.maximumf %758, %761 : vector<16x16xf32>
    %763 = arith.maximumf %755, %762 : vector<16x16xf32>
    %764 = vector.extract_strided_slice %763 {offsets = [0, 1], sizes = [16, 15], strides = [1, 1]} : vector<16x16xf32> to vector<16x15xf32>
    %765 = vector.extract_strided_slice %763 {offsets = [0, 15], sizes = [16, 1], strides = [1, 1]} : vector<16x16xf32> to vector<16x1xf32>
    %766 = tpu.concatenate %764, %765 in 1 : vector<16x15xf32>, vector<16x1xf32> -> vector<16x16xf32>
    %767 = vector.extract_strided_slice %763 {offsets = [0, 0], sizes = [16, 15], strides = [1, 1]} : vector<16x16xf32> to vector<16x15xf32>
    %768 = vector.extract_strided_slice %763 {offsets = [0, 0], sizes = [16, 1], strides = [1, 1]} : vector<16x16xf32> to vector<16x1xf32>
    %769 = tpu.concatenate %768, %767 in 1 : vector<16x1xf32>, vector<16x15xf32> -> vector<16x16xf32>
    %770 = arith.maximumf %766, %769 : vector<16x16xf32>
    %771 = arith.maximumf %763, %770 : vector<16x16xf32>
    %772 = arith.subf %715, %771 : vector<16x16xf32>
    %cst_51 = arith.constant 0.000000e+00 : f32
    %773 = vector.broadcast %cst_51 : f32 to vector<16x16xf32>
    %774 = arith.maximumf %772, %773 : vector<16x16xf32>
    %775 = arith.mulf %739, %774 : vector<16x16xf32>
    %776 = arith.subf %774, %775 : vector<16x16xf32>
    %cst_52 = arith.constant 0.000000e+00 : f32
    %777 = vector.broadcast %cst_52 : f32 to vector<16x16xf32>
    %778 = arith.maximumf %776, %777 : vector<16x16xf32>
    %779 = arith.addf %739, %778 : vector<16x16xf32>
    %780 = vector.extract_strided_slice %755 {offsets = [1, 0], sizes = [15, 16], strides = [1, 1]} : vector<16x16xf32> to vector<15x16xf32>
    %781 = vector.extract_strided_slice %755 {offsets = [15, 0], sizes = [1, 16], strides = [1, 1]} : vector<16x16xf32> to vector<1x16xf32>
    %782 = tpu.concatenate %780, %781 in 0 : vector<15x16xf32>, vector<1x16xf32> -> vector<16x16xf32>
    %783 = vector.extract_strided_slice %755 {offsets = [0, 0], sizes = [15, 16], strides = [1, 1]} : vector<16x16xf32> to vector<15x16xf32>
    %784 = vector.extract_strided_slice %755 {offsets = [0, 0], sizes = [1, 16], strides = [1, 1]} : vector<16x16xf32> to vector<1x16xf32>
    %785 = tpu.concatenate %784, %783 in 0 : vector<1x16xf32>, vector<15x16xf32> -> vector<16x16xf32>
    %786 = arith.minimumf %782, %785 : vector<16x16xf32>
    %787 = vector.extract_strided_slice %755 {offsets = [0, 1], sizes = [16, 15], strides = [1, 1]} : vector<16x16xf32> to vector<16x15xf32>
    %788 = vector.extract_strided_slice %755 {offsets = [0, 15], sizes = [16, 1], strides = [1, 1]} : vector<16x16xf32> to vector<16x1xf32>
    %789 = tpu.concatenate %787, %788 in 1 : vector<16x15xf32>, vector<16x1xf32> -> vector<16x16xf32>
    %790 = vector.extract_strided_slice %755 {offsets = [0, 0], sizes = [16, 15], strides = [1, 1]} : vector<16x16xf32> to vector<16x15xf32>
    %791 = vector.extract_strided_slice %755 {offsets = [0, 0], sizes = [16, 1], strides = [1, 1]} : vector<16x16xf32> to vector<16x1xf32>
    %792 = tpu.concatenate %791, %790 in 1 : vector<16x1xf32>, vector<16x15xf32> -> vector<16x16xf32>
    %793 = arith.minimumf %789, %792 : vector<16x16xf32>
    %794 = arith.minimumf %786, %793 : vector<16x16xf32>
    %795 = arith.minimumf %755, %794 : vector<16x16xf32>
    %796 = vector.extract_strided_slice %795 {offsets = [1, 0], sizes = [15, 16], strides = [1, 1]} : vector<16x16xf32> to vector<15x16xf32>
    %797 = vector.extract_strided_slice %795 {offsets = [15, 0], sizes = [1, 16], strides = [1, 1]} : vector<16x16xf32> to vector<1x16xf32>
    %798 = tpu.concatenate %796, %797 in 0 : vector<15x16xf32>, vector<1x16xf32> -> vector<16x16xf32>
    %799 = vector.extract_strided_slice %795 {offsets = [0, 0], sizes = [15, 16], strides = [1, 1]} : vector<16x16xf32> to vector<15x16xf32>
    %800 = vector.extract_strided_slice %795 {offsets = [0, 0], sizes = [1, 16], strides = [1, 1]} : vector<16x16xf32> to vector<1x16xf32>
    %801 = tpu.concatenate %800, %799 in 0 : vector<1x16xf32>, vector<15x16xf32> -> vector<16x16xf32>
    %802 = arith.maximumf %798, %801 : vector<16x16xf32>
    %803 = arith.maximumf %795, %802 : vector<16x16xf32>
    %804 = vector.extract_strided_slice %803 {offsets = [0, 1], sizes = [16, 15], strides = [1, 1]} : vector<16x16xf32> to vector<16x15xf32>
    %805 = vector.extract_strided_slice %803 {offsets = [0, 15], sizes = [16, 1], strides = [1, 1]} : vector<16x16xf32> to vector<16x1xf32>
    %806 = tpu.concatenate %804, %805 in 1 : vector<16x15xf32>, vector<16x1xf32> -> vector<16x16xf32>
    %807 = vector.extract_strided_slice %803 {offsets = [0, 0], sizes = [16, 15], strides = [1, 1]} : vector<16x16xf32> to vector<16x15xf32>
    %808 = vector.extract_strided_slice %803 {offsets = [0, 0], sizes = [16, 1], strides = [1, 1]} : vector<16x16xf32> to vector<16x1xf32>
    %809 = tpu.concatenate %808, %807 in 1 : vector<16x1xf32>, vector<16x15xf32> -> vector<16x16xf32>
    %810 = arith.maximumf %806, %809 : vector<16x16xf32>
    %811 = arith.maximumf %803, %810 : vector<16x16xf32>
    %812 = arith.subf %755, %811 : vector<16x16xf32>
    %cst_53 = arith.constant 0.000000e+00 : f32
    %813 = vector.broadcast %cst_53 : f32 to vector<16x16xf32>
    %814 = arith.maximumf %812, %813 : vector<16x16xf32>
    %815 = arith.mulf %779, %814 : vector<16x16xf32>
    %816 = arith.subf %814, %815 : vector<16x16xf32>
    %cst_54 = arith.constant 0.000000e+00 : f32
    %817 = vector.broadcast %cst_54 : f32 to vector<16x16xf32>
    %818 = arith.maximumf %816, %817 : vector<16x16xf32>
    %819 = arith.addf %779, %818 : vector<16x16xf32>
    %820 = vector.extract_strided_slice %664 {offsets = [1, 0], sizes = [15, 16], strides = [1, 1]} : vector<16x16xf32> to vector<15x16xf32>
    %821 = vector.extract_strided_slice %664 {offsets = [15, 0], sizes = [1, 16], strides = [1, 1]} : vector<16x16xf32> to vector<1x16xf32>
    %822 = tpu.concatenate %820, %821 in 0 : vector<15x16xf32>, vector<1x16xf32> -> vector<16x16xf32>
    %823 = vector.extract_strided_slice %664 {offsets = [0, 0], sizes = [15, 16], strides = [1, 1]} : vector<16x16xf32> to vector<15x16xf32>
    %824 = vector.extract_strided_slice %664 {offsets = [0, 0], sizes = [1, 16], strides = [1, 1]} : vector<16x16xf32> to vector<1x16xf32>
    %825 = tpu.concatenate %824, %823 in 0 : vector<1x16xf32>, vector<15x16xf32> -> vector<16x16xf32>
    %826 = arith.minimumf %822, %825 : vector<16x16xf32>
    %827 = vector.extract_strided_slice %664 {offsets = [0, 1], sizes = [16, 15], strides = [1, 1]} : vector<16x16xf32> to vector<16x15xf32>
    %828 = vector.extract_strided_slice %664 {offsets = [0, 15], sizes = [16, 1], strides = [1, 1]} : vector<16x16xf32> to vector<16x1xf32>
    %829 = tpu.concatenate %827, %828 in 1 : vector<16x15xf32>, vector<16x1xf32> -> vector<16x16xf32>
    %830 = vector.extract_strided_slice %664 {offsets = [0, 0], sizes = [16, 15], strides = [1, 1]} : vector<16x16xf32> to vector<16x15xf32>
    %831 = vector.extract_strided_slice %664 {offsets = [0, 0], sizes = [16, 1], strides = [1, 1]} : vector<16x16xf32> to vector<16x1xf32>
    %832 = tpu.concatenate %831, %830 in 1 : vector<16x1xf32>, vector<16x15xf32> -> vector<16x16xf32>
    %833 = arith.minimumf %829, %832 : vector<16x16xf32>
    %834 = arith.minimumf %826, %833 : vector<16x16xf32>
    %835 = arith.minimumf %664, %834 : vector<16x16xf32>
    %836 = vector.extract_strided_slice %835 {offsets = [1, 0], sizes = [15, 16], strides = [1, 1]} : vector<16x16xf32> to vector<15x16xf32>
    %837 = vector.extract_strided_slice %835 {offsets = [15, 0], sizes = [1, 16], strides = [1, 1]} : vector<16x16xf32> to vector<1x16xf32>
    %838 = tpu.concatenate %836, %837 in 0 : vector<15x16xf32>, vector<1x16xf32> -> vector<16x16xf32>
    %839 = vector.extract_strided_slice %835 {offsets = [0, 0], sizes = [15, 16], strides = [1, 1]} : vector<16x16xf32> to vector<15x16xf32>
    %840 = vector.extract_strided_slice %835 {offsets = [0, 0], sizes = [1, 16], strides = [1, 1]} : vector<16x16xf32> to vector<1x16xf32>
    %841 = tpu.concatenate %840, %839 in 0 : vector<1x16xf32>, vector<15x16xf32> -> vector<16x16xf32>
    %842 = arith.maximumf %838, %841 : vector<16x16xf32>
    %843 = arith.maximumf %835, %842 : vector<16x16xf32>
    %844 = vector.extract_strided_slice %843 {offsets = [0, 1], sizes = [16, 15], strides = [1, 1]} : vector<16x16xf32> to vector<16x15xf32>
    %845 = vector.extract_strided_slice %843 {offsets = [0, 15], sizes = [16, 1], strides = [1, 1]} : vector<16x16xf32> to vector<16x1xf32>
    %846 = tpu.concatenate %844, %845 in 1 : vector<16x15xf32>, vector<16x1xf32> -> vector<16x16xf32>
    %847 = vector.extract_strided_slice %843 {offsets = [0, 0], sizes = [16, 15], strides = [1, 1]} : vector<16x16xf32> to vector<16x15xf32>
    %848 = vector.extract_strided_slice %843 {offsets = [0, 0], sizes = [16, 1], strides = [1, 1]} : vector<16x16xf32> to vector<16x1xf32>
    %849 = tpu.concatenate %848, %847 in 1 : vector<16x1xf32>, vector<16x15xf32> -> vector<16x16xf32>
    %850 = arith.maximumf %846, %849 : vector<16x16xf32>
    %851 = arith.maximumf %843, %850 : vector<16x16xf32>
    %852 = arith.subf %664, %851 : vector<16x16xf32>
    %cst_55 = arith.constant 0.000000e+00 : f32
    %853 = vector.broadcast %cst_55 : f32 to vector<16x16xf32>
    %854 = arith.maximumf %852, %853 : vector<16x16xf32>
    %855 = vector.extract_strided_slice %835 {offsets = [1, 0], sizes = [15, 16], strides = [1, 1]} : vector<16x16xf32> to vector<15x16xf32>
    %856 = vector.extract_strided_slice %835 {offsets = [15, 0], sizes = [1, 16], strides = [1, 1]} : vector<16x16xf32> to vector<1x16xf32>
    %857 = tpu.concatenate %855, %856 in 0 : vector<15x16xf32>, vector<1x16xf32> -> vector<16x16xf32>
    %858 = vector.extract_strided_slice %835 {offsets = [0, 0], sizes = [15, 16], strides = [1, 1]} : vector<16x16xf32> to vector<15x16xf32>
    %859 = vector.extract_strided_slice %835 {offsets = [0, 0], sizes = [1, 16], strides = [1, 1]} : vector<16x16xf32> to vector<1x16xf32>
    %860 = tpu.concatenate %859, %858 in 0 : vector<1x16xf32>, vector<15x16xf32> -> vector<16x16xf32>
    %861 = arith.minimumf %857, %860 : vector<16x16xf32>
    %862 = vector.extract_strided_slice %835 {offsets = [0, 1], sizes = [16, 15], strides = [1, 1]} : vector<16x16xf32> to vector<16x15xf32>
    %863 = vector.extract_strided_slice %835 {offsets = [0, 15], sizes = [16, 1], strides = [1, 1]} : vector<16x16xf32> to vector<16x1xf32>
    %864 = tpu.concatenate %862, %863 in 1 : vector<16x15xf32>, vector<16x1xf32> -> vector<16x16xf32>
    %865 = vector.extract_strided_slice %835 {offsets = [0, 0], sizes = [16, 15], strides = [1, 1]} : vector<16x16xf32> to vector<16x15xf32>
    %866 = vector.extract_strided_slice %835 {offsets = [0, 0], sizes = [16, 1], strides = [1, 1]} : vector<16x16xf32> to vector<16x1xf32>
    %867 = tpu.concatenate %866, %865 in 1 : vector<16x1xf32>, vector<16x15xf32> -> vector<16x16xf32>
    %868 = arith.minimumf %864, %867 : vector<16x16xf32>
    %869 = arith.minimumf %861, %868 : vector<16x16xf32>
    %870 = arith.minimumf %835, %869 : vector<16x16xf32>
    %871 = vector.extract_strided_slice %870 {offsets = [1, 0], sizes = [15, 16], strides = [1, 1]} : vector<16x16xf32> to vector<15x16xf32>
    %872 = vector.extract_strided_slice %870 {offsets = [15, 0], sizes = [1, 16], strides = [1, 1]} : vector<16x16xf32> to vector<1x16xf32>
    %873 = tpu.concatenate %871, %872 in 0 : vector<15x16xf32>, vector<1x16xf32> -> vector<16x16xf32>
    %874 = vector.extract_strided_slice %870 {offsets = [0, 0], sizes = [15, 16], strides = [1, 1]} : vector<16x16xf32> to vector<15x16xf32>
    %875 = vector.extract_strided_slice %870 {offsets = [0, 0], sizes = [1, 16], strides = [1, 1]} : vector<16x16xf32> to vector<1x16xf32>
    %876 = tpu.concatenate %875, %874 in 0 : vector<1x16xf32>, vector<15x16xf32> -> vector<16x16xf32>
    %877 = arith.maximumf %873, %876 : vector<16x16xf32>
    %878 = arith.maximumf %870, %877 : vector<16x16xf32>
    %879 = vector.extract_strided_slice %878 {offsets = [0, 1], sizes = [16, 15], strides = [1, 1]} : vector<16x16xf32> to vector<16x15xf32>
    %880 = vector.extract_strided_slice %878 {offsets = [0, 15], sizes = [16, 1], strides = [1, 1]} : vector<16x16xf32> to vector<16x1xf32>
    %881 = tpu.concatenate %879, %880 in 1 : vector<16x15xf32>, vector<16x1xf32> -> vector<16x16xf32>
    %882 = vector.extract_strided_slice %878 {offsets = [0, 0], sizes = [16, 15], strides = [1, 1]} : vector<16x16xf32> to vector<16x15xf32>
    %883 = vector.extract_strided_slice %878 {offsets = [0, 0], sizes = [16, 1], strides = [1, 1]} : vector<16x16xf32> to vector<16x1xf32>
    %884 = tpu.concatenate %883, %882 in 1 : vector<16x1xf32>, vector<16x15xf32> -> vector<16x16xf32>
    %885 = arith.maximumf %881, %884 : vector<16x16xf32>
    %886 = arith.maximumf %878, %885 : vector<16x16xf32>
    %887 = arith.subf %835, %886 : vector<16x16xf32>
    %cst_56 = arith.constant 0.000000e+00 : f32
    %888 = vector.broadcast %cst_56 : f32 to vector<16x16xf32>
    %889 = arith.maximumf %887, %888 : vector<16x16xf32>
    %890 = arith.mulf %854, %889 : vector<16x16xf32>
    %891 = arith.subf %889, %890 : vector<16x16xf32>
    %cst_57 = arith.constant 0.000000e+00 : f32
    %892 = vector.broadcast %cst_57 : f32 to vector<16x16xf32>
    %893 = arith.maximumf %891, %892 : vector<16x16xf32>
    %894 = arith.addf %854, %893 : vector<16x16xf32>
    %895 = vector.extract_strided_slice %870 {offsets = [1, 0], sizes = [15, 16], strides = [1, 1]} : vector<16x16xf32> to vector<15x16xf32>
    %896 = vector.extract_strided_slice %870 {offsets = [15, 0], sizes = [1, 16], strides = [1, 1]} : vector<16x16xf32> to vector<1x16xf32>
    %897 = tpu.concatenate %895, %896 in 0 : vector<15x16xf32>, vector<1x16xf32> -> vector<16x16xf32>
    %898 = vector.extract_strided_slice %870 {offsets = [0, 0], sizes = [15, 16], strides = [1, 1]} : vector<16x16xf32> to vector<15x16xf32>
    %899 = vector.extract_strided_slice %870 {offsets = [0, 0], sizes = [1, 16], strides = [1, 1]} : vector<16x16xf32> to vector<1x16xf32>
    %900 = tpu.concatenate %899, %898 in 0 : vector<1x16xf32>, vector<15x16xf32> -> vector<16x16xf32>
    %901 = arith.minimumf %897, %900 : vector<16x16xf32>
    %902 = vector.extract_strided_slice %870 {offsets = [0, 1], sizes = [16, 15], strides = [1, 1]} : vector<16x16xf32> to vector<16x15xf32>
    %903 = vector.extract_strided_slice %870 {offsets = [0, 15], sizes = [16, 1], strides = [1, 1]} : vector<16x16xf32> to vector<16x1xf32>
    %904 = tpu.concatenate %902, %903 in 1 : vector<16x15xf32>, vector<16x1xf32> -> vector<16x16xf32>
    %905 = vector.extract_strided_slice %870 {offsets = [0, 0], sizes = [16, 15], strides = [1, 1]} : vector<16x16xf32> to vector<16x15xf32>
    %906 = vector.extract_strided_slice %870 {offsets = [0, 0], sizes = [16, 1], strides = [1, 1]} : vector<16x16xf32> to vector<16x1xf32>
    %907 = tpu.concatenate %906, %905 in 1 : vector<16x1xf32>, vector<16x15xf32> -> vector<16x16xf32>
    %908 = arith.minimumf %904, %907 : vector<16x16xf32>
    %909 = arith.minimumf %901, %908 : vector<16x16xf32>
    %910 = arith.minimumf %870, %909 : vector<16x16xf32>
    %911 = vector.extract_strided_slice %910 {offsets = [1, 0], sizes = [15, 16], strides = [1, 1]} : vector<16x16xf32> to vector<15x16xf32>
    %912 = vector.extract_strided_slice %910 {offsets = [15, 0], sizes = [1, 16], strides = [1, 1]} : vector<16x16xf32> to vector<1x16xf32>
    %913 = tpu.concatenate %911, %912 in 0 : vector<15x16xf32>, vector<1x16xf32> -> vector<16x16xf32>
    %914 = vector.extract_strided_slice %910 {offsets = [0, 0], sizes = [15, 16], strides = [1, 1]} : vector<16x16xf32> to vector<15x16xf32>
    %915 = vector.extract_strided_slice %910 {offsets = [0, 0], sizes = [1, 16], strides = [1, 1]} : vector<16x16xf32> to vector<1x16xf32>
    %916 = tpu.concatenate %915, %914 in 0 : vector<1x16xf32>, vector<15x16xf32> -> vector<16x16xf32>
    %917 = arith.maximumf %913, %916 : vector<16x16xf32>
    %918 = arith.maximumf %910, %917 : vector<16x16xf32>
    %919 = vector.extract_strided_slice %918 {offsets = [0, 1], sizes = [16, 15], strides = [1, 1]} : vector<16x16xf32> to vector<16x15xf32>
    %920 = vector.extract_strided_slice %918 {offsets = [0, 15], sizes = [16, 1], strides = [1, 1]} : vector<16x16xf32> to vector<16x1xf32>
    %921 = tpu.concatenate %919, %920 in 1 : vector<16x15xf32>, vector<16x1xf32> -> vector<16x16xf32>
    %922 = vector.extract_strided_slice %918 {offsets = [0, 0], sizes = [16, 15], strides = [1, 1]} : vector<16x16xf32> to vector<16x15xf32>
    %923 = vector.extract_strided_slice %918 {offsets = [0, 0], sizes = [16, 1], strides = [1, 1]} : vector<16x16xf32> to vector<16x1xf32>
    %924 = tpu.concatenate %923, %922 in 1 : vector<16x1xf32>, vector<16x15xf32> -> vector<16x16xf32>
    %925 = arith.maximumf %921, %924 : vector<16x16xf32>
    %926 = arith.maximumf %918, %925 : vector<16x16xf32>
    %927 = arith.subf %870, %926 : vector<16x16xf32>
    %cst_58 = arith.constant 0.000000e+00 : f32
    %928 = vector.broadcast %cst_58 : f32 to vector<16x16xf32>
    %929 = arith.maximumf %927, %928 : vector<16x16xf32>
    %930 = arith.mulf %894, %929 : vector<16x16xf32>
    %931 = arith.subf %929, %930 : vector<16x16xf32>
    %cst_59 = arith.constant 0.000000e+00 : f32
    %932 = vector.broadcast %cst_59 : f32 to vector<16x16xf32>
    %933 = arith.maximumf %931, %932 : vector<16x16xf32>
    %934 = arith.addf %894, %933 : vector<16x16xf32>
    %935 = vector.extract_strided_slice %910 {offsets = [1, 0], sizes = [15, 16], strides = [1, 1]} : vector<16x16xf32> to vector<15x16xf32>
    %936 = vector.extract_strided_slice %910 {offsets = [15, 0], sizes = [1, 16], strides = [1, 1]} : vector<16x16xf32> to vector<1x16xf32>
    %937 = tpu.concatenate %935, %936 in 0 : vector<15x16xf32>, vector<1x16xf32> -> vector<16x16xf32>
    %938 = vector.extract_strided_slice %910 {offsets = [0, 0], sizes = [15, 16], strides = [1, 1]} : vector<16x16xf32> to vector<15x16xf32>
    %939 = vector.extract_strided_slice %910 {offsets = [0, 0], sizes = [1, 16], strides = [1, 1]} : vector<16x16xf32> to vector<1x16xf32>
    %940 = tpu.concatenate %939, %938 in 0 : vector<1x16xf32>, vector<15x16xf32> -> vector<16x16xf32>
    %941 = arith.minimumf %937, %940 : vector<16x16xf32>
    %942 = vector.extract_strided_slice %910 {offsets = [0, 1], sizes = [16, 15], strides = [1, 1]} : vector<16x16xf32> to vector<16x15xf32>
    %943 = vector.extract_strided_slice %910 {offsets = [0, 15], sizes = [16, 1], strides = [1, 1]} : vector<16x16xf32> to vector<16x1xf32>
    %944 = tpu.concatenate %942, %943 in 1 : vector<16x15xf32>, vector<16x1xf32> -> vector<16x16xf32>
    %945 = vector.extract_strided_slice %910 {offsets = [0, 0], sizes = [16, 15], strides = [1, 1]} : vector<16x16xf32> to vector<16x15xf32>
    %946 = vector.extract_strided_slice %910 {offsets = [0, 0], sizes = [16, 1], strides = [1, 1]} : vector<16x16xf32> to vector<16x1xf32>
    %947 = tpu.concatenate %946, %945 in 1 : vector<16x1xf32>, vector<16x15xf32> -> vector<16x16xf32>
    %948 = arith.minimumf %944, %947 : vector<16x16xf32>
    %949 = arith.minimumf %941, %948 : vector<16x16xf32>
    %950 = arith.minimumf %910, %949 : vector<16x16xf32>
    %951 = vector.extract_strided_slice %950 {offsets = [1, 0], sizes = [15, 16], strides = [1, 1]} : vector<16x16xf32> to vector<15x16xf32>
    %952 = vector.extract_strided_slice %950 {offsets = [15, 0], sizes = [1, 16], strides = [1, 1]} : vector<16x16xf32> to vector<1x16xf32>
    %953 = tpu.concatenate %951, %952 in 0 : vector<15x16xf32>, vector<1x16xf32> -> vector<16x16xf32>
    %954 = vector.extract_strided_slice %950 {offsets = [0, 0], sizes = [15, 16], strides = [1, 1]} : vector<16x16xf32> to vector<15x16xf32>
    %955 = vector.extract_strided_slice %950 {offsets = [0, 0], sizes = [1, 16], strides = [1, 1]} : vector<16x16xf32> to vector<1x16xf32>
    %956 = tpu.concatenate %955, %954 in 0 : vector<1x16xf32>, vector<15x16xf32> -> vector<16x16xf32>
    %957 = arith.maximumf %953, %956 : vector<16x16xf32>
    %958 = arith.maximumf %950, %957 : vector<16x16xf32>
    %959 = vector.extract_strided_slice %958 {offsets = [0, 1], sizes = [16, 15], strides = [1, 1]} : vector<16x16xf32> to vector<16x15xf32>
    %960 = vector.extract_strided_slice %958 {offsets = [0, 15], sizes = [16, 1], strides = [1, 1]} : vector<16x16xf32> to vector<16x1xf32>
    %961 = tpu.concatenate %959, %960 in 1 : vector<16x15xf32>, vector<16x1xf32> -> vector<16x16xf32>
    %962 = vector.extract_strided_slice %958 {offsets = [0, 0], sizes = [16, 15], strides = [1, 1]} : vector<16x16xf32> to vector<16x15xf32>
    %963 = vector.extract_strided_slice %958 {offsets = [0, 0], sizes = [16, 1], strides = [1, 1]} : vector<16x16xf32> to vector<16x1xf32>
    %964 = tpu.concatenate %963, %962 in 1 : vector<16x1xf32>, vector<16x15xf32> -> vector<16x16xf32>
    %965 = arith.maximumf %961, %964 : vector<16x16xf32>
    %966 = arith.maximumf %958, %965 : vector<16x16xf32>
    %967 = arith.subf %910, %966 : vector<16x16xf32>
    %cst_60 = arith.constant 0.000000e+00 : f32
    %968 = vector.broadcast %cst_60 : f32 to vector<16x16xf32>
    %969 = arith.maximumf %967, %968 : vector<16x16xf32>
    %970 = arith.mulf %934, %969 : vector<16x16xf32>
    %971 = arith.subf %969, %970 : vector<16x16xf32>
    %cst_61 = arith.constant 0.000000e+00 : f32
    %972 = vector.broadcast %cst_61 : f32 to vector<16x16xf32>
    %973 = arith.maximumf %971, %972 : vector<16x16xf32>
    %974 = arith.addf %934, %973 : vector<16x16xf32>
    %975 = arith.mulf %819, %664 : vector<16x16xf32>
    %cst_62 = arith.constant dense<0.000000e+00> : vector<16xf32>
    %976 = vector.multi_reduction <add>, %975, %cst_62 [0] : vector<16x16xf32> to vector<16xf32>
    %977 = arith.addf %650, %976 : vector<16xf32>
    %cst_63 = arith.constant dense<0.000000e+00> : vector<16xf32>
    %978 = vector.multi_reduction <add>, %819, %cst_63 [0] : vector<16x16xf32> to vector<16xf32>
    %979 = arith.addf %652, %978 : vector<16xf32>
    %980 = arith.mulf %974, %659 : vector<16x16xf32>
    %cst_64 = arith.constant dense<0.000000e+00> : vector<16xf32>
    %981 = vector.multi_reduction <add>, %980, %cst_64 [0] : vector<16x16xf32> to vector<16xf32>
    %982 = arith.addf %655, %981 : vector<16xf32>
    %cst_65 = arith.constant dense<0.000000e+00> : vector<16xf32>
    %983 = vector.multi_reduction <add>, %974, %cst_65 [0] : vector<16x16xf32> to vector<16xf32>
    %984 = arith.addf %657, %983 : vector<16xf32>
    %c3 = arith.constant 3 : index
    %c0_66 = arith.constant 0 : index
    %c0_67 = arith.constant 0 : index
    %985 = vector.load %arg1[%c3, %c0_66, %c0_67] : memref<4x16x16xf32, #tpu.memory_space<vmem>>, vector<1x16x16xf32>
    %986 = vector.shape_cast %985 : vector<1x16x16xf32> to vector<16x16xf32>
    %987 = arith.negf %986 : vector<16x16xf32>
    %988 = math.exp %987 : vector<16x16xf32>
    %cst_68 = arith.constant 1.000000e+00 : f32
    %989 = vector.broadcast %cst_68 : f32 to vector<16x16xf32>
    %990 = arith.addf %989, %988 : vector<16x16xf32>
    %991 = arith.divf %989, %990 : vector<16x16xf32>
    %992 = vector.extract_strided_slice %986 {offsets = [1, 0], sizes = [15, 16], strides = [1, 1]} : vector<16x16xf32> to vector<15x16xf32>
    %993 = vector.extract_strided_slice %986 {offsets = [15, 0], sizes = [1, 16], strides = [1, 1]} : vector<16x16xf32> to vector<1x16xf32>
    %994 = tpu.concatenate %992, %993 in 0 : vector<15x16xf32>, vector<1x16xf32> -> vector<16x16xf32>
    %995 = vector.extract_strided_slice %986 {offsets = [0, 0], sizes = [15, 16], strides = [1, 1]} : vector<16x16xf32> to vector<15x16xf32>
    %996 = vector.extract_strided_slice %986 {offsets = [0, 0], sizes = [1, 16], strides = [1, 1]} : vector<16x16xf32> to vector<1x16xf32>
    %997 = tpu.concatenate %996, %995 in 0 : vector<1x16xf32>, vector<15x16xf32> -> vector<16x16xf32>
    %998 = arith.minimumf %994, %997 : vector<16x16xf32>
    %999 = vector.extract_strided_slice %986 {offsets = [0, 1], sizes = [16, 15], strides = [1, 1]} : vector<16x16xf32> to vector<16x15xf32>
    %1000 = vector.extract_strided_slice %986 {offsets = [0, 15], sizes = [16, 1], strides = [1, 1]} : vector<16x16xf32> to vector<16x1xf32>
    %1001 = tpu.concatenate %999, %1000 in 1 : vector<16x15xf32>, vector<16x1xf32> -> vector<16x16xf32>
    %1002 = vector.extract_strided_slice %986 {offsets = [0, 0], sizes = [16, 15], strides = [1, 1]} : vector<16x16xf32> to vector<16x15xf32>
    %1003 = vector.extract_strided_slice %986 {offsets = [0, 0], sizes = [16, 1], strides = [1, 1]} : vector<16x16xf32> to vector<16x1xf32>
    %1004 = tpu.concatenate %1003, %1002 in 1 : vector<16x1xf32>, vector<16x15xf32> -> vector<16x16xf32>
    %1005 = arith.minimumf %1001, %1004 : vector<16x16xf32>
    %1006 = arith.minimumf %998, %1005 : vector<16x16xf32>
    %1007 = arith.minimumf %986, %1006 : vector<16x16xf32>
    %1008 = vector.extract_strided_slice %1007 {offsets = [1, 0], sizes = [15, 16], strides = [1, 1]} : vector<16x16xf32> to vector<15x16xf32>
    %1009 = vector.extract_strided_slice %1007 {offsets = [15, 0], sizes = [1, 16], strides = [1, 1]} : vector<16x16xf32> to vector<1x16xf32>
    %1010 = tpu.concatenate %1008, %1009 in 0 : vector<15x16xf32>, vector<1x16xf32> -> vector<16x16xf32>
    %1011 = vector.extract_strided_slice %1007 {offsets = [0, 0], sizes = [15, 16], strides = [1, 1]} : vector<16x16xf32> to vector<15x16xf32>
    %1012 = vector.extract_strided_slice %1007 {offsets = [0, 0], sizes = [1, 16], strides = [1, 1]} : vector<16x16xf32> to vector<1x16xf32>
    %1013 = tpu.concatenate %1012, %1011 in 0 : vector<1x16xf32>, vector<15x16xf32> -> vector<16x16xf32>
    %1014 = arith.maximumf %1010, %1013 : vector<16x16xf32>
    %1015 = arith.maximumf %1007, %1014 : vector<16x16xf32>
    %1016 = vector.extract_strided_slice %1015 {offsets = [0, 1], sizes = [16, 15], strides = [1, 1]} : vector<16x16xf32> to vector<16x15xf32>
    %1017 = vector.extract_strided_slice %1015 {offsets = [0, 15], sizes = [16, 1], strides = [1, 1]} : vector<16x16xf32> to vector<16x1xf32>
    %1018 = tpu.concatenate %1016, %1017 in 1 : vector<16x15xf32>, vector<16x1xf32> -> vector<16x16xf32>
    %1019 = vector.extract_strided_slice %1015 {offsets = [0, 0], sizes = [16, 15], strides = [1, 1]} : vector<16x16xf32> to vector<16x15xf32>
    %1020 = vector.extract_strided_slice %1015 {offsets = [0, 0], sizes = [16, 1], strides = [1, 1]} : vector<16x16xf32> to vector<16x1xf32>
    %1021 = tpu.concatenate %1020, %1019 in 1 : vector<16x1xf32>, vector<16x15xf32> -> vector<16x16xf32>
    %1022 = arith.maximumf %1018, %1021 : vector<16x16xf32>
    %1023 = arith.maximumf %1015, %1022 : vector<16x16xf32>
    %1024 = arith.subf %986, %1023 : vector<16x16xf32>
    %cst_69 = arith.constant 0.000000e+00 : f32
    %1025 = vector.broadcast %cst_69 : f32 to vector<16x16xf32>
    %1026 = arith.maximumf %1024, %1025 : vector<16x16xf32>
    %1027 = vector.extract_strided_slice %1007 {offsets = [1, 0], sizes = [15, 16], strides = [1, 1]} : vector<16x16xf32> to vector<15x16xf32>
    %1028 = vector.extract_strided_slice %1007 {offsets = [15, 0], sizes = [1, 16], strides = [1, 1]} : vector<16x16xf32> to vector<1x16xf32>
    %1029 = tpu.concatenate %1027, %1028 in 0 : vector<15x16xf32>, vector<1x16xf32> -> vector<16x16xf32>
    %1030 = vector.extract_strided_slice %1007 {offsets = [0, 0], sizes = [15, 16], strides = [1, 1]} : vector<16x16xf32> to vector<15x16xf32>
    %1031 = vector.extract_strided_slice %1007 {offsets = [0, 0], sizes = [1, 16], strides = [1, 1]} : vector<16x16xf32> to vector<1x16xf32>
    %1032 = tpu.concatenate %1031, %1030 in 0 : vector<1x16xf32>, vector<15x16xf32> -> vector<16x16xf32>
    %1033 = arith.minimumf %1029, %1032 : vector<16x16xf32>
    %1034 = vector.extract_strided_slice %1007 {offsets = [0, 1], sizes = [16, 15], strides = [1, 1]} : vector<16x16xf32> to vector<16x15xf32>
    %1035 = vector.extract_strided_slice %1007 {offsets = [0, 15], sizes = [16, 1], strides = [1, 1]} : vector<16x16xf32> to vector<16x1xf32>
    %1036 = tpu.concatenate %1034, %1035 in 1 : vector<16x15xf32>, vector<16x1xf32> -> vector<16x16xf32>
    %1037 = vector.extract_strided_slice %1007 {offsets = [0, 0], sizes = [16, 15], strides = [1, 1]} : vector<16x16xf32> to vector<16x15xf32>
    %1038 = vector.extract_strided_slice %1007 {offsets = [0, 0], sizes = [16, 1], strides = [1, 1]} : vector<16x16xf32> to vector<16x1xf32>
    %1039 = tpu.concatenate %1038, %1037 in 1 : vector<16x1xf32>, vector<16x15xf32> -> vector<16x16xf32>
    %1040 = arith.minimumf %1036, %1039 : vector<16x16xf32>
    %1041 = arith.minimumf %1033, %1040 : vector<16x16xf32>
    %1042 = arith.minimumf %1007, %1041 : vector<16x16xf32>
    %1043 = vector.extract_strided_slice %1042 {offsets = [1, 0], sizes = [15, 16], strides = [1, 1]} : vector<16x16xf32> to vector<15x16xf32>
    %1044 = vector.extract_strided_slice %1042 {offsets = [15, 0], sizes = [1, 16], strides = [1, 1]} : vector<16x16xf32> to vector<1x16xf32>
    %1045 = tpu.concatenate %1043, %1044 in 0 : vector<15x16xf32>, vector<1x16xf32> -> vector<16x16xf32>
    %1046 = vector.extract_strided_slice %1042 {offsets = [0, 0], sizes = [15, 16], strides = [1, 1]} : vector<16x16xf32> to vector<15x16xf32>
    %1047 = vector.extract_strided_slice %1042 {offsets = [0, 0], sizes = [1, 16], strides = [1, 1]} : vector<16x16xf32> to vector<1x16xf32>
    %1048 = tpu.concatenate %1047, %1046 in 0 : vector<1x16xf32>, vector<15x16xf32> -> vector<16x16xf32>
    %1049 = arith.maximumf %1045, %1048 : vector<16x16xf32>
    %1050 = arith.maximumf %1042, %1049 : vector<16x16xf32>
    %1051 = vector.extract_strided_slice %1050 {offsets = [0, 1], sizes = [16, 15], strides = [1, 1]} : vector<16x16xf32> to vector<16x15xf32>
    %1052 = vector.extract_strided_slice %1050 {offsets = [0, 15], sizes = [16, 1], strides = [1, 1]} : vector<16x16xf32> to vector<16x1xf32>
    %1053 = tpu.concatenate %1051, %1052 in 1 : vector<16x15xf32>, vector<16x1xf32> -> vector<16x16xf32>
    %1054 = vector.extract_strided_slice %1050 {offsets = [0, 0], sizes = [16, 15], strides = [1, 1]} : vector<16x16xf32> to vector<16x15xf32>
    %1055 = vector.extract_strided_slice %1050 {offsets = [0, 0], sizes = [16, 1], strides = [1, 1]} : vector<16x16xf32> to vector<16x1xf32>
    %1056 = tpu.concatenate %1055, %1054 in 1 : vector<16x1xf32>, vector<16x15xf32> -> vector<16x16xf32>
    %1057 = arith.maximumf %1053, %1056 : vector<16x16xf32>
    %1058 = arith.maximumf %1050, %1057 : vector<16x16xf32>
    %1059 = arith.subf %1007, %1058 : vector<16x16xf32>
    %cst_70 = arith.constant 0.000000e+00 : f32
    %1060 = vector.broadcast %cst_70 : f32 to vector<16x16xf32>
    %1061 = arith.maximumf %1059, %1060 : vector<16x16xf32>
    %1062 = arith.mulf %1026, %1061 : vector<16x16xf32>
    %1063 = arith.subf %1061, %1062 : vector<16x16xf32>
    %cst_71 = arith.constant 0.000000e+00 : f32
    %1064 = vector.broadcast %cst_71 : f32 to vector<16x16xf32>
    %1065 = arith.maximumf %1063, %1064 : vector<16x16xf32>
    %1066 = arith.addf %1026, %1065 : vector<16x16xf32>
    %1067 = vector.extract_strided_slice %1042 {offsets = [1, 0], sizes = [15, 16], strides = [1, 1]} : vector<16x16xf32> to vector<15x16xf32>
    %1068 = vector.extract_strided_slice %1042 {offsets = [15, 0], sizes = [1, 16], strides = [1, 1]} : vector<16x16xf32> to vector<1x16xf32>
    %1069 = tpu.concatenate %1067, %1068 in 0 : vector<15x16xf32>, vector<1x16xf32> -> vector<16x16xf32>
    %1070 = vector.extract_strided_slice %1042 {offsets = [0, 0], sizes = [15, 16], strides = [1, 1]} : vector<16x16xf32> to vector<15x16xf32>
    %1071 = vector.extract_strided_slice %1042 {offsets = [0, 0], sizes = [1, 16], strides = [1, 1]} : vector<16x16xf32> to vector<1x16xf32>
    %1072 = tpu.concatenate %1071, %1070 in 0 : vector<1x16xf32>, vector<15x16xf32> -> vector<16x16xf32>
    %1073 = arith.minimumf %1069, %1072 : vector<16x16xf32>
    %1074 = vector.extract_strided_slice %1042 {offsets = [0, 1], sizes = [16, 15], strides = [1, 1]} : vector<16x16xf32> to vector<16x15xf32>
    %1075 = vector.extract_strided_slice %1042 {offsets = [0, 15], sizes = [16, 1], strides = [1, 1]} : vector<16x16xf32> to vector<16x1xf32>
    %1076 = tpu.concatenate %1074, %1075 in 1 : vector<16x15xf32>, vector<16x1xf32> -> vector<16x16xf32>
    %1077 = vector.extract_strided_slice %1042 {offsets = [0, 0], sizes = [16, 15], strides = [1, 1]} : vector<16x16xf32> to vector<16x15xf32>
    %1078 = vector.extract_strided_slice %1042 {offsets = [0, 0], sizes = [16, 1], strides = [1, 1]} : vector<16x16xf32> to vector<16x1xf32>
    %1079 = tpu.concatenate %1078, %1077 in 1 : vector<16x1xf32>, vector<16x15xf32> -> vector<16x16xf32>
    %1080 = arith.minimumf %1076, %1079 : vector<16x16xf32>
    %1081 = arith.minimumf %1073, %1080 : vector<16x16xf32>
    %1082 = arith.minimumf %1042, %1081 : vector<16x16xf32>
    %1083 = vector.extract_strided_slice %1082 {offsets = [1, 0], sizes = [15, 16], strides = [1, 1]} : vector<16x16xf32> to vector<15x16xf32>
    %1084 = vector.extract_strided_slice %1082 {offsets = [15, 0], sizes = [1, 16], strides = [1, 1]} : vector<16x16xf32> to vector<1x16xf32>
    %1085 = tpu.concatenate %1083, %1084 in 0 : vector<15x16xf32>, vector<1x16xf32> -> vector<16x16xf32>
    %1086 = vector.extract_strided_slice %1082 {offsets = [0, 0], sizes = [15, 16], strides = [1, 1]} : vector<16x16xf32> to vector<15x16xf32>
    %1087 = vector.extract_strided_slice %1082 {offsets = [0, 0], sizes = [1, 16], strides = [1, 1]} : vector<16x16xf32> to vector<1x16xf32>
    %1088 = tpu.concatenate %1087, %1086 in 0 : vector<1x16xf32>, vector<15x16xf32> -> vector<16x16xf32>
    %1089 = arith.maximumf %1085, %1088 : vector<16x16xf32>
    %1090 = arith.maximumf %1082, %1089 : vector<16x16xf32>
    %1091 = vector.extract_strided_slice %1090 {offsets = [0, 1], sizes = [16, 15], strides = [1, 1]} : vector<16x16xf32> to vector<16x15xf32>
    %1092 = vector.extract_strided_slice %1090 {offsets = [0, 15], sizes = [16, 1], strides = [1, 1]} : vector<16x16xf32> to vector<16x1xf32>
    %1093 = tpu.concatenate %1091, %1092 in 1 : vector<16x15xf32>, vector<16x1xf32> -> vector<16x16xf32>
    %1094 = vector.extract_strided_slice %1090 {offsets = [0, 0], sizes = [16, 15], strides = [1, 1]} : vector<16x16xf32> to vector<16x15xf32>
    %1095 = vector.extract_strided_slice %1090 {offsets = [0, 0], sizes = [16, 1], strides = [1, 1]} : vector<16x16xf32> to vector<16x1xf32>
    %1096 = tpu.concatenate %1095, %1094 in 1 : vector<16x1xf32>, vector<16x15xf32> -> vector<16x16xf32>
    %1097 = arith.maximumf %1093, %1096 : vector<16x16xf32>
    %1098 = arith.maximumf %1090, %1097 : vector<16x16xf32>
    %1099 = arith.subf %1042, %1098 : vector<16x16xf32>
    %cst_72 = arith.constant 0.000000e+00 : f32
    %1100 = vector.broadcast %cst_72 : f32 to vector<16x16xf32>
    %1101 = arith.maximumf %1099, %1100 : vector<16x16xf32>
    %1102 = arith.mulf %1066, %1101 : vector<16x16xf32>
    %1103 = arith.subf %1101, %1102 : vector<16x16xf32>
    %cst_73 = arith.constant 0.000000e+00 : f32
    %1104 = vector.broadcast %cst_73 : f32 to vector<16x16xf32>
    %1105 = arith.maximumf %1103, %1104 : vector<16x16xf32>
    %1106 = arith.addf %1066, %1105 : vector<16x16xf32>
    %1107 = vector.extract_strided_slice %1082 {offsets = [1, 0], sizes = [15, 16], strides = [1, 1]} : vector<16x16xf32> to vector<15x16xf32>
    %1108 = vector.extract_strided_slice %1082 {offsets = [15, 0], sizes = [1, 16], strides = [1, 1]} : vector<16x16xf32> to vector<1x16xf32>
    %1109 = tpu.concatenate %1107, %1108 in 0 : vector<15x16xf32>, vector<1x16xf32> -> vector<16x16xf32>
    %1110 = vector.extract_strided_slice %1082 {offsets = [0, 0], sizes = [15, 16], strides = [1, 1]} : vector<16x16xf32> to vector<15x16xf32>
    %1111 = vector.extract_strided_slice %1082 {offsets = [0, 0], sizes = [1, 16], strides = [1, 1]} : vector<16x16xf32> to vector<1x16xf32>
    %1112 = tpu.concatenate %1111, %1110 in 0 : vector<1x16xf32>, vector<15x16xf32> -> vector<16x16xf32>
    %1113 = arith.minimumf %1109, %1112 : vector<16x16xf32>
    %1114 = vector.extract_strided_slice %1082 {offsets = [0, 1], sizes = [16, 15], strides = [1, 1]} : vector<16x16xf32> to vector<16x15xf32>
    %1115 = vector.extract_strided_slice %1082 {offsets = [0, 15], sizes = [16, 1], strides = [1, 1]} : vector<16x16xf32> to vector<16x1xf32>
    %1116 = tpu.concatenate %1114, %1115 in 1 : vector<16x15xf32>, vector<16x1xf32> -> vector<16x16xf32>
    %1117 = vector.extract_strided_slice %1082 {offsets = [0, 0], sizes = [16, 15], strides = [1, 1]} : vector<16x16xf32> to vector<16x15xf32>
    %1118 = vector.extract_strided_slice %1082 {offsets = [0, 0], sizes = [16, 1], strides = [1, 1]} : vector<16x16xf32> to vector<16x1xf32>
    %1119 = tpu.concatenate %1118, %1117 in 1 : vector<16x1xf32>, vector<16x15xf32> -> vector<16x16xf32>
    %1120 = arith.minimumf %1116, %1119 : vector<16x16xf32>
    %1121 = arith.minimumf %1113, %1120 : vector<16x16xf32>
    %1122 = arith.minimumf %1082, %1121 : vector<16x16xf32>
    %1123 = vector.extract_strided_slice %1122 {offsets = [1, 0], sizes = [15, 16], strides = [1, 1]} : vector<16x16xf32> to vector<15x16xf32>
    %1124 = vector.extract_strided_slice %1122 {offsets = [15, 0], sizes = [1, 16], strides = [1, 1]} : vector<16x16xf32> to vector<1x16xf32>
    %1125 = tpu.concatenate %1123, %1124 in 0 : vector<15x16xf32>, vector<1x16xf32> -> vector<16x16xf32>
    %1126 = vector.extract_strided_slice %1122 {offsets = [0, 0], sizes = [15, 16], strides = [1, 1]} : vector<16x16xf32> to vector<15x16xf32>
    %1127 = vector.extract_strided_slice %1122 {offsets = [0, 0], sizes = [1, 16], strides = [1, 1]} : vector<16x16xf32> to vector<1x16xf32>
    %1128 = tpu.concatenate %1127, %1126 in 0 : vector<1x16xf32>, vector<15x16xf32> -> vector<16x16xf32>
    %1129 = arith.maximumf %1125, %1128 : vector<16x16xf32>
    %1130 = arith.maximumf %1122, %1129 : vector<16x16xf32>
    %1131 = vector.extract_strided_slice %1130 {offsets = [0, 1], sizes = [16, 15], strides = [1, 1]} : vector<16x16xf32> to vector<16x15xf32>
    %1132 = vector.extract_strided_slice %1130 {offsets = [0, 15], sizes = [16, 1], strides = [1, 1]} : vector<16x16xf32> to vector<16x1xf32>
    %1133 = tpu.concatenate %1131, %1132 in 1 : vector<16x15xf32>, vector<16x1xf32> -> vector<16x16xf32>
    %1134 = vector.extract_strided_slice %1130 {offsets = [0, 0], sizes = [16, 15], strides = [1, 1]} : vector<16x16xf32> to vector<16x15xf32>
    %1135 = vector.extract_strided_slice %1130 {offsets = [0, 0], sizes = [16, 1], strides = [1, 1]} : vector<16x16xf32> to vector<16x1xf32>
    %1136 = tpu.concatenate %1135, %1134 in 1 : vector<16x1xf32>, vector<16x15xf32> -> vector<16x16xf32>
    %1137 = arith.maximumf %1133, %1136 : vector<16x16xf32>
    %1138 = arith.maximumf %1130, %1137 : vector<16x16xf32>
    %1139 = arith.subf %1082, %1138 : vector<16x16xf32>
    %cst_74 = arith.constant 0.000000e+00 : f32
    %1140 = vector.broadcast %cst_74 : f32 to vector<16x16xf32>
    %1141 = arith.maximumf %1139, %1140 : vector<16x16xf32>
    %1142 = arith.mulf %1106, %1141 : vector<16x16xf32>
    %1143 = arith.subf %1141, %1142 : vector<16x16xf32>
    %cst_75 = arith.constant 0.000000e+00 : f32
    %1144 = vector.broadcast %cst_75 : f32 to vector<16x16xf32>
    %1145 = arith.maximumf %1143, %1144 : vector<16x16xf32>
    %1146 = arith.addf %1106, %1145 : vector<16x16xf32>
    %1147 = vector.extract_strided_slice %991 {offsets = [1, 0], sizes = [15, 16], strides = [1, 1]} : vector<16x16xf32> to vector<15x16xf32>
    %1148 = vector.extract_strided_slice %991 {offsets = [15, 0], sizes = [1, 16], strides = [1, 1]} : vector<16x16xf32> to vector<1x16xf32>
    %1149 = tpu.concatenate %1147, %1148 in 0 : vector<15x16xf32>, vector<1x16xf32> -> vector<16x16xf32>
    %1150 = vector.extract_strided_slice %991 {offsets = [0, 0], sizes = [15, 16], strides = [1, 1]} : vector<16x16xf32> to vector<15x16xf32>
    %1151 = vector.extract_strided_slice %991 {offsets = [0, 0], sizes = [1, 16], strides = [1, 1]} : vector<16x16xf32> to vector<1x16xf32>
    %1152 = tpu.concatenate %1151, %1150 in 0 : vector<1x16xf32>, vector<15x16xf32> -> vector<16x16xf32>
    %1153 = arith.minimumf %1149, %1152 : vector<16x16xf32>
    %1154 = vector.extract_strided_slice %991 {offsets = [0, 1], sizes = [16, 15], strides = [1, 1]} : vector<16x16xf32> to vector<16x15xf32>
    %1155 = vector.extract_strided_slice %991 {offsets = [0, 15], sizes = [16, 1], strides = [1, 1]} : vector<16x16xf32> to vector<16x1xf32>
    %1156 = tpu.concatenate %1154, %1155 in 1 : vector<16x15xf32>, vector<16x1xf32> -> vector<16x16xf32>
    %1157 = vector.extract_strided_slice %991 {offsets = [0, 0], sizes = [16, 15], strides = [1, 1]} : vector<16x16xf32> to vector<16x15xf32>
    %1158 = vector.extract_strided_slice %991 {offsets = [0, 0], sizes = [16, 1], strides = [1, 1]} : vector<16x16xf32> to vector<16x1xf32>
    %1159 = tpu.concatenate %1158, %1157 in 1 : vector<16x1xf32>, vector<16x15xf32> -> vector<16x16xf32>
    %1160 = arith.minimumf %1156, %1159 : vector<16x16xf32>
    %1161 = arith.minimumf %1153, %1160 : vector<16x16xf32>
    %1162 = arith.minimumf %991, %1161 : vector<16x16xf32>
    %1163 = vector.extract_strided_slice %1162 {offsets = [1, 0], sizes = [15, 16], strides = [1, 1]} : vector<16x16xf32> to vector<15x16xf32>
    %1164 = vector.extract_strided_slice %1162 {offsets = [15, 0], sizes = [1, 16], strides = [1, 1]} : vector<16x16xf32> to vector<1x16xf32>
    %1165 = tpu.concatenate %1163, %1164 in 0 : vector<15x16xf32>, vector<1x16xf32> -> vector<16x16xf32>
    %1166 = vector.extract_strided_slice %1162 {offsets = [0, 0], sizes = [15, 16], strides = [1, 1]} : vector<16x16xf32> to vector<15x16xf32>
    %1167 = vector.extract_strided_slice %1162 {offsets = [0, 0], sizes = [1, 16], strides = [1, 1]} : vector<16x16xf32> to vector<1x16xf32>
    %1168 = tpu.concatenate %1167, %1166 in 0 : vector<1x16xf32>, vector<15x16xf32> -> vector<16x16xf32>
    %1169 = arith.maximumf %1165, %1168 : vector<16x16xf32>
    %1170 = arith.maximumf %1162, %1169 : vector<16x16xf32>
    %1171 = vector.extract_strided_slice %1170 {offsets = [0, 1], sizes = [16, 15], strides = [1, 1]} : vector<16x16xf32> to vector<16x15xf32>
    %1172 = vector.extract_strided_slice %1170 {offsets = [0, 15], sizes = [16, 1], strides = [1, 1]} : vector<16x16xf32> to vector<16x1xf32>
    %1173 = tpu.concatenate %1171, %1172 in 1 : vector<16x15xf32>, vector<16x1xf32> -> vector<16x16xf32>
    %1174 = vector.extract_strided_slice %1170 {offsets = [0, 0], sizes = [16, 15], strides = [1, 1]} : vector<16x16xf32> to vector<16x15xf32>
    %1175 = vector.extract_strided_slice %1170 {offsets = [0, 0], sizes = [16, 1], strides = [1, 1]} : vector<16x16xf32> to vector<16x1xf32>
    %1176 = tpu.concatenate %1175, %1174 in 1 : vector<16x1xf32>, vector<16x15xf32> -> vector<16x16xf32>
    %1177 = arith.maximumf %1173, %1176 : vector<16x16xf32>
    %1178 = arith.maximumf %1170, %1177 : vector<16x16xf32>
    %1179 = arith.subf %991, %1178 : vector<16x16xf32>
    %cst_76 = arith.constant 0.000000e+00 : f32
    %1180 = vector.broadcast %cst_76 : f32 to vector<16x16xf32>
    %1181 = arith.maximumf %1179, %1180 : vector<16x16xf32>
    %1182 = vector.extract_strided_slice %1162 {offsets = [1, 0], sizes = [15, 16], strides = [1, 1]} : vector<16x16xf32> to vector<15x16xf32>
    %1183 = vector.extract_strided_slice %1162 {offsets = [15, 0], sizes = [1, 16], strides = [1, 1]} : vector<16x16xf32> to vector<1x16xf32>
    %1184 = tpu.concatenate %1182, %1183 in 0 : vector<15x16xf32>, vector<1x16xf32> -> vector<16x16xf32>
    %1185 = vector.extract_strided_slice %1162 {offsets = [0, 0], sizes = [15, 16], strides = [1, 1]} : vector<16x16xf32> to vector<15x16xf32>
    %1186 = vector.extract_strided_slice %1162 {offsets = [0, 0], sizes = [1, 16], strides = [1, 1]} : vector<16x16xf32> to vector<1x16xf32>
    %1187 = tpu.concatenate %1186, %1185 in 0 : vector<1x16xf32>, vector<15x16xf32> -> vector<16x16xf32>
    %1188 = arith.minimumf %1184, %1187 : vector<16x16xf32>
    %1189 = vector.extract_strided_slice %1162 {offsets = [0, 1], sizes = [16, 15], strides = [1, 1]} : vector<16x16xf32> to vector<16x15xf32>
    %1190 = vector.extract_strided_slice %1162 {offsets = [0, 15], sizes = [16, 1], strides = [1, 1]} : vector<16x16xf32> to vector<16x1xf32>
    %1191 = tpu.concatenate %1189, %1190 in 1 : vector<16x15xf32>, vector<16x1xf32> -> vector<16x16xf32>
    %1192 = vector.extract_strided_slice %1162 {offsets = [0, 0], sizes = [16, 15], strides = [1, 1]} : vector<16x16xf32> to vector<16x15xf32>
    %1193 = vector.extract_strided_slice %1162 {offsets = [0, 0], sizes = [16, 1], strides = [1, 1]} : vector<16x16xf32> to vector<16x1xf32>
    %1194 = tpu.concatenate %1193, %1192 in 1 : vector<16x1xf32>, vector<16x15xf32> -> vector<16x16xf32>
    %1195 = arith.minimumf %1191, %1194 : vector<16x16xf32>
    %1196 = arith.minimumf %1188, %1195 : vector<16x16xf32>
    %1197 = arith.minimumf %1162, %1196 : vector<16x16xf32>
    %1198 = vector.extract_strided_slice %1197 {offsets = [1, 0], sizes = [15, 16], strides = [1, 1]} : vector<16x16xf32> to vector<15x16xf32>
    %1199 = vector.extract_strided_slice %1197 {offsets = [15, 0], sizes = [1, 16], strides = [1, 1]} : vector<16x16xf32> to vector<1x16xf32>
    %1200 = tpu.concatenate %1198, %1199 in 0 : vector<15x16xf32>, vector<1x16xf32> -> vector<16x16xf32>
    %1201 = vector.extract_strided_slice %1197 {offsets = [0, 0], sizes = [15, 16], strides = [1, 1]} : vector<16x16xf32> to vector<15x16xf32>
    %1202 = vector.extract_strided_slice %1197 {offsets = [0, 0], sizes = [1, 16], strides = [1, 1]} : vector<16x16xf32> to vector<1x16xf32>
    %1203 = tpu.concatenate %1202, %1201 in 0 : vector<1x16xf32>, vector<15x16xf32> -> vector<16x16xf32>
    %1204 = arith.maximumf %1200, %1203 : vector<16x16xf32>
    %1205 = arith.maximumf %1197, %1204 : vector<16x16xf32>
    %1206 = vector.extract_strided_slice %1205 {offsets = [0, 1], sizes = [16, 15], strides = [1, 1]} : vector<16x16xf32> to vector<16x15xf32>
    %1207 = vector.extract_strided_slice %1205 {offsets = [0, 15], sizes = [16, 1], strides = [1, 1]} : vector<16x16xf32> to vector<16x1xf32>
    %1208 = tpu.concatenate %1206, %1207 in 1 : vector<16x15xf32>, vector<16x1xf32> -> vector<16x16xf32>
    %1209 = vector.extract_strided_slice %1205 {offsets = [0, 0], sizes = [16, 15], strides = [1, 1]} : vector<16x16xf32> to vector<16x15xf32>
    %1210 = vector.extract_strided_slice %1205 {offsets = [0, 0], sizes = [16, 1], strides = [1, 1]} : vector<16x16xf32> to vector<16x1xf32>
    %1211 = tpu.concatenate %1210, %1209 in 1 : vector<16x1xf32>, vector<16x15xf32> -> vector<16x16xf32>
    %1212 = arith.maximumf %1208, %1211 : vector<16x16xf32>
    %1213 = arith.maximumf %1205, %1212 : vector<16x16xf32>
    %1214 = arith.subf %1162, %1213 : vector<16x16xf32>
    %cst_77 = arith.constant 0.000000e+00 : f32
    %1215 = vector.broadcast %cst_77 : f32 to vector<16x16xf32>
    %1216 = arith.maximumf %1214, %1215 : vector<16x16xf32>
    %1217 = arith.mulf %1181, %1216 : vector<16x16xf32>
    %1218 = arith.subf %1216, %1217 : vector<16x16xf32>
    %cst_78 = arith.constant 0.000000e+00 : f32
    %1219 = vector.broadcast %cst_78 : f32 to vector<16x16xf32>
    %1220 = arith.maximumf %1218, %1219 : vector<16x16xf32>
    %1221 = arith.addf %1181, %1220 : vector<16x16xf32>
    %1222 = vector.extract_strided_slice %1197 {offsets = [1, 0], sizes = [15, 16], strides = [1, 1]} : vector<16x16xf32> to vector<15x16xf32>
    %1223 = vector.extract_strided_slice %1197 {offsets = [15, 0], sizes = [1, 16], strides = [1, 1]} : vector<16x16xf32> to vector<1x16xf32>
    %1224 = tpu.concatenate %1222, %1223 in 0 : vector<15x16xf32>, vector<1x16xf32> -> vector<16x16xf32>
    %1225 = vector.extract_strided_slice %1197 {offsets = [0, 0], sizes = [15, 16], strides = [1, 1]} : vector<16x16xf32> to vector<15x16xf32>
    %1226 = vector.extract_strided_slice %1197 {offsets = [0, 0], sizes = [1, 16], strides = [1, 1]} : vector<16x16xf32> to vector<1x16xf32>
    %1227 = tpu.concatenate %1226, %1225 in 0 : vector<1x16xf32>, vector<15x16xf32> -> vector<16x16xf32>
    %1228 = arith.minimumf %1224, %1227 : vector<16x16xf32>
    %1229 = vector.extract_strided_slice %1197 {offsets = [0, 1], sizes = [16, 15], strides = [1, 1]} : vector<16x16xf32> to vector<16x15xf32>
    %1230 = vector.extract_strided_slice %1197 {offsets = [0, 15], sizes = [16, 1], strides = [1, 1]} : vector<16x16xf32> to vector<16x1xf32>
    %1231 = tpu.concatenate %1229, %1230 in 1 : vector<16x15xf32>, vector<16x1xf32> -> vector<16x16xf32>
    %1232 = vector.extract_strided_slice %1197 {offsets = [0, 0], sizes = [16, 15], strides = [1, 1]} : vector<16x16xf32> to vector<16x15xf32>
    %1233 = vector.extract_strided_slice %1197 {offsets = [0, 0], sizes = [16, 1], strides = [1, 1]} : vector<16x16xf32> to vector<16x1xf32>
    %1234 = tpu.concatenate %1233, %1232 in 1 : vector<16x1xf32>, vector<16x15xf32> -> vector<16x16xf32>
    %1235 = arith.minimumf %1231, %1234 : vector<16x16xf32>
    %1236 = arith.minimumf %1228, %1235 : vector<16x16xf32>
    %1237 = arith.minimumf %1197, %1236 : vector<16x16xf32>
    %1238 = vector.extract_strided_slice %1237 {offsets = [1, 0], sizes = [15, 16], strides = [1, 1]} : vector<16x16xf32> to vector<15x16xf32>
    %1239 = vector.extract_strided_slice %1237 {offsets = [15, 0], sizes = [1, 16], strides = [1, 1]} : vector<16x16xf32> to vector<1x16xf32>
    %1240 = tpu.concatenate %1238, %1239 in 0 : vector<15x16xf32>, vector<1x16xf32> -> vector<16x16xf32>
    %1241 = vector.extract_strided_slice %1237 {offsets = [0, 0], sizes = [15, 16], strides = [1, 1]} : vector<16x16xf32> to vector<15x16xf32>
    %1242 = vector.extract_strided_slice %1237 {offsets = [0, 0], sizes = [1, 16], strides = [1, 1]} : vector<16x16xf32> to vector<1x16xf32>
    %1243 = tpu.concatenate %1242, %1241 in 0 : vector<1x16xf32>, vector<15x16xf32> -> vector<16x16xf32>
    %1244 = arith.maximumf %1240, %1243 : vector<16x16xf32>
    %1245 = arith.maximumf %1237, %1244 : vector<16x16xf32>
    %1246 = vector.extract_strided_slice %1245 {offsets = [0, 1], sizes = [16, 15], strides = [1, 1]} : vector<16x16xf32> to vector<16x15xf32>
    %1247 = vector.extract_strided_slice %1245 {offsets = [0, 15], sizes = [16, 1], strides = [1, 1]} : vector<16x16xf32> to vector<16x1xf32>
    %1248 = tpu.concatenate %1246, %1247 in 1 : vector<16x15xf32>, vector<16x1xf32> -> vector<16x16xf32>
    %1249 = vector.extract_strided_slice %1245 {offsets = [0, 0], sizes = [16, 15], strides = [1, 1]} : vector<16x16xf32> to vector<16x15xf32>
    %1250 = vector.extract_strided_slice %1245 {offsets = [0, 0], sizes = [16, 1], strides = [1, 1]} : vector<16x16xf32> to vector<16x1xf32>
    %1251 = tpu.concatenate %1250, %1249 in 1 : vector<16x1xf32>, vector<16x15xf32> -> vector<16x16xf32>
    %1252 = arith.maximumf %1248, %1251 : vector<16x16xf32>
    %1253 = arith.maximumf %1245, %1252 : vector<16x16xf32>
    %1254 = arith.subf %1197, %1253 : vector<16x16xf32>
    %cst_79 = arith.constant 0.000000e+00 : f32
    %1255 = vector.broadcast %cst_79 : f32 to vector<16x16xf32>
    %1256 = arith.maximumf %1254, %1255 : vector<16x16xf32>
    %1257 = arith.mulf %1221, %1256 : vector<16x16xf32>
    %1258 = arith.subf %1256, %1257 : vector<16x16xf32>
    %cst_80 = arith.constant 0.000000e+00 : f32
    %1259 = vector.broadcast %cst_80 : f32 to vector<16x16xf32>
    %1260 = arith.maximumf %1258, %1259 : vector<16x16xf32>
    %1261 = arith.addf %1221, %1260 : vector<16x16xf32>
    %1262 = vector.extract_strided_slice %1237 {offsets = [1, 0], sizes = [15, 16], strides = [1, 1]} : vector<16x16xf32> to vector<15x16xf32>
    %1263 = vector.extract_strided_slice %1237 {offsets = [15, 0], sizes = [1, 16], strides = [1, 1]} : vector<16x16xf32> to vector<1x16xf32>
    %1264 = tpu.concatenate %1262, %1263 in 0 : vector<15x16xf32>, vector<1x16xf32> -> vector<16x16xf32>
    %1265 = vector.extract_strided_slice %1237 {offsets = [0, 0], sizes = [15, 16], strides = [1, 1]} : vector<16x16xf32> to vector<15x16xf32>
    %1266 = vector.extract_strided_slice %1237 {offsets = [0, 0], sizes = [1, 16], strides = [1, 1]} : vector<16x16xf32> to vector<1x16xf32>
    %1267 = tpu.concatenate %1266, %1265 in 0 : vector<1x16xf32>, vector<15x16xf32> -> vector<16x16xf32>
    %1268 = arith.minimumf %1264, %1267 : vector<16x16xf32>
    %1269 = vector.extract_strided_slice %1237 {offsets = [0, 1], sizes = [16, 15], strides = [1, 1]} : vector<16x16xf32> to vector<16x15xf32>
    %1270 = vector.extract_strided_slice %1237 {offsets = [0, 15], sizes = [16, 1], strides = [1, 1]} : vector<16x16xf32> to vector<16x1xf32>
    %1271 = tpu.concatenate %1269, %1270 in 1 : vector<16x15xf32>, vector<16x1xf32> -> vector<16x16xf32>
    %1272 = vector.extract_strided_slice %1237 {offsets = [0, 0], sizes = [16, 15], strides = [1, 1]} : vector<16x16xf32> to vector<16x15xf32>
    %1273 = vector.extract_strided_slice %1237 {offsets = [0, 0], sizes = [16, 1], strides = [1, 1]} : vector<16x16xf32> to vector<16x1xf32>
    %1274 = tpu.concatenate %1273, %1272 in 1 : vector<16x1xf32>, vector<16x15xf32> -> vector<16x16xf32>
    %1275 = arith.minimumf %1271, %1274 : vector<16x16xf32>
    %1276 = arith.minimumf %1268, %1275 : vector<16x16xf32>
    %1277 = arith.minimumf %1237, %1276 : vector<16x16xf32>
    %1278 = vector.extract_strided_slice %1277 {offsets = [1, 0], sizes = [15, 16], strides = [1, 1]} : vector<16x16xf32> to vector<15x16xf32>
    %1279 = vector.extract_strided_slice %1277 {offsets = [15, 0], sizes = [1, 16], strides = [1, 1]} : vector<16x16xf32> to vector<1x16xf32>
    %1280 = tpu.concatenate %1278, %1279 in 0 : vector<15x16xf32>, vector<1x16xf32> -> vector<16x16xf32>
    %1281 = vector.extract_strided_slice %1277 {offsets = [0, 0], sizes = [15, 16], strides = [1, 1]} : vector<16x16xf32> to vector<15x16xf32>
    %1282 = vector.extract_strided_slice %1277 {offsets = [0, 0], sizes = [1, 16], strides = [1, 1]} : vector<16x16xf32> to vector<1x16xf32>
    %1283 = tpu.concatenate %1282, %1281 in 0 : vector<1x16xf32>, vector<15x16xf32> -> vector<16x16xf32>
    %1284 = arith.maximumf %1280, %1283 : vector<16x16xf32>
    %1285 = arith.maximumf %1277, %1284 : vector<16x16xf32>
    %1286 = vector.extract_strided_slice %1285 {offsets = [0, 1], sizes = [16, 15], strides = [1, 1]} : vector<16x16xf32> to vector<16x15xf32>
    %1287 = vector.extract_strided_slice %1285 {offsets = [0, 15], sizes = [16, 1], strides = [1, 1]} : vector<16x16xf32> to vector<16x1xf32>
    %1288 = tpu.concatenate %1286, %1287 in 1 : vector<16x15xf32>, vector<16x1xf32> -> vector<16x16xf32>
    %1289 = vector.extract_strided_slice %1285 {offsets = [0, 0], sizes = [16, 15], strides = [1, 1]} : vector<16x16xf32> to vector<16x15xf32>
    %1290 = vector.extract_strided_slice %1285 {offsets = [0, 0], sizes = [16, 1], strides = [1, 1]} : vector<16x16xf32> to vector<16x1xf32>
    %1291 = tpu.concatenate %1290, %1289 in 1 : vector<16x1xf32>, vector<16x15xf32> -> vector<16x16xf32>
    %1292 = arith.maximumf %1288, %1291 : vector<16x16xf32>
    %1293 = arith.maximumf %1285, %1292 : vector<16x16xf32>
    %1294 = arith.subf %1237, %1293 : vector<16x16xf32>
    %cst_81 = arith.constant 0.000000e+00 : f32
    %1295 = vector.broadcast %cst_81 : f32 to vector<16x16xf32>
    %1296 = arith.maximumf %1294, %1295 : vector<16x16xf32>
    %1297 = arith.mulf %1261, %1296 : vector<16x16xf32>
    %1298 = arith.subf %1296, %1297 : vector<16x16xf32>
    %cst_82 = arith.constant 0.000000e+00 : f32
    %1299 = vector.broadcast %cst_82 : f32 to vector<16x16xf32>
    %1300 = arith.maximumf %1298, %1299 : vector<16x16xf32>
    %1301 = arith.addf %1261, %1300 : vector<16x16xf32>
    %1302 = arith.mulf %1146, %991 : vector<16x16xf32>
    %cst_83 = arith.constant dense<0.000000e+00> : vector<16xf32>
    %1303 = vector.multi_reduction <add>, %1302, %cst_83 [0] : vector<16x16xf32> to vector<16xf32>
    %1304 = arith.addf %977, %1303 : vector<16xf32>
    %cst_84 = arith.constant dense<0.000000e+00> : vector<16xf32>
    %1305 = vector.multi_reduction <add>, %1146, %cst_84 [0] : vector<16x16xf32> to vector<16xf32>
    %1306 = arith.addf %979, %1305 : vector<16xf32>
    %1307 = arith.mulf %1301, %986 : vector<16x16xf32>
    %cst_85 = arith.constant dense<0.000000e+00> : vector<16xf32>
    %1308 = vector.multi_reduction <add>, %1307, %cst_85 [0] : vector<16x16xf32> to vector<16xf32>
    %1309 = arith.addf %982, %1308 : vector<16xf32>
    %cst_86 = arith.constant dense<0.000000e+00> : vector<16xf32>
    %1310 = vector.multi_reduction <add>, %1301, %cst_86 [0] : vector<16x16xf32> to vector<16xf32>
    %1311 = arith.addf %984, %1310 : vector<16xf32>
    %c0_87 = arith.constant 0 : index
    %c0_88 = arith.constant 0 : index
    %c0_89 = arith.constant 0 : index
    %1312 = vector.load %arg2[%c0_87, %c0_88, %c0_89] : memref<1x4x16xf32, #tpu.memory_space<vmem>>, vector<1x1x16xf32>
    %1313 = vector.shape_cast %1312 : vector<1x1x16xf32> to vector<16xf32>
    %1314 = vector.shape_cast %1304 : vector<16xf32> to vector<1x1x16xf32>
    tpu.vector_store %arg2[%c0_87, %c0_88, %c0_89], %1314 {strides = array<i32>} : memref<1x4x16xf32, #tpu.memory_space<vmem>>, vector<1x1x16xf32>,
    %c0_90 = arith.constant 0 : index
    %c1_91 = arith.constant 1 : index
    %c0_92 = arith.constant 0 : index
    %1315 = vector.load %arg2[%c0_90, %c1_91, %c0_92] : memref<1x4x16xf32, #tpu.memory_space<vmem>>, vector<1x1x16xf32>
    %1316 = vector.shape_cast %1315 : vector<1x1x16xf32> to vector<16xf32>
    %1317 = vector.shape_cast %1306 : vector<16xf32> to vector<1x1x16xf32>
    tpu.vector_store %arg2[%c0_90, %c1_91, %c0_92], %1317 {strides = array<i32>} : memref<1x4x16xf32, #tpu.memory_space<vmem>>, vector<1x1x16xf32>,
    %c0_93 = arith.constant 0 : index
    %c2_94 = arith.constant 2 : index
    %c0_95 = arith.constant 0 : index
    %1318 = vector.load %arg2[%c0_93, %c2_94, %c0_95] : memref<1x4x16xf32, #tpu.memory_space<vmem>>, vector<1x1x16xf32>
    %1319 = vector.shape_cast %1318 : vector<1x1x16xf32> to vector<16xf32>
    %1320 = vector.shape_cast %1309 : vector<16xf32> to vector<1x1x16xf32>
    tpu.vector_store %arg2[%c0_93, %c2_94, %c0_95], %1320 {strides = array<i32>} : memref<1x4x16xf32, #tpu.memory_space<vmem>>, vector<1x1x16xf32>,
    %c0_96 = arith.constant 0 : index
    %c3_97 = arith.constant 3 : index
    %c0_98 = arith.constant 0 : index
    %1321 = vector.load %arg2[%c0_96, %c3_97, %c0_98] : memref<1x4x16xf32, #tpu.memory_space<vmem>>, vector<1x1x16xf32>
    %1322 = vector.shape_cast %1321 : vector<1x1x16xf32> to vector<16xf32>
    %1323 = vector.shape_cast %1311 : vector<16xf32> to vector<1x1x16xf32>
    tpu.vector_store %arg2[%c0_96, %c3_97, %c0_98], %1323 {strides = array<i32>} : memref<1x4x16xf32, #tpu.memory_space<vmem>>, vector<1x1x16xf32>,
    return
  }
  func.func @transform_0(%arg0: i32) -> (i32, i32, i32) {
    %c0_i32 = arith.constant 0 : i32
    %c0_i32_0 = arith.constant 0 : i32
    %c0_i32_1 = arith.constant 0 : i32
    return %arg0, %c0_i32, %c0_i32_0 : i32, i32, i32
  }
  func.func @transform_1(%arg0: i32) -> (i32, i32, i32) {
    %c0_i32 = arith.constant 0 : i32
    %c0_i32_0 = arith.constant 0 : i32
    %c0_i32_1 = arith.constant 0 : i32
    return %arg0, %c0_i32, %c0_i32_0 : i32, i32, i32
  }
}

</mosaic_0001>

<bundles_post_ra>
// kernel: tpu_custom_call.1
= control target key start
LH: loop header
LB: loop body
LE: loop exit
PB: predicated region body
PF: predicated region fallthrough
CT: control target
= control target key end

     0   :  { %6 = vsyncpa [#allocation3], 0  ;;  %s6319_s0 = inlined_call_operand.hbm [shape: f32[8,16,16], index: 0, kind: input, shape index: {}]   ;;  %s6320_s1 = inlined_call_operand.hbm [shape: f32[2,4,16], index: 1, kind: output, shape index: {}]  }
   0x1   :  { %8 = vsyncpa [#allocation3 + $0x1], 0 }
   0x2   :  { %9 = vsyncpa [#allocation4], 0 }
   0x3   :  { %11 = vsyncpa [#allocation4 + $0x1], 0  ;;  %s3289_s6 = smov 0   ;;  %s3291_s7 = smov 0  }
   0x4   :  { %s3293_s8 = smov 0   ;;  %s3295_s9 = smov 0  }
   0x5 LB: > { %s3310_s10 = sadd.s32 4294967295, %s3273_s9   ;;  %s3054_s11 = sadd.s32 4294967294, %s3273_s9   ;;  %s3273_s9 = sphi %s3295_s9, %s6907_s9   ;;  %s3269_s8 = sphi %s3293_s8, %s6906_s8   ;;  %s3265_s7 = sphi %s3291_s7, %s6905_s7   ;;  %s3261_s6 = sphi %s3289_s6, %s6904_s6  }
   0x6   : > { %s3314_s12 = sadd.s32 1, %s3273_s9   ;;  %s24_s13 = sadd.s32 1, %s3269_s8 }
   0x7   : > { %s21_s14 = ssub.s32 %s3273_s9, %s3314_s12  ;;  %p31_p0 = scmp.ne.s32.totalorder %s3269_s8, %s3265_s7 }
   0x8   : > { %p22_p1 = scmp.eq.s32.totalorder %s21_s14, 0  ;;  %p32_p2 = scmp.eq.s32.totalorder %s3273_s9, 0 }
   0x9   : > { %p37_p3 = scmp.ne.s32.totalorder %s3265_s7, %s3261_s6  ;;  %p38_p4 = scmp.eq.s32.totalorder %s3310_s10, 0 }
   0xa   : > { %s3326_s15 = scalar_select %p22_p1, %s3269_s8, %s24_s13  }
   0xb   : > { %p3328_p5 = por %p32_p2, %p31_p0  ;;  %p3332_p6 = por %p38_p4, %p37_p3 }
   0xc   : > { %p61_p7 = scmp.eq.s32.totalorder %s3310_s10, 1  ;;  %p67_p8 = scmp.eq.s32.totalorder %s3054_s11, 1 }
   0xd   : > { %p3096_p10 = scmp.lt.s32.totalorder %s3273_s9, 2  ;;  %s87_s20 = sand.u32 1, %s3269_s8  }
   0xe   : > { %p3339_p11 = por %p61_p7, %p31_p0  ;;  %p3343_p12 = por %p67_p8, %p37_p3 }
   0xf   : > { %s3083_s21 = sshll.u32 %s3273_s9, 6  ;;  %s3057_s22 = sshll.u32 %s87_s20, 6 }
  0x10   : > { %s97_s25 = scalar_lea.hbm %s6319_s0, %s3083_s21  ;;  %s91_s27 = scalar_lea.vmem [#allocation2], %s3057_s22 }
  0x11   : > { %s98_s26 = sshll.u32 %s97_s25, 4  ;;  %s100_s28 = sshll.u32 %s91_s27, 4  ;;  %s99_s26 = int_to_ptr.hbm [resolvable:$true] %s98_s26  ;;  %s101_s28 = int_to_ptr.vmem [resolvable:$true] %s100_s28 }
  0x12   : > { %p3354_p13 = pnand %p3096_p10, %p3328_p5  ;;  %p3061_p0 = scmp.ge.s32.totalorder %s3273_s9, 1 }
  0x13   : > { %p108_p1 = scmp.lt.s32.totalorder %s3273_s9, 3  ;;  %s88_s30 = scalar_lea.sflag [#allocation3], %s87_s20 }
  0x14   : > { %s3177_s2 = sshra.s32 %s99_s26, 4  ;;  %p3181_p3 = pneg %p3354_p13  ;;  %s3178_s2 = int_to_ptr.hbm [resolvable:$true] %s3177_s2 }
  0x15   : > { %s3179_s3 = scalar_lea.hbm %s3178_s2, 64  ;;  %s3184_s11 = scalar_lea.hbm %s6319_s0, 128 }
  0x16   : > { %p3180_p2 = scmp.ne.s32.totalorder %s3178_s2, %s3179_s3  ;;  %p3185_p5 = scmp.lt.s32.totalorder %s3178_s2, %s6319_s0 }
  0x17   : > { %p3186_p8 = scmp.lt.s32.totalorder %s3184_s11, %s3179_s3 }
  0x18   : > { %p3182_p4 = pnand %p3181_p3, %p3180_p2 }
  0x19   : > { %p3187_p10 = por %p3186_p8, %p3185_p5 }
  0x1a   : > { %p3183_p7 = pneg %p3182_p4 }
  0x1c   : > { %p3188_p9 = pnand %p3187_p10, %p3183_p7 }
  0x1e   : > { %3191 = shalt.err (!%p3188_p9)
}
  0x1f   : > { %s3275_s16 = smov 128   ;;  %s3276_s20 = smov 8  }
  0x20   : > { %3091 = dma.hbm_to_vmem [thread:$0]  (!%p3354_p13), %s99_s26, 1024, %s101_s28, %s88_s30, %s3275_s16, %s3275_s16, %s3276_s20  }
  0x21   : > { %p109_p2 = pnand %p3061_p0, %p108_p1 }
  0x23   : > { %112 = sbr.rel (%p109_p2) target bundleno = 1490 (0x5d2), region = 24 }
  0x28   : > { %s3375_s21 = sand.u32 1, %s3265_s7  }
  0x29   : > { %s3062_s22 = sshll.u32 %s3375_s21, 6  ;;  %s115_s23 = scalar_lea.sflag [#allocation3], %s3375_s21 }
  0x2a   : > { %s3379_s24 = scalar_lea.vmem [#allocation2], %s3062_s22 }
  0x2b   : > { %3252 = dma.done.wait (%p3332_p6), %s115_s23, 1024  }
  0x2c   : > { %3254 = vsyncadd (%p3332_p6), %s115_s23, 4294966272  ;;  %v3386_v0 = vld [vmem:[%s3379_s24] sm:$0xff]  ;;  %v3389_v1 = vld [vmem:[%s3379_s24 + $0x8] sm:$0xff]  ;;  %s3277_s25 = smov 1   ;;  %s3278_s26 = smov 127  }
  0x2d   : > { %v3392_v2 = vld [vmem:[%s3379_s24 + $0x10] sm:$0xff]  ;;  %206 = vrot.lane.b32.xlu1 %v3386_v0, %s3277_s25  ;;  %197 = vrot.lane.b32.xlu0 %v3386_v0, %s3278_s26  ;;  %v3399_v3 = vld [vmem:[%s3379_s24 + $0x18] sm:$0xff]  ;;  %v3065_v4 = vmul.f32 -1.442695, %v3389_v1  ;;  %v3064_v5 = vmul.f32 -1.442695, %v3386_v0 }
  0x2e   : > { %907 = vrot.lane.b32.xlu2 %v3399_v3, %s3278_s26  ;;  %v3068_v6 = vmul.f32 -1.442695, %v3392_v2  ;;  %v3069_v7 = vmul.f32 -1.442695, %v3399_v3  ;;  %v3471_v60 = vld [vmem:[%s3379_s24 + $0x20] sm:$0xff]  ;;  %v3478_v61 = vld [vmem:[%s3379_s24 + $0x28] sm:$0xff] }
  0x2f   : > { %3134 = vpow2.f32 %v3065_v4  ;;  %v3072_v62 = vmul.f32 -1.442695, %v3471_v60  ;;  %v3073_v63 = vmul.f32 -1.442695, %v3478_v61  ;;  %v182_v29 = vrot.slane %v3386_v0, 1  ;;  %s3063_s17 = sshll.u32 %s3375_s21, 2 }
  0x30   : > { %3136 = vpow2.f32 %v3064_v5  ;;  %s6268_s27 = scalar_lea.vmem [#allocation5], %s3063_s17  ;;  %s3079_s28 = sshll.u32 %s3310_s10, 2 }
  0x31   : > { %3138 = vpow2.f32 %v3068_v6  ;;  %s2979_s2 = scalar_lea.hbm %s6320_s1, %s3079_s28  ;;  %s2981_s3 = sshll.u32 %s6268_s27, 4  ;;  %s2982_s3 = int_to_ptr.vmem [resolvable:$true] %s2981_s3 }
  0x32   : > { %3140 = vpow2.f32 %v3069_v7  ;;  %s2983_s4 = sshll.u32 %s2979_s2, 4  ;;  %s2969_s10 = scalar_lea.sflag [#allocation4], %s3375_s21  ;;  %s2984_s4 = int_to_ptr.hbm [resolvable:$true] %s2983_s4 }
  0x33   : > { %s3221_s5 = sshra.s32 %s2984_s4, 4  ;;  %s3227_s16 = scalar_lea.hbm %s6320_s1, 8  ;;  %s3222_s5 = int_to_ptr.hbm [resolvable:$true] %s3221_s5 }
  0x34   : > { %s3223_s11 = scalar_lea.hbm %s3222_s5, 4  ;;  %p3228_p0 = scmp.lt.s32.totalorder %s3222_s5, %s6320_s1 }
  0x35   : > { %v3135_v8 = vpop.eup %3134  ;;  %208 = vrot.lane.b32.xlu1 %v3389_v1, %s3277_s25  ;;  %199 = vrot.lane.b32.xlu0 %v3389_v1, %s3278_s26  ;;  %p3224_p6 = scmp.ne.s32.totalorder %s3222_s5, %s3223_s11  ;;  %p3229_p1 = scmp.lt.s32.totalorder %s3227_s16, %s3223_s11 }
  0x36   : > { %v3137_v9 = vpop.eup %3136  ;;  %v148_v10 = vadd.f32 1.0, %v3135_v8 }
  0x37   : > { %v3139_v11 = vpop.eup %3138  ;;  %v147_v12 = vadd.f32 1.0, %v3137_v9  ;;  %p3225_p9 = pnand %p3224_p6, %p3339_p11  ;;  %p3230_p3 = por %p3229_p1, %p3228_p0 }
  0x38   : > { %v3141_v13 = vpop.eup %3140  ;;  %3142 = vrcp.f32 %v148_v10  ;;  %v857_v14 = vadd.f32 1.0, %v3139_v11  ;;  %v173_v19 = vand.u32 2147483647, %v148_v10  ;;  %v175_v20 = vand.u32 2147483648, %v148_v10 }
  0x39   : > { %3144 = vrcp.f32 %v147_v12  ;;  %v3411_v15 = vadd.f32 1.0, %v3141_v13  ;;  %v160_v22 = vand.u32 2147483648, %v147_v12  ;;  %vm169_vm0 = vweird.f32 %v148_v10  ;;  %p3226_p13 = pneg %p3225_p9 }
  0x3a   : > { %3146 = vrcp.f32 %v857_v14  ;;  %vm154_vm2 = vweird.f32 %v147_v12  ;;  %v158_v26 = vand.u32 2147483647, %v147_v12  ;;  %vm3418_vm4 = vcmp.eq.f32.partialorder %v173_v19, 8.507059e+37 }
  0x3b   : > { %3148 = vrcp.f32 %v3411_v15  ;;  %v176_v32 = vor.u32 1.1754944e-38, %v175_v20  ;;  %v161_v34 = vor.u32 1.1754944e-38, %v160_v22  ;;  %vm864_vm7 = vweird.f32 %v857_v14  ;;  %p3231_p4 = pnand %p3230_p3, %p3226_p13 }
  0x3c   : > { %vm159_vm9 = vcmp.eq.f32.partialorder %v158_v26, 8.507059e+37  ;;  %v870_v40 = vand.u32 2147483648, %v857_v14  ;;  %v868_v44 = vand.u32 2147483647, %v857_v14  ;;  %vm879_vm11 = vweird.f32 %v3411_v15 }
  0x3d   : > { %905 = vrot.lane.b32.xlu1 %v3392_v2, %s3278_s26  ;;  %913 = vrot.lane.b32.xlu0 %v3392_v2, %s3277_s25  ;;  %v885_v52 = vand.u32 2147483648, %v3411_v15  ;;  %v883_v55 = vand.u32 2147483647, %v3411_v15  ;;  %3150 = vpow2.f32 %v3072_v62 }
  0x3e   : > { %v3143_v16 = vpop.eup %3142  ;;  %v871_v51 = vor.u32 1.1754944e-38, %v870_v40  ;;  %vm869_vm13 = vcmp.eq.f32.partialorder %v868_v44, 8.507059e+37  ;;  %3152 = vpow2.f32 %v3073_v63 }
  0x3f   : > { %v3145_v17 = vpop.eup %3144  ;;  %v165_v18 = vmul.f32 %v3143_v16, %v148_v10  ;;  %vm170_vm1 = vweird.f32 %v3143_v16  ;;  %v886_v57 = vor.u32 1.1754944e-38, %v885_v52  ;;  %vm884_vm15 = vcmp.eq.f32.partialorder %v883_v55, 8.507059e+37 }
  0x40   : > { %v150_v21 = vmul.f32 %v3145_v17, %v147_v12  ;;  %v3147_v24 = vpop.eup %3146  ;;  %vm155_vm3 = vweird.f32 %v3145_v17  ;;  %vm3422_vm5 = vmor %vm169_vm0, %vm170_vm1 }
  0x41   : > { %v166_v23 = vsub.f32 1.0, %v165_v18  ;;  %v3149_v27 = vpop.eup %3148  ;;  %v860_v30 = vmul.f32 %v3147_v24, %v857_v14  ;;  %vm3429_vm6 = vmor %vm154_vm2, %vm155_vm3  ;;  %vm865_vm8 = vweird.f32 %v3147_v24 }
  0x42   : > { %v151_v25 = vsub.f32 1.0, %v150_v21  ;;  %v875_v35 = vmul.f32 %v3149_v27, %v3411_v15  ;;  %vm3441_vm10 = vmor %vm864_vm7, %vm865_vm8  ;;  %vm880_vm12 = vweird.f32 %v3149_v27  ;;  %vm181_vm8 = vcmask 1046528  }
  0x43   : > { %v167_v28 = vmul.f32 %v3143_v16, %v166_v23  ;;  %v861_v38 = vsub.f32 1.0, %v860_v30  ;;  %vm881_vm14 = vmor %vm879_vm11, %vm880_vm12  ;;  %v3151_v4 = vpop.eup %3150  ;;  %v189_v30 = vrot.slane %v3386_v0, 7  ;;  %vm203_vm11 = vcmask 121856  }
  0x44   : > { %v152_v33 = vmul.f32 %v3145_v17, %v151_v25  ;;  %v876_v41 = vsub.f32 1.0, %v875_v35  ;;  %v3153_v5 = vpop.eup %3152  ;;  %v1562_v6 = vadd.f32 1.0, %v3151_v4 }
  0x45   : > { %915 = vrot.lane.b32.xlu1 %v3399_v3, %s3277_s25  ;;  %v168_v36 = vadd.f32 %v3143_v16, %v167_v28  ;;  %v862_v43 = vmul.f32 %v3147_v24, %v861_v38  ;;  %v1563_v7 = vadd.f32 1.0, %v3153_v5  ;;  %v183_v28 = vrot.slane %v3389_v1, 1 }
  0x46   : > { %v153_v39 = vadd.f32 %v3145_v17, %v152_v33  ;;  %v877_v48 = vmul.f32 %v3149_v27, %v876_v41  ;;  %3154 = vrcp.f32 %v1562_v6  ;;  %v1575_v15 = vand.u32 2147483648, %v1562_v6 }
  0x47   : > { %v172_v42 = vsel %vm3422_vm5, %v3143_v16, %v168_v36  ;;  %v863_v50 = vadd.f32 %v3147_v24, %v862_v43  ;;  %3156 = vrcp.f32 %v1563_v7  ;;  %vm1569_vm0 = vweird.f32 %v1562_v6 }
  0x48   : > { %v3437_v45 = vsel %vm3418_vm4, %v176_v32, %v172_v42  ;;  %v157_v46 = vsel %vm3429_vm6, %v3145_v17, %v153_v39  ;;  %v878_v54 = vadd.f32 %v3149_v27, %v877_v48  ;;  %v1590_v17 = vand.u32 2147483648, %v1563_v7 }
  0x49   : > { %6510 = vst [vmem:[#allocation8_spill] sm:$0xff] %v3437_v45  ;;  %511 = vrot.lane.b32.xlu0 %v3437_v45, %s3278_s26  ;;  %v3447_v49 = vsel %vm159_vm9, %v161_v34, %v157_v46  ;;  %v867_v53 = vsel %vm3441_vm10, %v3147_v24, %v863_v50  ;;  %v1573_v19 = vand.u32 2147483647, %v1562_v6  ;;  %v1576_v20 = vor.u32 1.1754944e-38, %v1575_v15 }
  0x4a   : > { %6513 = vst [vmem:[#allocation9_spill] sm:$0xff] %v3447_v49  ;;  %509 = vrot.lane.b32.xlu2 %v3447_v49, %s3278_s26  ;;  %v3458_v56 = vsel %vm869_vm13, %v871_v51, %v867_v53  ;;  %v882_v58 = vsel %vm881_vm14, %v3149_v27, %v878_v54  ;;  %vm1584_vm3 = vweird.f32 %v1563_v7  ;;  %v1588_v23 = vand.u32 2147483647, %v1563_v7 }
  0x4b   : > { %6514 = vst [vmem:[#allocation10_spill] sm:$0xff] %v3458_v56  ;;  %v3462_v59 = vsel %vm884_vm15, %v886_v57, %v882_v58  ;;  %vm1574_vm5 = vcmp.eq.f32.partialorder %v1573_v19, 8.507059e+37  ;;  %v1591_v24 = vor.u32 1.1754944e-38, %v1590_v17  ;;  %vm188_vm9 = vcmask 1040384  }
  0x4c   : > { %6515 = vst [vmem:[#allocation11_spill] sm:$0xff] %v3462_v59  ;;  %v3155_v8 = vpop.eup %3154  ;;  %vm1589_vm7 = vcmp.eq.f32.partialorder %v1588_v23, 8.507059e+37  ;;  %v184_v31 = vsel %vm181_vm8, %v182_v29, %v183_v28  ;;  %v194_v32 = vsel %vm188_vm9, %v3386_v0, %v189_v30  ;;  %vm212_vm10 = vcmask 7168  }
  0x4d   : > { %517 = vrot.lane.b32.xlu1 %v3447_v49, %s3277_s25  ;;  %v3157_v9 = vpop.eup %3156  ;;  %v1565_v10 = vmul.f32 %v3155_v8, %v1562_v6  ;;  %vm1570_vm1 = vweird.f32 %v3155_v8  ;;  %v195_v36 = vmin.f32 %v184_v31, %v194_v32  ;;  %v190_v39 = vrot.slane %v3389_v1, 7 }
  0x4e   : > { %v1580_v11 = vmul.f32 %v3157_v9, %v1563_v7  ;;  %vm1571_vm2 = vmor %vm1569_vm0, %vm1570_vm1  ;;  %vm1585_vm4 = vweird.f32 %v3157_v9  ;;  %v187_v42 = vsel %vm181_vm8, %v183_v28, %v3389_v1  ;;  %v891_v51 = vrot.slane %v3392_v2, 1 }
  0x4f   : > { %v1566_v12 = vsub.f32 1.0, %v1565_v10  ;;  %vm1586_vm6 = vmor %vm1584_vm3, %vm1585_vm4  ;;  %v191_v43 = vsel %vm188_vm9, %v189_v30, %v190_v39  ;;  %v892_v53 = vrot.slane %v3399_v3, 1  ;;  %v897_v54 = vrot.slane %v3392_v2, 7 }
  0x50   : > { %v1581_v13 = vsub.f32 1.0, %v1580_v11  ;;  %v196_v50 = vmin.f32 %v187_v42, %v191_v43  ;;  %v501_v28 = vrot.slane %v3447_v49, 7  ;;  %v495_v32 = vrot.slane %v3447_v49, 1 }
  0x51   : > { %1215 = vrot.lane.b32.xlu0 %v3458_v56, %s3278_s26  ;;  %v1567_v14 = vmul.f32 %v3155_v8, %v1566_v12  ;;  %v893_v58 = vsel %vm181_vm8, %v891_v51, %v892_v53  ;;  %v902_v62 = vsel %vm188_vm9, %v3392_v2, %v897_v54  ;;  %v898_v12 = vrot.slane %v3399_v3, 7 }
  0x52   : > { %519 = vrot.lane.b32.xlu2 %v3437_v45, %s3277_s25  ;;  %v1582_v16 = vmul.f32 %v3157_v9, %v1581_v13  ;;  %v903_v6 = vmin.f32 %v893_v58, %v902_v62  ;;  %v1207_v51 = vrot.slane %v3458_v56, 7  ;;  %vm805_vm4 = vcmask 130048  }
  0x53   : > { %v1568_v18 = vadd.f32 %v3155_v8, %v1567_v14  ;;  %v899_v23 = vsel %vm188_vm9, %v897_v54, %v898_v12 }
  0x54   : > { %v1583_v21 = vadd.f32 %v3157_v9, %v1582_v16 }
  0x55   : > { %1217 = vrot.lane.b32.xlu1 %v3462_v59, %s3278_s26  ;;  %v1572_v22 = vsel %vm1571_vm2, %v3155_v8, %v1568_v18 }
  0x56   : > { %v3488_v25 = vsel %vm1574_vm5, %v1576_v20, %v1572_v22  ;;  %v1587_v26 = vsel %vm1586_vm6, %v3157_v9, %v1583_v21  ;;  %v896_v21 = vsel %vm181_vm8, %v892_v53, %v3399_v3  ;;  %vm2963_vm5 = vcmask 122880  }
  0x57   : > { %6516 = vst [vmem:[#allocation12_spill] sm:$0xff] %v3488_v25  ;;  %v3494_v27 = vsel %vm1589_vm7, %v1591_v24, %v1587_v26  ;;  %v496_v24 = vrot.slane %v3437_v45, 1  ;;  %v502_v26 = vrot.slane %v3437_v45, 7  ;;  %v904_v30 = vmin.f32 %v896_v21, %v899_v23 }
  0x58   : > { %6517 = vst [vmem:[#allocation13_spill] sm:$0xff] %v3494_v27 }
  0x59   : > { %1225 = vrot.lane.b32.xlu0 %v3462_v59, %s3277_s25  ;;  %v497_v42 = vsel %vm181_vm8, %v495_v32, %v496_v24 }
  0x5a   : > { %1223 = vrot.lane.b32.xlu2 %v3458_v56, %s3277_s25 }
  0x5d   : > { %1618 = vrot.lane.b32.xlu1 %v3471_v60, %s3277_s25 }
  0x61   : > { %1612 = vrot.lane.b32.xlu0 %v3478_v61, %s3278_s26 }
  0x62   : > { %1610 = vrot.lane.b32.xlu2 %v3471_v60, %s3278_s26 }
  0x65   : > { %1920 = vrot.lane.b32.xlu1 %v3488_v25, %s3278_s26 }
  0x69   : > { %1928 = vrot.lane.b32.xlu0 %v3488_v25, %s3277_s25 }
  0x6a   : > { %1620 = vrot.lane.b32.xlu2 %v3478_v61, %s3277_s25 }
  0x72   : > { %1922 = vrot.lane.b32.xlu2 %v3494_v27, %s3278_s26 }
  0x88   : > { %v3504_v33 = vpop.permute.xlu2 %907 }
  0x9f   : > { %v207_v34 = vpop.permute.xlu1 %206  ;;  %v198_v35 = vpop.permute.xlu0 %197 }
  0xa0   : > { %v213_v37 = vsel %vm212_vm10, %v3386_v0, %v207_v34  ;;  %v204_v38 = vsel %vm203_vm11, %v198_v35, %v3386_v0  ;;  %v912_v34 = vsel %vm203_vm11, %v3504_v33, %v3399_v3  ;;  %v506_v33 = vsel %vm188_vm9, %v3447_v49, %v501_v28 }
  0xa1   : > { %v215_v40 = vmin.f32 %v204_v38, %v213_v37  ;;  %v507_v54 = vmin.f32 %v497_v42, %v506_v33  ;;  %v1602_v42 = vrot.slane %v3471_v60, 7 }
  0xa3   : > { %v217_v41 = vmin.f32 %v195_v36, %v215_v40  ;;  %v503_v36 = vsel %vm188_vm9, %v501_v28, %v502_v26 }
  0xa4   : > { %v3517_v46 = vpop.permute.xlu2 %509 }
  0xa5   : > { %v3515_v44 = vmin.f32 %v3386_v0, %v217_v41  ;;  %v515_v53 = vsel %vm203_vm11, %v3517_v46, %v3447_v49 }
  0xa7   : > { %6518 = vst [vmem:[#allocation14_spill] sm:$0xff] %v3515_v44  ;;  %v209_v47 = vpop.permute.xlu1 %208  ;;  %v200_v48 = vpop.permute.xlu0 %199  ;;  %275 = vrot.lane.b32.xlu1 %v3515_v44, %s3277_s25  ;;  %267 = vrot.lane.b32.xlu2 %v3515_v44, %s3278_s26  ;;  %v229_v4 = vrot.slane %v3515_v44, 7  ;;  %v223_v8 = vrot.slane %v3515_v44, 1 }
  0xa8   : > { %v214_v52 = vsel %vm212_vm10, %v3389_v1, %v209_v47  ;;  %v205_v0 = vsel %vm203_vm11, %v200_v48, %v3389_v1  ;;  %v1201_v48 = vrot.slane %v3458_v56, 1 }
  0xa9   : > { %v216_v55 = vmin.f32 %v205_v0, %v214_v52  ;;  %v3554_v16 = vsel %vm188_vm9, %v3515_v44, %v229_v4 }
  0xab   : > { %v218_v57 = vmin.f32 %v196_v50, %v216_v55  ;;  %v1202_v50 = vrot.slane %v3462_v59, 1 }
  0xac   : > { %v520_v14 = vpop.permute.xlu2 %519 }
  0xad   : > { %v3534_v63 = vmin.f32 %v3389_v1, %v218_v57  ;;  %v524_v38 = vsel %vm212_vm10, %v3437_v45, %v520_v14  ;;  %v1203_v46 = vsel %vm181_vm8, %v1201_v48, %v1202_v50 }
  0xaf   : > { %6519 = vst [vmem:[#allocation15_spill] sm:$0xff] %v3534_v63  ;;  %v906_v5 = vpop.permute.xlu1 %905  ;;  %v914_v7 = vpop.permute.xlu0 %913  ;;  %269 = vrot.lane.b32.xlu0 %v3534_v63, %s3278_s26  ;;  %277 = vrot.lane.b32.xlu2 %v3534_v63, %s3277_s25  ;;  %v224_v9 = vrot.slane %v3534_v63, 1  ;;  %v230_v10 = vrot.slane %v3534_v63, 7 }
  0xb0   : > { %v911_v1 = vsel %vm203_vm11, %v906_v5, %v3392_v2  ;;  %v919_v11 = vsel %vm212_vm10, %v3392_v2, %v914_v7  ;;  %v1212_v5 = vsel %vm188_vm9, %v3458_v56, %v1207_v51 }
  0xb1   : > { %v921_v13 = vmin.f32 %v911_v1, %v919_v11  ;;  %v3550_v15 = vsel %vm181_vm8, %v223_v8, %v224_v9  ;;  %v3558_v17 = vsel %vm181_vm8, %v224_v9, %v3534_v63  ;;  %v3561_v18 = vsel %vm188_vm9, %v229_v4, %v230_v10 }
  0xb2   : > { %v265_v19 = vmin.f32 %v3550_v15, %v3554_v16  ;;  %v266_v22 = vmin.f32 %v3558_v17, %v3561_v18  ;;  %v1213_v23 = vmin.f32 %v1203_v46, %v1212_v5 }
  0xb3   : > { %v923_v20 = vmin.f32 %v903_v6, %v921_v13 }
  0xb4   : > { %v1224_v43 = vpop.permute.xlu2 %1223 }
  0xb5   : > { %v3574_v29 = vmin.f32 %v3392_v2, %v923_v20  ;;  %v500_v2 = vsel %vm181_vm8, %v496_v24, %v3437_v45  ;;  %v1229_v1 = vsel %vm212_vm10, %v3458_v56, %v1224_v43  ;;  %v1208_v24 = vrot.slane %v3462_v59, 7 }
  0xb6   : > { %v508_v41 = vmin.f32 %v500_v2, %v503_v36  ;;  %v1596_v2 = vrot.slane %v3471_v60, 1  ;;  %v1597_v36 = vrot.slane %v3478_v61, 1 }
  0xb7   : > { %6520 = vst [vmem:[#allocation16_spill] sm:$0xff] %v3574_v29  ;;  %v916_v31 = vpop.permute.xlu1 %915  ;;  %973 = vrot.lane.b32.xlu0 %v3574_v29, %s3278_s26  ;;  %981 = vrot.lane.b32.xlu2 %v3574_v29, %s3277_s25  ;;  %v935_v62 = vrot.slane %v3574_v29, 7  ;;  %v929_v6 = vrot.slane %v3574_v29, 1 }
  0xb8   : > { %v920_v35 = vsel %vm212_vm10, %v3399_v3, %v916_v31 }
  0xb9   : > { %v922_v37 = vmin.f32 %v912_v34, %v920_v35  ;;  %v3637_v20 = vsel %vm188_vm9, %v3574_v29, %v935_v62 }
  0xbb   : > { %v924_v39 = vmin.f32 %v904_v30, %v922_v37  ;;  %v512_v40 = vpop.permute.xlu0 %511 }
  0xbc   : > { %v516_v47 = vsel %vm203_vm11, %v512_v40, %v3437_v45  ;;  %v1611_v31 = vpop.permute.xlu2 %1610  ;;  %v1206_v40 = vsel %vm181_vm8, %v1202_v50, %v3462_v59 }
  0xbd   : > { %v3600_v52 = vmin.f32 %v3399_v3, %v924_v39  ;;  %v526_v0 = vmin.f32 %v516_v47, %v524_v38  ;;  %v1616_v46 = vsel %vm203_vm11, %v1611_v31, %v3471_v60 }
  0xbf   : > { %6521 = vst [vmem:[#allocation17_spill] sm:$0xff] %v3600_v52  ;;  %v528_v55 = vmin.f32 %v508_v41, %v526_v0  ;;  %983 = vrot.lane.b32.xlu0 %v3600_v52, %s3277_s25  ;;  %975 = vrot.lane.b32.xlu1 %v3600_v52, %s3278_s26  ;;  %v518_v57 = vpop.permute.xlu1 %517  ;;  %v930_v58 = vrot.slane %v3600_v52, 1  ;;  %v936_v3 = vrot.slane %v3600_v52, 7  ;;  %v1209_v41 = vsel %vm188_vm9, %v1207_v51, %v1208_v24 }
  0xc0   : > { %v523_v4 = vsel %vm212_vm10, %v3447_v49, %v518_v57  ;;  %v1214_v0 = vmin.f32 %v1206_v40, %v1209_v41 }
  0xc1   : > { %v3619_v7 = vmin.f32 %v3437_v45, %v528_v55  ;;  %v525_v8 = vmin.f32 %v515_v53, %v523_v4  ;;  %v3623_v9 = vsel %vm181_vm8, %v930_v58, %v3600_v52  ;;  %v3626_v10 = vsel %vm188_vm9, %v935_v62, %v936_v3 }
  0xc2   : > { %v3631_v11 = vsel %vm181_vm8, %v929_v6, %v930_v58  ;;  %v972_v12 = vmin.f32 %v3623_v9, %v3626_v10  ;;  %v1603_v55 = vrot.slane %v3478_v61, 7  ;;  %v1607_v3 = vsel %vm188_vm9, %v3471_v60, %v1602_v42 }
  0xc3   : > { %6522 = vst [vmem:[#allocation18_spill] sm:$0xff] %v3619_v7  ;;  %v527_v13 = vmin.f32 %v507_v54, %v525_v8  ;;  %v1216_v14 = vpop.permute.xlu0 %1215  ;;  %v971_v26 = vmin.f32 %v3631_v11, %v3637_v20  ;;  %v534_v32 = vrot.slane %v3619_v7, 1  ;;  %v540_v34 = vrot.slane %v3619_v7, 7 }
  0xc4   : > { %v1221_v21 = vsel %vm203_vm11, %v1216_v14, %v3458_v56  ;;  %v1598_v54 = vsel %vm181_vm8, %v1596_v2, %v1597_v36  ;;  %v1621_v14 = vpop.permute.xlu2 %1620 }
  0xc5   : > { %v3645_v28 = vmin.f32 %v3447_v49, %v527_v13  ;;  %v1231_v30 = vmin.f32 %v1221_v21, %v1229_v1  ;;  %v3666_v47 = vsel %vm181_vm8, %v534_v32, %v3619_v7  ;;  %v1608_v6 = vmin.f32 %v1598_v54, %v1607_v3 }
  0xc6   : > { %v1601_v1 = vsel %vm181_vm8, %v1597_v36, %v3478_v61  ;;  %v1604_v13 = vsel %vm188_vm9, %v1602_v42, %v1603_v55  ;;  %v1625_v31 = vsel %vm212_vm10, %v3478_v61, %v1621_v14 }
  0xc7   : > { %6523 = vst [vmem:[#allocation19_spill] sm:$0xff] %v3645_v28  ;;  %v1218_v35 = vpop.permute.xlu1 %1217  ;;  %v533_v37 = vrot.slane %v3645_v28, 1  ;;  %v539_v38 = vrot.slane %v3645_v28, 7  ;;  %v1233_v39 = vmin.f32 %v1213_v23, %v1231_v30 }
  0xc8   : > { %v1222_v58 = vsel %vm203_vm11, %v1218_v35, %v3462_v59 }
  0xc9   : > { %v3658_v33 = vsel %vm181_vm8, %v533_v37, %v534_v32  ;;  %v3662_v43 = vsel %vm188_vm9, %v3645_v28, %v539_v38  ;;  %v3669_v48 = vsel %vm188_vm9, %v539_v38, %v540_v34  ;;  %v3678_v57 = vmin.f32 %v3458_v56, %v1233_v39 }
  0xca   : > { %v1609_v32 = vmin.f32 %v1601_v1, %v1604_v13 }
  0xcb   : > { %v1226_v53 = vpop.permute.xlu0 %1225  ;;  %6524 = vst [vmem:[#allocation20_spill] sm:$0xff] %v3678_v57  ;;  %v1245_v23 = vrot.slane %v3678_v57, 7  ;;  %v1239_v2 = vrot.slane %v3678_v57, 1 }
  0xcc   : > { %v1230_v62 = vsel %vm212_vm10, %v3462_v59, %v1226_v53 }
  0xcd   : > { %v1232_v4 = vmin.f32 %v1222_v58, %v1230_v62  ;;  %v3706_v39 = vsel %vm188_vm9, %v3678_v57, %v1245_v23 }
  0xcf   : > { %v1234_v5 = vmin.f32 %v1214_v0, %v1232_v4  ;;  %v1619_v8 = vpop.permute.xlu1 %1618 }
  0xd0   : > { %v1624_v21 = vsel %vm212_vm10, %v3471_v60, %v1619_v8 }
  0xd1   : > { %v3695_v24 = vmin.f32 %v3462_v59, %v1234_v5  ;;  %v1626_v30 = vmin.f32 %v1616_v46, %v1624_v21 }
  0xd3   : > { %6525 = vst [vmem:[#allocation21_spill] sm:$0xff] %v3695_v24  ;;  %v1628_v34 = vmin.f32 %v1608_v6, %v1626_v30  ;;  %v1613_v35 = vpop.permute.xlu0 %1612  ;;  %v1240_v36 = vrot.slane %v3695_v24, 1  ;;  %v1246_v37 = vrot.slane %v3695_v24, 7  ;;  %v236_v30 = vmax.f32 %v3558_v17, %v3561_v18 }
  0xd4   : > { %v1617_v38 = vsel %vm203_vm11, %v1613_v35, %v3478_v61 }
  0xd5   : > { %v3709_v40 = vmin.f32 %v3471_v60, %v1628_v34  ;;  %v1627_v41 = vmin.f32 %v1617_v38, %v1625_v31  ;;  %v3712_v42 = vsel %vm181_vm8, %v1239_v2, %v1240_v36  ;;  %v3716_v0 = vsel %vm181_vm8, %v1240_v36, %v3695_v24 }
  0xd6   : > { %v3719_v53 = vsel %vm188_vm9, %v1245_v23, %v1246_v37  ;;  %v235_v60 = vmax.f32 %v3550_v15, %v3554_v16  ;;  %v942_v23 = vmax.f32 %v3623_v9, %v3626_v10  ;;  %v3775_v31 = vmax.f32 %v3534_v63, %v236_v30 }
  0xd7   : > { %6526 = vst [vmem:[#allocation22_spill] sm:$0xff] %v3709_v40  ;;  %v1629_v55 = vmin.f32 %v1609_v32, %v1627_v41  ;;  %1686 = vrot.lane.b32.xlu0 %v3709_v40, %s3277_s25  ;;  %1678 = vrot.lane.b32.xlu1 %v3709_v40, %s3278_s26  ;;  %v1640_v3 = vrot.slane %v3709_v40, 7  ;;  %v1634_v4 = vrot.slane %v3709_v40, 1  ;;  %v941_v34 = vmax.f32 %v3631_v11, %v3637_v20  ;;  %v3820_v41 = vpop.permute.xlu2 %1922 }
  0xd8   : > { %v3741_v6 = vmax.f32 %v3515_v44, %v235_v60  ;;  %v3772_v32 = vmax.f32 %v3600_v52, %v942_v23  ;;  %6530 = vst [vmem:[#allocation26_spill] sm:$0xff] %v3775_v31 }
  0xd9   : > { %v3732_v62 = vmin.f32 %v3478_v61, %v1629_v55  ;;  %v3748_v61 = vsel %vm188_vm9, %v3709_v40, %v1640_v3  ;;  %v3788_v2 = vmax.f32 %v3574_v29, %v941_v34  ;;  %v545_v55 = vmax.f32 %v3658_v33, %v3662_v43 }
  0xda   : > { %6528 = vst [vmem:[#allocation24_spill] sm:$0xff] %v3741_v6  ;;  %v1251_v34 = vmax.f32 %v3712_v42, %v3706_v39 }
  0xdb   : > { %6527 = vst [vmem:[#allocation23_spill] sm:$0xff] %v3732_v62  ;;  %1680 = vrot.lane.b32.xlu2 %v3732_v62, %s3278_s26  ;;  %v1635_v46 = vrot.slane %v3732_v62, 1  ;;  %v1641_v5 = vrot.slane %v3732_v62, 7  ;;  %v3827_v60 = vmax.f32 %v3645_v28, %v545_v55  ;;  %v3846_v23 = vpop.permute.xlu0 %1928 }
  0xdc   : > { %6529 = vst [vmem:[#allocation25_spill] sm:$0xff] %v3772_v32  ;;  %v3857_v54 = vmax.f32 %v3678_v57, %v1251_v34 }
  0xdd   : > { %v3744_v8 = vsel %vm181_vm8, %v1634_v4, %v1635_v46  ;;  %v3752_v1 = vsel %vm181_vm8, %v1635_v46, %v3732_v62  ;;  %v3755_v13 = vsel %vm188_vm9, %v1640_v3, %v1641_v5  ;;  %6531 = vst [vmem:[#allocation27_spill] sm:$0xff] %v3788_v2  ;;  %v3833_v3 = vpop.permute.xlu1 %1920  ;;  %v546_v4 = vmax.f32 %v3666_v47, %v3669_v48 }
  0xde   : > { %v1646_v35 = vmax.f32 %v3744_v8, %v3748_v61  ;;  %v1647_v37 = vmax.f32 %v3752_v1, %v3755_v13  ;;  %6534 = vst [vmem:[#allocation30_spill] sm:$0xff] %v3827_v60 }
  0xdf   : > { %249 = vrot.lane.b32.xlu0 %v3741_v6, %s3277_s25  ;;  %1688 = vrot.lane.b32.xlu1 %v3732_v62, %s3277_s25  ;;  %v3840_v5 = vmax.f32 %v3619_v7, %v546_v4  ;;  %6536 = vst [vmem:[#allocation32_spill] sm:$0xff] %v3857_v54 }
  0xe0   : > { %v3791_v36 = vmax.f32 %v3709_v40, %v1646_v35  ;;  %v3802_v38 = vmax.f32 %v3732_v62, %v1647_v37 }
  0xe1   : > { %6535 = vst [vmem:[#allocation31_spill] sm:$0xff] %v3840_v5 }
  0xe2   : > { %6532 = vst [vmem:[#allocation28_spill] sm:$0xff] %v3791_v36 }
  0xe3   : > { %241 = vrot.lane.b32.xlu2 %v3741_v6, %s3278_s26  ;;  %6533 = vst [vmem:[#allocation29_spill] sm:$0xff] %v3802_v38 }
  0xe7   : > { %949 = vrot.lane.b32.xlu0 %v3772_v32, %s3278_s26  ;;  %251 = vrot.lane.b32.xlu1 %v3775_v31, %s3277_s25 }
  0xeb   : > { %243 = vrot.lane.b32.xlu2 %v3775_v31, %s3278_s26 }
  0xef   : > { %955 = vrot.lane.b32.xlu1 %v3788_v2, %s3277_s25  ;;  %1652 = vrot.lane.b32.xlu0 %v3791_v36, %s3278_s26 }
  0xf3   : > { %947 = vrot.lane.b32.xlu2 %v3788_v2, %s3278_s26 }
  0xf7   : > { %1654 = vrot.lane.b32.xlu1 %v3802_v38, %s3278_s26  ;;  %1662 = vrot.lane.b32.xlu0 %v3802_v38, %s3277_s25 }
  0xfb   : > { %957 = vrot.lane.b32.xlu2 %v3772_v32, %s3277_s25 }
  0xff   : > { %585 = vrot.lane.b32.xlu0 %v3645_v28, %s3277_s25  ;;  %577 = vrot.lane.b32.xlu1 %v3645_v28, %s3278_s26 }
 0x101   : > { %v268_v46 = vpop.permute.xlu2 %267 }
 0x102   : > { %v273_v35 = vsel %vm203_vm11, %v268_v46, %v3515_v44 }
 0x103   : > { %1660 = vrot.lane.b32.xlu2 %v3791_v36, %s3277_s25 }
 0x107   : > { %1285 = vrot.lane.b32.xlu0 %v3695_v24, %s3278_s26  ;;  %587 = vrot.lane.b32.xlu1 %v3619_v7, %s3277_s25 }
 0x109   : > { %v278_v4 = vpop.permute.xlu2 %277 }
 0x10b   : > { %579 = vrot.lane.b32.xlu2 %v3619_v7, %s3278_s26 }
 0x10f   : > { %1291 = vrot.lane.b32.xlu1 %v3678_v57, %s3277_s25  ;;  %551 = vrot.lane.b32.xlu0 %v3827_v60, %s3278_s26 }
 0x113   : > { %1283 = vrot.lane.b32.xlu2 %v3678_v57, %s3278_s26 }
 0x117   : > { %553 = vrot.lane.b32.xlu1 %v3840_v5, %s3278_s26  ;;  %561 = vrot.lane.b32.xlu0 %v3840_v5, %s3277_s25 }
 0x119   : > { %v276_v30 = vpop.permute.xlu1 %275 }
 0x11a   : > { %v281_v37 = vsel %vm212_vm10, %v3515_v44, %v276_v30  ;;  %v1252_v30 = vmax.f32 %v3716_v0, %v3719_v53 }
 0x11b   : > { %v283_v55 = vmin.f32 %v273_v35, %v281_v37  ;;  %1293 = vrot.lane.b32.xlu2 %v3695_v24, %s3277_s25  ;;  %v282_v35 = vsel %vm212_vm10, %v3534_v63, %v278_v4  ;;  %v982_v4 = vpop.permute.xlu2 %981 }
 0x11c   : > { %v3881_v37 = vmax.f32 %v3695_v24, %v1252_v30  ;;  %v987_v18 = vsel %vm212_vm10, %v3574_v29, %v982_v4 }
 0x11d   : > { %v285_v58 = vmin.f32 %v265_v19, %v283_v55 }
 0x11e   : > { %6538 = vst [vmem:[#allocation34_spill] sm:$0xff] %v3881_v37 }
 0x11f   : > { %1257 = vrot.lane.b32.xlu1 %v3857_v54, %s3278_s26  ;;  %1265 = vrot.lane.b32.xlu0 %v3857_v54, %s3277_s25  ;;  %v3871_v34 = vmin.f32 %v3515_v44, %v285_v58 }
 0x121   : > { %v270_v46 = vpop.permute.xlu0 %269  ;;  %6537 = vst [vmem:[#allocation33_spill] sm:$0xff] %v3871_v34  ;;  %v297_v55 = vrot.slane %v3871_v34, 7  ;;  %v291_v17 = vrot.slane %v3871_v34, 1 }
 0x122   : > { %v274_v15 = vsel %vm203_vm11, %v270_v46, %v3534_v63 }
 0x123   : > { %v284_v16 = vmin.f32 %v274_v15, %v282_v35  ;;  %559 = vrot.lane.b32.xlu2 %v3827_v60, %s3277_s25  ;;  %v3898_v30 = vsel %vm188_vm9, %v3871_v34, %v297_v55 }
 0x125   : > { %v286_v19 = vmin.f32 %v266_v22, %v284_v16 }
 0x127   : > { %v3885_v58 = vmin.f32 %v3534_v63, %v286_v19  ;;  %1267 = vrot.lane.b32.xlu1 %v3881_v37, %s3277_s25 }
 0x129   : > { %6539 = vst [vmem:[#allocation35_spill] sm:$0xff] %v3885_v58  ;;  %v974_v46 = vpop.permute.xlu0 %973  ;;  %v292_v35 = vrot.slane %v3885_v58, 1  ;;  %v298_v15 = vrot.slane %v3885_v58, 7 }
 0x12a   : > { %v979_v22 = vsel %vm203_vm11, %v974_v46, %v3574_v29 }
 0x12b   : > { %v989_v16 = vmin.f32 %v979_v22, %v987_v18  ;;  %1259 = vrot.lane.b32.xlu2 %v3881_v37, %s3278_s26  ;;  %v3904_v19 = vsel %vm181_vm8, %v292_v35, %v3885_v58  ;;  %v3907_v51 = vsel %vm188_vm9, %v297_v55, %v298_v15  ;;  %v3910_v4 = vsel %vm181_vm8, %v291_v17, %v292_v35 }
 0x12d   : > { %v991_v18 = vmin.f32 %v971_v26, %v989_v16 }
 0x12f   : > { %1930 = vrot.lane.b32.xlu1 %v3494_v27, %s3277_s25  ;;  %v3926_v15 = vmin.f32 %v3574_v29, %v991_v18 }
 0x131   : > { %v984_v22 = vpop.permute.xlu0 %983  ;;  %v976_v21 = vpop.permute.xlu1 %975  ;;  %6540 = vst [vmem:[#allocation36_spill] sm:$0xff] %v3926_v15  ;;  %v1003_v16 = vrot.slane %v3926_v15, 7  ;;  %v997_v50 = vrot.slane %v3926_v15, 1 }
 0x132   : > { %v988_v55 = vsel %vm212_vm10, %v3600_v52, %v984_v22  ;;  %v980_v35 = vsel %vm203_vm11, %v976_v21, %v3600_v52 }
 0x133   : > { %v990_v17 = vmin.f32 %v980_v35, %v988_v55  ;;  %v3943_v55 = vsel %vm188_vm9, %v3926_v15, %v1003_v16 }
 0x135   : > { %v992_v11 = vmin.f32 %v972_v12, %v990_v17  ;;  %v1681_v20 = vpop.permute.xlu2 %1680  ;;  %v6545_v12 = vmin.f32 %v3744_v8, %v3748_v61 }
 0x136   : > { %v1685_v45 = vsel %vm203_vm11, %v1681_v20, %v3732_v62 }
 0x137   : > { %v3932_v26 = vmin.f32 %v3600_v52, %v992_v11 }
 0x139   : > { %6541 = vst [vmem:[#allocation37_spill] sm:$0xff] %v3932_v26  ;;  %v998_v22 = vrot.slane %v3932_v26, 1  ;;  %v1004_v21 = vrot.slane %v3932_v26, 7 }
 0x13b   : > { %v3939_v18 = vsel %vm181_vm8, %v997_v50, %v998_v22  ;;  %v3947_v9 = vsel %vm181_vm8, %v998_v22, %v3932_v26  ;;  %v3950_v10 = vsel %vm188_vm9, %v1003_v16, %v1004_v21 }
 0x13d   : > { %v3956_v17 = vpop.permute.xlu2 %241 }
 0x13e   : > { %6542 = vst [vmem:[#allocation38_spill] sm:$0xff] %v3956_v17 }
 0x145   : > { %v3958_v50 = vpop.permute.xlu2 %243 }
 0x146   : > { %6543 = vst [vmem:[#allocation39_spill] sm:$0xff] %v3958_v50 }
 0x149   : > { %v1687_v11 = vpop.permute.xlu0 %1686  ;;  %v1679_v46 = vpop.permute.xlu1 %1678 }
 0x14a   : > { %v1692_v14 = vsel %vm212_vm10, %v3709_v40, %v1687_v11  ;;  %v1684_v22 = vsel %vm203_vm11, %v1679_v46, %v3709_v40 }
 0x14b   : > { %v1694_v16 = vmin.f32 %v1684_v22, %v1692_v14  ;;  %v6548_v14 = vmin.f32 %v3752_v1, %v3755_v13 }
 0x14d   : > { %v3964_v21 = vpop.permute.xlu2 %947  ;;  %v1696_v59 = vmin.f32 %v6545_v12, %v1694_v16 }
 0x14e   : > { %6544 = vst [vmem:[#allocation40_spill] sm:$0xff] %v3964_v21  ;;  %v6558_v21 = vmin.f32 %v3658_v33, %v3662_v43  ;;  %v6560_v33 = vmin.f32 %v3666_v47, %v3669_v48 }
 0x14f   : > { %v3976_v11 = vmin.f32 %v3709_v40, %v1696_v59 }
 0x151   : > { %v3969_v35 = vpop.permute.xlu0 %249  ;;  %v1689_v56 = vpop.permute.xlu1 %1688  ;;  %6547 = vst [vmem:[#allocation42_spill] sm:$0xff] %v3976_v11  ;;  %v1708_v61 = vrot.slane %v3976_v11, 7 }
 0x152   : > { %6546 = vst [vmem:[#allocation41_spill] sm:$0xff] %v3969_v35  ;;  %v1693_v37 = vsel %vm212_vm10, %v3732_v62, %v1689_v56  ;;  %v1702_v56 = vrot.slane %v3976_v11, 1 }
 0x153   : > { %v1695_v46 = vmin.f32 %v1685_v45, %v1693_v37  ;;  %v3999_v13 = vsel %vm188_vm9, %v3976_v11, %v1708_v61 }
 0x155   : > { %v1697_v22 = vmin.f32 %v6548_v14, %v1695_v46  ;;  %v3981_v29 = vpop.permute.xlu2 %957 }
 0x156   : > { %6549 = vst [vmem:[#allocation43_spill] sm:$0xff] %v3981_v29 }
 0x157   : > { %v3984_v8 = vmin.f32 %v3732_v62, %v1697_v22 }
 0x159   : > { %6550 = vst [vmem:[#allocation44_spill] sm:$0xff] %v3984_v8  ;;  %v3987_v12 = vpop.permute.xlu0 %949  ;;  %v3989_v20 = vpop.permute.xlu1 %251  ;;  %v1703_v59 = vrot.slane %v3984_v8, 1  ;;  %v1709_v45 = vrot.slane %v3984_v8, 7 }
 0x15a   : > { %6551 = vst [vmem:[#allocation45_spill] sm:$0xff] %v3987_v12 }
 0x15b   : > { %6552 = vst [vmem:[#allocation46_spill] sm:$0xff] %v3989_v20  ;;  %v3995_v1 = vsel %vm181_vm8, %v1702_v56, %v1703_v59  ;;  %v4003_v37 = vsel %vm181_vm8, %v1703_v59, %v3984_v8  ;;  %v4006_v16 = vsel %vm188_vm9, %v1708_v61, %v1709_v45 }
 0x15d   : > { %v4010_v14 = vpop.permute.xlu2 %1660 }
 0x15e   : > { %6553 = vst [vmem:[#allocation47_spill] sm:$0xff] %v4010_v14 }
 0x161   : > { %v4014_v56 = vpop.permute.xlu1 %955  ;;  %v4016_v62 = vpop.permute.xlu0 %1652 }
 0x162   : > { %6554 = vst [vmem:[#allocation48_spill] sm:$0xff] %v4014_v56 }
 0x163   : > { %6555 = vst [vmem:[#allocation49_spill] sm:$0xff] %v4016_v62 }
 0x165   : > { %v580_v54 = vpop.permute.xlu2 %579 }
 0x169   : > { %v4018_v5 = vpop.permute.xlu1 %1654  ;;  %v4020_v59 = vpop.permute.xlu0 %1662 }
 0x16a   : > { %6556 = vst [vmem:[#allocation50_spill] sm:$0xff] %v4018_v5 }
 0x16b   : > { %6557 = vst [vmem:[#allocation51_spill] sm:$0xff] %v4020_v59  ;;  %v584_v59 = vsel %vm203_vm11, %v580_v54, %v3619_v7  ;;  %v6561_v54 = vmin.f32 %v3716_v0, %v3719_v53 }
 0x16d   : > { %v1284_v63 = vpop.permute.xlu2 %1283 }
 0x16e   : > { %v1289_v47 = vsel %vm203_vm11, %v1284_v63, %v3678_v57  ;;  %v6564_v63 = vmin.f32 %v3712_v42, %v3706_v39 }
 0x171   : > { %v586_v61 = vpop.permute.xlu0 %585  ;;  %v578_v45 = vpop.permute.xlu1 %577 }
 0x172   : > { %v591_v46 = vsel %vm212_vm10, %v3645_v28, %v586_v61  ;;  %v583_v44 = vsel %vm203_vm11, %v578_v45, %v3645_v28 }
 0x173   : > { %v593_v38 = vmin.f32 %v583_v44, %v591_v46 }
 0x175   : > { %v1294_v22 = vpop.permute.xlu2 %1293  ;;  %v595_v50 = vmin.f32 %v6558_v21, %v593_v38 }
 0x176   : > { %v1298_v5 = vsel %vm212_vm10, %v3695_v24, %v1294_v22 }
 0x177   : > { %v4038_v56 = vmin.f32 %v3645_v28, %v595_v50 }
 0x179   : > { %v1286_v17 = vpop.permute.xlu0 %1285  ;;  %v588_v2 = vpop.permute.xlu1 %587  ;;  %6559 = vst [vmem:[#allocation52_spill] sm:$0xff] %v4038_v56  ;;  %v601_v22 = vrot.slane %v4038_v56, 1 }
 0x17a   : > { %v1290_v61 = vsel %vm203_vm11, %v1286_v17, %v3695_v24  ;;  %v592_v45 = vsel %vm212_vm10, %v3619_v7, %v588_v2 }
 0x17b   : > { %v1300_v44 = vmin.f32 %v1290_v61, %v1298_v5  ;;  %v594_v46 = vmin.f32 %v584_v59, %v592_v45  ;;  %v607_v5 = vrot.slane %v4038_v56, 7 }
 0x17d   : > { %v596_v43 = vmin.f32 %v6560_v33, %v594_v46  ;;  %v1302_v38 = vmin.f32 %v6561_v54, %v1300_v44  ;;  %v4075_v46 = vsel %vm188_vm9, %v4038_v56, %v607_v5  ;;  %v1913_v33 = vrot.slane %v3494_v27, 7 }
 0x17f   : > { %v4047_v21 = vmin.f32 %v3619_v7, %v596_v43  ;;  %v4058_v0 = vmin.f32 %v3695_v24, %v1302_v38  ;;  %v1912_v43 = vrot.slane %v3488_v25, 7 }
 0x181   : > { %6562 = vst [vmem:[#allocation53_spill] sm:$0xff] %v4047_v21  ;;  %v1292_v17 = vpop.permute.xlu1 %1291  ;;  %v602_v2 = vrot.slane %v4047_v21, 1  ;;  %v608_v50 = vrot.slane %v4047_v21, 7  ;;  %v1308_v38 = vrot.slane %v4058_v0, 1  ;;  %v1314_v42 = vrot.slane %v4058_v0, 7 }
 0x182   : > { %v1297_v48 = vsel %vm212_vm10, %v3678_v57, %v1292_v17  ;;  %6563 = vst [vmem:[#allocation54_spill] sm:$0xff] %v4058_v0 }
 0x183   : > { %v1299_v53 = vmin.f32 %v1289_v47, %v1297_v48  ;;  %v4061_v59 = vsel %vm181_vm8, %v601_v22, %v602_v2  ;;  %v4065_v61 = vsel %vm181_vm8, %v602_v2, %v4047_v21  ;;  %v4068_v45 = vsel %vm188_vm9, %v607_v5, %v608_v50 }
 0x184   : > { %v4092_v2 = vsel %vm181_vm8, %v1308_v38, %v4058_v0 }
 0x185   : > { %v1301_v44 = vmin.f32 %v6564_v63, %v1299_v53  ;;  %v1934_v53 = vsel %vm212_vm10, %v3488_v25, %v3846_v23 }
 0x187   : > { %v4082_v54 = vmin.f32 %v3678_v57, %v1301_v44  ;;  %v1906_v44 = vrot.slane %v3488_v25, 1 }
 0x189   : > { %6565 = vst [vmem:[#allocation55_spill] sm:$0xff] %v4082_v54  ;;  %v4085_v17 = vpop.permute.xlu1 %553  ;;  %v1313_v39 = vrot.slane %v4082_v54, 7  ;;  %v1307_v22 = vrot.slane %v4082_v54, 1 }
 0x18a   : > { %6566 = vst [vmem:[#allocation56_spill] sm:$0xff] %v4085_v17 }
 0x18b   : > { %v4095_v5 = vsel %vm188_vm9, %v1313_v39, %v1314_v42  ;;  %v4098_v50 = vsel %vm181_vm8, %v1307_v22, %v1308_v38  ;;  %v4102_v47 = vsel %vm188_vm9, %v4082_v54, %v1313_v39  ;;  %v1907_v42 = vrot.slane %v3494_v27, 1 }
 0x18c   : > { %v1926_v38 = vsel %vm203_vm11, %v3833_v3, %v3488_v25  ;;  %v1917_v22 = vsel %vm188_vm9, %v3488_v25, %v1912_v43  ;;  %v1914_v3 = vsel %vm188_vm9, %v1912_v43, %v1913_v33 }
 0x18d   : > { %v1908_v39 = vsel %vm181_vm8, %v1906_v44, %v1907_v42  ;;  %v1936_v57 = vmin.f32 %v1926_v38, %v1934_v53  ;;  %v1911_v7 = vsel %vm181_vm8, %v1907_v42, %v3494_v27  ;;  %v1927_v44 = vsel %vm203_vm11, %v3820_v41, %v3494_v27 }
 0x18e   : > { %v1918_v24 = vmin.f32 %v1908_v39, %v1917_v22  ;;  %v1919_v17 = vmin.f32 %v1911_v7, %v1914_v3  ;;  %v4259_v22 = vld [vmem:[%s3379_s24 + $0x38] sm:$0xff] }
 0x191   : > { %v4108_v63 = vpop.permute.xlu1 %1257 }
 0x192   : > { %6567 = vst [vmem:[#allocation57_spill] sm:$0xff] %v4108_v63  ;;  %v1938_v63 = vmin.f32 %v1918_v24, %v1936_v57 }
 0x199   : > { %v4122_v48 = vpop.permute.xlu1 %1267 }
 0x19a   : > { %6568 = vst [vmem:[#allocation58_spill] sm:$0xff] %v4122_v48  ;;  %v4134_v48 = vmin.f32 %v3488_v25, %v1938_v63  ;;  %v4261_v25 = vpop.permute.xlu2 %559 }
 0x19b   : > { %6582 = vst [vmem:[#allocation72_spill] sm:$0xff] %v4261_v25 }
 0x19c   : > { %6569 = vst [vmem:[#allocation59_spill] sm:$0xff] %v4134_v48  ;;  %v1950_v33 = vrot.slane %v4134_v48, 7  ;;  %v1944_v57 = vrot.slane %v4134_v48, 1 }
 0x1a1   : > { %v1931_v31 = vpop.permute.xlu1 %1930 }
 0x1a2   : > { %v1935_v23 = vsel %vm212_vm10, %v3494_v27, %v1931_v31  ;;  %v4148_v31 = vsel %vm188_vm9, %v4134_v48, %v1950_v33 }
 0x1a3   : > { %v1937_v39 = vmin.f32 %v1927_v44, %v1935_v23  ;;  %6571 = vst [vmem:[#allocation61_spill] sm:$0xff] %v4148_v31 }
 0x1a5   : > { %v1939_v53 = vmin.f32 %v1919_v17, %v1937_v39  ;;  %v4178_v39 = vld [vmem:[%s3379_s24 + $0x30] sm:$0xff] }
 0x1a7   : > { %v4137_v38 = vmin.f32 %v3494_v27, %v1939_v53  ;;  %v304_v53 = vmax.f32 %v3904_v19, %v3907_v51  ;;  %v2308_v27 = vrot.slane %v4259_v22, 7 }
 0x1a9   : > { %v1945_v24 = vrot.slane %v4137_v38, 1  ;;  %v1951_v7 = vrot.slane %v4137_v38, 7 }
 0x1ab   : > { %v4144_v41 = vsel %vm181_vm8, %v1944_v57, %v1945_v24  ;;  %v4152_v43 = vsel %vm181_vm8, %v1945_v24, %v4137_v38  ;;  %v4155_v17 = vsel %vm188_vm9, %v1950_v33, %v1951_v7  ;;  %v303_v33 = vmax.f32 %v3910_v4, %v3898_v30 }
 0x1ac   : > { %6570 = vst [vmem:[#allocation60_spill] sm:$0xff] %v4144_v41  ;;  %v1956_v63 = vmax.f32 %v4144_v41, %v4148_v31  ;;  %v1957_v42 = vmax.f32 %v4152_v43, %v4155_v17  ;;  %v4209_v57 = vmax.f32 %v3885_v58, %v304_v53  ;;  %v1009_v7 = vmax.f32 %v3939_v18, %v3943_v55 }
 0x1ad   : > { %6572 = vst [vmem:[#allocation62_spill] sm:$0xff] %v4152_v43  ;;  %v4212_v24 = vmax.f32 %v3871_v34, %v303_v33  ;;  %v1714_v33 = vmax.f32 %v3995_v1, %v3999_v13 }
 0x1ae   : > { %6573 = vst [vmem:[#allocation63_spill] sm:$0xff] %v4155_v17  ;;  %v4166_v44 = vmax.f32 %v4134_v48, %v1956_v63  ;;  %v4169_v23 = vmax.f32 %v4137_v38, %v1957_v42  ;;  %v4223_v63 = vmax.f32 %v3926_v15, %v1009_v7  ;;  %v1010_v42 = vmax.f32 %v3947_v9, %v3950_v10 }
 0x1af   : > { %6576 = vst [vmem:[#allocation66_spill] sm:$0xff] %v4209_v57  ;;  %v1715_v7 = vmax.f32 %v4003_v37, %v4006_v16  ;;  %v4247_v3 = vmax.f32 %v3976_v11, %v1714_v33  ;;  %v3077_v33 = vmul.f32 -1.442695, %v4259_v22 }
 0x1b0   : > { %6574 = vst [vmem:[#allocation64_spill] sm:$0xff] %v4166_v44  ;;  %1970 = vrot.lane.b32.xlu1 %v4166_v44, %s3277_s25  ;;  %1962 = vrot.lane.b32.xlu2 %v4166_v44, %s3278_s26  ;;  %v4234_v53 = vmax.f32 %v3932_v26, %v1010_v42 }
 0x1b1   : > { %6575 = vst [vmem:[#allocation65_spill] sm:$0xff] %v4169_v23  ;;  %1964 = vrot.lane.b32.xlu0 %v4169_v23, %s3278_s26  ;;  %v4250_v42 = vmax.f32 %v3984_v8, %v1715_v7  ;;  %3158 = vpow2.f32 %v3077_v33  ;;  %v3076_v7 = vmul.f32 -1.442695, %v4178_v39 }
 0x1b2   : > { %6577 = vst [vmem:[#allocation67_spill] sm:$0xff] %v4212_v24 }
 0x1b3   : > { %6578 = vst [vmem:[#allocation68_spill] sm:$0xff] %v4223_v63  ;;  %3160 = vpow2.f32 %v3076_v7 }
 0x1b4   : > { %6579 = vst [vmem:[#allocation69_spill] sm:$0xff] %v4234_v53 }
 0x1b5   : > { %6580 = vst [vmem:[#allocation70_spill] sm:$0xff] %v4247_v3 }
 0x1b6   : > { %6581 = vst [vmem:[#allocation71_spill] sm:$0xff] %v4250_v42 }
 0x1b7   : > { %v3159_v44 = vpop.eup %3158 }
 0x1b8   : > { %343 = vrot.lane.b32.xlu1 %v3871_v34, %s3278_s26  ;;  %2315 = vrot.lane.b32.xlu2 %v4178_v39, %s3278_s26 }
 0x1b9   : > { %351 = vrot.lane.b32.xlu0 %v3871_v34, %s3277_s25  ;;  %v3161_v33 = vpop.eup %3160 }
 0x1ba   : > { %v2267_v7 = vadd.f32 1.0, %v3161_v33 }
 0x1bc   : > { %vm2274_vm0 = vweird.f32 %v2267_v7  ;;  %v2278_v29 = vand.u32 2147483647, %v2267_v7 }
 0x1be   : > { %vm2279_vm3 = vcmp.eq.f32.partialorder %v2278_v29, 8.507059e+37 }
 0x1c0   : > { %353 = vrot.lane.b32.xlu1 %v3885_v58, %s3277_s25  ;;  %345 = vrot.lane.b32.xlu2 %v3885_v58, %s3278_s26 }
 0x1c1   : > { %1051 = vrot.lane.b32.xlu0 %v3932_v26, %s3278_s26 }
 0x1c8   : > { %1057 = vrot.lane.b32.xlu1 %v3926_v15, %s3277_s25  ;;  %1049 = vrot.lane.b32.xlu2 %v3926_v15, %s3278_s26 }
 0x1c9   : > { %1754 = vrot.lane.b32.xlu0 %v3976_v11, %s3278_s26 }
 0x1d0   : > { %1756 = vrot.lane.b32.xlu1 %v3984_v8, %s3278_s26  ;;  %1059 = vrot.lane.b32.xlu2 %v3932_v26, %s3277_s25 }
 0x1d1   : > { %1764 = vrot.lane.b32.xlu0 %v3984_v8, %s3277_s25 }
 0x1d8   : > { %311 = vrot.lane.b32.xlu1 %v4209_v57, %s3278_s26  ;;  %1762 = vrot.lane.b32.xlu2 %v3976_v11, %s3277_s25 }
 0x1d9   : > { %309 = vrot.lane.b32.xlu0 %v4212_v24, %s3278_s26 }
 0x1e0   : > { %1015 = vrot.lane.b32.xlu1 %v4223_v63, %s3278_s26  ;;  %317 = vrot.lane.b32.xlu2 %v4212_v24, %s3277_s25 }
 0x1e1   : > { %319 = vrot.lane.b32.xlu0 %v4209_v57, %s3277_s25  ;;  %v4279_v57 = vpop.permute.xlu0 %551 }
 0x1e2   : > { %6584 = vst [vmem:[#allocation74_spill] sm:$0xff] %v4279_v57 }
 0x1e8   : > { %1025 = vrot.lane.b32.xlu1 %v4234_v53, %s3277_s25  ;;  %1017 = vrot.lane.b32.xlu2 %v4234_v53, %s3278_s26 }
 0x1e9   : > { %1023 = vrot.lane.b32.xlu0 %v4223_v63, %s3277_s25  ;;  %v4277_v63 = vpop.permute.xlu2 %1259 }
 0x1ea   : > { %6583 = vst [vmem:[#allocation73_spill] sm:$0xff] %v4277_v63  ;;  %v613_v63 = vmax.f32 %v4061_v59, %v4075_v46 }
 0x1ec   : > { %v4294_v6 = vmax.f32 %v4038_v56, %v613_v63  ;;  %v1320_v63 = vmax.f32 %v4092_v2, %v4095_v5 }
 0x1ee   : > { %6586 = vst [vmem:[#allocation76_spill] sm:$0xff] %v4294_v6  ;;  %v4314_v28 = vmax.f32 %v4058_v0, %v1320_v63 }
 0x1f0   : > { %1728 = vrot.lane.b32.xlu1 %v4247_v3, %s3277_s25  ;;  %1720 = vrot.lane.b32.xlu2 %v4247_v3, %s3278_s26  ;;  %6589 = vst [vmem:[#allocation79_spill] sm:$0xff] %v4314_v28 }
 0x1f1   : > { %1722 = vrot.lane.b32.xlu0 %v4250_v42, %s3278_s26 }
 0x1f8   : > { %655 = vrot.lane.b32.xlu1 %v4047_v21, %s3278_s26  ;;  %1730 = vrot.lane.b32.xlu2 %v4250_v42, %s3277_s25  ;;  %v2268_v42 = vadd.f32 1.0, %v3159_v44  ;;  %v614_v44 = vmax.f32 %v4065_v61, %v4068_v45 }
 0x1f9   : > { %653 = vrot.lane.b32.xlu0 %v4038_v56, %s3278_s26 }
 0x1fa   : > { %3162 = vrcp.f32 %v2268_v42  ;;  %v4297_v24 = vmax.f32 %v4047_v21, %v614_v44  ;;  %v1319_v44 = vmax.f32 %v4098_v50, %v4102_v47  ;;  %vm2289_vm12 = vweird.f32 %v2268_v42 }
 0x1fb   : > { %3164 = vrcp.f32 %v2267_v7 }
 0x1fc   : > { %6587 = vst [vmem:[#allocation77_spill] sm:$0xff] %v4297_v24 }
 0x200   : > { %1359 = vrot.lane.b32.xlu1 %v4082_v54, %s3278_s26  ;;  %661 = vrot.lane.b32.xlu2 %v4038_v56, %s3277_s25  ;;  %v3163_v35 = vpop.eup %3162 }
 0x201   : > { %663 = vrot.lane.b32.xlu0 %v4047_v21, %s3277_s25  ;;  %v2285_v49 = vmul.f32 %v3163_v35, %v2268_v42  ;;  %v3165_v57 = vpop.eup %3164  ;;  %vm2290_vm13 = vweird.f32 %v3163_v35 }
 0x202   : > { %v2270_v40 = vmul.f32 %v3165_v57, %v2267_v7  ;;  %vm2291_vm14 = vmor %vm2289_vm12, %vm2290_vm13  ;;  %vm2275_vm1 = vweird.f32 %v3165_v57 }
 0x203   : > { %v2286_v25 = vsub.f32 1.0, %v2285_v49  ;;  %v2295_v49 = vand.u32 2147483648, %v2268_v42  ;;  %vm2276_vm2 = vmor %vm2274_vm0, %vm2275_vm1 }
 0x204   : > { %v2271_v52 = vsub.f32 1.0, %v2270_v40 }
 0x206   : > { %v2272_v36 = vmul.f32 %v3165_v57, %v2271_v52 }
 0x208   : > { %1369 = vrot.lane.b32.xlu1 %v4058_v0, %s3277_s25  ;;  %1361 = vrot.lane.b32.xlu2 %v4058_v0, %s3278_s26  ;;  %v2273_v3 = vadd.f32 %v3165_v57, %v2272_v36 }
 0x209   : > { %1367 = vrot.lane.b32.xlu0 %v4082_v54, %s3277_s25 }
 0x20a   : > { %v4287_v20 = vpop.permute.xlu2 %1962 }
 0x20b   : > { %6585 = vst [vmem:[#allocation75_spill] sm:$0xff] %v4287_v20  ;;  %v4303_v20 = vpop.permute.xlu0 %561 }
 0x20c   : > { %6588 = vst [vmem:[#allocation78_spill] sm:$0xff] %v4303_v20  ;;  %v4317_v20 = vmax.f32 %v4082_v54, %v1319_v44  ;;  %v2293_v44 = vand.u32 2147483647, %v2268_v42  ;;  %v2280_v42 = vand.u32 2147483648, %v2267_v7 }
 0x20e   : > { %6590 = vst [vmem:[#allocation80_spill] sm:$0xff] %v4317_v20  ;;  %vm2294_vm15 = vcmp.eq.f32.partialorder %v2293_v44, 8.507059e+37  ;;  %v2281_v52 = vor.u32 1.1754944e-38, %v2280_v42 }
 0x210   : > { %627 = vrot.lane.b32.xlu1 %v4294_v6, %s3277_s25  ;;  %619 = vrot.lane.b32.xlu2 %v4294_v6, %s3278_s26  ;;  %v2287_v6 = vmul.f32 %v3163_v35, %v2286_v25  ;;  %v2296_v25 = vor.u32 1.1754944e-38, %v2295_v49 }
 0x211   : > { %621 = vrot.lane.b32.xlu0 %v4297_v24, %s3278_s26 }
 0x212   : > { %v4307_v33 = vpop.permute.xlu2 %2315  ;;  %v2288_v63 = vadd.f32 %v3163_v35, %v2287_v6 }
 0x213   : > { %v4325_v14 = vpop.permute.xlu0 %1265 }
 0x214   : > { %6591 = vst [vmem:[#allocation81_spill] sm:$0xff] %v4325_v14  ;;  %v2292_v62 = vsel %vm2291_vm14, %v3163_v35, %v2288_v63  ;;  %v2277_v63 = vsel %vm2276_vm2, %v3165_v57, %v2273_v3  ;;  %v6596_v3 = vmin.f32 %v3910_v4, %v3898_v30 }
 0x215   : > { %v4337_v40 = vsel %vm2294_vm15, %v2296_v25, %v2292_v62  ;;  %v4349_v25 = vsel %vm2279_vm3, %v2281_v52, %v2277_v63 }
 0x216   : > { %6594 = vst [vmem:[#allocation84_spill] sm:$0xff] %v4337_v40  ;;  %v2612_v41 = vrot.slane %v4337_v40, 1 }
 0x217   : > { %6595 = vst [vmem:[#allocation85_spill] sm:$0xff] %v4349_v25 }
 0x218   : > { %1327 = vrot.lane.b32.xlu1 %v4314_v28, %s3278_s26  ;;  %629 = vrot.lane.b32.xlu2 %v4297_v24, %s3277_s25 }
 0x219   : > { %1325 = vrot.lane.b32.xlu0 %v4317_v20, %s3278_s26 }
 0x21a   : > { %v346_v60 = vpop.permute.xlu2 %345 }
 0x220   : > { %2323 = vrot.lane.b32.xlu1 %v4178_v39, %s3277_s25  ;;  %1333 = vrot.lane.b32.xlu2 %v4317_v20, %s3277_s25 }
 0x221   : > { %1335 = vrot.lane.b32.xlu0 %v4314_v28, %s3277_s25 }
 0x222   : > { %v4333_v24 = vpop.permute.xlu1 %1970  ;;  %v1050_v14 = vpop.permute.xlu2 %1049 }
 0x223   : > { %6592 = vst [vmem:[#allocation82_spill] sm:$0xff] %v4333_v24  ;;  %v4335_v6 = vpop.permute.xlu0 %1964 }
 0x224   : > { %6593 = vst [vmem:[#allocation83_spill] sm:$0xff] %v4335_v6 }
 0x228   : > { %2627 = vrot.lane.b32.xlu1 %v4337_v40, %s3278_s26  ;;  %2325 = vrot.lane.b32.xlu2 %v4259_v22, %s3277_s25 }
 0x229   : > { %2317 = vrot.lane.b32.xlu0 %v4259_v22, %s3278_s26 }
 0x22a   : > { %v344_v35 = vpop.permute.xlu1 %343  ;;  %v1060_v49 = vpop.permute.xlu2 %1059 }
 0x22b   : > { %v349_v62 = vsel %vm203_vm11, %v344_v35, %v3871_v34  ;;  %v352_v36 = vpop.permute.xlu0 %351  ;;  %v350_v35 = vsel %vm203_vm11, %v346_v60, %v3885_v58 }
 0x22c   : > { %v357_v7 = vsel %vm212_vm10, %v3871_v34, %v352_v36 }
 0x22d   : > { %v359_v44 = vmin.f32 %v349_v62, %v357_v7  ;;  %v1064_v62 = vsel %vm212_vm10, %v3932_v26, %v1060_v49  ;;  %v6600_v49 = vmin.f32 %v3947_v9, %v3950_v10  ;;  %v1055_v9 = vsel %vm203_vm11, %v1050_v14, %v3926_v15 }
 0x22f   : > { %v361_v29 = vmin.f32 %v6596_v3, %v359_v44  ;;  %v6598_v44 = vmin.f32 %v3904_v19, %v3907_v51 }
 0x230   : > { %1972 = vrot.lane.b32.xlu1 %v4169_v23, %s3277_s25  ;;  %2633 = vrot.lane.b32.xlu2 %v4349_v25, %s3277_s25 }
 0x231   : > { %2625 = vrot.lane.b32.xlu0 %v4349_v25, %s3278_s26  ;;  %v4369_v4 = vmin.f32 %v3871_v34, %v361_v29 }
 0x232   : > { %v354_v57 = vpop.permute.xlu1 %353  ;;  %v1763_v42 = vpop.permute.xlu2 %1762 }
 0x233   : > { %v358_v52 = vsel %vm212_vm10, %v3885_v58, %v354_v57  ;;  %v1052_v63 = vpop.permute.xlu0 %1051  ;;  %6597 = vst [vmem:[#allocation86_spill] sm:$0xff] %v4369_v4  ;;  %v373_v29 = vrot.slane %v4369_v4, 7  ;;  %v367_v19 = vrot.slane %v4369_v4, 1  ;;  %v1768_v10 = vsel %vm212_vm10, %v3976_v11, %v1763_v42 }
 0x234   : > { %v360_v36 = vmin.f32 %v350_v35, %v358_v52  ;;  %v1056_v30 = vsel %vm203_vm11, %v1052_v63, %v3932_v26 }
 0x235   : > { %v1066_v7 = vmin.f32 %v1056_v30, %v1064_v62  ;;  %v4412_v42 = vsel %vm188_vm9, %v4369_v4, %v373_v29 }
 0x236   : > { %v362_v3 = vmin.f32 %v6598_v44, %v360_v36 }
 0x237   : > { %v1068_v57 = vmin.f32 %v6600_v49, %v1066_v7 }
 0x238   : > { %v4375_v60 = vmin.f32 %v3885_v58, %v362_v3  ;;  %427 = vrot.lane.b32.xlu2 %v4369_v4, %s3277_s25 }
 0x239   : > { %2635 = vrot.lane.b32.xlu0 %v4337_v40, %s3277_s25  ;;  %v4408_v14 = vmin.f32 %v3932_v26, %v1068_v57 }
 0x23a   : > { %6599 = vst [vmem:[#allocation87_spill] sm:$0xff] %v4375_v60  ;;  %v1058_v35 = vpop.permute.xlu1 %1057  ;;  %421 = vrot.lane.b32.xlu1 %v4375_v60, %s3278_s26  ;;  %v4387_v51 = vpop.permute.xlu2 %317  ;;  %v368_v52 = vrot.slane %v4375_v60, 1  ;;  %v374_v63 = vrot.slane %v4375_v60, 7 }
 0x23b   : > { %6601 = vst [vmem:[#allocation88_spill] sm:$0xff] %v4387_v51  ;;  %v1063_v62 = vsel %vm212_vm10, %v3926_v15, %v1058_v35  ;;  %v1755_v36 = vpop.permute.xlu0 %1754 }
 0x23c   : > { %v1065_v30 = vmin.f32 %v1055_v9, %v1063_v62  ;;  %v1760_v7 = vsel %vm203_vm11, %v1755_v36, %v3976_v11  ;;  %v4401_v44 = vsel %vm181_vm8, %v367_v19, %v368_v52  ;;  %v4405_v3 = vsel %vm181_vm8, %v368_v52, %v4375_v60 }
 0x23d   : > { %v1770_v49 = vmin.f32 %v1760_v7, %v1768_v10  ;;  %v4415_v35 = vsel %vm188_vm9, %v373_v29, %v374_v63  ;;  %v6602_v9 = vmin.f32 %v3939_v18, %v3943_v55  ;;  %v6604_v29 = vmin.f32 %v3995_v1, %v3999_v13 }
 0x23e   : > { %v1074_v18 = vrot.slane %v4408_v14, 1  ;;  %v380_v20 = vmax.f32 %v4405_v3, %v4415_v35 }
 0x23f   : > { %v1067_v19 = vmin.f32 %v6602_v9, %v1065_v30  ;;  %v1772_v63 = vmin.f32 %v6604_v29, %v1770_v49  ;;  %v1080_v30 = vrot.slane %v4408_v14, 7 }
 0x240   : > { %1127 = vrot.lane.b32.xlu2 %v4408_v14, %s3278_s26 }
 0x241   : > { %v4425_v57 = vmin.f32 %v3926_v15, %v1067_v19  ;;  %419 = vrot.lane.b32.xlu0 %v4369_v4, %s3278_s26  ;;  %v4457_v52 = vmin.f32 %v3976_v11, %v1772_v63 }
 0x242   : > { %v1757_v55 = vpop.permute.xlu1 %1756  ;;  %v4437_v10 = vpop.permute.xlu2 %1017 }
 0x243   : > { %6603 = vst [vmem:[#allocation89_spill] sm:$0xff] %v4425_v57  ;;  %1125 = vrot.lane.b32.xlu1 %v4425_v57, %s3278_s26  ;;  %v1079_v36 = vrot.slane %v4425_v57, 7  ;;  %v1073_v7 = vrot.slane %v4425_v57, 1  ;;  %v1761_v1 = vsel %vm203_vm11, %v1757_v55, %v3984_v8  ;;  %v1765_v13 = vpop.permute.xlu0 %1764  ;;  %v4461_v55 = vsel %vm181_vm8, %v1074_v18, %v4408_v14 }
 0x244   : > { %6605 = vst [vmem:[#allocation90_spill] sm:$0xff] %v4437_v10  ;;  %v1769_v49 = vsel %vm212_vm10, %v3984_v8, %v1765_v13 }
 0x245   : > { %v4447_v9 = vsel %vm188_vm9, %v1079_v36, %v1080_v30  ;;  %v4450_v19 = vsel %vm181_vm8, %v1073_v7, %v1074_v18  ;;  %v4454_v29 = vsel %vm188_vm9, %v4425_v57, %v1079_v36  ;;  %v1771_v62 = vmin.f32 %v1761_v1, %v1769_v49 }
 0x246   : > { %v6606_v7 = vmin.f32 %v4003_v37, %v4006_v16  ;;  %v1784_v18 = vrot.slane %v4457_v52, 7  ;;  %v1778_v16 = vrot.slane %v4457_v52, 1 }
 0x248   : > { %v1773_v15 = vmin.f32 %v6606_v7, %v1771_v62  ;;  %1830 = vrot.lane.b32.xlu2 %v4457_v52, %s3278_s26  ;;  %v4494_v7 = vsel %vm188_vm9, %v4457_v52, %v1784_v18 }
 0x249   : > { %429 = vrot.lane.b32.xlu0 %v4375_v60, %s3277_s25 }
 0x24a   : > { %v4473_v63 = vmin.f32 %v3984_v8, %v1773_v15  ;;  %v4478_v36 = vpop.permute.xlu1 %311  ;;  %v4480_v1 = vpop.permute.xlu2 %1720 }
 0x24b   : > { %6608 = vst [vmem:[#allocation92_spill] sm:$0xff] %v4478_v36  ;;  %1135 = vrot.lane.b32.xlu1 %v4408_v14, %s3277_s25  ;;  %v4484_v37 = vpop.permute.xlu0 %309 }
 0x24c   : > { %6607 = vst [vmem:[#allocation91_spill] sm:$0xff] %v4473_v63  ;;  %v1779_v62 = vrot.slane %v4473_v63, 1  ;;  %v1785_v15 = vrot.slane %v4473_v63, 7 }
 0x24d   : > { %6609 = vst [vmem:[#allocation93_spill] sm:$0xff] %v4480_v1 }
 0x24e   : > { %6610 = vst [vmem:[#allocation94_spill] sm:$0xff] %v4484_v37  ;;  %v4490_v49 = vsel %vm181_vm8, %v1778_v16, %v1779_v62  ;;  %v4498_v30 = vsel %vm181_vm8, %v1779_v62, %v4473_v63  ;;  %v4501_v13 = vsel %vm188_vm9, %v1784_v18, %v1785_v15  ;;  %v379_v18 = vmax.f32 %v4401_v44, %v4412_v42 }
 0x250   : > { %1840 = vrot.lane.b32.xlu2 %v4473_v63, %s3277_s25  ;;  %v4522_v15 = vmax.f32 %v4369_v4, %v379_v18  ;;  %v1086_v18 = vmax.f32 %v4461_v55, %v4447_v9 }
 0x251   : > { %1133 = vrot.lane.b32.xlu0 %v4425_v57, %s3277_s25 }
 0x252   : > { %v4511_v16 = vpop.permute.xlu1 %1015  ;;  %v4513_v58 = vpop.permute.xlu2 %1730  ;;  %v4544_v24 = vmax.f32 %v4408_v14, %v1086_v18 }
 0x253   : > { %6611 = vst [vmem:[#allocation95_spill] sm:$0xff] %v4511_v16  ;;  %1838 = vrot.lane.b32.xlu1 %v4457_v52, %s3277_s25  ;;  %v4519_v62 = vpop.permute.xlu0 %319 }
 0x254   : > { %6612 = vst [vmem:[#allocation96_spill] sm:$0xff] %v4513_v58  ;;  %v4539_v58 = vmax.f32 %v4375_v60, %v380_v20 }
 0x255   : > { %6613 = vst [vmem:[#allocation97_spill] sm:$0xff] %v4519_v62  ;;  %v1790_v62 = vmax.f32 %v4490_v49, %v4494_v7 }
 0x257   : > { %v4564_v51 = vmax.f32 %v4457_v52, %v1790_v62 }
 0x258   : > { %385 = vrot.lane.b32.xlu2 %v4522_v15, %s3278_s26 }
 0x259   : > { %1832 = vrot.lane.b32.xlu0 %v4473_v63, %s3278_s26 }
 0x25a   : > { %v4528_v28 = vpop.permute.xlu1 %1025  ;;  %v662_v8 = vpop.permute.xlu2 %661 }
 0x25b   : > { %6614 = vst [vmem:[#allocation98_spill] sm:$0xff] %v4528_v28  ;;  %393 = vrot.lane.b32.xlu1 %v4522_v15, %s3277_s25  ;;  %v4534_v34 = vpop.permute.xlu0 %1023  ;;  %v667_v62 = vsel %vm212_vm10, %v4038_v56, %v662_v8 }
 0x25c   : > { %6615 = vst [vmem:[#allocation99_spill] sm:$0xff] %v4534_v34  ;;  %v1085_v34 = vmax.f32 %v4450_v19, %v4454_v29 }
 0x25e   : > { %v4559_v18 = vmax.f32 %v4425_v57, %v1085_v34 }
 0x260   : > { %395 = vrot.lane.b32.xlu2 %v4539_v58, %s3277_s25  ;;  %6618 = vst [vmem:[#allocation102_spill] sm:$0xff] %v4559_v18 }
 0x261   : > { %387 = vrot.lane.b32.xlu0 %v4539_v58, %s3278_s26 }
 0x262   : > { %v4548_v16 = vpop.permute.xlu1 %1728  ;;  %v1362_v36 = vpop.permute.xlu2 %1361 }
 0x263   : > { %6616 = vst [vmem:[#allocation100_spill] sm:$0xff] %v4548_v16  ;;  %1093 = vrot.lane.b32.xlu1 %v4544_v24, %s3278_s26  ;;  %v4554_v20 = vpop.permute.xlu0 %1722 }
 0x264   : > { %6617 = vst [vmem:[#allocation101_spill] sm:$0xff] %v4554_v20  ;;  %v1791_v20 = vmax.f32 %v4498_v30, %v4501_v13 }
 0x266   : > { %v4579_v16 = vmax.f32 %v4473_v63, %v1791_v20 }
 0x268   : > { %1099 = vrot.lane.b32.xlu2 %v4559_v18, %s3277_s25  ;;  %6620 = vst [vmem:[#allocation104_spill] sm:$0xff] %v4579_v16 }
 0x269   : > { %1091 = vrot.lane.b32.xlu0 %v4559_v18, %s3278_s26 }
 0x26a   : > { %v656_v37 = vpop.permute.xlu1 %655  ;;  %v4568_v11 = vpop.permute.xlu2 %619 }
 0x26b   : > { %6619 = vst [vmem:[#allocation103_spill] sm:$0xff] %v4568_v11  ;;  %1796 = vrot.lane.b32.xlu1 %v4564_v51, %s3278_s26  ;;  %v654_v34 = vpop.permute.xlu0 %653  ;;  %v6621_v11 = vmin.f32 %v4061_v59, %v4075_v46  ;;  %v660_v8 = vsel %vm203_vm11, %v656_v37, %v4047_v21 }
 0x26c   : > { %v659_v26 = vsel %vm203_vm11, %v654_v34, %v4038_v56 }
 0x26d   : > { %v669_v1 = vmin.f32 %v659_v26, %v667_v62 }
 0x26f   : > { %v671_v10 = vmin.f32 %v6621_v11, %v669_v1  ;;  %v6624_v11 = vmin.f32 %v4065_v61, %v4068_v45  ;;  %v1366_v1 = vsel %vm203_vm11, %v1362_v36, %v4058_v0 }
 0x270   : > { %1798 = vrot.lane.b32.xlu2 %v4579_v16, %s3278_s26 }
 0x271   : > { %1101 = vrot.lane.b32.xlu0 %v4544_v24, %s3277_s25  ;;  %v4597_v62 = vmin.f32 %v4038_v56, %v671_v10  ;;  %v6627_v56 = vmin.f32 %v4092_v2, %v4095_v5 }
 0x272   : > { %v1360_v53 = vpop.permute.xlu1 %1359  ;;  %v4588_v28 = vpop.permute.xlu2 %629 }
 0x273   : > { %6622 = vst [vmem:[#allocation105_spill] sm:$0xff] %v4588_v28  ;;  %1806 = vrot.lane.b32.xlu1 %v4579_v16, %s3277_s25  ;;  %v664_v26 = vpop.permute.xlu0 %663  ;;  %v683_v61 = vrot.slane %v4597_v62, 7  ;;  %v1365_v36 = vsel %vm203_vm11, %v1360_v53, %v4082_v54 }
 0x274   : > { %v668_v20 = vsel %vm212_vm10, %v4047_v21, %v664_v26  ;;  %6623 = vst [vmem:[#allocation106_spill] sm:$0xff] %v4597_v62 }
 0x275   : > { %v670_v34 = vmin.f32 %v660_v8, %v668_v20  ;;  %v677_v8 = vrot.slane %v4597_v62, 1  ;;  %v4640_v53 = vsel %vm188_vm9, %v4597_v62, %v683_v61 }
 0x277   : > { %v672_v59 = vmin.f32 %v6624_v11, %v670_v34 }
 0x278   : > { %729 = vrot.lane.b32.xlu2 %v4597_v62, %s3278_s26 }
 0x279   : > { %v4605_v46 = vmin.f32 %v4047_v21, %v672_v59  ;;  %1804 = vrot.lane.b32.xlu0 %v4564_v51, %s3277_s25 }
 0x27a   : > { %v1370_v37 = vpop.permute.xlu1 %1369  ;;  %v4611_v26 = vpop.permute.xlu2 %1333 }
 0x27b   : > { %6625 = vst [vmem:[#allocation107_spill] sm:$0xff] %v4605_v46  ;;  %737 = vrot.lane.b32.xlu1 %v4597_v62, %s3277_s25  ;;  %v1374_v45 = vsel %vm212_vm10, %v4058_v0, %v1370_v37  ;;  %v1368_v10 = vpop.permute.xlu0 %1367  ;;  %v678_v20 = vrot.slane %v4605_v46, 1  ;;  %v684_v34 = vrot.slane %v4605_v46, 7 }
 0x27c   : > { %6626 = vst [vmem:[#allocation108_spill] sm:$0xff] %v4611_v26  ;;  %v1376_v11 = vmin.f32 %v1366_v1, %v1374_v45  ;;  %v1373_v59 = vsel %vm212_vm10, %v4082_v54, %v1368_v10  ;;  %v6628_v1 = vmin.f32 %v4098_v50, %v4102_v47 }
 0x27d   : > { %v1375_v21 = vmin.f32 %v1365_v36, %v1373_v59  ;;  %v4626_v26 = vsel %vm181_vm8, %v677_v8, %v678_v20  ;;  %v4630_v37 = vsel %vm181_vm8, %v678_v20, %v4605_v46  ;;  %v4633_v28 = vsel %vm188_vm9, %v683_v61, %v684_v34 }
 0x27e   : > { %v1378_v12 = vmin.f32 %v6627_v56, %v1376_v11  ;;  %v689_v34 = vmax.f32 %v4626_v26, %v4640_v53 }
 0x27f   : > { %v1377_v45 = vmin.f32 %v6628_v1, %v1375_v21 }
 0x280   : > { %v4650_v20 = vmin.f32 %v4058_v0, %v1378_v12  ;;  %739 = vrot.lane.b32.xlu2 %v4605_v46, %s3277_s25  ;;  %v4692_v10 = vmax.f32 %v4597_v62, %v689_v34  ;;  %v2301_v34 = vrot.slane %v4178_v39, 1  ;;  %v2307_v0 = vrot.slane %v4178_v39, 7 }
 0x281   : > { %v4655_v56 = vmin.f32 %v4082_v54, %v1377_v45  ;;  %731 = vrot.lane.b32.xlu0 %v4605_v46, %s3278_s26  ;;  %v2302_v45 = vrot.slane %v4259_v22, 1 }
 0x282   : > { %6629 = vst [vmem:[#allocation109_spill] sm:$0xff] %v4650_v20  ;;  %v4659_v2 = vpop.permute.xlu1 %627  ;;  %v2326_v21 = vpop.permute.xlu2 %2325  ;;  %v1384_v5 = vrot.slane %v4650_v20, 1  ;;  %v1390_v12 = vrot.slane %v4650_v20, 7 }
 0x283   : > { %6630 = vst [vmem:[#allocation110_spill] sm:$0xff] %v4655_v56  ;;  %1437 = vrot.lane.b32.xlu1 %v4650_v20, %s3278_s26  ;;  %v4665_v50 = vpop.permute.xlu0 %621  ;;  %v1383_v47 = vrot.slane %v4655_v56, 1  ;;  %v1389_v61 = vrot.slane %v4655_v56, 7  ;;  %v2303_v54 = vsel %vm181_vm8, %v2301_v34, %v2302_v45  ;;  %v2321_v34 = vsel %vm203_vm11, %v4307_v33, %v4178_v39 }
 0x284   : > { %6631 = vst [vmem:[#allocation111_spill] sm:$0xff] %v4659_v2  ;;  %v4673_v36 = vsel %vm181_vm8, %v1384_v5, %v4650_v20  ;;  %v2306_v43 = vsel %vm181_vm8, %v2302_v45, %v4259_v22  ;;  %v2330_v45 = vsel %vm212_vm10, %v4259_v22, %v2326_v21 }
 0x285   : > { %6632 = vst [vmem:[#allocation112_spill] sm:$0xff] %v4665_v50  ;;  %v4676_v11 = vsel %vm181_vm8, %v1383_v47, %v1384_v5  ;;  %v4680_v59 = vsel %vm188_vm9, %v4655_v56, %v1389_v61  ;;  %v4683_v1 = vsel %vm188_vm9, %v1389_v61, %v1390_v12  ;;  %v690_v12 = vmax.f32 %v4630_v37, %v4633_v28 }
 0x286   : > { %6633 = vst [vmem:[#allocation113_spill] sm:$0xff] %v4683_v1  ;;  %v1395_v50 = vmax.f32 %v4676_v11, %v4680_v59 }
 0x287   : > { %6634 = vst [vmem:[#allocation114_spill] sm:$0xff] %v4692_v10  ;;  %v4705_v8 = vmax.f32 %v4605_v46, %v690_v12 }
 0x288   : > { %1443 = vrot.lane.b32.xlu2 %v4655_v56, %s3277_s25  ;;  %v4732_v17 = vmax.f32 %v4655_v56, %v1395_v50 }
 0x289   : > { %1435 = vrot.lane.b32.xlu0 %v4655_v56, %s3278_s26  ;;  %6637 = vst [vmem:[#allocation117_spill] sm:$0xff] %v4705_v8 }
 0x28a   : > { %v4696_v5 = vpop.permute.xlu1 %1327  ;;  %v2634_v47 = vpop.permute.xlu2 %2633  ;;  %6639 = vst [vmem:[#allocation119_spill] sm:$0xff] %v4732_v17 }
 0x28b   : > { %6635 = vst [vmem:[#allocation115_spill] sm:$0xff] %v4696_v5  ;;  %695 = vrot.lane.b32.xlu1 %v4692_v10, %s3278_s26  ;;  %v4702_v61 = vpop.permute.xlu0 %1325  ;;  %v2312_v5 = vsel %vm188_vm9, %v4178_v39, %v2307_v0 }
 0x28c   : > { %6636 = vst [vmem:[#allocation116_spill] sm:$0xff] %v4702_v61  ;;  %v2313_v6 = vmin.f32 %v2303_v54, %v2312_v5  ;;  %v1396_v54 = vmax.f32 %v4673_v36, %v4683_v1 }
 0x290   : > { %697 = vrot.lane.b32.xlu2 %v4705_v8, %s3278_s26 }
 0x291   : > { %1445 = vrot.lane.b32.xlu0 %v4650_v20, %s3277_s25 }
 0x292   : > { %v2324_v61 = vpop.permute.xlu1 %2323  ;;  %v4717_v12 = vpop.permute.xlu2 %427 }
 0x293   : > { %705 = vrot.lane.b32.xlu1 %v4705_v8, %s3277_s25  ;;  %v2329_v2 = vsel %vm212_vm10, %v4178_v39, %v2324_v61  ;;  %v4725_v32 = vpop.permute.xlu0 %1335  ;;  %v2309_v61 = vsel %vm188_vm9, %v2307_v0, %v2308_v27 }
 0x294   : > { %6638 = vst [vmem:[#allocation118_spill] sm:$0xff] %v4725_v32  ;;  %v2331_v23 = vmin.f32 %v2321_v34, %v2329_v2  ;;  %v2314_v2 = vmin.f32 %v2306_v43, %v2309_v61  ;;  %v2611_v34 = vrot.slane %v4349_v25, 1  ;;  %v2617_v43 = vrot.slane %v4349_v25, 7 }
 0x296   : > { %v2333_v32 = vmin.f32 %v2313_v6, %v2331_v23  ;;  %v4755_v6 = vmax.f32 %v4650_v20, %v1396_v54  ;;  %v2613_v61 = vsel %vm181_vm8, %v2611_v34, %v2612_v41  ;;  %v2622_v54 = vsel %vm188_vm9, %v4349_v25, %v2617_v43 }
 0x298   : > { %1401 = vrot.lane.b32.xlu2 %v4732_v17, %s3278_s26  ;;  %v4752_v0 = vmin.f32 %v4178_v39, %v2333_v32  ;;  %6641 = vst [vmem:[#allocation121_spill] sm:$0xff] %v4755_v6 }
 0x299   : > { %703 = vrot.lane.b32.xlu0 %v4692_v10, %s3277_s25 }
 0x29a   : > { %v2628_v33 = vpop.permute.xlu1 %2627  ;;  %v4741_v31 = vpop.permute.xlu2 %1127  ;;  %6640 = vst [vmem:[#allocation120_spill] sm:$0xff] %v4752_v0  ;;  %v2345_v32 = vrot.slane %v4752_v0, 7 }
 0x29b   : > { %1409 = vrot.lane.b32.xlu1 %v4732_v17, %s3277_s25  ;;  %v2318_v50 = vpop.permute.xlu0 %2317 }
 0x29c   : > { %v2322_v27 = vsel %vm203_vm11, %v2318_v50, %v4259_v22  ;;  %v2339_v50 = vrot.slane %v4752_v0, 1  ;;  %v4790_v17 = vsel %vm188_vm9, %v4752_v0, %v2345_v32 }
 0x29d   : > { %v2332_v23 = vmin.f32 %v2322_v27, %v2330_v45  ;;  %v2639_v45 = vsel %vm212_vm10, %v4349_v25, %v2634_v47  ;;  %6645 = vst [vmem:[#allocation125_spill] sm:$0xff] %v4790_v17 }
 0x29f   : > { %v2334_v5 = vmin.f32 %v2314_v2, %v2332_v23 }
 0x2a0   : > { %1411 = vrot.lane.b32.xlu2 %v4755_v6, %s3277_s25 }
 0x2a1   : > { %v4763_v21 = vmin.f32 %v4259_v22, %v2334_v5  ;;  %1403 = vrot.lane.b32.xlu0 %v4755_v6, %s3278_s26  ;;  %v2618_v5 = vrot.slane %v4337_v40, 7 }
 0x2a2   : > { %v4768_v39 = vpop.permute.xlu2 %1830  ;;  %v4779_v27 = vpop.permute.xlu1 %1972 }
 0x2a3   : > { %6642 = vst [vmem:[#allocation122_spill] sm:$0xff] %v4763_v21  ;;  %1996 = vrot.lane.b32.xlu1 %v4134_v48, %s3277_s25  ;;  %v2626_v2 = vpop.permute.xlu0 %2625  ;;  %v2340_v22 = vrot.slane %v4763_v21, 1  ;;  %v2346_v34 = vrot.slane %v4763_v21, 7 }
 0x2a4   : > { %6643 = vst [vmem:[#allocation123_spill] sm:$0xff] %v4779_v27  ;;  %v2631_v23 = vsel %vm203_vm11, %v2626_v2, %v4349_v25  ;;  %v2623_v27 = vmin.f32 %v2613_v61, %v2622_v54 }
 0x2a5   : > { %v2641_v6 = vmin.f32 %v2631_v23, %v2639_v45  ;;  %v4786_v10 = vsel %vm181_vm8, %v2339_v50, %v2340_v22  ;;  %v4794_v47 = vsel %vm181_vm8, %v2340_v22, %v4763_v21  ;;  %v4799_v1 = vsel %vm188_vm9, %v2345_v32, %v2346_v34 }
 0x2a6   : > { %6644 = vst [vmem:[#allocation124_spill] sm:$0xff] %v4786_v10  ;;  %v2616_v50 = vsel %vm181_vm8, %v2612_v41, %v4337_v40  ;;  %v2619_v23 = vsel %vm188_vm9, %v2617_v43, %v2618_v5  ;;  %v2632_v34 = vsel %vm203_vm11, %v2628_v33, %v4337_v40 }
 0x2a7   : > { %6646 = vst [vmem:[#allocation126_spill] sm:$0xff] %v4794_v47  ;;  %v2643_v61 = vmin.f32 %v2623_v27, %v2641_v6  ;;  %v2624_v22 = vmin.f32 %v2616_v50, %v2619_v23 }
 0x2a8   : > { %6647 = vst [vmem:[#allocation127_spill] sm:$0xff] %v4799_v1  ;;  %1988 = vrot.lane.b32.xlu2 %v4134_v48, %s3278_s26 }
 0x2a9   : > { %1990 = vrot.lane.b32.xlu0 %v4137_v38, %s3278_s26  ;;  %v4817_v41 = vmin.f32 %v4349_v25, %v2643_v61 }
 0x2aa   : > { %v4810_v54 = vpop.permute.xlu2 %1840 }
 0x2ab   : > { %v2636_v32 = vpop.permute.xlu0 %2635  ;;  %6648 = vst [vmem:[#allocation128_spill] sm:$0xff] %v4817_v41  ;;  %v2655_v5 = vrot.slane %v4817_v41, 7 }
 0x2ac   : > { %v2640_v45 = vsel %vm212_vm10, %v4337_v40, %v2636_v32  ;;  %v422_v2 = vpop.permute.xlu1 %421 }
 0x2ad   : > { %v2642_v47 = vmin.f32 %v2632_v34, %v2640_v45  ;;  %v433_v45 = vsel %vm212_vm10, %v4369_v4, %v4717_v12  ;;  %v4847_v12 = vsel %vm188_vm9, %v4817_v41, %v2655_v5 }
 0x2ae   : > { %6653 = vst [vmem:[#allocation133_spill] sm:$0xff] %v4847_v12 }
 0x2af   : > { %v2644_v43 = vmin.f32 %v2624_v22, %v2642_v47  ;;  %v2649_v22 = vrot.slane %v4817_v41, 1 }
 0x2b0   : > { %1998 = vrot.lane.b32.xlu2 %v4137_v38, %s3277_s25 }
 0x2b1   : > { %v4822_v6 = vmin.f32 %v4337_v40, %v2644_v43  ;;  %v426_v40 = vsel %vm203_vm11, %v422_v2, %v4375_v60 }
 0x2b2   : > { %v386_v27 = vpop.permute.xlu2 %385 }
 0x2b3   : > { %6649 = vst [vmem:[#allocation129_spill] sm:$0xff] %v4822_v6  ;;  %v420_v50 = vpop.permute.xlu0 %419  ;;  %v2650_v33 = vrot.slane %v4822_v6, 1  ;;  %v2656_v23 = vrot.slane %v4822_v6, 7 }
 0x2b4   : > { %v425_v47 = vsel %vm203_vm11, %v420_v50, %v4369_v4  ;;  %v6654_v50 = vmin.f32 %v4401_v44, %v4412_v42  ;;  %v1132_v44 = vsel %vm203_vm11, %v4741_v31, %v4408_v14  ;;  %v1836_v31 = vsel %vm203_vm11, %v4768_v39, %v4457_v52 }
 0x2b5   : > { %v1126_v61 = vpop.permute.xlu1 %1125  ;;  %v435_v32 = vmin.f32 %v425_v47, %v433_v45  ;;  %v4835_v34 = vsel %vm181_vm8, %v2650_v33, %v4822_v6  ;;  %v4838_v43 = vsel %vm188_vm9, %v2655_v5, %v2656_v23  ;;  %v4843_v25 = vsel %vm181_vm8, %v2649_v22, %v2650_v33 }
 0x2b6   : > { %6650 = vst [vmem:[#allocation130_spill] sm:$0xff] %v4835_v34  ;;  %v6655_v47 = vmin.f32 %v4405_v3, %v4415_v35  ;;  %v1131_v35 = vsel %vm203_vm11, %v1126_v61, %v4425_v57  ;;  %v6657_v61 = vmin.f32 %v4450_v19, %v4454_v29 }
 0x2b7   : > { %6651 = vst [vmem:[#allocation131_spill] sm:$0xff] %v4838_v43  ;;  %v437_v45 = vmin.f32 %v6654_v50, %v435_v32  ;;  %v6658_v43 = vmin.f32 %v4490_v49, %v4494_v7 }
 0x2b8   : > { %6652 = vst [vmem:[#allocation132_spill] sm:$0xff] %v4843_v25 }
 0x2b9   : > { %v439_v33 = vmin.f32 %v4369_v4, %v437_v45  ;;  %v6656_v45 = vmin.f32 %v4461_v55, %v4447_v9 }
 0x2ba   : > { %v4854_v1 = vpop.permute.xlu2 %395 }
 0x2bb   : > { %v430_v23 = vpop.permute.xlu0 %429  ;;  %v449_v2 = vrot.slane %v439_v33, 7 }
 0x2bc   : > { %v434_v22 = vsel %vm212_vm10, %v4375_v60, %v430_v23 }
 0x2bd   : > { %v1136_v5 = vpop.permute.xlu1 %1135  ;;  %v436_v42 = vmin.f32 %v426_v40, %v434_v22  ;;  %v454_v3 = vsel %vm188_vm9, %v439_v33, %v449_v2 }
 0x2be   : > { %v1140_v32 = vsel %vm212_vm10, %v4408_v14, %v1136_v5 }
 0x2bf   : > { %v1142_v50 = vmin.f32 %v1132_v44, %v1140_v32  ;;  %v438_v25 = vmin.f32 %v6655_v47, %v436_v42  ;;  %v443_v44 = vrot.slane %v439_v33, 1 }
 0x2c1   : > { %v1144_v4 = vmin.f32 %v6656_v45, %v1142_v50  ;;  %v440_v23 = vmin.f32 %v4375_v60, %v438_v25 }
 0x2c2   : > { %v4873_v12 = vpop.permute.xlu2 %1099 }
 0x2c3   : > { %v444_v40 = vrot.slane %v440_v23, 1  ;;  %v450_v22 = vrot.slane %v440_v23, 7  ;;  %v1134_v5 = vpop.permute.xlu0 %1133  ;;  %v1146_v32 = vmin.f32 %v4408_v14, %v1144_v4 }
 0x2c4   : > { %v1139_v9 = vsel %vm212_vm10, %v4425_v57, %v1134_v5 }
 0x2c5   : > { %v1839_v55 = vpop.permute.xlu1 %1838  ;;  %v448_v25 = vsel %vm181_vm8, %v444_v40, %v440_v23  ;;  %v1141_v47 = vmin.f32 %v1131_v35, %v1139_v9  ;;  %v451_v39 = vsel %vm188_vm9, %v449_v2, %v450_v22  ;;  %v445_v60 = vsel %vm181_vm8, %v443_v44, %v444_v40 }
 0x2c6   : > { %v1844_v42 = vsel %vm212_vm10, %v4457_v52, %v1839_v55  ;;  %v456_v45 = vmax.f32 %v448_v25, %v451_v39  ;;  %v455_v5 = vmax.f32 %v445_v60, %v454_v3  ;;  %v1150_v4 = vrot.slane %v1146_v32, 1 }
 0x2c7   : > { %v1846_v50 = vmin.f32 %v1836_v31, %v1844_v42  ;;  %v1143_v34 = vmin.f32 %v6657_v61, %v1141_v47  ;;  %v1845_v40 = vsel %vm212_vm10, %v4473_v63, %v4810_v54  ;;  %v4905_v60 = vsel %vm203_vm11, %v386_v27, %v4522_v15 }
 0x2c8   : > { %v4895_v9 = vmax.f32 %v440_v23, %v456_v45  ;;  %v4898_v2 = vmax.f32 %v439_v33, %v455_v5  ;;  %v1156_v49 = vrot.slane %v1146_v32, 7  ;;  %v1154_v3 = vsel %vm181_vm8, %v1150_v4, %v1146_v32 }
 0x2c9   : > { %v1848_v35 = vmin.f32 %v6658_v43, %v1846_v50  ;;  %v1145_v55 = vmin.f32 %v4425_v57, %v1143_v34  ;;  %v6659_v42 = vmin.f32 %v4498_v30, %v4501_v13 }
 0x2ca   : > { %v1799_v31 = vpop.permute.xlu2 %1798 }
 0x2cb   : > { %v1149_v22 = vrot.slane %v1145_v55, 1  ;;  %v1155_v19 = vrot.slane %v1145_v55, 7  ;;  %v1833_v29 = vpop.permute.xlu0 %1832  ;;  %v1850_v7 = vmin.f32 %v4457_v52, %v1848_v35 }
 0x2cc   : > { %v1837_v34 = vsel %vm203_vm11, %v1833_v29, %v4473_v63 }
 0x2cd   : > { %v394_v43 = vpop.permute.xlu1 %393  ;;  %v1160_v33 = vsel %vm188_vm9, %v1145_v55, %v1155_v19  ;;  %v1847_v23 = vmin.f32 %v1837_v34, %v1845_v40  ;;  %v1151_v44 = vsel %vm181_vm8, %v1149_v22, %v1150_v4  ;;  %v1157_v47 = vsel %vm188_vm9, %v1155_v19, %v1156_v49 }
 0x2ce   : > { %v4913_v54 = vsel %vm212_vm10, %v4522_v15, %v394_v43  ;;  %v1161_v25 = vmax.f32 %v1151_v44, %v1160_v33  ;;  %v1162_v50 = vmax.f32 %v1154_v3, %v1157_v47  ;;  %v1860_v61 = vrot.slane %v1850_v7, 7 }
 0x2cf   : > { %v1849_v39 = vmin.f32 %v6659_v42, %v1847_v23  ;;  %v1854_v40 = vrot.slane %v1850_v7, 1  ;;  %v4931_v19 = vsel %vm212_vm10, %v4539_v58, %v4854_v1  ;;  %v4950_v47 = vsel %vm212_vm10, %v4559_v18, %v4873_v12 }
 0x2d0   : > { %v4923_v45 = vmax.f32 %v1145_v55, %v1161_v25  ;;  %v4926_v35 = vmax.f32 %v1146_v32, %v1162_v50  ;;  %v1865_v55 = vsel %vm188_vm9, %v1850_v7, %v1860_v61  ;;  %6660 = vst [vmem:[#allocation134_spill] sm:$0xff] %v4950_v47 }
 0x2d1   : > { %v1851_v5 = vmin.f32 %v4473_v63, %v1849_v39 }
 0x2d2   : > { %v730_v29 = vpop.permute.xlu2 %729 }
 0x2d3   : > { %v1855_v4 = vrot.slane %v1851_v5, 1  ;;  %v1861_v22 = vrot.slane %v1851_v5, 7  ;;  %v388_v34 = vpop.permute.xlu0 %387 }
 0x2d4   : > { %v4935_v13 = vsel %vm203_vm11, %v388_v34, %v4539_v58 }
 0x2d5   : > { %v1094_v30 = vpop.permute.xlu1 %1093  ;;  %v1859_v32 = vsel %vm181_vm8, %v1855_v4, %v1851_v5  ;;  %v1856_v43 = vsel %vm181_vm8, %v1854_v40, %v1855_v4  ;;  %v1862_v23 = vsel %vm188_vm9, %v1860_v61, %v1861_v22  ;;  %v4968_v4 = vsel %vm203_vm11, %v1799_v31, %v4579_v16 }
 0x2d6   : > { %v1866_v33 = vmax.f32 %v1856_v43, %v1865_v55  ;;  %v1867_v44 = vmax.f32 %v1859_v32, %v1862_v23  ;;  %6662 = vst [vmem:[#allocation136_spill] sm:$0xff] %v4968_v4  ;;  %v735_v23 = vsel %vm203_vm11, %v730_v29, %v4597_v62 }
 0x2d8   : > { %v4943_v1 = vmax.f32 %v1850_v7, %v1866_v33  ;;  %v4945_v3 = vmax.f32 %v1851_v5, %v1867_v44  ;;  %v4960_v7 = vsel %vm203_vm11, %v1094_v30, %v4544_v24 }
 0x2da   : > { %v740_v50 = vpop.permute.xlu2 %739 }
 0x2db   : > { %v1092_v25 = vpop.permute.xlu0 %1091 }
 0x2dc   : > { %v4954_v42 = vsel %vm203_vm11, %v1092_v25, %v4559_v18 }
 0x2dd   : > { %6661 = vst [vmem:[#allocation135_spill] sm:$0xff] %v4954_v42  ;;  %v1797_v39 = vpop.permute.xlu1 %1796 }
 0x2de   : > { %v4980_v43 = vsel %vm203_vm11, %v1797_v39, %v4564_v51 }
 0x2e2   : > { %v1444_v55 = vpop.permute.xlu2 %1443 }
 0x2e3   : > { %v1102_v40 = vpop.permute.xlu0 %1101 }
 0x2e4   : > { %v4964_v5 = vsel %vm212_vm10, %v4544_v24, %v1102_v40 }
 0x2e5   : > { %v1807_v12 = vpop.permute.xlu1 %1806 }
 0x2e6   : > { %v4974_v34 = vsel %vm212_vm10, %v4579_v16, %v1807_v12  ;;  %v6664_v12 = vmin.f32 %v4626_v26, %v4640_v53 }
 0x2e7   : > { %6663 = vst [vmem:[#allocation137_spill] sm:$0xff] %v4974_v34 }
 0x2ea   : > { %v698_v30 = vpop.permute.xlu2 %697 }
 0x2eb   : > { %v1805_v32 = vpop.permute.xlu0 %1804 }
 0x2ec   : > { %v4984_v31 = vsel %vm212_vm10, %v4564_v51, %v1805_v32  ;;  %v744_v32 = vsel %vm212_vm10, %v4605_v46, %v740_v50  ;;  %v1449_v50 = vsel %vm212_vm10, %v4655_v56, %v1444_v55 }
 0x2ed   : > { %v738_v33 = vpop.permute.xlu1 %737 }
 0x2ee   : > { %v743_v25 = vsel %vm212_vm10, %v4597_v62, %v738_v33  ;;  %v6665_v33 = vmin.f32 %v4630_v37, %v4633_v28 }
 0x2ef   : > { %v745_v40 = vmin.f32 %v735_v23, %v743_v25 }
 0x2f1   : > { %v747_v39 = vmin.f32 %v6664_v12, %v745_v40 }
 0x2f2   : > { %v1402_v40 = vpop.permute.xlu2 %1401 }
 0x2f3   : > { %v732_v61 = vpop.permute.xlu0 %731  ;;  %v749_v27 = vmin.f32 %v4597_v62, %v747_v39 }
 0x2f4   : > { %v736_v49 = vsel %vm203_vm11, %v732_v61, %v4605_v46 }
 0x2f5   : > { %v1438_v29 = vpop.permute.xlu1 %1437  ;;  %v746_v44 = vmin.f32 %v736_v49, %v744_v32  ;;  %v759_v25 = vrot.slane %v749_v27, 7  ;;  %v753_v53 = vrot.slane %v749_v27, 1 }
 0x2f6   : > { %v1442_v34 = vsel %vm203_vm11, %v1438_v29, %v4650_v20  ;;  %v6670_v29 = vld [vmem:[#allocation113_spill] sm:$0xff] }
 0x2f7   : > { %v748_v23 = vmin.f32 %v6665_v33, %v746_v44  ;;  %v764_v49 = vsel %vm188_vm9, %v749_v27, %v759_v25 }
 0x2f9   : > { %v750_v26 = vmin.f32 %v4605_v46, %v748_v23  ;;  %v6666_v23 = vmin.f32 %v4676_v11, %v4680_v59 }
 0x2fa   : > { %v1412_v11 = vpop.permute.xlu2 %1411 }
 0x2fb   : > { %v754_v12 = vrot.slane %v750_v26, 1  ;;  %v760_v22 = vrot.slane %v750_v26, 7  ;;  %v1436_v63 = vpop.permute.xlu0 %1435 }
 0x2fc   : > { %v1441_v61 = vsel %vm203_vm11, %v1436_v63, %v4655_v56 }
 0x2fd   : > { %v696_v39 = vpop.permute.xlu1 %695  ;;  %v758_v28 = vsel %vm181_vm8, %v754_v12, %v750_v26  ;;  %v1451_v37 = vmin.f32 %v1441_v61, %v1449_v50  ;;  %v755_v44 = vsel %vm181_vm8, %v753_v53, %v754_v12  ;;  %v761_v33 = vsel %vm188_vm9, %v759_v25, %v760_v22 }
 0x2fe   : > { %v765_v32 = vmax.f32 %v755_v44, %v764_v49  ;;  %v766_v57 = vmax.f32 %v758_v28, %v761_v33  ;;  %v5026_v22 = vsel %vm203_vm11, %v698_v30, %v4705_v8  ;;  %v6672_v44 = vld [vmem:[#allocation119_spill] sm:$0xff]  ;;  %v6674_v33 = vld [vmem:[#allocation114_spill] sm:$0xff] }
 0x2ff   : > { %v1453_v46 = vmin.f32 %v6666_v23, %v1451_v37  ;;  %6668 = vst [vmem:[#allocation139_spill] sm:$0xff] %v5026_v22  ;;  %v5045_v23 = vsel %vm203_vm11, %v696_v39, %v6674_v33  ;;  %v6685_v39 = vld [vmem:[#allocation63_spill] sm:$0xff] }
 0x300   : > { %v5015_v55 = vmax.f32 %v749_v27, %v765_v32  ;;  %v5017_v16 = vmax.f32 %v750_v26, %v766_v57 }
 0x301   : > { %v1455_v50 = vmin.f32 %v4655_v56, %v1453_v46  ;;  %v6671_v46 = vmin.f32 %v4673_v36, %v6670_v29 }
 0x302   : > { %6667 = vst [vmem:[#allocation138_spill] sm:$0xff] %v5017_v16 }
 0x303   : > { %v1446_v63 = vpop.permute.xlu0 %1445  ;;  %v1465_v26 = vrot.slane %v1455_v50, 7  ;;  %v1459_v49 = vrot.slane %v1455_v50, 1 }
 0x304   : > { %v1450_v53 = vsel %vm212_vm10, %v4650_v20, %v1446_v63 }
 0x305   : > { %v706_v12 = vpop.permute.xlu1 %705  ;;  %v1452_v59 = vmin.f32 %v1442_v34, %v1450_v53  ;;  %v5040_v34 = vsel %vm203_vm11, %v1402_v40, %v6672_v44  ;;  %v1470_v32 = vsel %vm188_vm9, %v1455_v50, %v1465_v26 }
 0x306   : > { %v5030_v57 = vsel %vm212_vm10, %v4705_v8, %v706_v12  ;;  %6673 = vst [vmem:[#allocation113_spill] sm:$0xff] %v5040_v34  ;;  %v6678_v12 = vld [vmem:[#allocation121_spill] sm:$0xff] }
 0x307   : > { %6669 = vst [vmem:[#allocation140_spill] sm:$0xff] %v5030_v57  ;;  %v1454_v25 = vmin.f32 %v6671_v46, %v1452_v59  ;;  %v5068_v8 = vsel %vm212_vm10, %v6678_v12, %v1412_v11 }
 0x308   : > { %6679 = vst [vmem:[#allocation143_spill] sm:$0xff] %v5068_v8 }
 0x309   : > { %v1456_v61 = vmin.f32 %v4650_v20, %v1454_v25  ;;  %v1989_v25 = vpop.permute.xlu2 %1988 }
 0x30b   : > { %v1460_v28 = vrot.slane %v1456_v61, 1  ;;  %v1466_v30 = vrot.slane %v1456_v61, 7  ;;  %v704_v37 = vpop.permute.xlu0 %703 }
 0x30c   : > { %v5049_v36 = vsel %vm212_vm10, %v6674_v33, %v704_v37 }
 0x30d   : > { %v1410_v63 = vpop.permute.xlu1 %1409  ;;  %v1464_v53 = vsel %vm181_vm8, %v1460_v28, %v1456_v61  ;;  %v1461_v59 = vsel %vm181_vm8, %v1459_v49, %v1460_v28  ;;  %v1467_v46 = vsel %vm188_vm9, %v1465_v26, %v1466_v30  ;;  %v6684_v26 = vld [vmem:[#allocation62_spill] sm:$0xff] }
 0x30e   : > { %v5056_v40 = vsel %vm212_vm10, %v6672_v44, %v1410_v63  ;;  %v1471_v29 = vmax.f32 %v1461_v59, %v1470_v32  ;;  %v1472_v37 = vmax.f32 %v1464_v53, %v1467_v46  ;;  %v1994_v32 = vsel %vm203_vm11, %v1989_v25, %v4134_v48  ;;  %v6681_v63 = vld [vmem:[#allocation60_spill] sm:$0xff]  ;;  %v6682_v53 = vld [vmem:[#allocation61_spill] sm:$0xff] }
 0x30f   : > { %6675 = vst [vmem:[#allocation114_spill] sm:$0xff] %v5056_v40  ;;  %v6683_v11 = vmin.f32 %v6681_v63, %v6682_v53 }
 0x310   : > { %v5062_v27 = vmax.f32 %v1455_v50, %v1471_v29  ;;  %v5064_v20 = vmax.f32 %v1456_v61, %v1472_v37 }
 0x311   : > { %v1999_v30 = vpop.permute.xlu2 %1998 }
 0x312   : > { %6676 = vst [vmem:[#allocation141_spill] sm:$0xff] %v5062_v27 }
 0x313   : > { %6677 = vst [vmem:[#allocation142_spill] sm:$0xff] %v5064_v20  ;;  %v1404_v56 = vpop.permute.xlu0 %1403 }
 0x314   : > { %v5072_v49 = vsel %vm203_vm11, %v1404_v56, %v6678_v12  ;;  %v2003_v56 = vsel %vm212_vm10, %v4137_v38, %v1999_v30 }
 0x315   : > { %6680 = vst [vmem:[#allocation144_spill] sm:$0xff] %v5072_v49  ;;  %v1997_v28 = vpop.permute.xlu1 %1996 }
 0x316   : > { %v2002_v50 = vsel %vm212_vm10, %v4134_v48, %v1997_v28  ;;  %v6686_v28 = vmin.f32 %v6684_v26, %v6685_v39 }
 0x317   : > { %v2004_v61 = vmin.f32 %v1994_v32, %v2002_v50 }
 0x319   : > { %v2006_v59 = vmin.f32 %v6683_v11, %v2004_v61 }
 0x31b   : > { %v1991_v29 = vpop.permute.xlu0 %1990  ;;  %v5088_v25 = vmin.f32 %v4134_v48, %v2006_v59  ;;  %v6699_v48 = vld [vmem:[#allocation69_spill] sm:$0xff] }
 0x31c   : > { %v1995_v46 = vsel %vm203_vm11, %v1991_v29, %v4137_v38 }
 0x31d   : > { %v2005_v37 = vmin.f32 %v1995_v46, %v2003_v56  ;;  %v2018_v61 = vrot.slane %v5088_v25, 7  ;;  %v2012_v53 = vrot.slane %v5088_v25, 1 }
 0x31f   : > { %v2007_v32 = vmin.f32 %v6686_v28, %v2005_v37  ;;  %v5112_v26 = vsel %vm188_vm9, %v5088_v25, %v2018_v61  ;;  %v6690_v37 = vld [vmem:[#allocation83_spill] sm:$0xff] }
 0x321   : > { %v5094_v50 = vmin.f32 %v4137_v38, %v2007_v32 }
 0x323   : > { %v2013_v63 = vrot.slane %v5094_v50, 1  ;;  %v2019_v30 = vrot.slane %v5094_v50, 7 }
 0x325   : > { %v5102_v11 = vsel %vm181_vm8, %v2013_v63, %v5094_v50  ;;  %v5105_v59 = vsel %vm188_vm9, %v2018_v61, %v2019_v30  ;;  %v5108_v39 = vsel %vm181_vm8, %v2012_v53, %v2013_v63  ;;  %v6688_v53 = vld [vmem:[#allocation123_spill] sm:$0xff] }
 0x326   : > { %v2025_v29 = vmax.f32 %v5102_v11, %v5105_v59  ;;  %v2024_v56 = vmax.f32 %v5108_v39, %v5112_v26 }
 0x328   : > { %v2027_v28 = vmax.f32 %v5094_v50, %v2025_v29  ;;  %v5124_v32 = vmax.f32 %v5088_v25, %v2024_v56  ;;  %v6689_v29 = vld [vmem:[#allocation65_spill] sm:$0xff] }
 0x329   : > { %v1977_v56 = vsel %vm212_vm10, %v6689_v29, %v6688_v53  ;;  %v1969_v46 = vsel %vm203_vm11, %v6690_v37, %v6689_v29 }
 0x32a   : > { %6687 = vst [vmem:[#allocation60_spill] sm:$0xff] %v5124_v32  ;;  %2032 = vrot.lane.b32.xlu1 %v2027_v28, %s3278_s26  ;;  %2038 = vrot.lane.b32.xlu2 %v5124_v32, %s3277_s25  ;;  %v1979_v12 = vmax.f32 %v1969_v46, %v1977_v56 }
 0x32b   : > { %2030 = vrot.lane.b32.xlu0 %v5124_v32, %s3278_s26 }
 0x32c   : > { %v1981_v8 = vmax.f32 %v6689_v29, %v1979_v12  ;;  %v6693_v12 = vld [vmem:[#allocation13_spill] sm:$0xff] }
 0x32e   : > { %v1983_v37 = vsub.f32 %v6693_v12, %v1981_v8  ;;  %v6698_v12 = vld [vmem:[#allocation98_spill] sm:$0xff] }
 0x330   : > { %v1985_v56 = vmax.f32 %v1983_v37, 0.0  ;;  %v6696_v37 = vld [vmem:[#allocation45_spill] sm:$0xff] }
 0x332   : > { %2385 = vrot.lane.b32.xlu1 %v4763_v21, %s3278_s26  ;;  %2391 = vrot.lane.b32.xlu2 %v4752_v0, %s3277_s25 }
 0x333   : > { %2383 = vrot.lane.b32.xlu0 %v4752_v0, %s3278_s26 }
 0x33a   : > { %2693 = vrot.lane.b32.xlu1 %v4817_v41, %s3278_s26  ;;  %2695 = vrot.lane.b32.xlu2 %v4822_v6, %s3278_s26 }
 0x33b   : > { %2393 = vrot.lane.b32.xlu0 %v4763_v21, %s3277_s25 }
 0x342   : > { %2703 = vrot.lane.b32.xlu1 %v4822_v6, %s3277_s25  ;;  %2040 = vrot.lane.b32.xlu2 %v2027_v28, %s3277_s25 }
 0x343   : > { %2701 = vrot.lane.b32.xlu0 %v4817_v41, %s3277_s25 }
 0x34a   : > { %2066 = vrot.lane.b32.xlu1 %v5094_v50, %s3278_s26  ;;  %2072 = vrot.lane.b32.xlu2 %v5088_v25, %s3277_s25 }
 0x34b   : > { %2064 = vrot.lane.b32.xlu0 %v5088_v25, %s3278_s26 }
 0x352   : > { %463 = vrot.lane.b32.xlu2 %v4895_v9, %s3278_s26 }
 0x353   : > { %2074 = vrot.lane.b32.xlu0 %v5094_v50, %s3277_s25 }
 0x35a   : > { %1167 = vrot.lane.b32.xlu2 %v4923_v45, %s3278_s26 }
 0x35b   : > { %469 = vrot.lane.b32.xlu0 %v4898_v2, %s3277_s25 }
 0x362   : > { %1177 = vrot.lane.b32.xlu2 %v4926_v35, %s3277_s25 }
 0x363   : > { %1169 = vrot.lane.b32.xlu0 %v4926_v35, %s3278_s26 }
 0x36a   : > { %1880 = vrot.lane.b32.xlu2 %v4943_v1, %s3277_s25 }
 0x36b   : > { %1872 = vrot.lane.b32.xlu0 %v4943_v1, %s3278_s26 }
 0x373   : > { %1882 = vrot.lane.b32.xlu0 %v4945_v3, %s3277_s25 }
 0x384   : > { %v2039_v61 = vpop.permute.xlu2 %2038 }
 0x385   : > { %v5183_v22 = vsel %vm212_vm10, %v5124_v32, %v2039_v61 }
 0x386   : > { %6691 = vst [vmem:[#allocation61_spill] sm:$0xff] %v5183_v22  ;;  %v6707_v22 = vld [vmem:[#allocation130_spill] sm:$0xff] }
 0x38c   : > { %v2392_v63 = vpop.permute.xlu2 %2391 }
 0x38d   : > { %v2397_v61 = vsel %vm212_vm10, %v4752_v0, %v2392_v63 }
 0x394   : > { %v2696_v30 = vpop.permute.xlu2 %2695 }
 0x39c   : > { %v2033_v49 = vpop.permute.xlu1 %2032  ;;  %v2041_v44 = vpop.permute.xlu2 %2040 }
 0x39d   : > { %v2037_v40 = vsel %vm203_vm11, %v2033_v49, %v2027_v28  ;;  %v2045_v34 = vsel %vm212_vm10, %v2027_v28, %v2041_v44  ;;  %v2031_v57 = vpop.permute.xlu0 %2030 }
 0x39e   : > { %v2047_v4 = vmax.f32 %v2037_v40, %v2045_v34  ;;  %v5187_v53 = vsel %vm203_vm11, %v2031_v57, %v5124_v32  ;;  %v2381_v40 = vmin.f32 %v4786_v10, %v4790_v17  ;;  %v6706_v32 = vld [vmem:[#allocation131_spill] sm:$0xff] }
 0x39f   : > { %6692 = vst [vmem:[#allocation62_spill] sm:$0xff] %v5187_v53 }
 0x3a0   : > { %v2049_v29 = vmax.f32 %v2027_v28, %v2047_v4  ;;  %v6695_v28 = vld [vmem:[#allocation25_spill] sm:$0xff] }
 0x3a2   : > { %v2051_v49 = vsub.f32 %v4137_v38, %v2049_v29  ;;  %v954_v29 = vsel %vm203_vm11, %v6696_v37, %v6695_v28 }
 0x3a4   : > { %v2053_v44 = vmax.f32 %v2051_v49, 0.0  ;;  %v2386_v18 = vpop.permute.xlu1 %2385 }
 0x3a5   : > { %v2384_v47 = vpop.permute.xlu0 %2383 }
 0x3a6   : > { %v2055_v34 = vmul.f32 %v2053_v44, %v1985_v56  ;;  %v2389_v57 = vsel %vm203_vm11, %v2384_v47, %v4752_v0  ;;  %v1030_v47 = vsel %vm212_vm10, %v6699_v48, %v6698_v12  ;;  %v6702_v12 = vld [vmem:[#allocation127_spill] sm:$0xff] }
 0x3a7   : > { %v2399_v46 = vmin.f32 %v2389_v57, %v2397_v61  ;;  %v2390_v61 = vsel %vm203_vm11, %v2386_v18, %v4763_v21  ;;  %v6701_v57 = vld [vmem:[#allocation90_spill] sm:$0xff] }
 0x3a8   : > { %v2057_v42 = vsub.f32 %v2053_v44, %v2055_v34 }
 0x3a9   : > { %v2401_v8 = vmin.f32 %v2381_v40, %v2399_v46  ;;  %v6700_v46 = vld [vmem:[#allocation43_spill] sm:$0xff]  ;;  %v1022_v40 = vsel %vm203_vm11, %v6701_v57, %v6699_v48 }
 0x3aa   : > { %v2059_v4 = vmax.f32 %v2057_v42, 0.0  ;;  %v962_v42 = vsel %vm212_vm10, %v6695_v28, %v6700_v46  ;;  %v2073_v46 = vpop.permute.xlu2 %2072 }
 0x3ab   : > { %v5200_v38 = vmin.f32 %v4752_v0, %v2401_v8  ;;  %v6703_v8 = vld [vmem:[#allocation126_spill] sm:$0xff]  ;;  %v1032_v0 = vmax.f32 %v1022_v40, %v1030_v47  ;;  %v6708_v47 = vld [vmem:[#allocation133_spill] sm:$0xff] }
 0x3ac   : > { %v2694_v49 = vpop.permute.xlu1 %2693  ;;  %v5205_v63 = vadd.f32 %v2059_v4, %v1985_v56  ;;  %v964_v56 = vmax.f32 %v954_v29, %v962_v42  ;;  %v2382_v4 = vmin.f32 %v6703_v8, %v6702_v12  ;;  %v6705_v42 = vld [vmem:[#allocation70_spill] sm:$0xff]  ;;  %v2692_v12 = vmin.f32 %v6707_v22, %v6706_v32 }
 0x3ad   : > { %6694 = vst [vmem:[#allocation63_spill] sm:$0xff] %v5200_v38  ;;  %2459 = vrot.lane.b32.xlu0 %v5200_v38, %s3278_s26  ;;  %v2394_v44 = vpop.permute.xlu0 %2393  ;;  %v2413_v18 = vrot.slane %v5200_v38, 7  ;;  %v1034_v29 = vmax.f32 %v6699_v48, %v1032_v0  ;;  %v2407_v0 = vrot.slane %v5200_v38, 1 }
 0x3ae   : > { %6697 = vst [vmem:[#allocation123_spill] sm:$0xff] %v5205_v63  ;;  %v2398_v34 = vsel %vm212_vm10, %v4763_v21, %v2394_v44  ;;  %v966_v10 = vmax.f32 %v6695_v28, %v964_v56  ;;  %v6704_v44 = vld [vmem:[#allocation100_spill] sm:$0xff]  ;;  %v2700_v28 = vsel %vm203_vm11, %v2696_v30, %v4822_v6 }
 0x3af   : > { %v2400_v37 = vmin.f32 %v2390_v61, %v2398_v34  ;;  %v1734_v57 = vsel %vm212_vm10, %v6705_v42, %v6704_v44  ;;  %v6709_v34 = vld [vmem:[#allocation132_spill] sm:$0xff]  ;;  %v5255_v22 = vsel %vm188_vm9, %v5200_v38, %v2413_v18 }
 0x3b0   : > { %v2691_v40 = vmin.f32 %v6709_v34, %v6708_v47  ;;  %6711 = vst [vmem:[#allocation83_spill] sm:$0xff] %v5255_v22 }
 0x3b1   : > { %v2402_v17 = vmin.f32 %v2382_v4, %v2400_v37  ;;  %v2699_v4 = vsel %vm203_vm11, %v2694_v49, %v4817_v41  ;;  %v6713_v49 = vld [vmem:[#allocation28_spill] sm:$0xff] }
 0x3b3   : > { %v5226_v63 = vmin.f32 %v4763_v21, %v2402_v17  ;;  %v6716_v21 = vld [vmem:[#allocation17_spill] sm:$0xff] }
 0x3b4   : > { %v2704_v61 = vpop.permute.xlu1 %2703  ;;  %v1036_v8 = vsub.f32 %v6716_v21, %v1034_v29 }
 0x3b5   : > { %v2708_v17 = vsel %vm212_vm10, %v4822_v6, %v2704_v61  ;;  %771 = vrot.lane.b32.xlu0 %v5015_v55, %s3278_s26  ;;  %v2702_v48 = vpop.permute.xlu0 %2701  ;;  %v2408_v56 = vrot.slane %v5226_v63, 1  ;;  %v2414_v30 = vrot.slane %v5226_v63, 7 }
 0x3b6   : > { %v2710_v37 = vmin.f32 %v2700_v28, %v2708_v17  ;;  %v2707_v44 = vsel %vm212_vm10, %v4817_v41, %v2702_v48  ;;  %v6714_v28 = vld [vmem:[#allocation49_spill] sm:$0xff]  ;;  %v1038_v29 = vmax.f32 %v1036_v8, 0.0 }
 0x3b7   : > { %v2709_v32 = vmin.f32 %v2699_v4, %v2707_v44  ;;  %v5251_v61 = vsel %vm181_vm8, %v2407_v0, %v2408_v56  ;;  %v5259_v47 = vsel %vm181_vm8, %v2408_v56, %v5226_v63  ;;  %v1658_v17 = vsel %vm203_vm11, %v6714_v28, %v6713_v49  ;;  %v6715_v0 = vld [vmem:[#allocation93_spill] sm:$0xff] }
 0x3b8   : > { %6710 = vst [vmem:[#allocation65_spill] sm:$0xff] %v5251_v61  ;;  %v2712_v48 = vmin.f32 %v2692_v12, %v2710_v37  ;;  %v5267_v44 = vsel %vm188_vm9, %v2413_v18, %v2414_v30  ;;  %v1726_v34 = vsel %vm203_vm11, %v6715_v0, %v6705_v42  ;;  %v6718_v12 = vld [vmem:[#allocation47_spill] sm:$0xff]  ;;  %v3166_v30 = vld [vmem:[%s3379_s24 + $0x18] sm:$0xff] }
 0x3b9   : > { %6712 = vst [vmem:[#allocation25_spill] sm:$0xff] %v5259_v47  ;;  %v2711_v53 = vmin.f32 %v2691_v40, %v2709_v32  ;;  %v1736_v62 = vmax.f32 %v1726_v34, %v1734_v57  ;;  %v1666_v37 = vsel %vm212_vm10, %v6713_v49, %v6718_v12  ;;  %v968_v4 = vsub.f32 %v3166_v30, %v966_v10  ;;  %v5287_v40 = vpop.permute.xlu2 %463  ;;  %v3167_v47 = vld [vmem:[%s3379_s24 + $0x20] sm:$0xff] }
 0x3ba   : > { %v5276_v28 = vmin.f32 %v4822_v6, %v2712_v48  ;;  %v1668_v0 = vmax.f32 %v1658_v17, %v1666_v37  ;;  %v2078_v10 = vsel %vm212_vm10, %v5088_v25, %v2073_v46  ;;  %v6725_v6 = vmin.f32 %v5108_v39, %v5112_v26 }
 0x3bb   : > { %v5282_v18 = vmin.f32 %v4817_v41, %v2711_v53  ;;  %v1738_v53 = vmax.f32 %v6705_v42, %v1736_v62  ;;  %v970_v42 = vmax.f32 %v968_v4, 0.0  ;;  %v6726_v4 = vmax.f32 %v4960_v7, %v4964_v5 }
 0x3bc   : > { %6717 = vst [vmem:[#allocation45_spill] sm:$0xff] %v5276_v28  ;;  %v2718_v21 = vrot.slane %v5276_v28, 1  ;;  %v2724_v32 = vrot.slane %v5276_v28, 7  ;;  %v1670_v46 = vmax.f32 %v6713_v49, %v1668_v0 }
 0x3bd   : > { %6719 = vst [vmem:[#allocation98_spill] sm:$0xff] %v5282_v18  ;;  %781 = vrot.lane.b32.xlu0 %v5017_v16, %s3277_s25  ;;  %v2065_v57 = vpop.permute.xlu0 %2064  ;;  %v2717_v34 = vrot.slane %v5282_v18, 1  ;;  %v2723_v48 = vrot.slane %v5282_v18, 7  ;;  %v1110_v49 = vmax.f32 %v4544_v24, %v6726_v4  ;;  %v6728_v24 = vld [vmem:[#allocation37_spill] sm:$0xff] }
 0x3be   : > { %v2070_v17 = vsel %vm203_vm11, %v2065_v57, %v5088_v25  ;;  %v5300_v8 = vsel %vm181_vm8, %v2718_v21, %v5276_v28 }
 0x3bf   : > { %6720 = vst [vmem:[#allocation69_spill] sm:$0xff] %v5300_v8  ;;  %v2080_v12 = vmin.f32 %v2070_v17, %v2078_v10  ;;  %v5303_v37 = vsel %vm181_vm8, %v2717_v34, %v2718_v21  ;;  %v5307_v30 = vsel %vm188_vm9, %v5282_v18, %v2723_v48  ;;  %v5310_v62 = vsel %vm188_vm9, %v2723_v48, %v2724_v32  ;;  %v6724_v17 = vld [vmem:[#allocation22_spill] sm:$0xff]  ;;  %v2067_v34 = vpop.permute.xlu1 %2066  ;;  %v6757_v8 = vld [vmem:[#allocation97_spill] sm:$0xff] }
 0x3c0   : > { %6721 = vst [vmem:[#allocation43_spill] sm:$0xff] %v5303_v37  ;;  %v1040_v10 = vmul.f32 %v1038_v29, %v970_v42  ;;  %v1740_v21 = vsub.f32 %v6724_v17, %v1738_v53  ;;  %v1672_v32 = vsub.f32 %v3167_v47, %v1670_v46  ;;  %v2071_v53 = vsel %vm203_vm11, %v2067_v34, %v5094_v50 }
 0x3c1   : > { %6722 = vst [vmem:[#allocation90_spill] sm:$0xff] %v5307_v30  ;;  %v2082_v41 = vmin.f32 %v6725_v6, %v2080_v12  ;;  %v5332_v6 = vpop.permute.xlu2 %1167  ;;  %v1112_v47 = vsub.f32 %v6728_v24, %v1110_v49  ;;  %v6729_v12 = vmin.f32 %v5102_v11, %v5105_v59  ;;  %v6763_v30 = vld [vmem:[#allocation50_spill] sm:$0xff] }
 0x3c2   : > { %6723 = vst [vmem:[#allocation100_spill] sm:$0xff] %v5310_v62  ;;  %v1042_v48 = vsub.f32 %v1038_v29, %v1040_v10  ;;  %v1742_v56 = vmax.f32 %v1740_v21, 0.0  ;;  %v1674_v5 = vmax.f32 %v1672_v32, 0.0 }
 0x3c3   : > { %v5335_v26 = vmin.f32 %v5088_v25, %v2082_v41  ;;  %v1114_v34 = vmax.f32 %v1112_v47, 0.0  ;;  %v6731_v41 = vmax.f32 %v4980_v43, %v4984_v31  ;;  %v6736_v47 = vld [vmem:[#allocation42_spill] sm:$0xff] }
 0x3c4   : > { %v1044_v46 = vmax.f32 %v1042_v48, 0.0  ;;  %v1744_v10 = vmul.f32 %v1742_v56, %v1674_v5 }
 0x3c5   : > { %1485 = vrot.lane.b32.xlu0 %v5062_v27, %s3277_s25  ;;  %v2075_v0 = vpop.permute.xlu0 %2074  ;;  %6727 = vst [vmem:[#allocation70_spill] sm:$0xff] %v5335_v26  ;;  %v2094_v21 = vrot.slane %v5335_v26, 7  ;;  %v1814_v4 = vmax.f32 %v4564_v51, %v6731_v41  ;;  %v2088_v49 = vrot.slane %v5335_v26, 1 }
 0x3c6   : > { %v2079_v39 = vsel %vm212_vm10, %v5094_v50, %v2075_v0  ;;  %v1746_v0 = vsub.f32 %v1742_v56, %v1744_v10  ;;  %v1046_v48 = vadd.f32 %v1044_v46, %v970_v42  ;;  %v6753_v42 = vld [vmem:[#allocation27_spill] sm:$0xff] }
 0x3c7   : > { %v2081_v7 = vmin.f32 %v2071_v53, %v2079_v39  ;;  %v5368_v31 = vsel %vm188_vm9, %v5335_v26, %v2094_v21 }
 0x3c8   : > { %6735 = vst [vmem:[#allocation47_spill] sm:$0xff] %v5368_v31  ;;  %v1116_v24 = vmul.f32 %v1114_v34, %v1046_v48 }
 0x3c9   : > { %v2083_v29 = vmin.f32 %v6729_v12, %v2081_v7  ;;  %v1816_v12 = vsub.f32 %v6736_v47, %v1814_v4 }
 0x3ca   : > { %v1118_v41 = vsub.f32 %v1114_v34, %v1116_v24 }
 0x3cb   : > { %v5342_v17 = vmin.f32 %v5094_v50, %v2083_v29  ;;  %v1178_v29 = vpop.permute.xlu2 %1177 }
 0x3cd   : > { %6730 = vst [vmem:[#allocation28_spill] sm:$0xff] %v5342_v17  ;;  %2469 = vrot.lane.b32.xlu0 %v5226_v63, %s3277_s25  ;;  %v5351_v32 = vpop.permute.xlu0 %469  ;;  %v2089_v11 = vrot.slane %v5342_v17, 1  ;;  %v2095_v59 = vrot.slane %v5342_v17, 7 }
 0x3cf   : > { %v5358_v53 = vsel %vm181_vm8, %v2089_v11, %v5342_v17  ;;  %v5361_v43 = vsel %vm188_vm9, %v2094_v21, %v2095_v59  ;;  %v5364_v51 = vsel %vm181_vm8, %v2088_v49, %v2089_v11  ;;  %v1748_v21 = vmax.f32 %v1746_v0, 0.0 }
 0x3d0   : > { %6732 = vst [vmem:[#allocation49_spill] sm:$0xff] %v5358_v53  ;;  %v2101_v39 = vmax.f32 %v5358_v53, %v5361_v43  ;;  %v2100_v56 = vmax.f32 %v5364_v51, %v5368_v31  ;;  %v1818_v11 = vmax.f32 %v1816_v12, 0.0  ;;  %v1182_v59 = vsel %vm212_vm10, %v4926_v35, %v1178_v29 }
 0x3d1   : > { %6733 = vst [vmem:[#allocation93_spill] sm:$0xff] %v5361_v43 }
 0x3d2   : > { %6734 = vst [vmem:[#allocation17_spill] sm:$0xff] %v5364_v51  ;;  %v5380_v46 = vmax.f32 %v5342_v17, %v2101_v39  ;;  %v5383_v10 = vmax.f32 %v5335_v26, %v2100_v56  ;;  %v1750_v39 = vadd.f32 %v1748_v21, %v1674_v5  ;;  %v1120_v56 = vmax.f32 %v1118_v41, 0.0 }
 0x3d3   : > { %v1881_v7 = vpop.permute.xlu2 %1880 }
 0x3d4   : > { %2108 = vrot.lane.b32.xlu2 %v5380_v46, %s3278_s26  ;;  %2106 = vrot.lane.b32.xlu1 %v5383_v10, %s3278_s26  ;;  %v1820_v47 = vmul.f32 %v1818_v11, %v1750_v39  ;;  %v1122_v12 = vadd.f32 %v1120_v56, %v1046_v48  ;;  %v1886_v21 = vsel %vm212_vm10, %v4943_v1, %v1881_v7 }
 0x3d5   : > { %2777 = vrot.lane.b32.xlu0 %v5282_v18, %s3277_s25  ;;  %v1170_v4 = vpop.permute.xlu0 %1169 }
 0x3d6   : > { %v1174_v49 = vsel %vm203_vm11, %v1170_v4, %v4926_v35  ;;  %v1822_v24 = vsub.f32 %v1818_v11, %v1820_v47 }
 0x3d7   : > { %v1184_v0 = vmax.f32 %v1174_v49, %v1182_v59 }
 0x3d8   : > { %v1824_v41 = vmax.f32 %v1822_v24, 0.0  ;;  %v6738_v24 = vld [vmem:[#allocation76_spill] sm:$0xff] }
 0x3d9   : > { %v1186_v57 = vmax.f32 %v4926_v35, %v1184_v0 }
 0x3da   : > { %v1826_v7 = vadd.f32 %v1824_v41, %v1750_v39  ;;  %v6737_v39 = vld [vmem:[#allocation111_spill] sm:$0xff]  ;;  %v6742_v41 = vld [vmem:[#allocation72_spill] sm:$0xff] }
 0x3db   : > { %v1188_v34 = vsub.f32 %v4408_v14, %v1186_v57 }
 0x3dc   : > { %2467 = vrot.lane.b32.xlu2 %v5200_v38, %s3277_s25  ;;  %461 = vrot.lane.b32.xlu1 %v4898_v2, %s3278_s26 }
 0x3dd   : > { %v1190_v29 = vmax.f32 %v1188_v34, 0.0  ;;  %2116 = vrot.lane.b32.xlu0 %v5380_v46, %s3277_s25  ;;  %v1873_v5 = vpop.permute.xlu0 %1872 }
 0x3de   : > { %v1878_v35 = vsel %vm203_vm11, %v1873_v5, %v4943_v1  ;;  %v6740_v5 = vld [vmem:[#allocation74_spill] sm:$0xff] }
 0x3df   : > { %v1192_v14 = vmul.f32 %v1190_v29, %v1122_v12  ;;  %v1888_v57 = vmax.f32 %v1878_v35, %v1886_v21  ;;  %v6741_v35 = vld [vmem:[#allocation103_spill] sm:$0xff] }
 0x3e1   : > { %v1194_v4 = vsub.f32 %v1190_v29, %v1192_v14  ;;  %v1890_v59 = vmax.f32 %v4943_v1, %v1888_v57  ;;  %v6739_v29 = vld [vmem:[#allocation30_spill] sm:$0xff]  ;;  %v625_v14 = vsel %vm203_vm11, %v6741_v35, %v6738_v24 }
 0x3e2   : > { %v557_v21 = vsel %vm203_vm11, %v6740_v5, %v6739_v29  ;;  %v6746_v5 = vld [vmem:[#allocation94_spill] sm:$0xff] }
 0x3e3   : > { %v1196_v49 = vmax.f32 %v1194_v4, 0.0  ;;  %v1892_v48 = vsub.f32 %v4457_v52, %v1890_v59  ;;  %v565_v4 = vsel %vm212_vm10, %v6739_v29, %v6742_v41  ;;  %v6748_v41 = vld [vmem:[#allocation24_spill] sm:$0xff] }
 0x3e4   : > { %779 = vrot.lane.b32.xlu2 %v5015_v55, %s3277_s25  ;;  %471 = vrot.lane.b32.xlu1 %v4895_v9, %s3277_s25  ;;  %v567_v59 = vmax.f32 %v557_v21, %v565_v4  ;;  %v6747_v21 = vld [vmem:[#allocation41_spill] sm:$0xff] }
 0x3e5   : > { %v5413_v11 = vadd.f32 %v1196_v49, %v1122_v12  ;;  %v1894_v0 = vmax.f32 %v1892_v48, 0.0  ;;  %2148 = vrot.lane.b32.xlu0 %v5335_v26, %s3277_s25  ;;  %v5439_v1 = vpop.permute.xlu0 %1882  ;;  %v633_v12 = vsel %vm212_vm10, %v6738_v24, %v6737_v39 }
 0x3e6   : > { %v635_v57 = vmax.f32 %v625_v14, %v633_v12  ;;  %v6745_v12 = vld [vmem:[#allocation67_spill] sm:$0xff] }
 0x3e7   : > { %v1896_v56 = vmul.f32 %v1894_v0, %v1826_v7  ;;  %v315_v35 = vsel %vm203_vm11, %v6746_v5, %v6745_v12 }
 0x3e8   : > { %v637_v48 = vmax.f32 %v6738_v24, %v635_v57  ;;  %v255_v24 = vsel %vm212_vm10, %v6748_v41, %v6747_v21 }
 0x3e9   : > { %v1898_v47 = vsub.f32 %v1894_v0, %v1896_v56  ;;  %v6743_v0 = vld [vmem:[#allocation19_spill] sm:$0xff] }
 0x3ea   : > { %v639_v56 = vsub.f32 %v6743_v0, %v637_v48  ;;  %v6751_v48 = vld [vmem:[#allocation26_spill] sm:$0xff]  ;;  %v6752_v0 = vld [vmem:[#allocation48_spill] sm:$0xff] }
 0x3eb   : > { %v1900_v34 = vmax.f32 %v1898_v47, 0.0  ;;  %v6744_v47 = vld [vmem:[#allocation9_spill] sm:$0xff]  ;;  %v961_v43 = vsel %vm212_vm10, %v6753_v42, %v6752_v0  ;;  %v6758_v0 = vld [vmem:[#allocation66_spill] sm:$0xff] }
 0x3ec   : > { %1479 = vrot.lane.b32.xlu2 %v5064_v20, %s3278_s26  ;;  %1175 = vrot.lane.b32.xlu1 %v4923_v45, %s3277_s25  ;;  %v641_v14 = vmax.f32 %v639_v56, 0.0  ;;  %v6754_v56 = vld [vmem:[#allocation38_spill] sm:$0xff] }
 0x3ed   : > { %v5421_v52 = vadd.f32 %v1900_v34, %v1826_v7  ;;  %v569_v7 = vmax.f32 %v6739_v29, %v567_v59  ;;  %v6749_v29 = vld [vmem:[#allocation88_spill] sm:$0xff]  ;;  %v6750_v59 = vld [vmem:[#allocation46_spill] sm:$0xff]  ;;  %v247_v5 = vsel %vm203_vm11, %v6754_v56, %v6748_v41  ;;  %v6759_v56 = vmax.f32 %v5045_v23, %v5049_v36 }
 0x3ee   : > { %v323_v4 = vsel %vm212_vm10, %v6745_v12, %v6749_v29  ;;  %v6756_v29 = vld [vmem:[#allocation40_spill] sm:$0xff]  ;;  %v257_v51 = vmax.f32 %v247_v5, %v255_v24  ;;  %v6762_v5 = vld [vmem:[#allocation29_spill] sm:$0xff] }
 0x3ef   : > { %v571_v34 = vsub.f32 %v6744_v47, %v569_v7  ;;  %v256_v7 = vsel %vm212_vm10, %v6751_v48, %v6750_v59  ;;  %v325_v53 = vmax.f32 %v315_v35, %v323_v4  ;;  %v953_v59 = vsel %vm203_vm11, %v6756_v29, %v6753_v42 }
 0x3f0   : > { %v324_v35 = vsel %vm212_vm10, %v6758_v0, %v6757_v8  ;;  %v963_v62 = vmax.f32 %v953_v59, %v961_v43  ;;  %v1659_v8 = vsel %vm203_vm11, %v6763_v30, %v6762_v5  ;;  %v6764_v43 = vld [vmem:[#allocation51_spill] sm:$0xff]  ;;  %v6766_v59 = vld [vmem:[#allocation68_spill] sm:$0xff] }
 0x3f1   : > { %v573_v57 = vmax.f32 %v571_v34, 0.0  ;;  %v6755_v34 = vld [vmem:[#allocation39_spill] sm:$0xff]  ;;  %v327_v29 = vmax.f32 %v6745_v12, %v325_v53  ;;  %v1667_v23 = vsel %vm212_vm10, %v6762_v5, %v6764_v43 }
 0x3f2   : > { %v248_v21 = vsel %vm203_vm11, %v6755_v34, %v6751_v48  ;;  %v6760_v34 = vld [vmem:[#allocation92_spill] sm:$0xff]  ;;  %v965_v53 = vmax.f32 %v6753_v42, %v963_v62  ;;  %v6765_v12 = vld [vmem:[#allocation99_spill] sm:$0xff] }
 0x3f3   : > { %v643_v31 = vmul.f32 %v641_v14, %v573_v57  ;;  %v258_v4 = vmax.f32 %v248_v21, %v256_v7  ;;  %v316_v37 = vsel %vm203_vm11, %v6760_v34, %v6758_v0  ;;  %v259_v7 = vmax.f32 %v6748_v41, %v257_v51  ;;  %v6767_v34 = vld [vmem:[#allocation52_spill] sm:$0xff]  ;;  %v5525_v62 = vld [vmem:[%s3379_s24] sm:$0xff] }
 0x3f4   : > { %2771 = vrot.lane.b32.xlu2 %v5276_v28, %s3278_s26  ;;  %1874 = vrot.lane.b32.xlu1 %v4945_v3, %s3278_s26  ;;  %6770 = vst [vmem:[#allocation37_spill] sm:$0xff] %v5525_v62 }
 0x3f5   : > { %v645_v36 = vsub.f32 %v641_v14, %v643_v31  ;;  %v260_v21 = vmax.f32 %v6751_v48, %v258_v4  ;;  %v261_v42 = vsub.f32 %v5525_v62, %v259_v7  ;;  %v5529_v48 = vld [vmem:[%s3379_s24 + $0x8] sm:$0xff]  ;;  %v6788_v62 = vld [vmem:[#allocation77_spill] sm:$0xff] }
 0x3f6   : > { %6771 = vst [vmem:[#allocation42_spill] sm:$0xff] %v5529_v48 }
 0x3f7   : > { %v647_v14 = vmax.f32 %v645_v36, 0.0  ;;  %v6774_v36 = vld [vmem:[#allocation15_spill] sm:$0xff] }
 0x3fc   : > { %2114 = vrot.lane.b32.xlu2 %v5383_v10, %s3277_s25  ;;  %2461 = vrot.lane.b32.xlu1 %v5226_v63, %s3278_s26 }
 0x404   : > { %2142 = vrot.lane.b32.xlu2 %v5342_v17, %s3278_s26  ;;  %773 = vrot.lane.b32.xlu1 %v5017_v16, %s3278_s26 }
 0x40c   : > { %1477 = vrot.lane.b32.xlu1 %v5062_v27, %s3278_s26 }
 0x414   : > { %1487 = vrot.lane.b32.xlu1 %v5064_v20, %s3277_s25  ;;  %v6768_v20 = vld [vmem:[#allocation14_spill] sm:$0xff] }
 0x415   : > { %v329_v27 = vsub.f32 %v6768_v20, %v327_v29  ;;  %v5533_v20 = vld [vmem:[%s3379_s24 + $0x10] sm:$0xff] }
 0x416   : > { %6772 = vst [vmem:[#allocation111_spill] sm:$0xff] %v5533_v20 }
 0x41c   : > { %2769 = vrot.lane.b32.xlu1 %v5282_v18, %s3278_s26  ;;  %v1669_v18 = vmax.f32 %v1659_v8, %v1667_v23  ;;  %v331_v8 = vmax.f32 %v329_v27, 0.0  ;;  %v6776_v27 = vld [vmem:[#allocation56_spill] sm:$0xff] }
 0x41f   : > { %v2460_v49 = vpop.permute.xlu0 %2459 }
 0x420   : > { %v2465_v43 = vsel %vm203_vm11, %v2460_v49, %v5200_v38 }
 0x424   : > { %2779 = vrot.lane.b32.xlu1 %v5276_v28, %s3277_s25 }
 0x427   : > { %v5461_v39 = vpop.permute.xlu0 %771 }
 0x42c   : > { %2140 = vrot.lane.b32.xlu1 %v5335_v26, %s3278_s26  ;;  %v713_v26 = vmax.f32 %v6674_v33, %v6759_v56  ;;  %v326_v33 = vmax.f32 %v316_v37, %v324_v35  ;;  %v1029_v56 = vsel %vm212_vm10, %v6766_v59, %v6765_v12  ;;  %v6769_v37 = vld [vmem:[#allocation95_spill] sm:$0xff]  ;;  %v967_v35 = vsub.f32 %v5533_v20, %v965_v53 }
 0x42d   : > { %v1021_v31 = vsel %vm203_vm11, %v6769_v37, %v6766_v59  ;;  %v2457_v53 = vmin.f32 %v5251_v61, %v5255_v22  ;;  %v6778_v37 = vld [vmem:[#allocation71_spill] sm:$0xff]  ;;  %v6785_v22 = vld [vmem:[#allocation57_spill] sm:$0xff] }
 0x42e   : > { %v5496_v28 = vpop.permute.xlu2 %2108  ;;  %v715_v30 = vsub.f32 %v6767_v34, %v713_v26  ;;  %v328_v51 = vmax.f32 %v6758_v0, %v326_v33  ;;  %v1031_v41 = vmax.f32 %v1021_v31, %v1029_v56  ;;  %v262_v26 = vsub.f32 %v5529_v48, %v260_v21  ;;  %v6777_v34 = vld [vmem:[#allocation78_spill] sm:$0xff]  ;;  %v6779_v31 = vld [vmem:[#allocation101_spill] sm:$0xff]  ;;  %v6787_v48 = vld [vmem:[#allocation75_spill] sm:$0xff] }
 0x42f   : > { %v5502_v24 = vpop.permute.xlu0 %781  ;;  %v5537_v0 = vmax.f32 %v6762_v5, %v1669_v18  ;;  %v649_v21 = vadd.f32 %v647_v14, %v573_v57  ;;  %v5548_v56 = vmax.f32 %v261_v42, 0.0  ;;  %v6775_v18 = vld [vmem:[#allocation31_spill] sm:$0xff]  ;;  %v1727_v57 = vsel %vm203_vm11, %v6779_v31, %v6778_v37 }
 0x430   : > { %6761 = vst [vmem:[#allocation22_spill] sm:$0xff] %v5502_v24  ;;  %v717_v4 = vmax.f32 %v715_v30, 0.0  ;;  %v330_v7 = vsub.f32 %v6774_v36, %v328_v51  ;;  %v558_v5 = vsel %vm203_vm11, %v6776_v27, %v6775_v18  ;;  %v1033_v49 = vmax.f32 %v6766_v59, %v1031_v41  ;;  %v6780_v41 = vld [vmem:[#allocation82_spill] sm:$0xff]  ;;  %v6781_v36 = vld [vmem:[#allocation64_spill] sm:$0xff] }
 0x431   : > { %v566_v30 = vsel %vm212_vm10, %v6775_v18, %v6777_v34  ;;  %v5562_v42 = vmax.f32 %v967_v35, 0.0  ;;  %v333_v59 = vmul.f32 %v331_v8, %v5548_v56  ;;  %v1976_v27 = vsel %vm212_vm10, %v6781_v36, %v6780_v41  ;;  %v6782_v34 = vld [vmem:[#allocation96_spill] sm:$0xff]  ;;  %v6796_v24 = vld [vmem:[#allocation58_spill] sm:$0xff] }
 0x432   : > { %v719_v51 = vmul.f32 %v717_v4, %v649_v21  ;;  %v1735_v31 = vsel %vm212_vm10, %v6778_v37, %v6782_v34  ;;  %v568_v35 = vmax.f32 %v558_v5, %v566_v30  ;;  %v1968_v41 = vsel %vm203_vm11, %v6787_v48, %v6781_v36 }
 0x433   : > { %v1737_v20 = vmax.f32 %v1727_v57, %v1735_v31  ;;  %v777_v48 = vsel %vm203_vm11, %v5461_v39, %v5015_v55 }
 0x434   : > { %2150 = vrot.lane.b32.xlu1 %v5342_v17, %s3277_s25  ;;  %v721_v30 = vsub.f32 %v717_v4, %v719_v51  ;;  %v6793_v51 = vld [vmem:[#allocation34_spill] sm:$0xff] }
 0x435   : > { %v1739_v31 = vmax.f32 %v6778_v37, %v1737_v20  ;;  %v6798_v20 = vld [vmem:[#allocation116_spill] sm:$0xff] }
 0x436   : > { %v2468_v29 = vpop.permute.xlu2 %2467 }
 0x437   : > { %v2473_v23 = vsel %vm212_vm10, %v5200_v38, %v2468_v29  ;;  %v5543_v33 = vpop.permute.xlu0 %1485  ;;  %v5560_v29 = vmax.f32 %v262_v26, 0.0 }
 0x438   : > { %6773 = vst [vmem:[#allocation76_spill] sm:$0xff] %v5543_v33  ;;  %v2475_v12 = vmin.f32 %v2465_v43, %v2473_v23  ;;  %v5565_v43 = vld [vmem:[%s3379_s24 + $0x28] sm:$0xff] }
 0x439   : > { %v6786_v23 = vld [vmem:[#allocation16_spill] sm:$0xff] }
 0x43a   : > { %v2477_v14 = vmin.f32 %v2457_v53, %v2475_v12  ;;  %v332_v53 = vmax.f32 %v330_v7, 0.0  ;;  %v6784_v12 = vld [vmem:[#allocation32_spill] sm:$0xff]  ;;  %v1035_v17 = vsub.f32 %v6786_v23, %v1033_v49  ;;  %v6790_v7 = vmax.f32 %v4905_v60, %v4913_v54  ;;  %v6791_v23 = vld [vmem:[#allocation81_spill] sm:$0xff] }
 0x43b   : > { %v1263_v61 = vsel %vm203_vm11, %v6785_v22, %v6784_v12  ;;  %v6789_v33 = vld [vmem:[#allocation112_spill] sm:$0xff]  ;;  %v1978_v22 = vmax.f32 %v1968_v41, %v1976_v27  ;;  %v335_v49 = vsub.f32 %v331_v8, %v333_v59  ;;  %v6792_v54 = vld [vmem:[#allocation105_spill] sm:$0xff] }
 0x43c   : > { %v5577_v26 = vmin.f32 %v5200_v38, %v2477_v14  ;;  %v626_v34 = vsel %vm203_vm11, %v6789_v33, %v6788_v62  ;;  %v403_v5 = vmax.f32 %v4522_v15, %v6790_v7  ;;  %v1271_v15 = vsel %vm212_vm10, %v6784_v12, %v6791_v23  ;;  %v6794_v59 = vld [vmem:[#allocation73_spill] sm:$0xff] }
 0x43d   : > { %v334_v60 = vmul.f32 %v332_v53, %v5560_v29  ;;  %v634_v4 = vsel %vm212_vm10, %v6788_v62, %v6792_v54  ;;  %v1264_v39 = vsel %vm203_vm11, %v6794_v59, %v6793_v51  ;;  %v1037_v27 = vmax.f32 %v1035_v17, 0.0  ;;  %v6797_v59 = vld [vmem:[#allocation80_spill] sm:$0xff] }
 0x43e   : > { %6783 = vst [vmem:[#allocation30_spill] sm:$0xff] %v5577_v26  ;;  %v780_v14 = vpop.permute.xlu2 %779  ;;  %2535 = vrot.lane.b32.xlu0 %v5577_v26, %s3278_s26  ;;  %v636_v41 = vmax.f32 %v626_v34, %v634_v4  ;;  %v5614_v7 = vmax.f32 %v6775_v18, %v568_v35  ;;  %v723_v38 = vmax.f32 %v721_v30, 0.0  ;;  %v1273_v16 = vmax.f32 %v1263_v61, %v1271_v15  ;;  %v6800_v34 = vld [vmem:[#allocation106_spill] sm:$0xff]  ;;  %v6804_v15 = vld [vmem:[#allocation61_spill] sm:$0xff]  ;;  %v6806_v4 = vld [vmem:[#allocation60_spill] sm:$0xff] }
 0x43f   : > { %v785_v57 = vsel %vm212_vm10, %v5015_v55, %v780_v14  ;;  %v5600_v33 = vpop.permute.xlu0 %2469  ;;  %v6795_v14 = vld [vmem:[#allocation33_spill] sm:$0xff]  ;;  %v337_v54 = vmax.f32 %v335_v49, 0.0  ;;  %v336_v17 = vsub.f32 %v332_v53, %v334_v60  ;;  %v1331_v37 = vsel %vm203_vm11, %v6798_v20, %v6797_v59  ;;  %v6803_v49 = vld [vmem:[#allocation62_spill] sm:$0xff]  ;;  %v6807_v20 = vld [vmem:[#allocation12_spill] sm:$0xff] }
 0x440   : > { %v787_v8 = vmax.f32 %v777_v48, %v785_v57  ;;  %v405_v23 = vsub.f32 %v6795_v14, %v403_v5  ;;  %v1272_v48 = vsel %vm212_vm10, %v6793_v51, %v6796_v24  ;;  %v1980_v57 = vmax.f32 %v6781_v36, %v1978_v22  ;;  %v6801_v5 = vld [vmem:[#allocation23_spill] sm:$0xff]  ;;  %v6802_v24 = vld [vmem:[#allocation108_spill] sm:$0xff] }
 0x441   : > { %v6799_v18 = vmax.f32 %v4935_v13, %v4931_v19  ;;  %v1039_v61 = vmul.f32 %v1037_v27, %v5562_v42  ;;  %v1741_v30 = vsub.f32 %v6801_v5, %v1739_v31  ;;  %v1339_v36 = vsel %vm212_vm10, %v6797_v59, %v6802_v24 }
 0x442   : > { %v789_v26 = vmax.f32 %v5015_v55, %v787_v8  ;;  %v638_v53 = vmax.f32 %v6788_v62, %v636_v41  ;;  %v407_v22 = vmax.f32 %v405_v23, 0.0  ;;  %v6805_v60 = vmax.f32 %v6803_v49, %v6804_v15  ;;  %v6808_v23 = vld [vmem:[#allocation35_spill] sm:$0xff] }
 0x443   : > { %v404_v35 = vmax.f32 %v4539_v58, %v6799_v18  ;;  %v725_v13 = vadd.f32 %v723_v38, %v649_v21  ;;  %v1275_v31 = vmax.f32 %v6784_v12, %v1273_v16  ;;  %v1274_v14 = vmax.f32 %v1264_v39, %v1272_v48  ;;  %v6811_v48 = vld [vmem:[#allocation59_spill] sm:$0xff] }
 0x444   : > { %v791_v55 = vsub.f32 %v6800_v34, %v789_v26  ;;  %v2048_v19 = vmax.f32 %v6806_v4, %v6805_v60  ;;  %v1982_v18 = vsub.f32 %v6807_v20, %v1980_v57  ;;  %v1341_v34 = vmax.f32 %v1331_v37, %v1339_v36 }
 0x445   : > { %v338_v62 = vmax.f32 %v336_v17, 0.0  ;;  %v339_v41 = vadd.f32 %v337_v54, %v5548_v56  ;;  %v406_v24 = vsub.f32 %v6808_v23, %v404_v35  ;;  %v1041_v38 = vsub.f32 %v1037_v27, %v1039_v61  ;;  %v6812_v17 = vld [vmem:[#allocation8_spill] sm:$0xff]  ;;  %v6813_v54 = vld [vmem:[#allocation10_spill] sm:$0xff] }
 0x446   : > { %v793_v58 = vmax.f32 %v791_v55, 0.0  ;;  %v5640_v8 = vpop.permute.xlu2 %1479  ;;  %v5642_v26 = vpop.permute.xlu1 %2106  ;;  %v5650_v21 = vmax.f32 %v1741_v30, 0.0  ;;  %v6809_v55 = vld [vmem:[#allocation18_spill] sm:$0xff]  ;;  %v6810_v16 = vsub.f32 %v5565_v43, %v5537_v0  ;;  %v2050_v57 = vsub.f32 %v6811_v48, %v2048_v19 }
 0x447   : > { %v5646_v5 = vpop.permute.xlu0 %2777  ;;  %v640_v15 = vsub.f32 %v6809_v55, %v638_v53  ;;  %v409_v39 = vmul.f32 %v407_v22, %v339_v41  ;;  %v572_v56 = vsub.f32 %v6812_v17, %v5614_v7  ;;  %v1277_v35 = vsub.f32 %v6813_v54, %v1275_v31  ;;  %v6814_v7 = vld [vmem:[#allocation135_spill] sm:$0xff]  ;;  %v6815_v19 = vld [vmem:[#allocation134_spill] sm:$0xff]  ;;  %v6821_v55 = vld [vmem:[#allocation20_spill] sm:$0xff] }
 0x448   : > { %v795_v49 = vmul.f32 %v793_v58, %v725_v13  ;;  %v5656_v12 = vmax.f32 %v6810_v16, 0.0  ;;  %v5663_v27 = vmax.f32 %v6793_v51, %v1274_v14  ;;  %v1343_v61 = vmax.f32 %v6797_v59, %v1341_v34  ;;  %v6817_v51 = vld [vmem:[#allocation102_spill] sm:$0xff]  ;;  %v6819_v59 = vld [vmem:[#allocation79_spill] sm:$0xff] }
 0x449   : > { %v5666_v30 = vmax.f32 %v1982_v18, 0.0  ;;  %v5669_v0 = vadd.f32 %v338_v62, %v5560_v29  ;;  %v408_v43 = vmax.f32 %v406_v24, 0.0  ;;  %v1043_v53 = vmax.f32 %v1041_v38, 0.0  ;;  %v6818_v14 = vld [vmem:[#allocation118_spill] sm:$0xff] }
 0x44a   : > { %v797_v37 = vsub.f32 %v793_v58, %v795_v49  ;;  %v1745_v60 = vmul.f32 %v5650_v21, %v5656_v12  ;;  %v5673_v4 = vmax.f32 %v640_v15, 0.0  ;;  %v6816_v58 = vmax.f32 %v6814_v7, %v6815_v19  ;;  %v6820_v49 = vld [vmem:[#allocation115_spill] sm:$0xff]  ;;  %v6822_v7 = vld [vmem:[#allocation36_spill] sm:$0xff] }
 0x44b   : > { %v1340_v18 = vsel %vm212_vm10, %v6819_v59, %v6818_v14  ;;  %v411_v34 = vsub.f32 %v407_v22, %v409_v39  ;;  %v2052_v29 = vmax.f32 %v2050_v57, 0.0  ;;  %v1332_v38 = vsel %vm203_vm11, %v6820_v49, %v6819_v59  ;;  %v6823_v49 = vld [vmem:[#allocation11_spill] sm:$0xff] }
 0x44c   : > { %v799_v36 = vmax.f32 %v797_v37, 0.0  ;;  %v1109_v31 = vmax.f32 %v6817_v51, %v6816_v58  ;;  %v1345_v15 = vsub.f32 %v6821_v55, %v1343_v61  ;;  %v475_v16 = vsel %vm212_vm10, %v4898_v2, %v5351_v32 }
 0x44d   : > { %v2113_v39 = vsel %vm203_vm11, %v5496_v28, %v5380_v46  ;;  %v1342_v61 = vmax.f32 %v1332_v38, %v1340_v18  ;;  %v5704_v58 = vmax.f32 %v1277_v35, 0.0  ;;  %v413_v51 = vmax.f32 %v411_v34, 0.0  ;;  %v6824_v34 = vld [vmem:[#allocation86_spill] sm:$0xff] }
 0x44e   : > { %v5682_v62 = vadd.f32 %v799_v36, %v725_v13  ;;  %v5684_v23 = vpop.permute.xlu2 %2771  ;;  %v462_v24 = vpop.permute.xlu1 %461  ;;  %v410_v13 = vmul.f32 %v408_v43, %v5669_v0  ;;  %v5701_v36 = vmax.f32 %v572_v56, 0.0  ;;  %v1111_v19 = vsub.f32 %v6822_v7, %v1109_v31 }
 0x44f   : > { %v467_v48 = vsel %vm203_vm11, %v462_v24, %v4898_v2  ;;  %v2117_v22 = vpop.permute.xlu0 %2116  ;;  %v2054_v14 = vmul.f32 %v2052_v29, %v5666_v30  ;;  %v1278_v28 = vsub.f32 %v6823_v49, %v5663_v27  ;;  %v1747_v55 = vsub.f32 %v5650_v21, %v1745_v60  ;;  %v6828_v21 = vld [vmem:[#allocation104_spill] sm:$0xff] }
 0x450   : > { %v477_v57 = vmax.f32 %v467_v48, %v475_v16  ;;  %v2121_v37 = vsel %vm212_vm10, %v5380_v46, %v2117_v22  ;;  %v5712_v16 = vadd.f32 %v1043_v53, %v5562_v42  ;;  %v644_v31 = vmul.f32 %v5673_v4, %v5701_v36  ;;  %v6825_v22 = vld [vmem:[#allocation136_spill] sm:$0xff] }
 0x451   : > { %v2123_v32 = vmax.f32 %v2113_v39, %v2121_v37  ;;  %v5717_v35 = vmax.f32 %v1345_v15, 0.0  ;;  %v412_v18 = vsub.f32 %v408_v43, %v410_v13  ;;  %v1113_v48 = vmax.f32 %v1111_v19, 0.0  ;;  %v6826_v39 = vld [vmem:[#allocation137_spill] sm:$0xff] }
 0x452   : > { %v479_v24 = vmax.f32 %v4898_v2, %v477_v57  ;;  %v1344_v2 = vmax.f32 %v6819_v59, %v1342_v61  ;;  %v6827_v57 = vmax.f32 %v6825_v22, %v6826_v39  ;;  %v2056_v53 = vsub.f32 %v2052_v29, %v2054_v14 }
 0x453   : > { %v2125_v56 = vmax.f32 %v5380_v46, %v2123_v32  ;;  %v468_v46 = vsel %vm203_vm11, %v5287_v40, %v4895_v9  ;;  %v415_v15 = vadd.f32 %v413_v51, %v339_v41  ;;  %v2112_v59 = vsel %vm203_vm11, %v5642_v26, %v5383_v10  ;;  %v6829_v51 = vld [vmem:[#allocation44_spill] sm:$0xff] }
 0x454   : > { %v481_v38 = vsub.f32 %v6824_v34, %v479_v24  ;;  %v1815_v60 = vmax.f32 %v6828_v21, %v6827_v57  ;;  %v414_v29 = vmax.f32 %v412_v18, 0.0  ;;  %v1749_v40 = vmax.f32 %v1747_v55, 0.0  ;;  %v6831_v21 = vld [vmem:[#allocation21_spill] sm:$0xff] }
 0x455   : > { %v2127_v42 = vsub.f32 %v5094_v50, %v2125_v56  ;;  %v1115_v41 = vmul.f32 %v1113_v48, %v5712_v16  ;;  %v6830_v56 = vld [vmem:[#allocation123_spill] sm:$0xff]  ;;  %v646_v57 = vsub.f32 %v5673_v4, %v644_v31  ;;  %v1349_v18 = vmul.f32 %v5717_v35, %v5704_v58 }
 0x456   : > { %v483_v37 = vmax.f32 %v481_v38, 0.0  ;;  %v2115_v43 = vpop.permute.xlu2 %2114  ;;  %v472_v13 = vpop.permute.xlu1 %471  ;;  %v1817_v24 = vsub.f32 %v6829_v51, %v1815_v60  ;;  %v2058_v38 = vmax.f32 %v2056_v53, 0.0  ;;  %v416_v60 = vadd.f32 %v414_v29, %v5669_v0 }
 0x457   : > { %v2129_v61 = vmax.f32 %v2127_v42, 0.0  ;;  %v2120_v7 = vsel %vm212_vm10, %v5383_v10, %v2115_v43  ;;  %v476_v50 = vsel %vm212_vm10, %v4895_v9, %v472_v13  ;;  %v1346_v42 = vsub.f32 %v6831_v21, %v1344_v2  ;;  %v6832_v13 = vld [vmem:[#allocation87_spill] sm:$0xff] }
 0x458   : > { %v485_v19 = vmul.f32 %v483_v37, %v415_v15  ;;  %v2122_v32 = vmax.f32 %v2112_v59, %v2120_v7  ;;  %v478_v14 = vmax.f32 %v468_v46, %v476_v50  ;;  %v1819_v59 = vmax.f32 %v1817_v24, 0.0  ;;  %v6834_v7 = vld [vmem:[#allocation140_spill] sm:$0xff]  ;;  %v6836_v50 = vld [vmem:[#allocation117_spill] sm:$0xff] }
 0x459   : > { %v2131_v34 = vmul.f32 %v2129_v61, %v6830_v56  ;;  %v648_v51 = vmax.f32 %v646_v57, 0.0  ;;  %v1351_v29 = vsub.f32 %v5717_v35, %v1349_v18  ;;  %v1348_v24 = vmax.f32 %v1346_v42, 0.0 }
 0x45a   : > { %v487_v26 = vsub.f32 %v483_v37, %v485_v19  ;;  %v2124_v22 = vmax.f32 %v5383_v10, %v2122_v32  ;;  %v480_v39 = vmax.f32 %v4895_v9, %v478_v14  ;;  %v1117_v37 = vsub.f32 %v1113_v48, %v1115_v41  ;;  %v6833_v10 = vld [vmem:[#allocation139_spill] sm:$0xff] }
 0x45b   : > { %v2133_v55 = vsub.f32 %v2129_v61, %v2131_v34  ;;  %v6835_v9 = vmax.f32 %v6833_v10, %v6834_v7  ;;  %v2060_v32 = vadd.f32 %v2058_v38, %v5666_v30  ;;  %v1353_v57 = vmax.f32 %v1351_v29, 0.0 }
 0x45c   : > { %v489_v46 = vmax.f32 %v487_v26, 0.0  ;;  %v2126_v43 = vsub.f32 %v5088_v25, %v2124_v22  ;;  %v482_v53 = vsub.f32 %v6832_v13, %v480_v39  ;;  %v1751_v25 = vadd.f32 %v1749_v40, %v5656_v12  ;;  %v6837_v22 = vld [vmem:[#allocation53_spill] sm:$0xff] }
 0x45d   : > { %v714_v4 = vmax.f32 %v6836_v50, %v6835_v9  ;;  %v2135_v31 = vmax.f32 %v2133_v55, 0.0  ;;  %v1119_v34 = vmax.f32 %v1117_v37, 0.0  ;;  %v5769_v18 = vadd.f32 %v648_v51, %v5701_v36  ;;  %v6839_v50 = vld [vmem:[#allocation113_spill] sm:$0xff] }
 0x45e   : > { %v491_v19 = vadd.f32 %v489_v46, %v415_v15  ;;  %v2128_v2 = vmax.f32 %v2126_v43, 0.0  ;;  %v484_v61 = vmax.f32 %v482_v53, 0.0  ;;  %v1176_v14 = vpop.permute.xlu1 %1175  ;;  %v1173_v15 = vsel %vm203_vm11, %v5332_v6, %v4923_v45  ;;  %v6838_v43 = vld [vmem:[#allocation89_spill] sm:$0xff] }
 0x45f   : > { %v1181_v0 = vsel %vm212_vm10, %v4923_v45, %v1176_v14  ;;  %v5757_v48 = vadd.f32 %v2135_v31, %v6830_v56  ;;  %v1821_v38 = vmul.f32 %v1819_v59, %v1751_v25  ;;  %v716_v12 = vsub.f32 %v6837_v22, %v714_v4  ;;  %v6840_v4 = vld [vmem:[#allocation114_spill] sm:$0xff] }
 0x460   : > { %v2130_v41 = vmul.f32 %v2128_v2, %v2060_v32  ;;  %v486_v30 = vmul.f32 %v484_v61, %v416_v60  ;;  %v1183_v26 = vmax.f32 %v1173_v15, %v1181_v0  ;;  %v1280_v56 = vmax.f32 %v1278_v28, 0.0 }
 0x461   : > { %v1823_v55 = vsub.f32 %v1819_v59, %v1821_v38  ;;  %v1121_v46 = vadd.f32 %v1119_v34, %v5712_v16  ;;  %v718_v53 = vmax.f32 %v716_v12, 0.0  ;;  %v803_v37 = vmul.f32 %v491_v19, %v6744_v47 }
 0x462   : > { %v2132_v40 = vsub.f32 %v2128_v2, %v2130_v41  ;;  %v488_v39 = vsub.f32 %v484_v61, %v486_v30  ;;  %v1185_v35 = vmax.f32 %v4923_v45, %v1183_v26  ;;  %v1350_v42 = vmul.f32 %v1348_v24, %v1280_v56  ;;  %v6844_v26 = vld [vmem:[#allocation55_spill] sm:$0xff] }
 0x463   : > { %v1887_v45 = vsel %vm212_vm10, %v4945_v3, %v5439_v1  ;;  %v816_v16 = vsel %vm805_vm4, %v491_v19, 0.0  ;;  %v6841_v31 = vmax.f32 %v6839_v50, %v6840_v4  ;;  %v1825_v1 = vmax.f32 %v1823_v55, 0.0 }
 0x464   : > { %v2134_v6 = vmax.f32 %v2132_v40, 0.0  ;;  %v490_v21 = vmax.f32 %v488_v39, 0.0  ;;  %v1187_v13 = vsub.f32 %v6838_v43, %v1185_v35  ;;  %v806_v51 = vsel %vm805_vm4, %v803_v37, 0.0  ;;  %v6845_v37 = vld [vmem:[#allocation25_spill] sm:$0xff] }
 0x465   : > { %v720_v41 = vmul.f32 %v718_v53, %v5769_v18  ;;  %v5793_v30 = vadd.f32 %v1353_v57, %v5704_v58  ;;  %v1510_v39 = vmul.f32 %v5413_v11, %v6823_v49 }
 0x466   : > { %v492_v10 = vadd.f32 %v490_v21, %v416_v60  ;;  %v1875_v27 = vpop.permute.xlu1 %1874  ;;  %v5774_v28 = vadd.f32 %v2134_v6, %v2060_v32  ;;  %v1189_v36 = vmax.f32 %v1187_v13, 0.0  ;;  %v1352_v60 = vsub.f32 %v1348_v24, %v1350_v42  ;;  %v6842_v32 = vld [vmem:[#allocation119_spill] sm:$0xff] }
 0x467   : > { %v1879_v59 = vsel %vm203_vm11, %v1875_v27, %v4945_v3  ;;  %v1419_v2 = vmax.f32 %v6842_v32, %v6841_v31  ;;  %v6843_v24 = vld [vmem:[#allocation91_spill] sm:$0xff]  ;;  %v2474_v42 = vsel %vm212_vm10, %v5226_v63, %v5600_v33  ;;  %v722_v43 = vsub.f32 %v718_v53, %v720_v41  ;;  %v6846_v32 = vld [vmem:[#allocation144_spill] sm:$0xff]  ;;  %v6850_v41 = vld [vmem:[#allocation22_spill] sm:$0xff] }
 0x468   : > { %v804_v7 = vmul.f32 %v492_v10, %v6812_v17  ;;  %v817_v9 = vsel %vm805_vm4, %v492_v10, 0.0  ;;  %v1889_v47 = vmax.f32 %v1879_v59, %v1887_v45  ;;  %v1191_v14 = vmul.f32 %v1189_v36, %v1121_v46 }
 0x469   : > { %v818_v61 = vadd.f32 %v817_v9, %v816_v16  ;;  %v1354_v38 = vmax.f32 %v1352_v60, 0.0  ;;  %v1421_v22 = vsub.f32 %v6844_v26, %v1419_v2  ;;  %v2458_v10 = vmin.f32 %v6845_v37, %v5267_v44  ;;  %v6847_v2 = vld [vmem:[#allocation143_spill] sm:$0xff] }
 0x46a   : > { %v807_v0 = vsel %vm805_vm4, %v804_v7, 0.0  ;;  %v1891_v19 = vmax.f32 %v4945_v3, %v1889_v47  ;;  %v1193_v15 = vsub.f32 %v1189_v36, %v1191_v14  ;;  %v1827_v3 = vadd.f32 %v1825_v1, %v1751_v25 }
 0x46b   : > { %v808_v29 = vadd.f32 %v807_v0, %v806_v51  ;;  %v819_v17 = vrot.slane %v818_v61, 4  ;;  %v5806_v49 = vmax.f32 %v1421_v22, 0.0  ;;  %v1522_v25 = vsel %vm805_vm4, %v5413_v11, 0.0 }
 0x46c   : > { %v1893_v34 = vsub.f32 %v6843_v24, %v1891_v19  ;;  %v1195_v40 = vmax.f32 %v1193_v15, 0.0  ;;  %v5812_v7 = vadd.f32 %v1354_v38, %v1280_v56  ;;  %v1512_v53 = vsel %vm805_vm4, %v1510_v39, 0.0  ;;  %v6849_v56 = vld [vmem:[#allocation121_spill] sm:$0xff]  ;;  %v6851_v24 = vld [vmem:[#allocation138_spill] sm:$0xff] }
 0x46d   : > { %v809_v12 = vrot.slane %v808_v29, 4  ;;  %v820_v35 = vadd.f32 %v819_v17, %v818_v61  ;;  %v1425_v31 = vmul.f32 %v5806_v49, %v5793_v30  ;;  %v6848_v61 = vmax.f32 %v6846_v32, %v6847_v2 }
 0x46e   : > { %v1895_v6 = vmax.f32 %v1893_v34, 0.0  ;;  %v2462_v21 = vpop.permute.xlu1 %2461  ;;  %v1197_v57 = vadd.f32 %v1195_v40, %v1121_v46  ;;  %v2214_v1 = vmul.f32 %v5421_v52, %v6807_v20  ;;  %v2226_v15 = vsel %vm805_vm4, %v5421_v52, 0.0 }
 0x46f   : > { %v810_v58 = vadd.f32 %v809_v12, %v808_v29  ;;  %v2466_v55 = vsel %vm203_vm11, %v2462_v21, %v5226_v63  ;;  %v821_v36 = vrot.slane %v820_v35, 2  ;;  %v1420_v14 = vmax.f32 %v6849_v56, %v6848_v61  ;;  %v6852_v12 = vld [vmem:[#allocation13_spill] sm:$0xff] }
 0x470   : > { %v1897_v13 = vmul.f32 %v1895_v6, %v1827_v3  ;;  %v2476_v27 = vmin.f32 %v2466_v55, %v2474_v42  ;;  %v1509_v45 = vmul.f32 %v1197_v57, %v6813_v54  ;;  %v1521_v33 = vsel %vm805_vm4, %v1197_v57, 0.0 }
 0x471   : > { %v1523_v46 = vadd.f32 %v1522_v25, %v1521_v33  ;;  %v811_v9 = vrot.slane %v810_v58, 2  ;;  %v724_v54 = vmax.f32 %v722_v43, 0.0  ;;  %v822_v51 = vadd.f32 %v821_v36, %v820_v35  ;;  %v6853_v35 = vld [vmem:[#allocation54_spill] sm:$0xff] }
 0x472   : > { %v1899_v59 = vsub.f32 %v1895_v6, %v1897_v13  ;;  %v2478_v16 = vmin.f32 %v2458_v10, %v2476_v27  ;;  %v1511_v47 = vsel %vm805_vm4, %v1509_v45, 0.0  ;;  %v786_v34 = vsel %vm212_vm10, %v6851_v24, %v6850_v41 }
 0x473   : > { %v1513_v60 = vadd.f32 %v1512_v53, %v1511_v47  ;;  %v1524_v50 = vrot.slane %v1523_v46, 4  ;;  %v812_v38 = vadd.f32 %v811_v9, %v810_v58  ;;  %v2216_v6 = vsel %vm805_vm4, %v2214_v1, 0.0  ;;  %v6854_v53 = vld [vmem:[#allocation107_spill] sm:$0xff]  ;;  %v6855_v47 = vld [vmem:[#allocation76_spill] sm:$0xff] }
 0x474   : > { %v1901_v4 = vmax.f32 %v1899_v59, 0.0  ;;  %v5817_v11 = vmin.f32 %v5226_v63, %v2478_v16  ;;  %v823_v42 = vrot.slane %v822_v51, 1  ;;  %v726_v10 = vadd.f32 %v724_v54, %v5769_v18 }
 0x475   : > { %v1514_v0 = vrot.slane %v1513_v60, 4  ;;  %v1525_v19 = vadd.f32 %v1524_v50, %v1523_v46  ;;  %v1427_v25 = vsub.f32 %v5806_v49, %v1425_v31  ;;  %v813_v45 = vrot.slane %v812_v38, 1 }
 0x476   : > { %v1903_v29 = vadd.f32 %v1901_v4, %v1827_v3  ;;  %v774_v17 = vpop.permute.xlu1 %773  ;;  %2545 = vrot.lane.b32.xlu0 %v5817_v11, %s3277_s25  ;;  %2537 = vrot.lane.b32.xlu1 %v5817_v11, %s3278_s26  ;;  %v1422_v3 = vsub.f32 %v6853_v35, %v1420_v14  ;;  %v824_v4 = vadd.f32 %v823_v42, %v822_v51 }
 0x477   : > { %v778_v20 = vsel %vm203_vm11, %v774_v17, %v6851_v24  ;;  %v1515_v26 = vadd.f32 %v1514_v0, %v1513_v60  ;;  %v1526_v22 = vrot.slane %v1525_v19, 2  ;;  %v6856_v60 = vld [vmem:[#allocation141_spill] sm:$0xff]  ;;  %v814_v31 = vadd.f32 %v813_v45, %v812_v38 }
 0x478   : > { %v2215_v40 = vmul.f32 %v1903_v29, %v6852_v12  ;;  %v2227_v39 = vsel %vm805_vm4, %v1903_v29, 0.0  ;;  %v788_v52 = vmax.f32 %v778_v20, %v786_v34  ;;  %v1424_v46 = vmax.f32 %v1422_v3, 0.0 }
 0x479   : > { %v2228_v21 = vadd.f32 %v2227_v39, %v2226_v15  ;;  %v1516_v57 = vrot.slane %v1515_v26, 2  ;;  %v1527_v55 = vadd.f32 %v1526_v22, %v1525_v19  ;;  %v1491_v50 = vsel %vm212_vm10, %v6856_v60, %v6855_v47  ;;  %v6857_v22 = vld [vmem:[#allocation110_spill] sm:$0xff] }
 0x47a   : > { %v2217_v58 = vsel %vm805_vm4, %v2215_v40, 0.0  ;;  %v790_v27 = vmax.f32 %v6851_v24, %v788_v52  ;;  %v1429_v19 = vmax.f32 %v1427_v25, 0.0  ;;  %v1426_v41 = vmul.f32 %v1424_v46, %v5812_v7  ;;  %v6859_v52 = vld [vmem:[#allocation142_spill] sm:$0xff] }
 0x47b   : > { %v2218_v43 = vadd.f32 %v2217_v58, %v2216_v6  ;;  %v2229_v13 = vrot.slane %v2228_v21, 4  ;;  %v1517_v33 = vadd.f32 %v1516_v57, %v1515_v26  ;;  %v1528_v36 = vrot.slane %v1527_v55, 1  ;;  %v6858_v6 = vld [vmem:[#allocation37_spill] sm:$0xff] }
 0x47c   : > { %v792_v9 = vsub.f32 %v6854_v53, %v790_v27  ;;  %v1431_v35 = vadd.f32 %v1429_v19, %v5793_v30  ;;  %v1428_v3 = vsub.f32 %v1424_v46, %v1426_v41  ;;  %v1484_v42 = vsel %vm203_vm11, %v5640_v8, %v6859_v52 }
 0x47d   : > { %v2219_v59 = vrot.slane %v2218_v43, 4  ;;  %v2230_v16 = vadd.f32 %v2229_v13, %v2228_v21  ;;  %v1518_v32 = vrot.slane %v1517_v33, 1  ;;  %v1529_v2 = vadd.f32 %v1528_v36, %v1527_v55  ;;  %v6860_v36 = vld [vmem:[#allocation42_spill] sm:$0xff] }
 0x47e   : > { %v1478_v18 = vpop.permute.xlu1 %1477  ;;  %v794_v56 = vmax.f32 %v792_v9, 0.0  ;;  %v826_v21 = vmul.f32 %v6858_v6, %v5682_v62  ;;  %v838_v30 = vsel %vm805_vm4, %v5682_v62, 0.0  ;;  %v1430_v9 = vmax.f32 %v1428_v3, 0.0 }
 0x47f   : > { %v2220_v54 = vadd.f32 %v2219_v59, %v2218_v43  ;;  %v2231_v61 = vrot.slane %v2230_v16, 2  ;;  %v1483_v49 = vsel %vm203_vm11, %v1478_v18, %v6856_v60  ;;  %v1519_v14 = vadd.f32 %v1518_v32, %v1517_v33 }
 0x480   : > { %v1530_v1 = vadd.f32 %v1529_v2, %v824_v4  ;;  %v1493_v0 = vmax.f32 %v1483_v49, %v1491_v50  ;;  %v796_v15 = vmul.f32 %v794_v56, %v726_v10  ;;  %v6861_v4 = vld [vmem:[#allocation109_spill] sm:$0xff] }
 0x481   : > { %v2221_v29 = vrot.slane %v2220_v54, 2  ;;  %v2232_v17 = vadd.f32 %v2231_v61, %v2230_v16  ;;  %v1520_v51 = vadd.f32 %v1519_v14, %v814_v31  ;;  %v6862_v61 = vld [vmem:[#allocation98_spill] sm:$0xff] }
 0x482   : > { %v1495_v24 = vmax.f32 %v6856_v60, %v1493_v0  ;;  %v798_v26 = vsub.f32 %v794_v56, %v796_v15  ;;  %v2783_v49 = vsel %vm212_vm10, %v6862_v61, %v5646_v5  ;;  %v6863_v14 = vld [vmem:[#allocation90_spill] sm:$0xff] }
 0x483   : > { %v2222_v34 = vadd.f32 %v2221_v29, %v2220_v54  ;;  %v2233_v20 = vrot.slane %v2232_v17, 1  ;;  %v1432_v54 = vadd.f32 %v1430_v9, %v5812_v7  ;;  %v6869_v9 = vld [vmem:[#allocation70_spill] sm:$0xff] }
 0x484   : > { %v1497_v12 = vsub.f32 %v6857_v22, %v1495_v24  ;;  %v800_v38 = vmax.f32 %v798_v26, 0.0  ;;  %v6865_v24 = vld [vmem:[#allocation45_spill] sm:$0xff]  ;;  %v6866_v22 = vld [vmem:[#allocation111_spill] sm:$0xff] }
 0x485   : > { %v2223_v40 = vrot.slane %v2222_v34, 1  ;;  %v2234_v39 = vadd.f32 %v2233_v20, %v2232_v17 }
 0x486   : > { %v1499_v57 = vmax.f32 %v1497_v12, 0.0  ;;  %v1488_v55 = vpop.permute.xlu1 %1487  ;;  %v802_v13 = vadd.f32 %v800_v38, %v726_v10  ;;  %v828_v10 = vsel %vm805_vm4, %v826_v21, 0.0  ;;  %v6867_v38 = vld [vmem:[#allocation100_spill] sm:$0xff]  ;;  %v3172_v21 = vld [vmem:[%s3379_s24 + $0x18] sm:$0xff] }
 0x487   : > { %v2224_v58 = vadd.f32 %v2223_v40, %v2222_v34  ;;  %v5861_v43 = vadd.f32 %v2234_v39, %v1530_v1  ;;  %v1492_v27 = vsel %vm212_vm10, %v6859_v52, %v1488_v55  ;;  %v6864_v1 = vld [vmem:[#allocation43_spill] sm:$0xff]  ;;  %v2776_v34 = vsel %vm203_vm11, %v5684_v23, %v6865_v24 }
 0x488   : > { %v1501_v25 = vmul.f32 %v1499_v57, %v1431_v35  ;;  %v1494_v45 = vmax.f32 %v1484_v42, %v1492_v27  ;;  %v827_v46 = vmul.f32 %v6860_v36, %v802_v13  ;;  %v839_v8 = vsel %vm805_vm4, %v802_v13, 0.0 }
 0x489   : > { %v5867_v33 = vadd.f32 %v2224_v58, %v1520_v51  ;;  %v840_v59 = vadd.f32 %v839_v8, %v838_v30  ;;  %v2767_v0 = vmin.f32 %v6864_v1, %v6863_v14 }
 0x48a   : > { %v1503_v16 = vsub.f32 %v1499_v57, %v1501_v25  ;;  %v1496_v53 = vmax.f32 %v6859_v52, %v1494_v45  ;;  %v829_v47 = vsel %vm805_vm4, %v827_v46, 0.0  ;;  %v2149_v45 = vpop.permute.xlu0 %2148 }
 0x48b   : > { %v830_v60 = vadd.f32 %v829_v47, %v828_v10  ;;  %v841_v17 = vrot.slane %v840_v59, 4  ;;  %v2154_v10 = vsel %vm212_vm10, %v6869_v9, %v2149_v45 }
 0x48c   : > { %v1505_v50 = vmax.f32 %v1503_v16, 0.0  ;;  %v1498_v32 = vsub.f32 %v6861_v4, %v1496_v53 }
 0x48d   : > { %v831_v29 = vrot.slane %v830_v60, 4  ;;  %v842_v5 = vadd.f32 %v841_v17, %v840_v59 }
 0x48e   : > { %v1507_v62 = vadd.f32 %v1505_v50, %v1431_v35  ;;  %v1500_v2 = vmax.f32 %v1498_v32, 0.0  ;;  %v2770_v18 = vpop.permute.xlu1 %2769  ;;  %v6868_v35 = vld [vmem:[#allocation69_spill] sm:$0xff] }
 0x48f   : > { %v2775_v56 = vsel %vm203_vm11, %v2770_v18, %v6862_v61  ;;  %v832_v20 = vadd.f32 %v831_v29, %v830_v60  ;;  %v2768_v3 = vmin.f32 %v6868_v35, %v6867_v38  ;;  %v843_v57 = vrot.slane %v842_v5, 2 }
 0x490   : > { %v1502_v31 = vmul.f32 %v1500_v2, %v1432_v54  ;;  %v2785_v19 = vmin.f32 %v2775_v56, %v2783_v49  ;;  %v1531_v12 = vmul.f32 %v6866_v22, %v1507_v62  ;;  %v1543_v23 = vsel %vm805_vm4, %v1507_v62, 0.0  ;;  %v2143_v56 = vpop.permute.xlu2 %2142 }
 0x491   : > { %v833_v13 = vrot.slane %v832_v20, 2  ;;  %v844_v8 = vadd.f32 %v843_v57, %v842_v5 }
 0x492   : > { %v1504_v15 = vsub.f32 %v1500_v2, %v1502_v31  ;;  %v2787_v41 = vmin.f32 %v2767_v0, %v2785_v19  ;;  %v1533_v27 = vsel %vm805_vm4, %v1531_v12, 0.0  ;;  %v6870_v0 = vld [vmem:[#allocation17_spill] sm:$0xff]  ;;  %v6871_v19 = vld [vmem:[#allocation47_spill] sm:$0xff] }
 0x493   : > { %v834_v47 = vadd.f32 %v833_v13, %v832_v20  ;;  %v845_v62 = vrot.slane %v844_v8, 1  ;;  %v6872_v29 = vmin.f32 %v6870_v0, %v6871_v19  ;;  %v6873_v20 = vld [vmem:[#allocation28_spill] sm:$0xff]  ;;  %v6889_v19 = vld [vmem:[#allocation63_spill] sm:$0xff] }
 0x494   : > { %v1506_v51 = vmax.f32 %v1504_v15, 0.0  ;;  %v5884_v7 = vmin.f32 %v6862_v61, %v2787_v41  ;;  %v2147_v5 = vsel %vm203_vm11, %v2143_v56, %v6873_v20  ;;  %v6885_v56 = vld [vmem:[#allocation30_spill] sm:$0xff] }
 0x495   : > { %v846_v15 = vadd.f32 %v845_v62, %v844_v8  ;;  %v6882_v62 = vld [vmem:[#allocation127_spill] sm:$0xff] }
 0x496   : > { %v2780_v26 = vpop.permute.xlu1 %2779  ;;  %v1508_v40 = vadd.f32 %v1506_v51, %v1432_v54  ;;  %2853 = vrot.lane.b32.xlu0 %v5884_v7, %s3277_s25  ;;  %2845 = vrot.lane.b32.xlu1 %v5884_v7, %s3278_s26  ;;  %v835_v54 = vrot.slane %v834_v47, 1 }
 0x497   : > { %v2784_v39 = vsel %vm212_vm10, %v6865_v24, %v2780_v26 }
 0x498   : > { %v2786_v6 = vmin.f32 %v2776_v34, %v2784_v39  ;;  %v1532_v52 = vmul.f32 %v3172_v21, %v1508_v40  ;;  %v1544_v42 = vsel %vm805_vm4, %v1508_v40, 0.0  ;;  %v836_v26 = vadd.f32 %v835_v54, %v834_v47  ;;  %v6875_v21 = vld [vmem:[#allocation93_spill] sm:$0xff] }
 0x499   : > { %v1545_v55 = vadd.f32 %v1544_v42, %v1543_v23  ;;  %v6874_v23 = vld [vmem:[#allocation49_spill] sm:$0xff] }
 0x49a   : > { %v2788_v58 = vmin.f32 %v2768_v3, %v2786_v6  ;;  %v1534_v25 = vsel %vm805_vm4, %v1532_v52, 0.0  ;;  %v6876_v52 = vmin.f32 %v6874_v23, %v6875_v21  ;;  %v6878_v47 = vld [vmem:[#allocation125_spill] sm:$0xff]  ;;  %v2490_v23 = vrot.slane %v5817_v11, 7 }
 0x49b   : > { %v1535_v30 = vadd.f32 %v1534_v25, %v1533_v27  ;;  %v1546_v36 = vrot.slane %v1545_v55, 4  ;;  %v2489_v21 = vrot.slane %v6885_v56, 7 }
 0x49c   : > { %v5904_v46 = vmin.f32 %v6865_v24, %v2788_v58 }
 0x49d   : > { %v1536_v59 = vrot.slane %v1535_v30, 4  ;;  %v1547_v16 = vadd.f32 %v1546_v36, %v1545_v55 }
 0x49e   : > { %v2141_v53 = vpop.permute.xlu1 %2140  ;;  %2855 = vrot.lane.b32.xlu1 %v5904_v46, %s3277_s25 }
 0x49f   : > { %v2146_v60 = vsel %vm203_vm11, %v2141_v53, %v6869_v9  ;;  %v1537_v50 = vadd.f32 %v1536_v59, %v1535_v30  ;;  %v1548_v4 = vrot.slane %v1547_v16, 2 }
 0x4a0   : > { %v2156_v32 = vmin.f32 %v2146_v60, %v2154_v10  ;;  %v6877_v10 = vld [vmem:[#allocation124_spill] sm:$0xff] }
 0x4a1   : > { %v1538_v2 = vrot.slane %v1537_v50, 2  ;;  %v1549_v18 = vadd.f32 %v1548_v4, %v1547_v16  ;;  %v6879_v60 = vmax.f32 %v6877_v10, %v6878_v47 }
 0x4a2   : > { %v2158_v17 = vmin.f32 %v6872_v29, %v2156_v32  ;;  %v6881_v32 = vld [vmem:[#allocation126_spill] sm:$0xff] }
 0x4a3   : > { %v1539_v49 = vadd.f32 %v1538_v2, %v1537_v50  ;;  %v1550_v31 = vrot.slane %v1549_v18, 1  ;;  %v6880_v50 = vld [vmem:[#allocation120_spill] sm:$0xff]  ;;  %v6883_v2 = vmax.f32 %v6881_v32, %v6882_v62 }
 0x4a4   : > { %v2160_v39 = vmin.f32 %v6869_v9, %v2158_v17  ;;  %v5946_v4 = vmax.f32 %v6880_v50, %v6879_v60  ;;  %v6890_v17 = vmax.f32 %v6845_v37, %v5267_v44  ;;  %v6895_v44 = vld [vmem:[#allocation130_spill] sm:$0xff]  ;;  %v6896_v37 = vld [vmem:[#allocation131_spill] sm:$0xff]  ;;  %v2800_v60 = vrot.slane %v5904_v46, 7 }
 0x4a5   : > { %v1540_v41 = vrot.slane %v1539_v49, 1  ;;  %v1551_v51 = vadd.f32 %v1550_v31, %v1549_v18  ;;  %v6884_v18 = vld [vmem:[#allocation122_spill] sm:$0xff]  ;;  %v6887_v31 = vld [vmem:[#allocation83_spill] sm:$0xff] }
 0x4a6   : > { %v2151_v34 = vpop.permute.xlu1 %2150  ;;  %v2170_v57 = vrot.slane %v2160_v39, 7  ;;  %v2164_v58 = vrot.slane %v2160_v39, 1  ;;  %v5952_v54 = vmax.f32 %v6884_v18, %v6883_v2 }
 0x4a7   : > { %v2155_v22 = vsel %vm212_vm10, %v6873_v20, %v2151_v34  ;;  %v1541_v12 = vadd.f32 %v1540_v41, %v1539_v49  ;;  %v5919_v40 = vadd.f32 %v1551_v51, %v846_v15  ;;  %v6886_v49 = vld [vmem:[#allocation65_spill] sm:$0xff]  ;;  %v5970_v15 = vmax.f32 %v5226_v63, %v6890_v17  ;;  %v6891_v41 = vld [vmem:[#allocation132_spill] sm:$0xff] }
 0x4a8   : > { %v2157_v3 = vmin.f32 %v2147_v5, %v2155_v22  ;;  %v2175_v25 = vsel %vm188_vm9, %v2160_v39, %v2170_v57  ;;  %v6888_v0 = vmax.f32 %v6886_v49, %v6887_v31  ;;  %v6892_v51 = vld [vmem:[#allocation133_spill] sm:$0xff]  ;;  %v6894_v5 = vld [vmem:[#allocation128_spill] sm:$0xff]  ;;  %v6897_v22 = vmax.f32 %v6895_v44, %v6896_v37 }
 0x4a9   : > { %v5922_v6 = vadd.f32 %v1541_v12, %v836_v26  ;;  %v6893_v34 = vmax.f32 %v6891_v41, %v6892_v51  ;;  %v6898_v12 = vld [vmem:[#allocation129_spill] sm:$0xff] }
 0x4aa   : > { %v2159_v42 = vmin.f32 %v6876_v52, %v2157_v3  ;;  %v5964_v29 = vmax.f32 %v6889_v19, %v6888_v0  ;;  %v2484_v3 = vrot.slane %v5817_v11, 1  ;;  %v2483_v52 = vrot.slane %v6885_v56, 1 }
 0x4ab   : > { %v5982_v26 = vmax.f32 %v6894_v5, %v6893_v34 }
 0x4ac   : > { %v2161_v55 = vmin.f32 %v6873_v20, %v2159_v42  ;;  %v6899_v42 = vmax.f32 %v6864_v1, %v6863_v14  ;;  %v2494_v14 = vsel %vm188_vm9, %v6885_v56, %v2489_v21 }
 0x4ae   : > { %v2165_v13 = vrot.slane %v2161_v55, 1  ;;  %v2171_v27 = vrot.slane %v2161_v55, 7 }
 0x4b0   : > { %v2169_v45 = vsel %vm181_vm8, %v2165_v13, %v2161_v55  ;;  %v2172_v30 = vsel %vm188_vm9, %v2170_v57, %v2171_v27  ;;  %v2166_v36 = vsel %vm181_vm8, %v2164_v58, %v2165_v13  ;;  %v6010_v57 = vmax.f32 %v6862_v61, %v6899_v42  ;;  %v2536_v0 = vpop.permute.xlu0 %2535 }
 0x4b1   : > { %v2177_v8 = vmax.f32 %v2169_v45, %v2172_v30  ;;  %v2176_v59 = vmax.f32 %v2166_v36, %v2175_v25  ;;  %v2488_v13 = vsel %vm181_vm8, %v2484_v3, %v5817_v11  ;;  %v2491_v27 = vsel %vm188_vm9, %v2489_v21, %v2490_v23 }
 0x4b2   : > { %v2485_v25 = vsel %vm181_vm8, %v2483_v52, %v2484_v3  ;;  %v2496_v1 = vmax.f32 %v2488_v13, %v2491_v27  ;;  %v2793_v45 = vrot.slane %v5884_v7, 1  ;;  %v2799_v30 = vrot.slane %v5884_v7, 7 }
 0x4b3   : > { %v5932_v16 = vmax.f32 %v2161_v55, %v2177_v8  ;;  %v5934_v53 = vmax.f32 %v2160_v39, %v2176_v59  ;;  %v5994_v39 = vmax.f32 %v6898_v12, %v6897_v22  ;;  %v6900_v55 = vmax.f32 %v6868_v35, %v6867_v38 }
 0x4b4   : > { %v2495_v38 = vmax.f32 %v2485_v25, %v2494_v14  ;;  %v2794_v35 = vrot.slane %v5904_v46, 1  ;;  %v6034_v36 = vmax.f32 %v5817_v11, %v2496_v1  ;;  %v2804_v10 = vsel %vm188_vm9, %v5884_v7, %v2799_v30 }
 0x4b5   : > { %2192 = vrot.lane.b32.xlu1 %v5932_v16, %s3277_s25  ;;  %2190 = vrot.lane.b32.xlu0 %v5934_v53, %s3277_s25  ;;  %v6016_v58 = vmax.f32 %v6865_v24, %v6900_v55  ;;  %v2801_v2 = vsel %vm188_vm9, %v2799_v30, %v2800_v60  ;;  %v2534_v22 = vmin.f32 %v2488_v13, %v2491_v27 }
 0x4b6   : > { %2182 = vrot.lane.b32.xlu2 %v5934_v53, %s3278_s26  ;;  %v6037_v8 = vmax.f32 %v6885_v56, %v2495_v38  ;;  %v2795_v59 = vsel %vm181_vm8, %v2793_v45, %v2794_v35  ;;  %v2798_v62 = vsel %vm181_vm8, %v2794_v35, %v5904_v46  ;;  %v2541_v1 = vsel %vm203_vm11, %v2536_v0, %v6885_v56 }
 0x4b7   : > { %v2805_v47 = vmax.f32 %v2795_v59, %v2804_v10  ;;  %v2806_v49 = vmax.f32 %v2798_v62, %v2801_v2  ;;  %v2533_v13 = vmin.f32 %v2485_v25, %v2494_v14  ;;  %v2843_v30 = vmin.f32 %v2795_v59, %v2804_v10 }
 0x4b9   : > { %v6050_v32 = vmax.f32 %v5884_v7, %v2805_v47  ;;  %v6062_v31 = vmax.f32 %v5904_v46, %v2806_v49 }
 0x4bd   : > { %2365 = vrot.lane.b32.xlu1 %v5946_v4, %s3277_s25  ;;  %2359 = vrot.lane.b32.xlu0 %v5952_v54, %s3278_s26 }
 0x4be   : > { %2543 = vrot.lane.b32.xlu2 %v6885_v56, %s3277_s25 }
 0x4c5   : > { %2427 = vrot.lane.b32.xlu1 %v5970_v15, %s3278_s26  ;;  %2425 = vrot.lane.b32.xlu0 %v5964_v29, %s3278_s26 }
 0x4c6   : > { %2847 = vrot.lane.b32.xlu2 %v5904_v46, %s3278_s26 }
 0x4cd   : > { %2667 = vrot.lane.b32.xlu1 %v5982_v26, %s3278_s26  ;;  %2435 = vrot.lane.b32.xlu0 %v5970_v15, %s3277_s25 }
 0x4ce   : > { %2184 = vrot.lane.b32.xlu2 %v5932_v16, %s3278_s26 }
 0x4d5   : > { %2677 = vrot.lane.b32.xlu1 %v5994_v39, %s3277_s25  ;;  %2675 = vrot.lane.b32.xlu0 %v5982_v26, %s3277_s25 }
 0x4d6   : > { %2357 = vrot.lane.b32.xlu2 %v5946_v4, %s3278_s26 }
 0x4dd   : > { %2743 = vrot.lane.b32.xlu1 %v6010_v57, %s3277_s25  ;;  %2737 = vrot.lane.b32.xlu0 %v6016_v58, %s3278_s26 }
 0x4de   : > { %2367 = vrot.lane.b32.xlu2 %v5952_v54, %s3277_s25 }
 0x4e5   : > { %2503 = vrot.lane.b32.xlu1 %v6034_v36, %s3278_s26  ;;  %2501 = vrot.lane.b32.xlu0 %v6037_v8, %s3278_s26 }
 0x4e6   : > { %2433 = vrot.lane.b32.xlu2 %v5964_v29, %s3277_s25 }
 0x4e8   : > { %v2538_v17 = vpop.permute.xlu1 %2537  ;;  %v2546_v41 = vpop.permute.xlu0 %2545 }
 0x4e9   : > { %v2542_v51 = vsel %vm203_vm11, %v2538_v17, %v5817_v11  ;;  %v2550_v34 = vsel %vm212_vm10, %v5817_v11, %v2546_v41 }
 0x4ea   : > { %v2552_v37 = vmin.f32 %v2542_v51, %v2550_v34 }
 0x4ec   : > { %v2554_v21 = vmin.f32 %v2534_v22, %v2552_v37  ;;  %v2844_v22 = vmin.f32 %v2798_v62, %v2801_v2 }
 0x4ed   : > { %2811 = vrot.lane.b32.xlu1 %v6050_v32, %s3278_s26  ;;  %2511 = vrot.lane.b32.xlu0 %v6034_v36, %s3277_s25 }
 0x4ee   : > { %2669 = vrot.lane.b32.xlu2 %v5994_v39, %s3278_s26  ;;  %v2556_v38 = vmin.f32 %v5817_v11, %v2554_v21 }
 0x4f0   : > { %v2560_v60 = vrot.slane %v2556_v38, 1  ;;  %v2566_v51 = vrot.slane %v2556_v38, 7 }
 0x4f5   : > { %2821 = vrot.lane.b32.xlu1 %v6062_v31, %s3277_s25  ;;  %2819 = vrot.lane.b32.xlu0 %v6050_v32, %s3277_s25 }
 0x4f6   : > { %2735 = vrot.lane.b32.xlu2 %v6010_v57, %s3278_s26 }
 0x4fe   : > { %2745 = vrot.lane.b32.xlu2 %v6016_v58, %s3277_s25 }
 0x506   : > { %2509 = vrot.lane.b32.xlu2 %v6037_v8, %s3277_s25 }
 0x508   : > { %v2846_v3 = vpop.permute.xlu1 %2845  ;;  %v2854_v23 = vpop.permute.xlu0 %2853 }
 0x509   : > { %v2851_v52 = vsel %vm203_vm11, %v2846_v3, %v5884_v7  ;;  %v2859_v42 = vsel %vm212_vm10, %v5884_v7, %v2854_v23  ;;  %v2564_v3 = vsel %vm181_vm8, %v2560_v60, %v2556_v38 }
 0x50a   : > { %v2861_v35 = vmin.f32 %v2851_v52, %v2859_v42 }
 0x50c   : > { %v2863_v49 = vmin.f32 %v2843_v30, %v2861_v35 }
 0x50e   : > { %2813 = vrot.lane.b32.xlu2 %v6062_v31, %s3278_s26  ;;  %v2865_v23 = vmin.f32 %v5884_v7, %v2863_v49 }
 0x510   : > { %v2183_v44 = vpop.permute.xlu2 %2182  ;;  %v2856_v17 = vpop.permute.xlu1 %2855 }
 0x511   : > { %v2860_v25 = vsel %vm212_vm10, %v5904_v46, %v2856_v17 }
 0x518   : > { %v2544_v55 = vpop.permute.xlu2 %2543 }
 0x519   : > { %v2549_v45 = vsel %vm212_vm10, %v6885_v56, %v2544_v55  ;;  %v2875_v55 = vrot.slane %v2865_v23, 7 }
 0x51a   : > { %v2551_v27 = vmin.f32 %v2541_v1, %v2549_v45 }
 0x51c   : > { %v2553_v47 = vmin.f32 %v2533_v13, %v2551_v27  ;;  %v2869_v13 = vrot.slane %v2865_v23, 1  ;;  %v2188_v27 = vsel %vm203_vm11, %v2183_v44, %v5934_v53 }
 0x51e   : > { %v2555_v41 = vmin.f32 %v6885_v56, %v2553_v47 }
 0x520   : > { %v2559_v34 = vrot.slane %v2555_v41, 1  ;;  %v2565_v37 = vrot.slane %v2555_v41, 7  ;;  %v2848_v0 = vpop.permute.xlu2 %2847 }
 0x521   : > { %v2852_v14 = vsel %vm203_vm11, %v2848_v0, %v5904_v46 }
 0x522   : > { %v2570_v59 = vsel %vm188_vm9, %v2555_v41, %v2565_v37  ;;  %v2862_v10 = vmin.f32 %v2852_v14, %v2860_v25  ;;  %v2567_v21 = vsel %vm188_vm9, %v2565_v37, %v2566_v51  ;;  %v2561_v52 = vsel %vm181_vm8, %v2559_v34, %v2560_v60 }
 0x523   : > { %v2572_v42 = vmax.f32 %v2564_v3, %v2567_v21  ;;  %v2571_v62 = vmax.f32 %v2561_v52, %v2570_v59 }
 0x524   : > { %v2864_v2 = vmin.f32 %v2844_v22, %v2862_v10 }
 0x525   : > { %v6099_v1 = vmax.f32 %v2556_v38, %v2572_v42  ;;  %v6101_v35 = vmax.f32 %v2555_v41, %v2571_v62  ;;  %v2880_v41 = vsel %vm188_vm9, %v2865_v23, %v2875_v55 }
 0x526   : > { %v2866_v45 = vmin.f32 %v5904_v46, %v2864_v2 }
 0x527   : > { %2579 = vrot.lane.b32.xlu0 %v6099_v1, %s3278_s26  ;;  %2585 = vrot.lane.b32.xlu1 %v6101_v35, %s3277_s25  ;;  %v2193_v30 = vpop.permute.xlu1 %2192  ;;  %v2191_v47 = vpop.permute.xlu0 %2190 }
 0x528   : > { %v2870_v60 = vrot.slane %v2866_v45, 1  ;;  %v2876_v49 = vrot.slane %v2866_v45, 7  ;;  %2577 = vrot.lane.b32.xlu2 %v6101_v35, %s3278_s26  ;;  %v2197_v38 = vsel %vm212_vm10, %v5932_v16, %v2193_v30  ;;  %v2185_v17 = vpop.permute.xlu2 %2184  ;;  %v2196_v44 = vsel %vm212_vm10, %v5934_v53, %v2191_v47  ;;  %v3173_v30 = vld [vmem:[%s3379_s24 + $0x20] sm:$0xff] }
 0x529   : > { %v2189_v51 = vsel %vm203_vm11, %v2185_v17, %v5932_v16  ;;  %v2198_v34 = vmax.f32 %v2188_v27, %v2196_v44 }
 0x52a   : > { %v2874_v37 = vsel %vm181_vm8, %v2870_v60, %v2866_v45  ;;  %v2199_v22 = vmax.f32 %v2189_v51, %v2197_v38  ;;  %v2877_v0 = vsel %vm188_vm9, %v2875_v55, %v2876_v49  ;;  %v2871_v3 = vsel %vm181_vm8, %v2869_v13, %v2870_v60  ;;  %v3174_v49 = vld [vmem:[%s3379_s24 + $0x28] sm:$0xff] }
 0x52b   : > { %v2200_v25 = vmax.f32 %v5934_v53, %v2198_v34  ;;  %v2882_v14 = vmax.f32 %v2874_v37, %v2877_v0  ;;  %v2881_v59 = vmax.f32 %v2871_v3, %v2880_v41 }
 0x52c   : > { %v2201_v10 = vmax.f32 %v5932_v16, %v2199_v22 }
 0x52d   : > { %v2202_v21 = vsub.f32 %v6869_v9, %v2200_v25  ;;  %v6125_v52 = vmax.f32 %v2866_v45, %v2882_v14  ;;  %v6127_v42 = vmax.f32 %v2865_v23, %v2881_v59 }
 0x52e   : > { %v2203_v62 = vsub.f32 %v6873_v20, %v2201_v10 }
 0x52f   : > { %v2204_v2 = vmax.f32 %v2202_v21, 0.0  ;;  %2889 = vrot.lane.b32.xlu1 %v6125_v52, %s3278_s26  ;;  %2887 = vrot.lane.b32.xlu0 %v6127_v42, %s3278_s26  ;;  %v2360_v25 = vpop.permute.xlu0 %2359 }
 0x530   : > { %v2205_v53 = vmax.f32 %v2203_v62, 0.0  ;;  %2587 = vrot.lane.b32.xlu2 %v6099_v1, %s3277_s25  ;;  %v2358_v37 = vpop.permute.xlu2 %2357 }
 0x531   : > { %v2206_v9 = vmul.f32 %v2204_v2, %v5774_v28 }
 0x532   : > { %v2207_v16 = vmul.f32 %v2205_v53, %v5757_v48 }
 0x533   : > { %v2208_v23 = vsub.f32 %v2204_v2, %v2206_v9 }
 0x534   : > { %v2209_v55 = vsub.f32 %v2205_v53, %v2207_v16 }
 0x535   : > { %v2210_v20 = vmax.f32 %v2208_v23, 0.0  ;;  %v2366_v23 = vpop.permute.xlu1 %2365 }
 0x536   : > { %v2211_v45 = vmax.f32 %v2209_v55, 0.0 }
 0x537   : > { %v2212_v13 = vadd.f32 %v2210_v20, %v5774_v28  ;;  %2897 = vrot.lane.b32.xlu0 %v6125_v52, %s3277_s25  ;;  %v2426_v20 = vpop.permute.xlu0 %2425 }
 0x538   : > { %v2213_v27 = vadd.f32 %v2211_v45, %v5757_v48  ;;  %2895 = vrot.lane.b32.xlu2 %v6127_v42, %s3277_s25  ;;  %v2368_v53 = vpop.permute.xlu2 %2367 }
 0x539   : > { %v2236_v47 = vmul.f32 %v3173_v30, %v2212_v13  ;;  %v2248_v60 = vsel %vm805_vm4, %v2212_v13, 0.0 }
 0x53a   : > { %v2237_v38 = vmul.f32 %v3174_v49, %v2213_v27  ;;  %v2249_v17 = vsel %vm805_vm4, %v2213_v27, 0.0 }
 0x53b   : > { %v2238_v44 = vsel %vm805_vm4, %v2236_v47, 0.0  ;;  %v2250_v41 = vadd.f32 %v2249_v17, %v2248_v60 }
 0x53c   : > { %v2239_v28 = vsel %vm805_vm4, %v2237_v38, 0.0 }
 0x53d   : > { %v2240_v51 = vadd.f32 %v2239_v28, %v2238_v44  ;;  %v2251_v34 = vrot.slane %v2250_v41, 4  ;;  %v2428_v13 = vpop.permute.xlu1 %2427 }
 0x53f   : > { %v2241_v48 = vrot.slane %v2240_v51, 4  ;;  %v2252_v22 = vadd.f32 %v2251_v34, %v2250_v41  ;;  %v2436_v27 = vpop.permute.xlu0 %2435  ;;  %v2363_v34 = vsel %vm203_vm11, %v2358_v37, %v5946_v4 }
 0x540   : > { %v2434_v45 = vpop.permute.xlu2 %2433 }
 0x541   : > { %v2242_v0 = vadd.f32 %v2241_v48, %v2240_v51  ;;  %v2253_v3 = vrot.slane %v2252_v22, 2  ;;  %v2371_v51 = vsel %vm212_vm10, %v5946_v4, %v2366_v23  ;;  %v2432_v48 = vsel %vm203_vm11, %v2428_v13, %v5970_v15 }
 0x543   : > { %v2243_v14 = vrot.slane %v2242_v0, 2  ;;  %v2254_v59 = vadd.f32 %v2253_v3, %v2252_v22  ;;  %v2372_v22 = vsel %vm212_vm10, %v5952_v54, %v2368_v53 }
 0x545   : > { %v2244_v10 = vadd.f32 %v2243_v14, %v2242_v0  ;;  %v2255_v21 = vrot.slane %v2254_v59, 1  ;;  %v2668_v47 = vpop.permute.xlu1 %2667  ;;  %v2431_v0 = vsel %vm203_vm11, %v2426_v20, %v5964_v29 }
 0x547   : > { %v2245_v62 = vrot.slane %v2244_v10, 1  ;;  %v2256_v2 = vadd.f32 %v2255_v21, %v2254_v59  ;;  %v2676_v60 = vpop.permute.xlu0 %2675  ;;  %v2373_v59 = vmax.f32 %v2363_v34, %v2371_v51 }
 0x548   : > { %v2670_v30 = vpop.permute.xlu2 %2669 }
 0x549   : > { %v2246_v9 = vadd.f32 %v2245_v62, %v2244_v10  ;;  %v6151_v16 = vadd.f32 %v2256_v2, %v5919_v40  ;;  %v2439_v40 = vsel %vm212_vm10, %v5964_v29, %v2434_v45  ;;  %v2364_v10 = vsel %vm203_vm11, %v2360_v25, %v5952_v54 }
 0x54a   : > { %v2441_v3 = vmax.f32 %v2431_v0, %v2439_v40  ;;  %v2374_v21 = vmax.f32 %v2364_v10, %v2372_v22  ;;  %v2375_v53 = vmax.f32 %v5946_v4, %v2373_v59 }
 0x54b   : > { %v6154_v55 = vadd.f32 %v2246_v9, %v5922_v6  ;;  %v2440_v6 = vsel %vm212_vm10, %v5970_v15, %v2436_v27 }
 0x54c   : > { %v2442_v14 = vmax.f32 %v2432_v48, %v2440_v6  ;;  %v2443_v37 = vmax.f32 %v5964_v29, %v2441_v3  ;;  %v2376_v23 = vmax.f32 %v5952_v54, %v2374_v21  ;;  %v2681_v29 = vsel %vm212_vm10, %v5982_v26, %v2676_v60  ;;  %v6189_v54 = vld [vmem:[%s3379_s24 + $0x38] sm:$0xff] }
 0x54d   : > { %v2678_v38 = vpop.permute.xlu1 %2677 }
 0x54e   : > { %v2444_v2 = vmax.f32 %v5970_v15, %v2442_v14  ;;  %v2445_v25 = vsub.f32 %v6880_v50, %v2443_v37  ;;  %v6185_v15 = vld [vmem:[%s3379_s24 + $0x30] sm:$0xff] }
 0x54f   : > { %v2738_v17 = vpop.permute.xlu0 %2737  ;;  %v2377_v4 = vsub.f32 %v6185_v15, %v2375_v53 }
 0x550   : > { %v2736_v49 = vpop.permute.xlu2 %2735  ;;  %v2446_v27 = vsub.f32 %v6884_v18, %v2444_v2  ;;  %v2447_v60 = vmax.f32 %v2445_v25, 0.0 }
 0x551   : > { %v2741_v45 = vsel %vm203_vm11, %v2736_v49, %v6010_v57  ;;  %v2673_v49 = vsel %vm203_vm11, %v2668_v47, %v5982_v26  ;;  %v2379_v48 = vmax.f32 %v2377_v4, 0.0 }
 0x552   : > { %v2683_v6 = vmax.f32 %v2673_v49, %v2681_v29  ;;  %v2448_v51 = vmax.f32 %v2446_v27, 0.0 }
 0x553   : > { %v2449_v2 = vmul.f32 %v2447_v60, %v2379_v48 }
 0x554   : > { %v2685_v37 = vmax.f32 %v5982_v26, %v2683_v6 }
 0x555   : > { %v2744_v41 = vpop.permute.xlu1 %2743  ;;  %v2451_v27 = vsub.f32 %v2447_v60, %v2449_v2 }
 0x556   : > { %v2749_v20 = vsel %vm212_vm10, %v6010_v57, %v2744_v41  ;;  %v2378_v41 = vsub.f32 %v6189_v54, %v2376_v23 }
 0x557   : > { %v2502_v28 = vpop.permute.xlu0 %2501  ;;  %v2751_v40 = vmax.f32 %v2741_v45, %v2749_v20  ;;  %v2453_v6 = vmax.f32 %v2451_v27, 0.0 }
 0x558   : > { %v2746_v44 = vpop.permute.xlu2 %2745  ;;  %v2507_v3 = vsel %vm203_vm11, %v2502_v28, %v6037_v8  ;;  %v2380_v47 = vmax.f32 %v2378_v41, 0.0  ;;  %v2742_v28 = vsel %vm203_vm11, %v2738_v17, %v6016_v58 }
 0x559   : > { %v2753_v22 = vmax.f32 %v6010_v57, %v2751_v40  ;;  %v2750_v14 = vsel %vm212_vm10, %v6016_v58, %v2746_v44 }
 0x55a   : > { %v2450_v57 = vmul.f32 %v2448_v51, %v2380_v47  ;;  %v2752_v44 = vmax.f32 %v2742_v28, %v2750_v14 }
 0x55b   : > { %v2755_v23 = vsub.f32 %v6894_v5, %v2753_v22 }
 0x55c   : > { %v2452_v29 = vsub.f32 %v2448_v51, %v2450_v57  ;;  %v2754_v17 = vmax.f32 %v6016_v58, %v2752_v44 }
 0x55d   : > { %v2504_v9 = vpop.permute.xlu1 %2503  ;;  %v2757_v4 = vmax.f32 %v2755_v23, 0.0 }
 0x55e   : > { %v2508_v0 = vsel %vm203_vm11, %v2504_v9, %v6034_v36  ;;  %v2674_v9 = vsel %vm203_vm11, %v2670_v30, %v5994_v39  ;;  %v2756_v51 = vsub.f32 %v6898_v12, %v2754_v17 }
 0x55f   : > { %v2512_v13 = vpop.permute.xlu0 %2511 }
 0x560   : > { %v2510_v62 = vpop.permute.xlu2 %2509  ;;  %v2516_v18 = vsel %vm212_vm10, %v6034_v36, %v2512_v13 }
 0x561   : > { %v2515_v50 = vsel %vm212_vm10, %v6037_v8, %v2510_v62  ;;  %v2518_v21 = vmax.f32 %v2508_v0, %v2516_v18  ;;  %v2682_v62 = vsel %vm212_vm10, %v5994_v39, %v2678_v38  ;;  %v6901_v38 = vld [vmem:[#allocation85_spill] sm:$0xff] }
 0x562   : > { %v2517_v10 = vmax.f32 %v2507_v3, %v2515_v50  ;;  %v2684_v13 = vmax.f32 %v2674_v9, %v2682_v62  ;;  %v2687_v25 = vsub.f32 %v6901_v38, %v2685_v37  ;;  %v2454_v50 = vmax.f32 %v2452_v29, 0.0  ;;  %v6902_v3 = vld [vmem:[#allocation84_spill] sm:$0xff] }
 0x563   : > { %v2520_v45 = vmax.f32 %v6034_v36, %v2518_v21  ;;  %v2758_v21 = vmax.f32 %v2756_v51, 0.0 }
 0x564   : > { %v2519_v20 = vmax.f32 %v6037_v8, %v2517_v10  ;;  %v2686_v41 = vmax.f32 %v5994_v39, %v2684_v13  ;;  %v2689_v49 = vmax.f32 %v2687_v25, 0.0  ;;  %v2455_v39 = vadd.f32 %v2453_v6, %v2379_v48 }
 0x565   : > { %v2812_v59 = vpop.permute.xlu1 %2811  ;;  %v2522_v8 = vsub.f32 %v5226_v63, %v2520_v45 }
 0x566   : > { %v2817_v5 = vsel %vm203_vm11, %v2812_v59, %v6050_v32  ;;  %v2521_v40 = vsub.f32 %v6889_v19, %v2519_v20  ;;  %v2759_v60 = vmul.f32 %v2757_v4, %v2689_v49  ;;  %v2688_v14 = vsub.f32 %v6902_v3, %v2686_v41 }
 0x567   : > { %v2820_v53 = vpop.permute.xlu0 %2819  ;;  %v2524_v0 = vmax.f32 %v2522_v8, 0.0  ;;  %v2456_v59 = vadd.f32 %v2454_v50, %v2380_v47 }
 0x568   : > { %v2814_v34 = vpop.permute.xlu2 %2813  ;;  %v2825_v26 = vsel %vm212_vm10, %v6050_v32, %v2820_v53  ;;  %v2523_v22 = vmax.f32 %v2521_v40, 0.0  ;;  %v2761_v10 = vsub.f32 %v2757_v4, %v2759_v60  ;;  %v2690_v9 = vmax.f32 %v2688_v14, 0.0 }
 0x569   : > { %v2827_v36 = vmax.f32 %v2817_v5, %v2825_v26  ;;  %v2818_v63 = vsel %vm203_vm11, %v2814_v34, %v6062_v31  ;;  %v2526_v37 = vmul.f32 %v2524_v0, %v2456_v59 }
 0x56a   : > { %v2525_v62 = vmul.f32 %v2523_v22, %v2455_v39  ;;  %v2760_v28 = vmul.f32 %v2758_v21, %v2690_v9 }
 0x56b   : > { %v2829_v58 = vmax.f32 %v6050_v32, %v2827_v36  ;;  %v2763_v32 = vmax.f32 %v2761_v10, 0.0  ;;  %v2528_v23 = vsub.f32 %v2524_v0, %v2526_v37 }
 0x56c   : > { %v2527_v53 = vsub.f32 %v2523_v22, %v2525_v62  ;;  %v2762_v27 = vsub.f32 %v2758_v21, %v2760_v28 }
 0x56d   : > { %v2822_v18 = vpop.permute.xlu1 %2821  ;;  %v2831_v12 = vsub.f32 %v6862_v61, %v2829_v58  ;;  %v2765_v29 = vadd.f32 %v2763_v32, %v2689_v49  ;;  %v2530_v4 = vmax.f32 %v2528_v23, 0.0 }
 0x56e   : > { %v2826_v19 = vsel %vm212_vm10, %v6062_v31, %v2822_v18  ;;  %v2764_v6 = vmax.f32 %v2762_v27, 0.0 }
 0x56f   : > { %v2828_v2 = vmax.f32 %v2818_v63, %v2826_v19  ;;  %v2833_v20 = vmax.f32 %v2831_v12, 0.0  ;;  %v2532_v60 = vadd.f32 %v2530_v4, %v2456_v59 }
 0x571   : > { %v2830_v44 = vmax.f32 %v6062_v31, %v2828_v2  ;;  %v2529_v31 = vmax.f32 %v2527_v53, 0.0  ;;  %v2835_v40 = vmul.f32 %v2833_v20, %v2765_v29 }
 0x573   : > { %v2531_v50 = vadd.f32 %v2529_v31, %v2455_v39  ;;  %v2837_v0 = vsub.f32 %v2833_v20, %v2835_v40 }
 0x575   : > { %v2839_v59 = vmax.f32 %v2837_v0, 0.0 }
 0x582   : > { %v2578_v30 = vpop.permute.xlu2 %2577 }
 0x583   : > { %v2583_v48 = vsel %vm203_vm11, %v2578_v30, %v6101_v35  ;;  %v2832_v30 = vsub.f32 %v6865_v24, %v2830_v44 }
 0x585   : > { %v2834_v22 = vmax.f32 %v2832_v30, 0.0 }
 0x58a   : > { %v2588_v57 = vpop.permute.xlu2 %2587 }
 0x58b   : > { %v2592_v47 = vsel %vm212_vm10, %v6099_v1, %v2588_v57 }
 0x592   : > { %v2896_v8 = vpop.permute.xlu2 %2895 }
 0x599   : > { %v2586_v45 = vpop.permute.xlu1 %2585  ;;  %v2580_v34 = vpop.permute.xlu0 %2579 }
 0x59a   : > { %v2591_v61 = vsel %vm212_vm10, %v6101_v35, %v2586_v45  ;;  %v2584_v13 = vsel %vm203_vm11, %v2580_v34, %v6099_v1 }
 0x59b   : > { %v2593_v25 = vmax.f32 %v2583_v48, %v2591_v61  ;;  %v2594_v26 = vmax.f32 %v2584_v13, %v2592_v47 }
 0x59d   : > { %v2595_v17 = vmax.f32 %v6101_v35, %v2593_v25  ;;  %v2596_v5 = vmax.f32 %v6099_v1, %v2594_v26  ;;  %v2901_v35 = vsel %vm212_vm10, %v6127_v42, %v2896_v8 }
 0x59f   : > { %v2597_v36 = vsub.f32 %v6885_v56, %v2595_v17  ;;  %v2598_v41 = vsub.f32 %v5817_v11, %v2596_v5  ;;  %v2766_v56 = vadd.f32 %v2764_v6, %v2690_v9  ;;  %v2841_v9 = vadd.f32 %v2839_v59, %v2765_v29 }
 0x5a1   : > { %v2599_v18 = vmax.f32 %v2597_v36, 0.0  ;;  %v2600_v51 = vmax.f32 %v2598_v41, 0.0  ;;  %v2888_v49 = vpop.permute.xlu0 %2887  ;;  %v2836_v39 = vmul.f32 %v2834_v22, %v2766_v56  ;;  %v2890_v62 = vpop.permute.xlu1 %2889 }
 0x5a2   : > { %v2893_v24 = vsel %vm203_vm11, %v2888_v49, %v6127_v42  ;;  %v2894_v53 = vsel %vm203_vm11, %v2890_v62, %v6125_v52 }
 0x5a3   : > { %v2601_v1 = vmul.f32 %v2599_v18, %v2531_v50  ;;  %v2602_v58 = vmul.f32 %v2600_v51, %v2532_v60  ;;  %v2903_v14 = vmax.f32 %v2893_v24, %v2901_v35  ;;  %v2838_v28 = vsub.f32 %v2834_v22, %v2836_v39 }
 0x5a5   : > { %v2603_v19 = vsub.f32 %v2599_v18, %v2601_v1  ;;  %v2604_v11 = vsub.f32 %v2600_v51, %v2602_v58  ;;  %v2905_v63 = vmax.f32 %v6127_v42, %v2903_v14  ;;  %v2840_v27 = vmax.f32 %v2838_v28, 0.0 }
 0x5a7   : > { %v2605_v10 = vmax.f32 %v2603_v19, 0.0  ;;  %v2606_v21 = vmax.f32 %v2604_v11, 0.0  ;;  %v2907_v37 = vsub.f32 %v5884_v7, %v2905_v63  ;;  %v2842_v40 = vadd.f32 %v2840_v27, %v2766_v56 }
 0x5a9   : > { %v2607_v2 = vadd.f32 %v2605_v10, %v2531_v50  ;;  %v2608_v12 = vadd.f32 %v2606_v21, %v2532_v60  ;;  %v2909_v57 = vmax.f32 %v2907_v37, 0.0  ;;  %v2898_v32 = vpop.permute.xlu0 %2897 }
 0x5aa   : > { %v2902_v23 = vsel %vm212_vm10, %v6125_v52, %v2898_v32 }
 0x5ab   : > { %v2919_v42 = vmul.f32 %v2607_v2, %v6901_v38  ;;  %v2931_v44 = vsel %vm805_vm4, %v2607_v2, 0.0  ;;  %v2920_v20 = vmul.f32 %v2608_v12, %v6902_v3  ;;  %v2932_v7 = vsel %vm805_vm4, %v2608_v12, 0.0 }
 0x5ac   : > { %v2933_v45 = vadd.f32 %v2932_v7, %v2931_v44  ;;  %v2911_v34 = vmul.f32 %v2909_v57, %v2841_v9  ;;  %v2904_v48 = vmax.f32 %v2894_v53, %v2902_v23 }
 0x5ad   : > { %v2921_v47 = vsel %vm805_vm4, %v2919_v42, 0.0  ;;  %v2922_v61 = vsel %vm805_vm4, %v2920_v20, 0.0 }
 0x5ae   : > { %v2923_v13 = vadd.f32 %v2922_v61, %v2921_v47  ;;  %v2934_v25 = vrot.slane %v2933_v45, 4  ;;  %v2906_v26 = vmax.f32 %v6125_v52, %v2904_v48  ;;  %v2913_v38 = vsub.f32 %v2909_v57, %v2911_v34 }
 0x5b0   : > { %v2924_v29 = vrot.slane %v2923_v13, 4  ;;  %v2935_v31 = vadd.f32 %v2934_v25, %v2933_v45  ;;  %v2908_v3 = vsub.f32 %v5904_v46, %v2906_v26  ;;  %v2915_v30 = vmax.f32 %v2913_v38, 0.0 }
 0x5b2   : > { %v2925_v4 = vadd.f32 %v2924_v29, %v2923_v13  ;;  %v2936_v17 = vrot.slane %v2935_v31, 2  ;;  %v2910_v5 = vmax.f32 %v2908_v3, 0.0  ;;  %v2917_v18 = vadd.f32 %v2915_v30, %v2841_v9 }
 0x5b4   : > { %v2926_v8 = vrot.slane %v2925_v4, 2  ;;  %v2937_v36 = vadd.f32 %v2936_v17, %v2935_v31  ;;  %v2912_v41 = vmul.f32 %v2910_v5, %v2842_v40  ;;  %v2941_v0 = vmul.f32 %v6185_v15, %v2917_v18 }
 0x5b5   : > { %v2953_v1 = vsel %vm805_vm4, %v2917_v18, 0.0 }
 0x5b6   : > { %v2927_v6 = vadd.f32 %v2926_v8, %v2925_v4  ;;  %v2938_v50 = vrot.slane %v2937_v36, 1  ;;  %v2914_v52 = vsub.f32 %v2910_v5, %v2912_v41 }
 0x5b8   : > { %v2928_v60 = vrot.slane %v2927_v6, 1  ;;  %v2939_v51 = vadd.f32 %v2938_v50, %v2937_v36  ;;  %v2916_v49 = vmax.f32 %v2914_v52, 0.0 }
 0x5ba   : > { %v2929_v22 = vadd.f32 %v2928_v60, %v2927_v6  ;;  %v2940_v46 = vadd.f32 %v2939_v51, %v5861_v43  ;;  %v2918_v35 = vadd.f32 %v2916_v49, %v2842_v40  ;;  %v2943_v43 = vsel %vm805_vm4, %v2941_v0, 0.0 }
 0x5bc   : > { %v2930_v24 = vadd.f32 %v2929_v22, %v5867_v33  ;;  %2965 = vst.msk [vmem:[%s6268_s27 + $0x1] sm:$0x1] %vm2963_vm5, %v2940_v46  ;;  %v2942_v58 = vmul.f32 %v6189_v54, %v2918_v35  ;;  %v2954_v14 = vsel %vm805_vm4, %v2918_v35, 0.0 }
 0x5bd   : > { %v2955_v56 = vadd.f32 %v2954_v14, %v2953_v1 }
 0x5be   : > { %2964 = vst.msk [vmem:[%s6268_s27] sm:$0x1] %vm2963_vm5, %v2930_v24  ;;  %v2944_v33 = vsel %vm805_vm4, %v2942_v58, 0.0 }
 0x5bf   : > { %v2945_v15 = vadd.f32 %v2944_v33, %v2943_v43  ;;  %v2956_v19 = vrot.slane %v2955_v56, 4 }
 0x5c1   : > { %v2946_v11 = vrot.slane %v2945_v15, 4  ;;  %v2957_v63 = vadd.f32 %v2956_v19, %v2955_v56 }
 0x5c3   : > { %v2947_v39 = vadd.f32 %v2946_v11, %v2945_v15  ;;  %v2958_v59 = vrot.slane %v2957_v63, 2 }
 0x5c5   : > { %v2948_v54 = vrot.slane %v2947_v39, 2  ;;  %v2959_v10 = vadd.f32 %v2958_v59, %v2957_v63 }
 0x5c7   : > { %v2949_v21 = vadd.f32 %v2948_v54, %v2947_v39  ;;  %v2960_v62 = vrot.slane %v2959_v10, 1 }
 0x5c9   : > { %v2950_v37 = vrot.slane %v2949_v21, 1  ;;  %v2961_v2 = vadd.f32 %v2960_v62, %v2959_v10 }
 0x5cb   : > { %v2951_v12 = vadd.f32 %v2950_v37, %v2949_v21  ;;  %v2962_v57 = vadd.f32 %v2961_v2, %v6151_v16 }
 0x5cd   : > { %v2952_v32 = vadd.f32 %v2951_v12, %v6154_v55  ;;  %2967 = vst.msk [vmem:[%s6268_s27 + $0x3] sm:$0x1] %vm2963_vm5, %v2962_v57 }
 0x5cf   : > { %2966 = vst.msk [vmem:[%s6268_s27 + $0x2] sm:$0x1] %vm2963_vm5, %v2952_v32 }
 0x5d0   : > { %3234 = shalt.err (!%p3231_p4)
}
 0x5d1   : > { %3086 = dma.vmem_to_hbm [thread:$0]  (%p3339_p11), %s2982_s3, 64, %s2984_s4, %s2969_s10  }
 0x5d2 PF: > { %s2995_s21 = sand.u32 1, %s3261_s6   ;;  %p6903_p7 = scmp.ge.s32.totalorder %s3273_s9, 2 }
 0x5d3   : > { %s2996_s23 = scalar_lea.sflag [#allocation4], %s2995_s21 }
 0x5d4   : > { %p3093_p5 = pnand %p6903_p7, %p3343_p12 }
 0x5d6   : > { %p3094_p8 = pneg %p3093_p5 }
 0x5d8   : > { %3256 = dma.done.wait (%p3094_p8), %s2996_s23, 64  }
 0x5d9   : > { %3258 = vsyncadd (%p3094_p8), %s2996_s23, 4294967232  ;;  %p14_p10 = scmp.ge.s32.totalorder %s3314_s12, 4   ;;  %s6904_s6 = smov %s3265_s7 }
 0x5da   : > { %s6905_s7 = smov %s3269_s8  ;;  %s6906_s8 = smov %s3326_s15 }
 0x5db   : > { %s6907_s9 = smov %s3314_s12  ;;  %16 = sbr.rel (!%p14_p10) target bundleno = 5 (0x5), region = 72 }
 0x5e0   :  { %3002 = vsyncpa [#allocation3], 1 }
 0x5e1   :  { %3004 = vsyncpa [#allocation3 + $0x1], 1 }
 0x5e2   :  { %3005 = vsyncpa [#allocation4], 1 }
 0x5e3   :  { %3007 = vsyncpa [#allocation4 + $0x1], 1 }

</bundles_post_ra>
